<compile_context>
chip_gen: v7x
topology: tpu7x:2x2x1
jax: 0.10.0
libtpu: 0.0.40
codegen_flags: <defaults>
</compile_context>

<pallas_src>
import functools

import jax
import jax.numpy as jnp
from jax.experimental import pallas as pl
from jax.experimental.pallas import tpu as pltpu

EMBED_DIM = 100      # embed_dim = 100 in the reference module
SEQ_LEN = 50         # implied by nn.Linear(embed_dim * 50, 128)
HIDDEN1 = 128
HIDDEN2 = 64

LANE = 128
SUBLANE = 8
HIDDEN2_PAD = 128    # 64  -> 128 so every matmul is (., 128) x (128, 128)
OUT_PAD = 128        # lane-dense output slab; real classes live in the first lanes


def _round_up(x, m):
    return (x + m - 1) // m * m


def _fused_kernel(ids_ref, t1_ref, w23_ref, bias_ref, o_ref, onehot_ref, *,
                  vocab_pad):
    """One-hot build -> single fc1 matmul (emb folded into W1) -> fc2+ReLU -> fc3."""
    ids = ids_ref[...]                                   # (TB, SEQ)  int32
    bias = bias_ref[...]                                 # (3, 128)   f32
    tb = ids.shape[0]

    lane_iota = jax.lax.broadcasted_iota(jnp.int32, (tb, vocab_pad), 1)

    # Positional one-hot (TB, SEQ*VP) written into VMEM scratch: 50 cheap
    # compare + lane-aligned store pairs; nothing is live across iterations, so
    # the static unroll keeps vreg pressure flat.
    for s in range(SEQ_LEN):
        tok = ids[:, s:s + 1]                            # (TB, 1)
        onehot_ref[:, s * vocab_pad:(s + 1) * vocab_pad] = (
            lane_iota == tok).astype(jnp.bfloat16)

    # fc1: embedding already folded into t1 offline -> ONE long-K MXU matmul.
    h1 = jnp.dot(onehot_ref[...], t1_ref[...],
                 preferred_element_type=jnp.float32)     # (TB, 128) f32
    h1 = jnp.maximum(h1 + bias[0:1, :], 0.0)             # fc1 bias + ReLU
    # dropout(p=0.5): identity at inference time

    w2 = w23_ref[0:HIDDEN1, :]                           # (128, 128) bf16
    h2 = jnp.dot(h1.astype(jnp.bfloat16), w2,
                 preferred_element_type=jnp.float32)
    h2 = jnp.maximum(h2 + bias[1:2, :], 0.0)             # fc2 bias + ReLU
    # dropout: identity at inference time

    w3 = w23_ref[HIDDEN1:HIDDEN1 + HIDDEN2_PAD, :]       # (128, 128) bf16
    o_ref[...] = jnp.dot(h2.astype(jnp.bfloat16), w3,
                         preferred_element_type=jnp.float32) + bias[2:3, :]


def init_params(key, vocab_size, embed_dim, num_classes):
    """Deterministic synthetic parameters (logical shapes match the PyTorch module)."""
    assert embed_dim == EMBED_DIM
    ks = jax.random.split(key, 7)
    in1 = embed_dim * SEQ_LEN
    return {
        "embedding": jax.random.normal(ks[0], (vocab_size, embed_dim), jnp.float32) * 0.1,
        # linear weights stored as (in, out) == transpose of nn.Linear's (out, in)
        "w1": jax.random.normal(ks[1], (in1, HIDDEN1), jnp.float32) * (1.0 / jnp.sqrt(in1)),
        "b1": jax.random.normal(ks[2], (HIDDEN1,), jnp.float32) * 0.05,
        "w2": jax.random.normal(ks[3], (HIDDEN1, HIDDEN2), jnp.float32) * (1.0 / jnp.sqrt(HIDDEN1)),
        "b2": jax.random.normal(ks[4], (HIDDEN2,), jnp.float32) * 0.05,
        "w3": jax.random.normal(ks[5], (HIDDEN2, num_classes), jnp.float32) * (1.0 / jnp.sqrt(HIDDEN2)),
        "b3": jax.random.normal(ks[6], (num_classes,), jnp.float32) * 0.05,
    }


def pack_params(params):
    """Fold embedding into fc1, pad to (8,128)-friendly shapes, cast weights to bf16."""
    vocab = params["embedding"].shape[0]
    num_classes = params["w3"].shape[1]
    vp = _round_up(vocab, LANE)

    # Fused table: T[s*vp + v, :] = Emb[v, :] @ W1_s  (f32 contraction, one bf16 round).
    w1 = params["w1"].reshape(SEQ_LEN, EMBED_DIM, HIDDEN1)
    t = jnp.einsum("ve,seh->svh", params["embedding"], w1)          # (50, vocab, 128)
    t_p = jnp.zeros((SEQ_LEN, vp, HIDDEN1), jnp.float32).at[:, :vocab, :].set(t)
    t1 = t_p.reshape(SEQ_LEN * vp, HIDDEN1).astype(jnp.bfloat16)

    # W2 (128,64)->(128,128) and W3 (64,C)->(128,128) stacked into one (256,128) tensor.
    w23 = jnp.zeros((HIDDEN1 + HIDDEN2_PAD, OUT_PAD), jnp.float32)
    w23 = w23.at[:HIDDEN1, :HIDDEN2].set(params["w2"])
    w23 = w23.at[HIDDEN1:HIDDEN1 + HIDDEN2, :num_classes].set(params["w3"])
    w23 = w23.astype(jnp.bfloat16)

    bias = jnp.zeros((3, LANE), jnp.float32)
    bias = bias.at[0, :HIDDEN1].set(params["b1"])
    bias = bias.at[1, :HIDDEN2].set(params["b2"])
    bias = bias.at[2, :num_classes].set(params["b3"])
    return {"t1": t1, "w23": w23, "bias": bias, "vocab": vocab,
            "vocab_pad": vp, "num_classes": num_classes}


_SINGLE_BUFFER_WEIGHTS = None   # resolved on first call (pl.Buffered(1) supported?)


def _const_spec(shape, single_buffer):
    if single_buffer:
        # constant index_map -> the second pipeline buffer is never used; single-buffer it
        return pl.BlockSpec(shape, lambda i: (0, 0), pipeline_mode=pl.Buffered(1))
    return pl.BlockSpec(shape, lambda i: (0, 0))


def _run(ids, packed, tb, b_pad, single_buffer):
    vp = packed["vocab_pad"]
    k1 = SEQ_LEN * vp
    t1, w23, bias = packed["t1"], packed["w23"], packed["bias"]

    flops = 2 * b_pad * (k1 * HIDDEN1 + HIDDEN1 * LANE + LANE * LANE)
    bytes_accessed = (ids.size * 4 + t1.size * 2 + w23.size * 2 + bias.size * 4
                      + b_pad * OUT_PAD * 4)
    resident = t1.size * 2 + w23.size * 2 + SUBLANE * LANE * 4        # weights + bias pad
    per_step = 2 * (tb * LANE * 4 + tb * OUT_PAD * 4) + tb * k1 * 2   # ids/out (x2) + scratch
    vmem_limit = min(int(resident + per_step + (8 << 20)), 48 << 20)

    kernel = functools.partial(_fused_kernel, vocab_pad=vp)
    return pl.pallas_call(
        kernel,
        out_shape=jax.ShapeDtypeStruct((b_pad, OUT_PAD), jnp.float32),
        grid=(b_pad // tb,),
        in_specs=[
            pl.BlockSpec((tb, SEQ_LEN), lambda i: (i, 0)),               # token ids (tiled)
            _const_spec((k1, LANE), single_buffer),                      # fused emb@W1 table
            _const_spec((HIDDEN1 + HIDDEN2_PAD, LANE), single_buffer),   # W2;W3
            _const_spec((3, LANE), single_buffer),                       # biases
        ],
        out_specs=pl.BlockSpec((tb, OUT_PAD), lambda i: (i, 0)),         # lane-dense slab
        scratch_shapes=[pltpu.VMEM((tb, k1), jnp.bfloat16)],             # one-hot scratch
        compiler_params=pltpu.CompilerParams(
            dimension_semantics=("parallel",),        # v7x: batch tiles split across TCs
            vmem_limit_bytes=vmem_limit,
        ),
        cost_estimate=pl.CostEstimate(
            flops=int(flops), transcendentals=0, bytes_accessed=int(bytes_accessed)),
    )(ids, t1, w23, bias)


def text_classifier_forward(token_ids, packed):
    """token_ids: (B, SEQ_LEN) int -> logits (B, num_classes) float32."""
    global _SINGLE_BUFFER_WEIGHTS
    B, seq = token_ids.shape
    assert seq == SEQ_LEN
    n_classes = packed["num_classes"]

    # Clamp out-of-range ids (PyTorch would error; silent zero-row would hide bugs).
    ids = jnp.clip(token_ids.astype(jnp.int32), 0, packed["vocab"] - 1)

    # Batch tile: multiple of 8 sublanes, <=256 rows, and >=2 grid steps whenever the
    # batch allows it so both v7x TensorCores get work on the "parallel" axis.
    b8 = _round_up(B, SUBLANE)
    if b8 <= SUBLANE:
        tb = b8
    else:
        tb = min(256, _round_up(b8 // 2, SUBLANE))
    b_pad = _round_up(B, tb)
    if b_pad != B:
        ids = jnp.pad(ids, ((0, b_pad - B), (0, 0)))     # pad rows use token 0; sliced away

    if _SINGLE_BUFFER_WEIGHTS is None:
        try:
            out = jax.block_until_ready(_run(ids, packed, tb, b_pad, True))
            _SINGLE_BUFFER_WEIGHTS = True
        except Exception:
            # pl.Buffered(1) not supported by this JAX/Mosaic build -> default buffering.
            _SINGLE_BUFFER_WEIGHTS = False
            out = _run(ids, packed, tb, b_pad, False)
    else:
        out = _run(ids, packed, tb, b_pad, _SINGLE_BUFFER_WEIGHTS)
    return out[:B, :n_classes]


def _reference_forward(token_ids, params):
    """Pure-JAX f32 reference mirroring the PyTorch forward (eval mode, dropout=identity)."""
    B = token_ids.shape[0]
    x = jnp.take(params["embedding"], token_ids, axis=0).reshape(B, -1)
    x = jnp.maximum(x @ params["w1"] + params["b1"][None, :], 0.0)
    x = jnp.maximum(x @ params["w2"] + params["b2"][None, :], 0.0)
    return x @ params["w3"] + params["b3"][None, :]


if __name__ == "__main__":
    BATCH = 2
    VOCAB = 128
    NUM_CLASSES = 4   # len(le.classes_) in the original script; synthetic here

    key = jax.random.PRNGKey(0)
    k_ids, k_params = jax.random.split(key)

    token_ids = jax.random.randint(k_ids, (BATCH, SEQ_LEN), 0, VOCAB, dtype=jnp.int32)
    params = init_params(k_params, VOCAB, EMBED_DIM, NUM_CLASSES)
    packed = pack_params(params)

    logits = jax.block_until_ready(text_classifier_forward(token_ids, packed))
    ref = jax.block_until_ready(_reference_forward(token_ids, params))

    assert logits.shape == (BATCH, NUM_CLASSES)
    max_diff = float(jnp.max(jnp.abs(logits - ref)))
    # bf16 weights (intentional inference precision) -> ~1e-3 drift vs f32 reference.
    assert jnp.allclose(logits, ref, atol=2e-2, rtol=2e-2), f"mismatch vs reference: {max_diff}"

    print("KERNEL_OK")
</pallas_src>

<mosaic_0001>
module attributes {stable_mosaic.version = 11 : i64} {
  func.func @_fused_kernel(%arg0: i32, %arg1: memref<8x50xi32, #tpu.memory_space<vmem>>, %arg2: memref<6400x128xbf16, #tpu.memory_space<vmem>>, %arg3: memref<256x128xbf16, #tpu.memory_space<vmem>>, %arg4: memref<3x128xf32, #tpu.memory_space<vmem>>, %arg5: memref<8x128xf32, #tpu.memory_space<vmem>>, %arg6: memref<8x6400xbf16, #tpu.memory_space<vmem>>) attributes {dimension_semantics = [#tpu.dimension_semantics<parallel>], iteration_bounds = array<i64: 1>, scalar_prefetch = 0 : i64, scratch_operands = 1 : i64, tpu.core_type = #tpu.core_type<tc>, window_params = [{transform_indices = @transform_0, window_bounds = array<i64: 8, 50>}, {pipeline_mode = #tpu.pipeline_mode<synchronous>, transform_indices = @transform_1, window_bounds = array<i64: 6400, 128>}, {pipeline_mode = #tpu.pipeline_mode<synchronous>, transform_indices = @transform_2, window_bounds = array<i64: 256, 128>}, {pipeline_mode = #tpu.pipeline_mode<synchronous>, transform_indices = @transform_3, window_bounds = array<i64: 3, 128>}, {transform_indices = @transform_4, window_bounds = array<i64: 8, 128>}]} {
    %c0 = arith.constant 0 : index
    %c0_0 = arith.constant 0 : index
    %0 = vector.load %arg1[%c0, %c0_0] : memref<8x50xi32, #tpu.memory_space<vmem>>, vector<8x50xi32>
    %c0_1 = arith.constant 0 : index
    %c0_2 = arith.constant 0 : index
    %1 = vector.load %arg4[%c0_1, %c0_2] : memref<3x128xf32, #tpu.memory_space<vmem>>, vector<3x128xf32>
    %2 = tpu.iota {dimensions = array<i32: 1>} : vector<8x128xi32>
    %3 = vector.extract_strided_slice %0 {offsets = [0, 0], sizes = [8, 1], strides = [1, 1]} : vector<8x50xi32> to vector<8x1xi32>
    %4 = vector.broadcast %3 : vector<8x1xi32> to vector<8x128xi32>
    %5 = arith.cmpi eq, %2, %4 : vector<8x128xi32>
    %6 = arith.extui %5 : vector<8x128xi1> to vector<8x128xi32>
    %7 = arith.sitofp %6 : vector<8x128xi32> to vector<8x128xf32>
    %8 = arith.truncf %7 : vector<8x128xf32> to vector<8x128xbf16>
    %c0_3 = arith.constant 0 : index
    %c0_4 = arith.constant 0 : index
    %9 = vector.load %arg6[%c0_3, %c0_4] : memref<8x6400xbf16, #tpu.memory_space<vmem>>, vector<8x128xbf16>
    tpu.vector_store %arg6[%c0_3, %c0_4], %8 {strides = array<i32>} : memref<8x6400xbf16, #tpu.memory_space<vmem>>, vector<8x128xbf16>,
    %10 = vector.extract_strided_slice %0 {offsets = [0, 1], sizes = [8, 1], strides = [1, 1]} : vector<8x50xi32> to vector<8x1xi32>
    %11 = vector.broadcast %10 : vector<8x1xi32> to vector<8x128xi32>
    %12 = arith.cmpi eq, %2, %11 : vector<8x128xi32>
    %13 = arith.extui %12 : vector<8x128xi1> to vector<8x128xi32>
    %14 = arith.sitofp %13 : vector<8x128xi32> to vector<8x128xf32>
    %15 = arith.truncf %14 : vector<8x128xf32> to vector<8x128xbf16>
    %c0_5 = arith.constant 0 : index
    %c128 = arith.constant 128 : index
    %16 = vector.load %arg6[%c0_5, %c128] : memref<8x6400xbf16, #tpu.memory_space<vmem>>, vector<8x128xbf16>
    tpu.vector_store %arg6[%c0_5, %c128], %15 {strides = array<i32>} : memref<8x6400xbf16, #tpu.memory_space<vmem>>, vector<8x128xbf16>,
    %17 = vector.extract_strided_slice %0 {offsets = [0, 2], sizes = [8, 1], strides = [1, 1]} : vector<8x50xi32> to vector<8x1xi32>
    %18 = vector.broadcast %17 : vector<8x1xi32> to vector<8x128xi32>
    %19 = arith.cmpi eq, %2, %18 : vector<8x128xi32>
    %20 = arith.extui %19 : vector<8x128xi1> to vector<8x128xi32>
    %21 = arith.sitofp %20 : vector<8x128xi32> to vector<8x128xf32>
    %22 = arith.truncf %21 : vector<8x128xf32> to vector<8x128xbf16>
    %c0_6 = arith.constant 0 : index
    %c256 = arith.constant 256 : index
    %23 = vector.load %arg6[%c0_6, %c256] : memref<8x6400xbf16, #tpu.memory_space<vmem>>, vector<8x128xbf16>
    tpu.vector_store %arg6[%c0_6, %c256], %22 {strides = array<i32>} : memref<8x6400xbf16, #tpu.memory_space<vmem>>, vector<8x128xbf16>,
    %24 = vector.extract_strided_slice %0 {offsets = [0, 3], sizes = [8, 1], strides = [1, 1]} : vector<8x50xi32> to vector<8x1xi32>
    %25 = vector.broadcast %24 : vector<8x1xi32> to vector<8x128xi32>
    %26 = arith.cmpi eq, %2, %25 : vector<8x128xi32>
    %27 = arith.extui %26 : vector<8x128xi1> to vector<8x128xi32>
    %28 = arith.sitofp %27 : vector<8x128xi32> to vector<8x128xf32>
    %29 = arith.truncf %28 : vector<8x128xf32> to vector<8x128xbf16>
    %c0_7 = arith.constant 0 : index
    %c384 = arith.constant 384 : index
    %30 = vector.load %arg6[%c0_7, %c384] : memref<8x6400xbf16, #tpu.memory_space<vmem>>, vector<8x128xbf16>
    tpu.vector_store %arg6[%c0_7, %c384], %29 {strides = array<i32>} : memref<8x6400xbf16, #tpu.memory_space<vmem>>, vector<8x128xbf16>,
    %31 = vector.extract_strided_slice %0 {offsets = [0, 4], sizes = [8, 1], strides = [1, 1]} : vector<8x50xi32> to vector<8x1xi32>
    %32 = vector.broadcast %31 : vector<8x1xi32> to vector<8x128xi32>
    %33 = arith.cmpi eq, %2, %32 : vector<8x128xi32>
    %34 = arith.extui %33 : vector<8x128xi1> to vector<8x128xi32>
    %35 = arith.sitofp %34 : vector<8x128xi32> to vector<8x128xf32>
    %36 = arith.truncf %35 : vector<8x128xf32> to vector<8x128xbf16>
    %c0_8 = arith.constant 0 : index
    %c512 = arith.constant 512 : index
    %37 = vector.load %arg6[%c0_8, %c512] : memref<8x6400xbf16, #tpu.memory_space<vmem>>, vector<8x128xbf16>
    tpu.vector_store %arg6[%c0_8, %c512], %36 {strides = array<i32>} : memref<8x6400xbf16, #tpu.memory_space<vmem>>, vector<8x128xbf16>,
    %38 = vector.extract_strided_slice %0 {offsets = [0, 5], sizes = [8, 1], strides = [1, 1]} : vector<8x50xi32> to vector<8x1xi32>
    %39 = vector.broadcast %38 : vector<8x1xi32> to vector<8x128xi32>
    %40 = arith.cmpi eq, %2, %39 : vector<8x128xi32>
    %41 = arith.extui %40 : vector<8x128xi1> to vector<8x128xi32>
    %42 = arith.sitofp %41 : vector<8x128xi32> to vector<8x128xf32>
    %43 = arith.truncf %42 : vector<8x128xf32> to vector<8x128xbf16>
    %c0_9 = arith.constant 0 : index
    %c640 = arith.constant 640 : index
    %44 = vector.load %arg6[%c0_9, %c640] : memref<8x6400xbf16, #tpu.memory_space<vmem>>, vector<8x128xbf16>
    tpu.vector_store %arg6[%c0_9, %c640], %43 {strides = array<i32>} : memref<8x6400xbf16, #tpu.memory_space<vmem>>, vector<8x128xbf16>,
    %45 = vector.extract_strided_slice %0 {offsets = [0, 6], sizes = [8, 1], strides = [1, 1]} : vector<8x50xi32> to vector<8x1xi32>
    %46 = vector.broadcast %45 : vector<8x1xi32> to vector<8x128xi32>
    %47 = arith.cmpi eq, %2, %46 : vector<8x128xi32>
    %48 = arith.extui %47 : vector<8x128xi1> to vector<8x128xi32>
    %49 = arith.sitofp %48 : vector<8x128xi32> to vector<8x128xf32>
    %50 = arith.truncf %49 : vector<8x128xf32> to vector<8x128xbf16>
    %c0_10 = arith.constant 0 : index
    %c768 = arith.constant 768 : index
    %51 = vector.load %arg6[%c0_10, %c768] : memref<8x6400xbf16, #tpu.memory_space<vmem>>, vector<8x128xbf16>
    tpu.vector_store %arg6[%c0_10, %c768], %50 {strides = array<i32>} : memref<8x6400xbf16, #tpu.memory_space<vmem>>, vector<8x128xbf16>,
    %52 = vector.extract_strided_slice %0 {offsets = [0, 7], sizes = [8, 1], strides = [1, 1]} : vector<8x50xi32> to vector<8x1xi32>
    %53 = vector.broadcast %52 : vector<8x1xi32> to vector<8x128xi32>
    %54 = arith.cmpi eq, %2, %53 : vector<8x128xi32>
    %55 = arith.extui %54 : vector<8x128xi1> to vector<8x128xi32>
    %56 = arith.sitofp %55 : vector<8x128xi32> to vector<8x128xf32>
    %57 = arith.truncf %56 : vector<8x128xf32> to vector<8x128xbf16>
    %c0_11 = arith.constant 0 : index
    %c896 = arith.constant 896 : index
    %58 = vector.load %arg6[%c0_11, %c896] : memref<8x6400xbf16, #tpu.memory_space<vmem>>, vector<8x128xbf16>
    tpu.vector_store %arg6[%c0_11, %c896], %57 {strides = array<i32>} : memref<8x6400xbf16, #tpu.memory_space<vmem>>, vector<8x128xbf16>,
    %59 = vector.extract_strided_slice %0 {offsets = [0, 8], sizes = [8, 1], strides = [1, 1]} : vector<8x50xi32> to vector<8x1xi32>
    %60 = vector.broadcast %59 : vector<8x1xi32> to vector<8x128xi32>
    %61 = arith.cmpi eq, %2, %60 : vector<8x128xi32>
    %62 = arith.extui %61 : vector<8x128xi1> to vector<8x128xi32>
    %63 = arith.sitofp %62 : vector<8x128xi32> to vector<8x128xf32>
    %64 = arith.truncf %63 : vector<8x128xf32> to vector<8x128xbf16>
    %c0_12 = arith.constant 0 : index
    %c1024 = arith.constant 1024 : index
    %65 = vector.load %arg6[%c0_12, %c1024] : memref<8x6400xbf16, #tpu.memory_space<vmem>>, vector<8x128xbf16>
    tpu.vector_store %arg6[%c0_12, %c1024], %64 {strides = array<i32>} : memref<8x6400xbf16, #tpu.memory_space<vmem>>, vector<8x128xbf16>,
    %66 = vector.extract_strided_slice %0 {offsets = [0, 9], sizes = [8, 1], strides = [1, 1]} : vector<8x50xi32> to vector<8x1xi32>
    %67 = vector.broadcast %66 : vector<8x1xi32> to vector<8x128xi32>
    %68 = arith.cmpi eq, %2, %67 : vector<8x128xi32>
    %69 = arith.extui %68 : vector<8x128xi1> to vector<8x128xi32>
    %70 = arith.sitofp %69 : vector<8x128xi32> to vector<8x128xf32>
    %71 = arith.truncf %70 : vector<8x128xf32> to vector<8x128xbf16>
    %c0_13 = arith.constant 0 : index
    %c1152 = arith.constant 1152 : index
    %72 = vector.load %arg6[%c0_13, %c1152] : memref<8x6400xbf16, #tpu.memory_space<vmem>>, vector<8x128xbf16>
    tpu.vector_store %arg6[%c0_13, %c1152], %71 {strides = array<i32>} : memref<8x6400xbf16, #tpu.memory_space<vmem>>, vector<8x128xbf16>,
    %73 = vector.extract_strided_slice %0 {offsets = [0, 10], sizes = [8, 1], strides = [1, 1]} : vector<8x50xi32> to vector<8x1xi32>
    %74 = vector.broadcast %73 : vector<8x1xi32> to vector<8x128xi32>
    %75 = arith.cmpi eq, %2, %74 : vector<8x128xi32>
    %76 = arith.extui %75 : vector<8x128xi1> to vector<8x128xi32>
    %77 = arith.sitofp %76 : vector<8x128xi32> to vector<8x128xf32>
    %78 = arith.truncf %77 : vector<8x128xf32> to vector<8x128xbf16>
    %c0_14 = arith.constant 0 : index
    %c1280 = arith.constant 1280 : index
    %79 = vector.load %arg6[%c0_14, %c1280] : memref<8x6400xbf16, #tpu.memory_space<vmem>>, vector<8x128xbf16>
    tpu.vector_store %arg6[%c0_14, %c1280], %78 {strides = array<i32>} : memref<8x6400xbf16, #tpu.memory_space<vmem>>, vector<8x128xbf16>,
    %80 = vector.extract_strided_slice %0 {offsets = [0, 11], sizes = [8, 1], strides = [1, 1]} : vector<8x50xi32> to vector<8x1xi32>
    %81 = vector.broadcast %80 : vector<8x1xi32> to vector<8x128xi32>
    %82 = arith.cmpi eq, %2, %81 : vector<8x128xi32>
    %83 = arith.extui %82 : vector<8x128xi1> to vector<8x128xi32>
    %84 = arith.sitofp %83 : vector<8x128xi32> to vector<8x128xf32>
    %85 = arith.truncf %84 : vector<8x128xf32> to vector<8x128xbf16>
    %c0_15 = arith.constant 0 : index
    %c1408 = arith.constant 1408 : index
    %86 = vector.load %arg6[%c0_15, %c1408] : memref<8x6400xbf16, #tpu.memory_space<vmem>>, vector<8x128xbf16>
    tpu.vector_store %arg6[%c0_15, %c1408], %85 {strides = array<i32>} : memref<8x6400xbf16, #tpu.memory_space<vmem>>, vector<8x128xbf16>,
    %87 = vector.extract_strided_slice %0 {offsets = [0, 12], sizes = [8, 1], strides = [1, 1]} : vector<8x50xi32> to vector<8x1xi32>
    %88 = vector.broadcast %87 : vector<8x1xi32> to vector<8x128xi32>
    %89 = arith.cmpi eq, %2, %88 : vector<8x128xi32>
    %90 = arith.extui %89 : vector<8x128xi1> to vector<8x128xi32>
    %91 = arith.sitofp %90 : vector<8x128xi32> to vector<8x128xf32>
    %92 = arith.truncf %91 : vector<8x128xf32> to vector<8x128xbf16>
    %c0_16 = arith.constant 0 : index
    %c1536 = arith.constant 1536 : index
    %93 = vector.load %arg6[%c0_16, %c1536] : memref<8x6400xbf16, #tpu.memory_space<vmem>>, vector<8x128xbf16>
    tpu.vector_store %arg6[%c0_16, %c1536], %92 {strides = array<i32>} : memref<8x6400xbf16, #tpu.memory_space<vmem>>, vector<8x128xbf16>,
    %94 = vector.extract_strided_slice %0 {offsets = [0, 13], sizes = [8, 1], strides = [1, 1]} : vector<8x50xi32> to vector<8x1xi32>
    %95 = vector.broadcast %94 : vector<8x1xi32> to vector<8x128xi32>
    %96 = arith.cmpi eq, %2, %95 : vector<8x128xi32>
    %97 = arith.extui %96 : vector<8x128xi1> to vector<8x128xi32>
    %98 = arith.sitofp %97 : vector<8x128xi32> to vector<8x128xf32>
    %99 = arith.truncf %98 : vector<8x128xf32> to vector<8x128xbf16>
    %c0_17 = arith.constant 0 : index
    %c1664 = arith.constant 1664 : index
    %100 = vector.load %arg6[%c0_17, %c1664] : memref<8x6400xbf16, #tpu.memory_space<vmem>>, vector<8x128xbf16>
    tpu.vector_store %arg6[%c0_17, %c1664], %99 {strides = array<i32>} : memref<8x6400xbf16, #tpu.memory_space<vmem>>, vector<8x128xbf16>,
    %101 = vector.extract_strided_slice %0 {offsets = [0, 14], sizes = [8, 1], strides = [1, 1]} : vector<8x50xi32> to vector<8x1xi32>
    %102 = vector.broadcast %101 : vector<8x1xi32> to vector<8x128xi32>
    %103 = arith.cmpi eq, %2, %102 : vector<8x128xi32>
    %104 = arith.extui %103 : vector<8x128xi1> to vector<8x128xi32>
    %105 = arith.sitofp %104 : vector<8x128xi32> to vector<8x128xf32>
    %106 = arith.truncf %105 : vector<8x128xf32> to vector<8x128xbf16>
    %c0_18 = arith.constant 0 : index
    %c1792 = arith.constant 1792 : index
    %107 = vector.load %arg6[%c0_18, %c1792] : memref<8x6400xbf16, #tpu.memory_space<vmem>>, vector<8x128xbf16>
    tpu.vector_store %arg6[%c0_18, %c1792], %106 {strides = array<i32>} : memref<8x6400xbf16, #tpu.memory_space<vmem>>, vector<8x128xbf16>,
    %108 = vector.extract_strided_slice %0 {offsets = [0, 15], sizes = [8, 1], strides = [1, 1]} : vector<8x50xi32> to vector<8x1xi32>
    %109 = vector.broadcast %108 : vector<8x1xi32> to vector<8x128xi32>
    %110 = arith.cmpi eq, %2, %109 : vector<8x128xi32>
    %111 = arith.extui %110 : vector<8x128xi1> to vector<8x128xi32>
    %112 = arith.sitofp %111 : vector<8x128xi32> to vector<8x128xf32>
    %113 = arith.truncf %112 : vector<8x128xf32> to vector<8x128xbf16>
    %c0_19 = arith.constant 0 : index
    %c1920 = arith.constant 1920 : index
    %114 = vector.load %arg6[%c0_19, %c1920] : memref<8x6400xbf16, #tpu.memory_space<vmem>>, vector<8x128xbf16>
    tpu.vector_store %arg6[%c0_19, %c1920], %113 {strides = array<i32>} : memref<8x6400xbf16, #tpu.memory_space<vmem>>, vector<8x128xbf16>,
    %115 = vector.extract_strided_slice %0 {offsets = [0, 16], sizes = [8, 1], strides = [1, 1]} : vector<8x50xi32> to vector<8x1xi32>
    %116 = vector.broadcast %115 : vector<8x1xi32> to vector<8x128xi32>
    %117 = arith.cmpi eq, %2, %116 : vector<8x128xi32>
    %118 = arith.extui %117 : vector<8x128xi1> to vector<8x128xi32>
    %119 = arith.sitofp %118 : vector<8x128xi32> to vector<8x128xf32>
    %120 = arith.truncf %119 : vector<8x128xf32> to vector<8x128xbf16>
    %c0_20 = arith.constant 0 : index
    %c2048 = arith.constant 2048 : index
    %121 = vector.load %arg6[%c0_20, %c2048] : memref<8x6400xbf16, #tpu.memory_space<vmem>>, vector<8x128xbf16>
    tpu.vector_store %arg6[%c0_20, %c2048], %120 {strides = array<i32>} : memref<8x6400xbf16, #tpu.memory_space<vmem>>, vector<8x128xbf16>,
    %122 = vector.extract_strided_slice %0 {offsets = [0, 17], sizes = [8, 1], strides = [1, 1]} : vector<8x50xi32> to vector<8x1xi32>
    %123 = vector.broadcast %122 : vector<8x1xi32> to vector<8x128xi32>
    %124 = arith.cmpi eq, %2, %123 : vector<8x128xi32>
    %125 = arith.extui %124 : vector<8x128xi1> to vector<8x128xi32>
    %126 = arith.sitofp %125 : vector<8x128xi32> to vector<8x128xf32>
    %127 = arith.truncf %126 : vector<8x128xf32> to vector<8x128xbf16>
    %c0_21 = arith.constant 0 : index
    %c2176 = arith.constant 2176 : index
    %128 = vector.load %arg6[%c0_21, %c2176] : memref<8x6400xbf16, #tpu.memory_space<vmem>>, vector<8x128xbf16>
    tpu.vector_store %arg6[%c0_21, %c2176], %127 {strides = array<i32>} : memref<8x6400xbf16, #tpu.memory_space<vmem>>, vector<8x128xbf16>,
    %129 = vector.extract_strided_slice %0 {offsets = [0, 18], sizes = [8, 1], strides = [1, 1]} : vector<8x50xi32> to vector<8x1xi32>
    %130 = vector.broadcast %129 : vector<8x1xi32> to vector<8x128xi32>
    %131 = arith.cmpi eq, %2, %130 : vector<8x128xi32>
    %132 = arith.extui %131 : vector<8x128xi1> to vector<8x128xi32>
    %133 = arith.sitofp %132 : vector<8x128xi32> to vector<8x128xf32>
    %134 = arith.truncf %133 : vector<8x128xf32> to vector<8x128xbf16>
    %c0_22 = arith.constant 0 : index
    %c2304 = arith.constant 2304 : index
    %135 = vector.load %arg6[%c0_22, %c2304] : memref<8x6400xbf16, #tpu.memory_space<vmem>>, vector<8x128xbf16>
    tpu.vector_store %arg6[%c0_22, %c2304], %134 {strides = array<i32>} : memref<8x6400xbf16, #tpu.memory_space<vmem>>, vector<8x128xbf16>,
    %136 = vector.extract_strided_slice %0 {offsets = [0, 19], sizes = [8, 1], strides = [1, 1]} : vector<8x50xi32> to vector<8x1xi32>
    %137 = vector.broadcast %136 : vector<8x1xi32> to vector<8x128xi32>
    %138 = arith.cmpi eq, %2, %137 : vector<8x128xi32>
    %139 = arith.extui %138 : vector<8x128xi1> to vector<8x128xi32>
    %140 = arith.sitofp %139 : vector<8x128xi32> to vector<8x128xf32>
    %141 = arith.truncf %140 : vector<8x128xf32> to vector<8x128xbf16>
    %c0_23 = arith.constant 0 : index
    %c2432 = arith.constant 2432 : index
    %142 = vector.load %arg6[%c0_23, %c2432] : memref<8x6400xbf16, #tpu.memory_space<vmem>>, vector<8x128xbf16>
    tpu.vector_store %arg6[%c0_23, %c2432], %141 {strides = array<i32>} : memref<8x6400xbf16, #tpu.memory_space<vmem>>, vector<8x128xbf16>,
    %143 = vector.extract_strided_slice %0 {offsets = [0, 20], sizes = [8, 1], strides = [1, 1]} : vector<8x50xi32> to vector<8x1xi32>
    %144 = vector.broadcast %143 : vector<8x1xi32> to vector<8x128xi32>
    %145 = arith.cmpi eq, %2, %144 : vector<8x128xi32>
    %146 = arith.extui %145 : vector<8x128xi1> to vector<8x128xi32>
    %147 = arith.sitofp %146 : vector<8x128xi32> to vector<8x128xf32>
    %148 = arith.truncf %147 : vector<8x128xf32> to vector<8x128xbf16>
    %c0_24 = arith.constant 0 : index
    %c2560 = arith.constant 2560 : index
    %149 = vector.load %arg6[%c0_24, %c2560] : memref<8x6400xbf16, #tpu.memory_space<vmem>>, vector<8x128xbf16>
    tpu.vector_store %arg6[%c0_24, %c2560], %148 {strides = array<i32>} : memref<8x6400xbf16, #tpu.memory_space<vmem>>, vector<8x128xbf16>,
    %150 = vector.extract_strided_slice %0 {offsets = [0, 21], sizes = [8, 1], strides = [1, 1]} : vector<8x50xi32> to vector<8x1xi32>
    %151 = vector.broadcast %150 : vector<8x1xi32> to vector<8x128xi32>
    %152 = arith.cmpi eq, %2, %151 : vector<8x128xi32>
    %153 = arith.extui %152 : vector<8x128xi1> to vector<8x128xi32>
    %154 = arith.sitofp %153 : vector<8x128xi32> to vector<8x128xf32>
    %155 = arith.truncf %154 : vector<8x128xf32> to vector<8x128xbf16>
    %c0_25 = arith.constant 0 : index
    %c2688 = arith.constant 2688 : index
    %156 = vector.load %arg6[%c0_25, %c2688] : memref<8x6400xbf16, #tpu.memory_space<vmem>>, vector<8x128xbf16>
    tpu.vector_store %arg6[%c0_25, %c2688], %155 {strides = array<i32>} : memref<8x6400xbf16, #tpu.memory_space<vmem>>, vector<8x128xbf16>,
    %157 = vector.extract_strided_slice %0 {offsets = [0, 22], sizes = [8, 1], strides = [1, 1]} : vector<8x50xi32> to vector<8x1xi32>
    %158 = vector.broadcast %157 : vector<8x1xi32> to vector<8x128xi32>
    %159 = arith.cmpi eq, %2, %158 : vector<8x128xi32>
    %160 = arith.extui %159 : vector<8x128xi1> to vector<8x128xi32>
    %161 = arith.sitofp %160 : vector<8x128xi32> to vector<8x128xf32>
    %162 = arith.truncf %161 : vector<8x128xf32> to vector<8x128xbf16>
    %c0_26 = arith.constant 0 : index
    %c2816 = arith.constant 2816 : index
    %163 = vector.load %arg6[%c0_26, %c2816] : memref<8x6400xbf16, #tpu.memory_space<vmem>>, vector<8x128xbf16>
    tpu.vector_store %arg6[%c0_26, %c2816], %162 {strides = array<i32>} : memref<8x6400xbf16, #tpu.memory_space<vmem>>, vector<8x128xbf16>,
    %164 = vector.extract_strided_slice %0 {offsets = [0, 23], sizes = [8, 1], strides = [1, 1]} : vector<8x50xi32> to vector<8x1xi32>
    %165 = vector.broadcast %164 : vector<8x1xi32> to vector<8x128xi32>
    %166 = arith.cmpi eq, %2, %165 : vector<8x128xi32>
    %167 = arith.extui %166 : vector<8x128xi1> to vector<8x128xi32>
    %168 = arith.sitofp %167 : vector<8x128xi32> to vector<8x128xf32>
    %169 = arith.truncf %168 : vector<8x128xf32> to vector<8x128xbf16>
    %c0_27 = arith.constant 0 : index
    %c2944 = arith.constant 2944 : index
    %170 = vector.load %arg6[%c0_27, %c2944] : memref<8x6400xbf16, #tpu.memory_space<vmem>>, vector<8x128xbf16>
    tpu.vector_store %arg6[%c0_27, %c2944], %169 {strides = array<i32>} : memref<8x6400xbf16, #tpu.memory_space<vmem>>, vector<8x128xbf16>,
    %171 = vector.extract_strided_slice %0 {offsets = [0, 24], sizes = [8, 1], strides = [1, 1]} : vector<8x50xi32> to vector<8x1xi32>
    %172 = vector.broadcast %171 : vector<8x1xi32> to vector<8x128xi32>
    %173 = arith.cmpi eq, %2, %172 : vector<8x128xi32>
    %174 = arith.extui %173 : vector<8x128xi1> to vector<8x128xi32>
    %175 = arith.sitofp %174 : vector<8x128xi32> to vector<8x128xf32>
    %176 = arith.truncf %175 : vector<8x128xf32> to vector<8x128xbf16>
    %c0_28 = arith.constant 0 : index
    %c3072 = arith.constant 3072 : index
    %177 = vector.load %arg6[%c0_28, %c3072] : memref<8x6400xbf16, #tpu.memory_space<vmem>>, vector<8x128xbf16>
    tpu.vector_store %arg6[%c0_28, %c3072], %176 {strides = array<i32>} : memref<8x6400xbf16, #tpu.memory_space<vmem>>, vector<8x128xbf16>,
    %178 = vector.extract_strided_slice %0 {offsets = [0, 25], sizes = [8, 1], strides = [1, 1]} : vector<8x50xi32> to vector<8x1xi32>
    %179 = vector.broadcast %178 : vector<8x1xi32> to vector<8x128xi32>
    %180 = arith.cmpi eq, %2, %179 : vector<8x128xi32>
    %181 = arith.extui %180 : vector<8x128xi1> to vector<8x128xi32>
    %182 = arith.sitofp %181 : vector<8x128xi32> to vector<8x128xf32>
    %183 = arith.truncf %182 : vector<8x128xf32> to vector<8x128xbf16>
    %c0_29 = arith.constant 0 : index
    %c3200 = arith.constant 3200 : index
    %184 = vector.load %arg6[%c0_29, %c3200] : memref<8x6400xbf16, #tpu.memory_space<vmem>>, vector<8x128xbf16>
    tpu.vector_store %arg6[%c0_29, %c3200], %183 {strides = array<i32>} : memref<8x6400xbf16, #tpu.memory_space<vmem>>, vector<8x128xbf16>,
    %185 = vector.extract_strided_slice %0 {offsets = [0, 26], sizes = [8, 1], strides = [1, 1]} : vector<8x50xi32> to vector<8x1xi32>
    %186 = vector.broadcast %185 : vector<8x1xi32> to vector<8x128xi32>
    %187 = arith.cmpi eq, %2, %186 : vector<8x128xi32>
    %188 = arith.extui %187 : vector<8x128xi1> to vector<8x128xi32>
    %189 = arith.sitofp %188 : vector<8x128xi32> to vector<8x128xf32>
    %190 = arith.truncf %189 : vector<8x128xf32> to vector<8x128xbf16>
    %c0_30 = arith.constant 0 : index
    %c3328 = arith.constant 3328 : index
    %191 = vector.load %arg6[%c0_30, %c3328] : memref<8x6400xbf16, #tpu.memory_space<vmem>>, vector<8x128xbf16>
    tpu.vector_store %arg6[%c0_30, %c3328], %190 {strides = array<i32>} : memref<8x6400xbf16, #tpu.memory_space<vmem>>, vector<8x128xbf16>,
    %192 = vector.extract_strided_slice %0 {offsets = [0, 27], sizes = [8, 1], strides = [1, 1]} : vector<8x50xi32> to vector<8x1xi32>
    %193 = vector.broadcast %192 : vector<8x1xi32> to vector<8x128xi32>
    %194 = arith.cmpi eq, %2, %193 : vector<8x128xi32>
    %195 = arith.extui %194 : vector<8x128xi1> to vector<8x128xi32>
    %196 = arith.sitofp %195 : vector<8x128xi32> to vector<8x128xf32>
    %197 = arith.truncf %196 : vector<8x128xf32> to vector<8x128xbf16>
    %c0_31 = arith.constant 0 : index
    %c3456 = arith.constant 3456 : index
    %198 = vector.load %arg6[%c0_31, %c3456] : memref<8x6400xbf16, #tpu.memory_space<vmem>>, vector<8x128xbf16>
    tpu.vector_store %arg6[%c0_31, %c3456], %197 {strides = array<i32>} : memref<8x6400xbf16, #tpu.memory_space<vmem>>, vector<8x128xbf16>,
    %199 = vector.extract_strided_slice %0 {offsets = [0, 28], sizes = [8, 1], strides = [1, 1]} : vector<8x50xi32> to vector<8x1xi32>
    %200 = vector.broadcast %199 : vector<8x1xi32> to vector<8x128xi32>
    %201 = arith.cmpi eq, %2, %200 : vector<8x128xi32>
    %202 = arith.extui %201 : vector<8x128xi1> to vector<8x128xi32>
    %203 = arith.sitofp %202 : vector<8x128xi32> to vector<8x128xf32>
    %204 = arith.truncf %203 : vector<8x128xf32> to vector<8x128xbf16>
    %c0_32 = arith.constant 0 : index
    %c3584 = arith.constant 3584 : index
    %205 = vector.load %arg6[%c0_32, %c3584] : memref<8x6400xbf16, #tpu.memory_space<vmem>>, vector<8x128xbf16>
    tpu.vector_store %arg6[%c0_32, %c3584], %204 {strides = array<i32>} : memref<8x6400xbf16, #tpu.memory_space<vmem>>, vector<8x128xbf16>,
    %206 = vector.extract_strided_slice %0 {offsets = [0, 29], sizes = [8, 1], strides = [1, 1]} : vector<8x50xi32> to vector<8x1xi32>
    %207 = vector.broadcast %206 : vector<8x1xi32> to vector<8x128xi32>
    %208 = arith.cmpi eq, %2, %207 : vector<8x128xi32>
    %209 = arith.extui %208 : vector<8x128xi1> to vector<8x128xi32>
    %210 = arith.sitofp %209 : vector<8x128xi32> to vector<8x128xf32>
    %211 = arith.truncf %210 : vector<8x128xf32> to vector<8x128xbf16>
    %c0_33 = arith.constant 0 : index
    %c3712 = arith.constant 3712 : index
    %212 = vector.load %arg6[%c0_33, %c3712] : memref<8x6400xbf16, #tpu.memory_space<vmem>>, vector<8x128xbf16>
    tpu.vector_store %arg6[%c0_33, %c3712], %211 {strides = array<i32>} : memref<8x6400xbf16, #tpu.memory_space<vmem>>, vector<8x128xbf16>,
    %213 = vector.extract_strided_slice %0 {offsets = [0, 30], sizes = [8, 1], strides = [1, 1]} : vector<8x50xi32> to vector<8x1xi32>
    %214 = vector.broadcast %213 : vector<8x1xi32> to vector<8x128xi32>
    %215 = arith.cmpi eq, %2, %214 : vector<8x128xi32>
    %216 = arith.extui %215 : vector<8x128xi1> to vector<8x128xi32>
    %217 = arith.sitofp %216 : vector<8x128xi32> to vector<8x128xf32>
    %218 = arith.truncf %217 : vector<8x128xf32> to vector<8x128xbf16>
    %c0_34 = arith.constant 0 : index
    %c3840 = arith.constant 3840 : index
    %219 = vector.load %arg6[%c0_34, %c3840] : memref<8x6400xbf16, #tpu.memory_space<vmem>>, vector<8x128xbf16>
    tpu.vector_store %arg6[%c0_34, %c3840], %218 {strides = array<i32>} : memref<8x6400xbf16, #tpu.memory_space<vmem>>, vector<8x128xbf16>,
    %220 = vector.extract_strided_slice %0 {offsets = [0, 31], sizes = [8, 1], strides = [1, 1]} : vector<8x50xi32> to vector<8x1xi32>
    %221 = vector.broadcast %220 : vector<8x1xi32> to vector<8x128xi32>
    %222 = arith.cmpi eq, %2, %221 : vector<8x128xi32>
    %223 = arith.extui %222 : vector<8x128xi1> to vector<8x128xi32>
    %224 = arith.sitofp %223 : vector<8x128xi32> to vector<8x128xf32>
    %225 = arith.truncf %224 : vector<8x128xf32> to vector<8x128xbf16>
    %c0_35 = arith.constant 0 : index
    %c3968 = arith.constant 3968 : index
    %226 = vector.load %arg6[%c0_35, %c3968] : memref<8x6400xbf16, #tpu.memory_space<vmem>>, vector<8x128xbf16>
    tpu.vector_store %arg6[%c0_35, %c3968], %225 {strides = array<i32>} : memref<8x6400xbf16, #tpu.memory_space<vmem>>, vector<8x128xbf16>,
    %227 = vector.extract_strided_slice %0 {offsets = [0, 32], sizes = [8, 1], strides = [1, 1]} : vector<8x50xi32> to vector<8x1xi32>
    %228 = vector.broadcast %227 : vector<8x1xi32> to vector<8x128xi32>
    %229 = arith.cmpi eq, %2, %228 : vector<8x128xi32>
    %230 = arith.extui %229 : vector<8x128xi1> to vector<8x128xi32>
    %231 = arith.sitofp %230 : vector<8x128xi32> to vector<8x128xf32>
    %232 = arith.truncf %231 : vector<8x128xf32> to vector<8x128xbf16>
    %c0_36 = arith.constant 0 : index
    %c4096 = arith.constant 4096 : index
    %233 = vector.load %arg6[%c0_36, %c4096] : memref<8x6400xbf16, #tpu.memory_space<vmem>>, vector<8x128xbf16>
    tpu.vector_store %arg6[%c0_36, %c4096], %232 {strides = array<i32>} : memref<8x6400xbf16, #tpu.memory_space<vmem>>, vector<8x128xbf16>,
    %234 = vector.extract_strided_slice %0 {offsets = [0, 33], sizes = [8, 1], strides = [1, 1]} : vector<8x50xi32> to vector<8x1xi32>
    %235 = vector.broadcast %234 : vector<8x1xi32> to vector<8x128xi32>
    %236 = arith.cmpi eq, %2, %235 : vector<8x128xi32>
    %237 = arith.extui %236 : vector<8x128xi1> to vector<8x128xi32>
    %238 = arith.sitofp %237 : vector<8x128xi32> to vector<8x128xf32>
    %239 = arith.truncf %238 : vector<8x128xf32> to vector<8x128xbf16>
    %c0_37 = arith.constant 0 : index
    %c4224 = arith.constant 4224 : index
    %240 = vector.load %arg6[%c0_37, %c4224] : memref<8x6400xbf16, #tpu.memory_space<vmem>>, vector<8x128xbf16>
    tpu.vector_store %arg6[%c0_37, %c4224], %239 {strides = array<i32>} : memref<8x6400xbf16, #tpu.memory_space<vmem>>, vector<8x128xbf16>,
    %241 = vector.extract_strided_slice %0 {offsets = [0, 34], sizes = [8, 1], strides = [1, 1]} : vector<8x50xi32> to vector<8x1xi32>
    %242 = vector.broadcast %241 : vector<8x1xi32> to vector<8x128xi32>
    %243 = arith.cmpi eq, %2, %242 : vector<8x128xi32>
    %244 = arith.extui %243 : vector<8x128xi1> to vector<8x128xi32>
    %245 = arith.sitofp %244 : vector<8x128xi32> to vector<8x128xf32>
    %246 = arith.truncf %245 : vector<8x128xf32> to vector<8x128xbf16>
    %c0_38 = arith.constant 0 : index
    %c4352 = arith.constant 4352 : index
    %247 = vector.load %arg6[%c0_38, %c4352] : memref<8x6400xbf16, #tpu.memory_space<vmem>>, vector<8x128xbf16>
    tpu.vector_store %arg6[%c0_38, %c4352], %246 {strides = array<i32>} : memref<8x6400xbf16, #tpu.memory_space<vmem>>, vector<8x128xbf16>,
    %248 = vector.extract_strided_slice %0 {offsets = [0, 35], sizes = [8, 1], strides = [1, 1]} : vector<8x50xi32> to vector<8x1xi32>
    %249 = vector.broadcast %248 : vector<8x1xi32> to vector<8x128xi32>
    %250 = arith.cmpi eq, %2, %249 : vector<8x128xi32>
    %251 = arith.extui %250 : vector<8x128xi1> to vector<8x128xi32>
    %252 = arith.sitofp %251 : vector<8x128xi32> to vector<8x128xf32>
    %253 = arith.truncf %252 : vector<8x128xf32> to vector<8x128xbf16>
    %c0_39 = arith.constant 0 : index
    %c4480 = arith.constant 4480 : index
    %254 = vector.load %arg6[%c0_39, %c4480] : memref<8x6400xbf16, #tpu.memory_space<vmem>>, vector<8x128xbf16>
    tpu.vector_store %arg6[%c0_39, %c4480], %253 {strides = array<i32>} : memref<8x6400xbf16, #tpu.memory_space<vmem>>, vector<8x128xbf16>,
    %255 = vector.extract_strided_slice %0 {offsets = [0, 36], sizes = [8, 1], strides = [1, 1]} : vector<8x50xi32> to vector<8x1xi32>
    %256 = vector.broadcast %255 : vector<8x1xi32> to vector<8x128xi32>
    %257 = arith.cmpi eq, %2, %256 : vector<8x128xi32>
    %258 = arith.extui %257 : vector<8x128xi1> to vector<8x128xi32>
    %259 = arith.sitofp %258 : vector<8x128xi32> to vector<8x128xf32>
    %260 = arith.truncf %259 : vector<8x128xf32> to vector<8x128xbf16>
    %c0_40 = arith.constant 0 : index
    %c4608 = arith.constant 4608 : index
    %261 = vector.load %arg6[%c0_40, %c4608] : memref<8x6400xbf16, #tpu.memory_space<vmem>>, vector<8x128xbf16>
    tpu.vector_store %arg6[%c0_40, %c4608], %260 {strides = array<i32>} : memref<8x6400xbf16, #tpu.memory_space<vmem>>, vector<8x128xbf16>,
    %262 = vector.extract_strided_slice %0 {offsets = [0, 37], sizes = [8, 1], strides = [1, 1]} : vector<8x50xi32> to vector<8x1xi32>
    %263 = vector.broadcast %262 : vector<8x1xi32> to vector<8x128xi32>
    %264 = arith.cmpi eq, %2, %263 : vector<8x128xi32>
    %265 = arith.extui %264 : vector<8x128xi1> to vector<8x128xi32>
    %266 = arith.sitofp %265 : vector<8x128xi32> to vector<8x128xf32>
    %267 = arith.truncf %266 : vector<8x128xf32> to vector<8x128xbf16>
    %c0_41 = arith.constant 0 : index
    %c4736 = arith.constant 4736 : index
    %268 = vector.load %arg6[%c0_41, %c4736] : memref<8x6400xbf16, #tpu.memory_space<vmem>>, vector<8x128xbf16>
    tpu.vector_store %arg6[%c0_41, %c4736], %267 {strides = array<i32>} : memref<8x6400xbf16, #tpu.memory_space<vmem>>, vector<8x128xbf16>,
    %269 = vector.extract_strided_slice %0 {offsets = [0, 38], sizes = [8, 1], strides = [1, 1]} : vector<8x50xi32> to vector<8x1xi32>
    %270 = vector.broadcast %269 : vector<8x1xi32> to vector<8x128xi32>
    %271 = arith.cmpi eq, %2, %270 : vector<8x128xi32>
    %272 = arith.extui %271 : vector<8x128xi1> to vector<8x128xi32>
    %273 = arith.sitofp %272 : vector<8x128xi32> to vector<8x128xf32>
    %274 = arith.truncf %273 : vector<8x128xf32> to vector<8x128xbf16>
    %c0_42 = arith.constant 0 : index
    %c4864 = arith.constant 4864 : index
    %275 = vector.load %arg6[%c0_42, %c4864] : memref<8x6400xbf16, #tpu.memory_space<vmem>>, vector<8x128xbf16>
    tpu.vector_store %arg6[%c0_42, %c4864], %274 {strides = array<i32>} : memref<8x6400xbf16, #tpu.memory_space<vmem>>, vector<8x128xbf16>,
    %276 = vector.extract_strided_slice %0 {offsets = [0, 39], sizes = [8, 1], strides = [1, 1]} : vector<8x50xi32> to vector<8x1xi32>
    %277 = vector.broadcast %276 : vector<8x1xi32> to vector<8x128xi32>
    %278 = arith.cmpi eq, %2, %277 : vector<8x128xi32>
    %279 = arith.extui %278 : vector<8x128xi1> to vector<8x128xi32>
    %280 = arith.sitofp %279 : vector<8x128xi32> to vector<8x128xf32>
    %281 = arith.truncf %280 : vector<8x128xf32> to vector<8x128xbf16>
    %c0_43 = arith.constant 0 : index
    %c4992 = arith.constant 4992 : index
    %282 = vector.load %arg6[%c0_43, %c4992] : memref<8x6400xbf16, #tpu.memory_space<vmem>>, vector<8x128xbf16>
    tpu.vector_store %arg6[%c0_43, %c4992], %281 {strides = array<i32>} : memref<8x6400xbf16, #tpu.memory_space<vmem>>, vector<8x128xbf16>,
    %283 = vector.extract_strided_slice %0 {offsets = [0, 40], sizes = [8, 1], strides = [1, 1]} : vector<8x50xi32> to vector<8x1xi32>
    %284 = vector.broadcast %283 : vector<8x1xi32> to vector<8x128xi32>
    %285 = arith.cmpi eq, %2, %284 : vector<8x128xi32>
    %286 = arith.extui %285 : vector<8x128xi1> to vector<8x128xi32>
    %287 = arith.sitofp %286 : vector<8x128xi32> to vector<8x128xf32>
    %288 = arith.truncf %287 : vector<8x128xf32> to vector<8x128xbf16>
    %c0_44 = arith.constant 0 : index
    %c5120 = arith.constant 5120 : index
    %289 = vector.load %arg6[%c0_44, %c5120] : memref<8x6400xbf16, #tpu.memory_space<vmem>>, vector<8x128xbf16>
    tpu.vector_store %arg6[%c0_44, %c5120], %288 {strides = array<i32>} : memref<8x6400xbf16, #tpu.memory_space<vmem>>, vector<8x128xbf16>,
    %290 = vector.extract_strided_slice %0 {offsets = [0, 41], sizes = [8, 1], strides = [1, 1]} : vector<8x50xi32> to vector<8x1xi32>
    %291 = vector.broadcast %290 : vector<8x1xi32> to vector<8x128xi32>
    %292 = arith.cmpi eq, %2, %291 : vector<8x128xi32>
    %293 = arith.extui %292 : vector<8x128xi1> to vector<8x128xi32>
    %294 = arith.sitofp %293 : vector<8x128xi32> to vector<8x128xf32>
    %295 = arith.truncf %294 : vector<8x128xf32> to vector<8x128xbf16>
    %c0_45 = arith.constant 0 : index
    %c5248 = arith.constant 5248 : index
    %296 = vector.load %arg6[%c0_45, %c5248] : memref<8x6400xbf16, #tpu.memory_space<vmem>>, vector<8x128xbf16>
    tpu.vector_store %arg6[%c0_45, %c5248], %295 {strides = array<i32>} : memref<8x6400xbf16, #tpu.memory_space<vmem>>, vector<8x128xbf16>,
    %297 = vector.extract_strided_slice %0 {offsets = [0, 42], sizes = [8, 1], strides = [1, 1]} : vector<8x50xi32> to vector<8x1xi32>
    %298 = vector.broadcast %297 : vector<8x1xi32> to vector<8x128xi32>
    %299 = arith.cmpi eq, %2, %298 : vector<8x128xi32>
    %300 = arith.extui %299 : vector<8x128xi1> to vector<8x128xi32>
    %301 = arith.sitofp %300 : vector<8x128xi32> to vector<8x128xf32>
    %302 = arith.truncf %301 : vector<8x128xf32> to vector<8x128xbf16>
    %c0_46 = arith.constant 0 : index
    %c5376 = arith.constant 5376 : index
    %303 = vector.load %arg6[%c0_46, %c5376] : memref<8x6400xbf16, #tpu.memory_space<vmem>>, vector<8x128xbf16>
    tpu.vector_store %arg6[%c0_46, %c5376], %302 {strides = array<i32>} : memref<8x6400xbf16, #tpu.memory_space<vmem>>, vector<8x128xbf16>,
    %304 = vector.extract_strided_slice %0 {offsets = [0, 43], sizes = [8, 1], strides = [1, 1]} : vector<8x50xi32> to vector<8x1xi32>
    %305 = vector.broadcast %304 : vector<8x1xi32> to vector<8x128xi32>
    %306 = arith.cmpi eq, %2, %305 : vector<8x128xi32>
    %307 = arith.extui %306 : vector<8x128xi1> to vector<8x128xi32>
    %308 = arith.sitofp %307 : vector<8x128xi32> to vector<8x128xf32>
    %309 = arith.truncf %308 : vector<8x128xf32> to vector<8x128xbf16>
    %c0_47 = arith.constant 0 : index
    %c5504 = arith.constant 5504 : index
    %310 = vector.load %arg6[%c0_47, %c5504] : memref<8x6400xbf16, #tpu.memory_space<vmem>>, vector<8x128xbf16>
    tpu.vector_store %arg6[%c0_47, %c5504], %309 {strides = array<i32>} : memref<8x6400xbf16, #tpu.memory_space<vmem>>, vector<8x128xbf16>,
    %311 = vector.extract_strided_slice %0 {offsets = [0, 44], sizes = [8, 1], strides = [1, 1]} : vector<8x50xi32> to vector<8x1xi32>
    %312 = vector.broadcast %311 : vector<8x1xi32> to vector<8x128xi32>
    %313 = arith.cmpi eq, %2, %312 : vector<8x128xi32>
    %314 = arith.extui %313 : vector<8x128xi1> to vector<8x128xi32>
    %315 = arith.sitofp %314 : vector<8x128xi32> to vector<8x128xf32>
    %316 = arith.truncf %315 : vector<8x128xf32> to vector<8x128xbf16>
    %c0_48 = arith.constant 0 : index
    %c5632 = arith.constant 5632 : index
    %317 = vector.load %arg6[%c0_48, %c5632] : memref<8x6400xbf16, #tpu.memory_space<vmem>>, vector<8x128xbf16>
    tpu.vector_store %arg6[%c0_48, %c5632], %316 {strides = array<i32>} : memref<8x6400xbf16, #tpu.memory_space<vmem>>, vector<8x128xbf16>,
    %318 = vector.extract_strided_slice %0 {offsets = [0, 45], sizes = [8, 1], strides = [1, 1]} : vector<8x50xi32> to vector<8x1xi32>
    %319 = vector.broadcast %318 : vector<8x1xi32> to vector<8x128xi32>
    %320 = arith.cmpi eq, %2, %319 : vector<8x128xi32>
    %321 = arith.extui %320 : vector<8x128xi1> to vector<8x128xi32>
    %322 = arith.sitofp %321 : vector<8x128xi32> to vector<8x128xf32>
    %323 = arith.truncf %322 : vector<8x128xf32> to vector<8x128xbf16>
    %c0_49 = arith.constant 0 : index
    %c5760 = arith.constant 5760 : index
    %324 = vector.load %arg6[%c0_49, %c5760] : memref<8x6400xbf16, #tpu.memory_space<vmem>>, vector<8x128xbf16>
    tpu.vector_store %arg6[%c0_49, %c5760], %323 {strides = array<i32>} : memref<8x6400xbf16, #tpu.memory_space<vmem>>, vector<8x128xbf16>,
    %325 = vector.extract_strided_slice %0 {offsets = [0, 46], sizes = [8, 1], strides = [1, 1]} : vector<8x50xi32> to vector<8x1xi32>
    %326 = vector.broadcast %325 : vector<8x1xi32> to vector<8x128xi32>
    %327 = arith.cmpi eq, %2, %326 : vector<8x128xi32>
    %328 = arith.extui %327 : vector<8x128xi1> to vector<8x128xi32>
    %329 = arith.sitofp %328 : vector<8x128xi32> to vector<8x128xf32>
    %330 = arith.truncf %329 : vector<8x128xf32> to vector<8x128xbf16>
    %c0_50 = arith.constant 0 : index
    %c5888 = arith.constant 5888 : index
    %331 = vector.load %arg6[%c0_50, %c5888] : memref<8x6400xbf16, #tpu.memory_space<vmem>>, vector<8x128xbf16>
    tpu.vector_store %arg6[%c0_50, %c5888], %330 {strides = array<i32>} : memref<8x6400xbf16, #tpu.memory_space<vmem>>, vector<8x128xbf16>,
    %332 = vector.extract_strided_slice %0 {offsets = [0, 47], sizes = [8, 1], strides = [1, 1]} : vector<8x50xi32> to vector<8x1xi32>
    %333 = vector.broadcast %332 : vector<8x1xi32> to vector<8x128xi32>
    %334 = arith.cmpi eq, %2, %333 : vector<8x128xi32>
    %335 = arith.extui %334 : vector<8x128xi1> to vector<8x128xi32>
    %336 = arith.sitofp %335 : vector<8x128xi32> to vector<8x128xf32>
    %337 = arith.truncf %336 : vector<8x128xf32> to vector<8x128xbf16>
    %c0_51 = arith.constant 0 : index
    %c6016 = arith.constant 6016 : index
    %338 = vector.load %arg6[%c0_51, %c6016] : memref<8x6400xbf16, #tpu.memory_space<vmem>>, vector<8x128xbf16>
    tpu.vector_store %arg6[%c0_51, %c6016], %337 {strides = array<i32>} : memref<8x6400xbf16, #tpu.memory_space<vmem>>, vector<8x128xbf16>,
    %339 = vector.extract_strided_slice %0 {offsets = [0, 48], sizes = [8, 1], strides = [1, 1]} : vector<8x50xi32> to vector<8x1xi32>
    %340 = vector.broadcast %339 : vector<8x1xi32> to vector<8x128xi32>
    %341 = arith.cmpi eq, %2, %340 : vector<8x128xi32>
    %342 = arith.extui %341 : vector<8x128xi1> to vector<8x128xi32>
    %343 = arith.sitofp %342 : vector<8x128xi32> to vector<8x128xf32>
    %344 = arith.truncf %343 : vector<8x128xf32> to vector<8x128xbf16>
    %c0_52 = arith.constant 0 : index
    %c6144 = arith.constant 6144 : index
    %345 = vector.load %arg6[%c0_52, %c6144] : memref<8x6400xbf16, #tpu.memory_space<vmem>>, vector<8x128xbf16>
    tpu.vector_store %arg6[%c0_52, %c6144], %344 {strides = array<i32>} : memref<8x6400xbf16, #tpu.memory_space<vmem>>, vector<8x128xbf16>,
    %346 = vector.extract_strided_slice %0 {offsets = [0, 49], sizes = [8, 1], strides = [1, 1]} : vector<8x50xi32> to vector<8x1xi32>
    %347 = vector.broadcast %346 : vector<8x1xi32> to vector<8x128xi32>
    %348 = arith.cmpi eq, %2, %347 : vector<8x128xi32>
    %349 = arith.extui %348 : vector<8x128xi1> to vector<8x128xi32>
    %350 = arith.sitofp %349 : vector<8x128xi32> to vector<8x128xf32>
    %351 = arith.truncf %350 : vector<8x128xf32> to vector<8x128xbf16>
    %c0_53 = arith.constant 0 : index
    %c6272 = arith.constant 6272 : index
    %352 = vector.load %arg6[%c0_53, %c6272] : memref<8x6400xbf16, #tpu.memory_space<vmem>>, vector<8x128xbf16>
    tpu.vector_store %arg6[%c0_53, %c6272], %351 {strides = array<i32>} : memref<8x6400xbf16, #tpu.memory_space<vmem>>, vector<8x128xbf16>,
    %c0_54 = arith.constant 0 : index
    %c0_55 = arith.constant 0 : index
    %353 = vector.load %arg6[%c0_54, %c0_55] : memref<8x6400xbf16, #tpu.memory_space<vmem>>, vector<8x6400xbf16>
    %c0_56 = arith.constant 0 : index
    %c0_57 = arith.constant 0 : index
    %354 = vector.load %arg2[%c0_56, %c0_57] : memref<6400x128xbf16, #tpu.memory_space<vmem>>, vector<6400x128xbf16>
    %cst = arith.constant dense<0.000000e+00> : vector<8x128xf32>
    %355 = tpu.matmul %353, %354, %cst {dimension_numbers = #tpu.dot_dimension_numbers<[1], [0], [0], [1], [0, 0, 1, 1], [], []>} : vector<8x6400xbf16>, vector<6400x128xbf16>, vector<8x128xf32> -> vector<8x128xf32>
    %356 = vector.extract_strided_slice %1 {offsets = [0, 0], sizes = [1, 128], strides = [1, 1]} : vector<3x128xf32> to vector<1x128xf32>
    %357 = vector.broadcast %356 : vector<1x128xf32> to vector<8x128xf32>
    %358 = arith.addf %355, %357 : vector<8x128xf32>
    %cst_58 = arith.constant 0.000000e+00 : f32
    %359 = vector.broadcast %cst_58 : f32 to vector<8x128xf32>
    %360 = arith.maximumf %358, %359 : vector<8x128xf32>
    %c0_59 = arith.constant 0 : index
    %c0_60 = arith.constant 0 : index
    %361 = vector.load %arg3[%c0_59, %c0_60] : memref<256x128xbf16, #tpu.memory_space<vmem>>, vector<128x128xbf16>
    %362 = arith.truncf %360 : vector<8x128xf32> to vector<8x128xbf16>
    %cst_61 = arith.constant dense<0.000000e+00> : vector<8x128xf32>
    %363 = tpu.matmul %362, %361, %cst_61 {dimension_numbers = #tpu.dot_dimension_numbers<[1], [0], [0], [1], [0, 0, 1, 1], [], []>} : vector<8x128xbf16>, vector<128x128xbf16>, vector<8x128xf32> -> vector<8x128xf32>
    %364 = vector.extract_strided_slice %1 {offsets = [1, 0], sizes = [1, 128], strides = [1, 1]} : vector<3x128xf32> to vector<1x128xf32>
    %365 = vector.broadcast %364 : vector<1x128xf32> to vector<8x128xf32>
    %366 = arith.addf %363, %365 : vector<8x128xf32>
    %cst_62 = arith.constant 0.000000e+00 : f32
    %367 = vector.broadcast %cst_62 : f32 to vector<8x128xf32>
    %368 = arith.maximumf %366, %367 : vector<8x128xf32>
    %c128_63 = arith.constant 128 : index
    %c0_64 = arith.constant 0 : index
    %369 = vector.load %arg3[%c128_63, %c0_64] : memref<256x128xbf16, #tpu.memory_space<vmem>>, vector<128x128xbf16>
    %370 = arith.truncf %368 : vector<8x128xf32> to vector<8x128xbf16>
    %cst_65 = arith.constant dense<0.000000e+00> : vector<8x128xf32>
    %371 = tpu.matmul %370, %369, %cst_65 {dimension_numbers = #tpu.dot_dimension_numbers<[1], [0], [0], [1], [0, 0, 1, 1], [], []>} : vector<8x128xbf16>, vector<128x128xbf16>, vector<8x128xf32> -> vector<8x128xf32>
    %372 = vector.extract_strided_slice %1 {offsets = [2, 0], sizes = [1, 128], strides = [1, 1]} : vector<3x128xf32> to vector<1x128xf32>
    %373 = vector.broadcast %372 : vector<1x128xf32> to vector<8x128xf32>
    %374 = arith.addf %371, %373 : vector<8x128xf32>
    %c0_66 = arith.constant 0 : index
    %c0_67 = arith.constant 0 : index
    %375 = vector.load %arg5[%c0_66, %c0_67] : memref<8x128xf32, #tpu.memory_space<vmem>>, vector<8x128xf32>
    tpu.vector_store %arg5[%c0_66, %c0_67], %374 {strides = array<i32>} : memref<8x128xf32, #tpu.memory_space<vmem>>, vector<8x128xf32>,
    return
  }
  func.func @transform_0(%arg0: i32) -> (i32, i32) {
    %c0_i32 = arith.constant 0 : i32
    %c0_i32_0 = arith.constant 0 : i32
    return %arg0, %c0_i32 : i32, i32
  }
  func.func @transform_1(%arg0: i32) -> (i32, i32) {
    %c0_i32 = arith.constant 0 : i32
    %c0_i32_0 = arith.constant 0 : i32
    %c0_i32_1 = arith.constant 0 : i32
    return %c0_i32, %c0_i32_0 : i32, i32
  }
  func.func @transform_2(%arg0: i32) -> (i32, i32) {
    %c0_i32 = arith.constant 0 : i32
    %c0_i32_0 = arith.constant 0 : i32
    %c0_i32_1 = arith.constant 0 : i32
    return %c0_i32, %c0_i32_0 : i32, i32
  }
  func.func @transform_3(%arg0: i32) -> (i32, i32) {
    %c0_i32 = arith.constant 0 : i32
    %c0_i32_0 = arith.constant 0 : i32
    %c0_i32_1 = arith.constant 0 : i32
    return %c0_i32, %c0_i32_0 : i32, i32
  }
  func.func @transform_4(%arg0: i32) -> (i32, i32) {
    %c0_i32 = arith.constant 0 : i32
    %c0_i32_0 = arith.constant 0 : i32
    return %arg0, %c0_i32 : i32, i32
  }
}

module attributes {stable_mosaic.version = 11 : i64} {
  func.func @_fused_kernel(%arg0: i32, %arg1: memref<8x50xi32, #tpu.memory_space<vmem>>, %arg2: memref<6400x128xbf16, #tpu.memory_space<vmem>>, %arg3: memref<256x128xbf16, #tpu.memory_space<vmem>>, %arg4: memref<3x128xf32, #tpu.memory_space<vmem>>, %arg5: memref<8x128xf32, #tpu.memory_space<vmem>>, %arg6: memref<8x6400xbf16, #tpu.memory_space<vmem>>) attributes {dimension_semantics = [#tpu.dimension_semantics<parallel>], iteration_bounds = array<i64: 1>, scalar_prefetch = 0 : i64, scratch_operands = 1 : i64, tpu.core_type = #tpu.core_type<tc>, window_params = [{transform_indices = @transform_0, window_bounds = array<i64: 8, 50>}, {pipeline_mode = #tpu.pipeline_mode<synchronous>, transform_indices = @transform_1, window_bounds = array<i64: 6400, 128>}, {pipeline_mode = #tpu.pipeline_mode<synchronous>, transform_indices = @transform_2, window_bounds = array<i64: 256, 128>}, {pipeline_mode = #tpu.pipeline_mode<synchronous>, transform_indices = @transform_3, window_bounds = array<i64: 3, 128>}, {transform_indices = @transform_4, window_bounds = array<i64: 8, 128>}]} {
    %c0 = arith.constant 0 : index
    %c0_0 = arith.constant 0 : index
    %0 = vector.load %arg1[%c0, %c0_0] : memref<8x50xi32, #tpu.memory_space<vmem>>, vector<8x50xi32>
    %c0_1 = arith.constant 0 : index
    %c0_2 = arith.constant 0 : index
    %1 = vector.load %arg4[%c0_1, %c0_2] : memref<3x128xf32, #tpu.memory_space<vmem>>, vector<3x128xf32>
    %2 = tpu.iota {dimensions = array<i32: 1>} : vector<8x128xi32>
    %3 = vector.extract_strided_slice %0 {offsets = [0, 0], sizes = [8, 1], strides = [1, 1]} : vector<8x50xi32> to vector<8x1xi32>
    %4 = vector.broadcast %3 : vector<8x1xi32> to vector<8x128xi32>
    %5 = arith.cmpi eq, %2, %4 : vector<8x128xi32>
    %6 = arith.extui %5 : vector<8x128xi1> to vector<8x128xi32>
    %7 = arith.sitofp %6 : vector<8x128xi32> to vector<8x128xf32>
    %8 = arith.truncf %7 : vector<8x128xf32> to vector<8x128xbf16>
    %c0_3 = arith.constant 0 : index
    %c0_4 = arith.constant 0 : index
    %9 = vector.load %arg6[%c0_3, %c0_4] : memref<8x6400xbf16, #tpu.memory_space<vmem>>, vector<8x128xbf16>
    tpu.vector_store %arg6[%c0_3, %c0_4], %8 {strides = array<i32>} : memref<8x6400xbf16, #tpu.memory_space<vmem>>, vector<8x128xbf16>,
    %10 = vector.extract_strided_slice %0 {offsets = [0, 1], sizes = [8, 1], strides = [1, 1]} : vector<8x50xi32> to vector<8x1xi32>
    %11 = vector.broadcast %10 : vector<8x1xi32> to vector<8x128xi32>
    %12 = arith.cmpi eq, %2, %11 : vector<8x128xi32>
    %13 = arith.extui %12 : vector<8x128xi1> to vector<8x128xi32>
    %14 = arith.sitofp %13 : vector<8x128xi32> to vector<8x128xf32>
    %15 = arith.truncf %14 : vector<8x128xf32> to vector<8x128xbf16>
    %c0_5 = arith.constant 0 : index
    %c128 = arith.constant 128 : index
    %16 = vector.load %arg6[%c0_5, %c128] : memref<8x6400xbf16, #tpu.memory_space<vmem>>, vector<8x128xbf16>
    tpu.vector_store %arg6[%c0_5, %c128], %15 {strides = array<i32>} : memref<8x6400xbf16, #tpu.memory_space<vmem>>, vector<8x128xbf16>,
    %17 = vector.extract_strided_slice %0 {offsets = [0, 2], sizes = [8, 1], strides = [1, 1]} : vector<8x50xi32> to vector<8x1xi32>
    %18 = vector.broadcast %17 : vector<8x1xi32> to vector<8x128xi32>
    %19 = arith.cmpi eq, %2, %18 : vector<8x128xi32>
    %20 = arith.extui %19 : vector<8x128xi1> to vector<8x128xi32>
    %21 = arith.sitofp %20 : vector<8x128xi32> to vector<8x128xf32>
    %22 = arith.truncf %21 : vector<8x128xf32> to vector<8x128xbf16>
    %c0_6 = arith.constant 0 : index
    %c256 = arith.constant 256 : index
    %23 = vector.load %arg6[%c0_6, %c256] : memref<8x6400xbf16, #tpu.memory_space<vmem>>, vector<8x128xbf16>
    tpu.vector_store %arg6[%c0_6, %c256], %22 {strides = array<i32>} : memref<8x6400xbf16, #tpu.memory_space<vmem>>, vector<8x128xbf16>,
    %24 = vector.extract_strided_slice %0 {offsets = [0, 3], sizes = [8, 1], strides = [1, 1]} : vector<8x50xi32> to vector<8x1xi32>
    %25 = vector.broadcast %24 : vector<8x1xi32> to vector<8x128xi32>
    %26 = arith.cmpi eq, %2, %25 : vector<8x128xi32>
    %27 = arith.extui %26 : vector<8x128xi1> to vector<8x128xi32>
    %28 = arith.sitofp %27 : vector<8x128xi32> to vector<8x128xf32>
    %29 = arith.truncf %28 : vector<8x128xf32> to vector<8x128xbf16>
    %c0_7 = arith.constant 0 : index
    %c384 = arith.constant 384 : index
    %30 = vector.load %arg6[%c0_7, %c384] : memref<8x6400xbf16, #tpu.memory_space<vmem>>, vector<8x128xbf16>
    tpu.vector_store %arg6[%c0_7, %c384], %29 {strides = array<i32>} : memref<8x6400xbf16, #tpu.memory_space<vmem>>, vector<8x128xbf16>,
    %31 = vector.extract_strided_slice %0 {offsets = [0, 4], sizes = [8, 1], strides = [1, 1]} : vector<8x50xi32> to vector<8x1xi32>
    %32 = vector.broadcast %31 : vector<8x1xi32> to vector<8x128xi32>
    %33 = arith.cmpi eq, %2, %32 : vector<8x128xi32>
    %34 = arith.extui %33 : vector<8x128xi1> to vector<8x128xi32>
    %35 = arith.sitofp %34 : vector<8x128xi32> to vector<8x128xf32>
    %36 = arith.truncf %35 : vector<8x128xf32> to vector<8x128xbf16>
    %c0_8 = arith.constant 0 : index
    %c512 = arith.constant 512 : index
    %37 = vector.load %arg6[%c0_8, %c512] : memref<8x6400xbf16, #tpu.memory_space<vmem>>, vector<8x128xbf16>
    tpu.vector_store %arg6[%c0_8, %c512], %36 {strides = array<i32>} : memref<8x6400xbf16, #tpu.memory_space<vmem>>, vector<8x128xbf16>,
    %38 = vector.extract_strided_slice %0 {offsets = [0, 5], sizes = [8, 1], strides = [1, 1]} : vector<8x50xi32> to vector<8x1xi32>
    %39 = vector.broadcast %38 : vector<8x1xi32> to vector<8x128xi32>
    %40 = arith.cmpi eq, %2, %39 : vector<8x128xi32>
    %41 = arith.extui %40 : vector<8x128xi1> to vector<8x128xi32>
    %42 = arith.sitofp %41 : vector<8x128xi32> to vector<8x128xf32>
    %43 = arith.truncf %42 : vector<8x128xf32> to vector<8x128xbf16>
    %c0_9 = arith.constant 0 : index
    %c640 = arith.constant 640 : index
    %44 = vector.load %arg6[%c0_9, %c640] : memref<8x6400xbf16, #tpu.memory_space<vmem>>, vector<8x128xbf16>
    tpu.vector_store %arg6[%c0_9, %c640], %43 {strides = array<i32>} : memref<8x6400xbf16, #tpu.memory_space<vmem>>, vector<8x128xbf16>,
    %45 = vector.extract_strided_slice %0 {offsets = [0, 6], sizes = [8, 1], strides = [1, 1]} : vector<8x50xi32> to vector<8x1xi32>
    %46 = vector.broadcast %45 : vector<8x1xi32> to vector<8x128xi32>
    %47 = arith.cmpi eq, %2, %46 : vector<8x128xi32>
    %48 = arith.extui %47 : vector<8x128xi1> to vector<8x128xi32>
    %49 = arith.sitofp %48 : vector<8x128xi32> to vector<8x128xf32>
    %50 = arith.truncf %49 : vector<8x128xf32> to vector<8x128xbf16>
    %c0_10 = arith.constant 0 : index
    %c768 = arith.constant 768 : index
    %51 = vector.load %arg6[%c0_10, %c768] : memref<8x6400xbf16, #tpu.memory_space<vmem>>, vector<8x128xbf16>
    tpu.vector_store %arg6[%c0_10, %c768], %50 {strides = array<i32>} : memref<8x6400xbf16, #tpu.memory_space<vmem>>, vector<8x128xbf16>,
    %52 = vector.extract_strided_slice %0 {offsets = [0, 7], sizes = [8, 1], strides = [1, 1]} : vector<8x50xi32> to vector<8x1xi32>
    %53 = vector.broadcast %52 : vector<8x1xi32> to vector<8x128xi32>
    %54 = arith.cmpi eq, %2, %53 : vector<8x128xi32>
    %55 = arith.extui %54 : vector<8x128xi1> to vector<8x128xi32>
    %56 = arith.sitofp %55 : vector<8x128xi32> to vector<8x128xf32>
    %57 = arith.truncf %56 : vector<8x128xf32> to vector<8x128xbf16>
    %c0_11 = arith.constant 0 : index
    %c896 = arith.constant 896 : index
    %58 = vector.load %arg6[%c0_11, %c896] : memref<8x6400xbf16, #tpu.memory_space<vmem>>, vector<8x128xbf16>
    tpu.vector_store %arg6[%c0_11, %c896], %57 {strides = array<i32>} : memref<8x6400xbf16, #tpu.memory_space<vmem>>, vector<8x128xbf16>,
    %59 = vector.extract_strided_slice %0 {offsets = [0, 8], sizes = [8, 1], strides = [1, 1]} : vector<8x50xi32> to vector<8x1xi32>
    %60 = vector.broadcast %59 : vector<8x1xi32> to vector<8x128xi32>
    %61 = arith.cmpi eq, %2, %60 : vector<8x128xi32>
    %62 = arith.extui %61 : vector<8x128xi1> to vector<8x128xi32>
    %63 = arith.sitofp %62 : vector<8x128xi32> to vector<8x128xf32>
    %64 = arith.truncf %63 : vector<8x128xf32> to vector<8x128xbf16>
    %c0_12 = arith.constant 0 : index
    %c1024 = arith.constant 1024 : index
    %65 = vector.load %arg6[%c0_12, %c1024] : memref<8x6400xbf16, #tpu.memory_space<vmem>>, vector<8x128xbf16>
    tpu.vector_store %arg6[%c0_12, %c1024], %64 {strides = array<i32>} : memref<8x6400xbf16, #tpu.memory_space<vmem>>, vector<8x128xbf16>,
    %66 = vector.extract_strided_slice %0 {offsets = [0, 9], sizes = [8, 1], strides = [1, 1]} : vector<8x50xi32> to vector<8x1xi32>
    %67 = vector.broadcast %66 : vector<8x1xi32> to vector<8x128xi32>
    %68 = arith.cmpi eq, %2, %67 : vector<8x128xi32>
    %69 = arith.extui %68 : vector<8x128xi1> to vector<8x128xi32>
    %70 = arith.sitofp %69 : vector<8x128xi32> to vector<8x128xf32>
    %71 = arith.truncf %70 : vector<8x128xf32> to vector<8x128xbf16>
    %c0_13 = arith.constant 0 : index
    %c1152 = arith.constant 1152 : index
    %72 = vector.load %arg6[%c0_13, %c1152] : memref<8x6400xbf16, #tpu.memory_space<vmem>>, vector<8x128xbf16>
    tpu.vector_store %arg6[%c0_13, %c1152], %71 {strides = array<i32>} : memref<8x6400xbf16, #tpu.memory_space<vmem>>, vector<8x128xbf16>,
    %73 = vector.extract_strided_slice %0 {offsets = [0, 10], sizes = [8, 1], strides = [1, 1]} : vector<8x50xi32> to vector<8x1xi32>
    %74 = vector.broadcast %73 : vector<8x1xi32> to vector<8x128xi32>
    %75 = arith.cmpi eq, %2, %74 : vector<8x128xi32>
    %76 = arith.extui %75 : vector<8x128xi1> to vector<8x128xi32>
    %77 = arith.sitofp %76 : vector<8x128xi32> to vector<8x128xf32>
    %78 = arith.truncf %77 : vector<8x128xf32> to vector<8x128xbf16>
    %c0_14 = arith.constant 0 : index
    %c1280 = arith.constant 1280 : index
    %79 = vector.load %arg6[%c0_14, %c1280] : memref<8x6400xbf16, #tpu.memory_space<vmem>>, vector<8x128xbf16>
    tpu.vector_store %arg6[%c0_14, %c1280], %78 {strides = array<i32>} : memref<8x6400xbf16, #tpu.memory_space<vmem>>, vector<8x128xbf16>,
    %80 = vector.extract_strided_slice %0 {offsets = [0, 11], sizes = [8, 1], strides = [1, 1]} : vector<8x50xi32> to vector<8x1xi32>
    %81 = vector.broadcast %80 : vector<8x1xi32> to vector<8x128xi32>
    %82 = arith.cmpi eq, %2, %81 : vector<8x128xi32>
    %83 = arith.extui %82 : vector<8x128xi1> to vector<8x128xi32>
    %84 = arith.sitofp %83 : vector<8x128xi32> to vector<8x128xf32>
    %85 = arith.truncf %84 : vector<8x128xf32> to vector<8x128xbf16>
    %c0_15 = arith.constant 0 : index
    %c1408 = arith.constant 1408 : index
    %86 = vector.load %arg6[%c0_15, %c1408] : memref<8x6400xbf16, #tpu.memory_space<vmem>>, vector<8x128xbf16>
    tpu.vector_store %arg6[%c0_15, %c1408], %85 {strides = array<i32>} : memref<8x6400xbf16, #tpu.memory_space<vmem>>, vector<8x128xbf16>,
    %87 = vector.extract_strided_slice %0 {offsets = [0, 12], sizes = [8, 1], strides = [1, 1]} : vector<8x50xi32> to vector<8x1xi32>
    %88 = vector.broadcast %87 : vector<8x1xi32> to vector<8x128xi32>
    %89 = arith.cmpi eq, %2, %88 : vector<8x128xi32>
    %90 = arith.extui %89 : vector<8x128xi1> to vector<8x128xi32>
    %91 = arith.sitofp %90 : vector<8x128xi32> to vector<8x128xf32>
    %92 = arith.truncf %91 : vector<8x128xf32> to vector<8x128xbf16>
    %c0_16 = arith.constant 0 : index
    %c1536 = arith.constant 1536 : index
    %93 = vector.load %arg6[%c0_16, %c1536] : memref<8x6400xbf16, #tpu.memory_space<vmem>>, vector<8x128xbf16>
    tpu.vector_store %arg6[%c0_16, %c1536], %92 {strides = array<i32>} : memref<8x6400xbf16, #tpu.memory_space<vmem>>, vector<8x128xbf16>,
    %94 = vector.extract_strided_slice %0 {offsets = [0, 13], sizes = [8, 1], strides = [1, 1]} : vector<8x50xi32> to vector<8x1xi32>
    %95 = vector.broadcast %94 : vector<8x1xi32> to vector<8x128xi32>
    %96 = arith.cmpi eq, %2, %95 : vector<8x128xi32>
    %97 = arith.extui %96 : vector<8x128xi1> to vector<8x128xi32>
    %98 = arith.sitofp %97 : vector<8x128xi32> to vector<8x128xf32>
    %99 = arith.truncf %98 : vector<8x128xf32> to vector<8x128xbf16>
    %c0_17 = arith.constant 0 : index
    %c1664 = arith.constant 1664 : index
    %100 = vector.load %arg6[%c0_17, %c1664] : memref<8x6400xbf16, #tpu.memory_space<vmem>>, vector<8x128xbf16>
    tpu.vector_store %arg6[%c0_17, %c1664], %99 {strides = array<i32>} : memref<8x6400xbf16, #tpu.memory_space<vmem>>, vector<8x128xbf16>,
    %101 = vector.extract_strided_slice %0 {offsets = [0, 14], sizes = [8, 1], strides = [1, 1]} : vector<8x50xi32> to vector<8x1xi32>
    %102 = vector.broadcast %101 : vector<8x1xi32> to vector<8x128xi32>
    %103 = arith.cmpi eq, %2, %102 : vector<8x128xi32>
    %104 = arith.extui %103 : vector<8x128xi1> to vector<8x128xi32>
    %105 = arith.sitofp %104 : vector<8x128xi32> to vector<8x128xf32>
    %106 = arith.truncf %105 : vector<8x128xf32> to vector<8x128xbf16>
    %c0_18 = arith.constant 0 : index
    %c1792 = arith.constant 1792 : index
    %107 = vector.load %arg6[%c0_18, %c1792] : memref<8x6400xbf16, #tpu.memory_space<vmem>>, vector<8x128xbf16>
    tpu.vector_store %arg6[%c0_18, %c1792], %106 {strides = array<i32>} : memref<8x6400xbf16, #tpu.memory_space<vmem>>, vector<8x128xbf16>,
    %108 = vector.extract_strided_slice %0 {offsets = [0, 15], sizes = [8, 1], strides = [1, 1]} : vector<8x50xi32> to vector<8x1xi32>
    %109 = vector.broadcast %108 : vector<8x1xi32> to vector<8x128xi32>
    %110 = arith.cmpi eq, %2, %109 : vector<8x128xi32>
    %111 = arith.extui %110 : vector<8x128xi1> to vector<8x128xi32>
    %112 = arith.sitofp %111 : vector<8x128xi32> to vector<8x128xf32>
    %113 = arith.truncf %112 : vector<8x128xf32> to vector<8x128xbf16>
    %c0_19 = arith.constant 0 : index
    %c1920 = arith.constant 1920 : index
    %114 = vector.load %arg6[%c0_19, %c1920] : memref<8x6400xbf16, #tpu.memory_space<vmem>>, vector<8x128xbf16>
    tpu.vector_store %arg6[%c0_19, %c1920], %113 {strides = array<i32>} : memref<8x6400xbf16, #tpu.memory_space<vmem>>, vector<8x128xbf16>,
    %115 = vector.extract_strided_slice %0 {offsets = [0, 16], sizes = [8, 1], strides = [1, 1]} : vector<8x50xi32> to vector<8x1xi32>
    %116 = vector.broadcast %115 : vector<8x1xi32> to vector<8x128xi32>
    %117 = arith.cmpi eq, %2, %116 : vector<8x128xi32>
    %118 = arith.extui %117 : vector<8x128xi1> to vector<8x128xi32>
    %119 = arith.sitofp %118 : vector<8x128xi32> to vector<8x128xf32>
    %120 = arith.truncf %119 : vector<8x128xf32> to vector<8x128xbf16>
    %c0_20 = arith.constant 0 : index
    %c2048 = arith.constant 2048 : index
    %121 = vector.load %arg6[%c0_20, %c2048] : memref<8x6400xbf16, #tpu.memory_space<vmem>>, vector<8x128xbf16>
    tpu.vector_store %arg6[%c0_20, %c2048], %120 {strides = array<i32>} : memref<8x6400xbf16, #tpu.memory_space<vmem>>, vector<8x128xbf16>,
    %122 = vector.extract_strided_slice %0 {offsets = [0, 17], sizes = [8, 1], strides = [1, 1]} : vector<8x50xi32> to vector<8x1xi32>
    %123 = vector.broadcast %122 : vector<8x1xi32> to vector<8x128xi32>
    %124 = arith.cmpi eq, %2, %123 : vector<8x128xi32>
    %125 = arith.extui %124 : vector<8x128xi1> to vector<8x128xi32>
    %126 = arith.sitofp %125 : vector<8x128xi32> to vector<8x128xf32>
    %127 = arith.truncf %126 : vector<8x128xf32> to vector<8x128xbf16>
    %c0_21 = arith.constant 0 : index
    %c2176 = arith.constant 2176 : index
    %128 = vector.load %arg6[%c0_21, %c2176] : memref<8x6400xbf16, #tpu.memory_space<vmem>>, vector<8x128xbf16>
    tpu.vector_store %arg6[%c0_21, %c2176], %127 {strides = array<i32>} : memref<8x6400xbf16, #tpu.memory_space<vmem>>, vector<8x128xbf16>,
    %129 = vector.extract_strided_slice %0 {offsets = [0, 18], sizes = [8, 1], strides = [1, 1]} : vector<8x50xi32> to vector<8x1xi32>
    %130 = vector.broadcast %129 : vector<8x1xi32> to vector<8x128xi32>
    %131 = arith.cmpi eq, %2, %130 : vector<8x128xi32>
    %132 = arith.extui %131 : vector<8x128xi1> to vector<8x128xi32>
    %133 = arith.sitofp %132 : vector<8x128xi32> to vector<8x128xf32>
    %134 = arith.truncf %133 : vector<8x128xf32> to vector<8x128xbf16>
    %c0_22 = arith.constant 0 : index
    %c2304 = arith.constant 2304 : index
    %135 = vector.load %arg6[%c0_22, %c2304] : memref<8x6400xbf16, #tpu.memory_space<vmem>>, vector<8x128xbf16>
    tpu.vector_store %arg6[%c0_22, %c2304], %134 {strides = array<i32>} : memref<8x6400xbf16, #tpu.memory_space<vmem>>, vector<8x128xbf16>,
    %136 = vector.extract_strided_slice %0 {offsets = [0, 19], sizes = [8, 1], strides = [1, 1]} : vector<8x50xi32> to vector<8x1xi32>
    %137 = vector.broadcast %136 : vector<8x1xi32> to vector<8x128xi32>
    %138 = arith.cmpi eq, %2, %137 : vector<8x128xi32>
    %139 = arith.extui %138 : vector<8x128xi1> to vector<8x128xi32>
    %140 = arith.sitofp %139 : vector<8x128xi32> to vector<8x128xf32>
    %141 = arith.truncf %140 : vector<8x128xf32> to vector<8x128xbf16>
    %c0_23 = arith.constant 0 : index
    %c2432 = arith.constant 2432 : index
    %142 = vector.load %arg6[%c0_23, %c2432] : memref<8x6400xbf16, #tpu.memory_space<vmem>>, vector<8x128xbf16>
    tpu.vector_store %arg6[%c0_23, %c2432], %141 {strides = array<i32>} : memref<8x6400xbf16, #tpu.memory_space<vmem>>, vector<8x128xbf16>,
    %143 = vector.extract_strided_slice %0 {offsets = [0, 20], sizes = [8, 1], strides = [1, 1]} : vector<8x50xi32> to vector<8x1xi32>
    %144 = vector.broadcast %143 : vector<8x1xi32> to vector<8x128xi32>
    %145 = arith.cmpi eq, %2, %144 : vector<8x128xi32>
    %146 = arith.extui %145 : vector<8x128xi1> to vector<8x128xi32>
    %147 = arith.sitofp %146 : vector<8x128xi32> to vector<8x128xf32>
    %148 = arith.truncf %147 : vector<8x128xf32> to vector<8x128xbf16>
    %c0_24 = arith.constant 0 : index
    %c2560 = arith.constant 2560 : index
    %149 = vector.load %arg6[%c0_24, %c2560] : memref<8x6400xbf16, #tpu.memory_space<vmem>>, vector<8x128xbf16>
    tpu.vector_store %arg6[%c0_24, %c2560], %148 {strides = array<i32>} : memref<8x6400xbf16, #tpu.memory_space<vmem>>, vector<8x128xbf16>,
    %150 = vector.extract_strided_slice %0 {offsets = [0, 21], sizes = [8, 1], strides = [1, 1]} : vector<8x50xi32> to vector<8x1xi32>
    %151 = vector.broadcast %150 : vector<8x1xi32> to vector<8x128xi32>
    %152 = arith.cmpi eq, %2, %151 : vector<8x128xi32>
    %153 = arith.extui %152 : vector<8x128xi1> to vector<8x128xi32>
    %154 = arith.sitofp %153 : vector<8x128xi32> to vector<8x128xf32>
    %155 = arith.truncf %154 : vector<8x128xf32> to vector<8x128xbf16>
    %c0_25 = arith.constant 0 : index
    %c2688 = arith.constant 2688 : index
    %156 = vector.load %arg6[%c0_25, %c2688] : memref<8x6400xbf16, #tpu.memory_space<vmem>>, vector<8x128xbf16>
    tpu.vector_store %arg6[%c0_25, %c2688], %155 {strides = array<i32>} : memref<8x6400xbf16, #tpu.memory_space<vmem>>, vector<8x128xbf16>,
    %157 = vector.extract_strided_slice %0 {offsets = [0, 22], sizes = [8, 1], strides = [1, 1]} : vector<8x50xi32> to vector<8x1xi32>
    %158 = vector.broadcast %157 : vector<8x1xi32> to vector<8x128xi32>
    %159 = arith.cmpi eq, %2, %158 : vector<8x128xi32>
    %160 = arith.extui %159 : vector<8x128xi1> to vector<8x128xi32>
    %161 = arith.sitofp %160 : vector<8x128xi32> to vector<8x128xf32>
    %162 = arith.truncf %161 : vector<8x128xf32> to vector<8x128xbf16>
    %c0_26 = arith.constant 0 : index
    %c2816 = arith.constant 2816 : index
    %163 = vector.load %arg6[%c0_26, %c2816] : memref<8x6400xbf16, #tpu.memory_space<vmem>>, vector<8x128xbf16>
    tpu.vector_store %arg6[%c0_26, %c2816], %162 {strides = array<i32>} : memref<8x6400xbf16, #tpu.memory_space<vmem>>, vector<8x128xbf16>,
    %164 = vector.extract_strided_slice %0 {offsets = [0, 23], sizes = [8, 1], strides = [1, 1]} : vector<8x50xi32> to vector<8x1xi32>
    %165 = vector.broadcast %164 : vector<8x1xi32> to vector<8x128xi32>
    %166 = arith.cmpi eq, %2, %165 : vector<8x128xi32>
    %167 = arith.extui %166 : vector<8x128xi1> to vector<8x128xi32>
    %168 = arith.sitofp %167 : vector<8x128xi32> to vector<8x128xf32>
    %169 = arith.truncf %168 : vector<8x128xf32> to vector<8x128xbf16>
    %c0_27 = arith.constant 0 : index
    %c2944 = arith.constant 2944 : index
    %170 = vector.load %arg6[%c0_27, %c2944] : memref<8x6400xbf16, #tpu.memory_space<vmem>>, vector<8x128xbf16>
    tpu.vector_store %arg6[%c0_27, %c2944], %169 {strides = array<i32>} : memref<8x6400xbf16, #tpu.memory_space<vmem>>, vector<8x128xbf16>,
    %171 = vector.extract_strided_slice %0 {offsets = [0, 24], sizes = [8, 1], strides = [1, 1]} : vector<8x50xi32> to vector<8x1xi32>
    %172 = vector.broadcast %171 : vector<8x1xi32> to vector<8x128xi32>
    %173 = arith.cmpi eq, %2, %172 : vector<8x128xi32>
    %174 = arith.extui %173 : vector<8x128xi1> to vector<8x128xi32>
    %175 = arith.sitofp %174 : vector<8x128xi32> to vector<8x128xf32>
    %176 = arith.truncf %175 : vector<8x128xf32> to vector<8x128xbf16>
    %c0_28 = arith.constant 0 : index
    %c3072 = arith.constant 3072 : index
    %177 = vector.load %arg6[%c0_28, %c3072] : memref<8x6400xbf16, #tpu.memory_space<vmem>>, vector<8x128xbf16>
    tpu.vector_store %arg6[%c0_28, %c3072], %176 {strides = array<i32>} : memref<8x6400xbf16, #tpu.memory_space<vmem>>, vector<8x128xbf16>,
    %178 = vector.extract_strided_slice %0 {offsets = [0, 25], sizes = [8, 1], strides = [1, 1]} : vector<8x50xi32> to vector<8x1xi32>
    %179 = vector.broadcast %178 : vector<8x1xi32> to vector<8x128xi32>
    %180 = arith.cmpi eq, %2, %179 : vector<8x128xi32>
    %181 = arith.extui %180 : vector<8x128xi1> to vector<8x128xi32>
    %182 = arith.sitofp %181 : vector<8x128xi32> to vector<8x128xf32>
    %183 = arith.truncf %182 : vector<8x128xf32> to vector<8x128xbf16>
    %c0_29 = arith.constant 0 : index
    %c3200 = arith.constant 3200 : index
    %184 = vector.load %arg6[%c0_29, %c3200] : memref<8x6400xbf16, #tpu.memory_space<vmem>>, vector<8x128xbf16>
    tpu.vector_store %arg6[%c0_29, %c3200], %183 {strides = array<i32>} : memref<8x6400xbf16, #tpu.memory_space<vmem>>, vector<8x128xbf16>,
    %185 = vector.extract_strided_slice %0 {offsets = [0, 26], sizes = [8, 1], strides = [1, 1]} : vector<8x50xi32> to vector<8x1xi32>
    %186 = vector.broadcast %185 : vector<8x1xi32> to vector<8x128xi32>
    %187 = arith.cmpi eq, %2, %186 : vector<8x128xi32>
    %188 = arith.extui %187 : vector<8x128xi1> to vector<8x128xi32>
    %189 = arith.sitofp %188 : vector<8x128xi32> to vector<8x128xf32>
    %190 = arith.truncf %189 : vector<8x128xf32> to vector<8x128xbf16>
    %c0_30 = arith.constant 0 : index
    %c3328 = arith.constant 3328 : index
    %191 = vector.load %arg6[%c0_30, %c3328] : memref<8x6400xbf16, #tpu.memory_space<vmem>>, vector<8x128xbf16>
    tpu.vector_store %arg6[%c0_30, %c3328], %190 {strides = array<i32>} : memref<8x6400xbf16, #tpu.memory_space<vmem>>, vector<8x128xbf16>,
    %192 = vector.extract_strided_slice %0 {offsets = [0, 27], sizes = [8, 1], strides = [1, 1]} : vector<8x50xi32> to vector<8x1xi32>
    %193 = vector.broadcast %192 : vector<8x1xi32> to vector<8x128xi32>
    %194 = arith.cmpi eq, %2, %193 : vector<8x128xi32>
    %195 = arith.extui %194 : vector<8x128xi1> to vector<8x128xi32>
    %196 = arith.sitofp %195 : vector<8x128xi32> to vector<8x128xf32>
    %197 = arith.truncf %196 : vector<8x128xf32> to vector<8x128xbf16>
    %c0_31 = arith.constant 0 : index
    %c3456 = arith.constant 3456 : index
    %198 = vector.load %arg6[%c0_31, %c3456] : memref<8x6400xbf16, #tpu.memory_space<vmem>>, vector<8x128xbf16>
    tpu.vector_store %arg6[%c0_31, %c3456], %197 {strides = array<i32>} : memref<8x6400xbf16, #tpu.memory_space<vmem>>, vector<8x128xbf16>,
    %199 = vector.extract_strided_slice %0 {offsets = [0, 28], sizes = [8, 1], strides = [1, 1]} : vector<8x50xi32> to vector<8x1xi32>
    %200 = vector.broadcast %199 : vector<8x1xi32> to vector<8x128xi32>
    %201 = arith.cmpi eq, %2, %200 : vector<8x128xi32>
    %202 = arith.extui %201 : vector<8x128xi1> to vector<8x128xi32>
    %203 = arith.sitofp %202 : vector<8x128xi32> to vector<8x128xf32>
    %204 = arith.truncf %203 : vector<8x128xf32> to vector<8x128xbf16>
    %c0_32 = arith.constant 0 : index
    %c3584 = arith.constant 3584 : index
    %205 = vector.load %arg6[%c0_32, %c3584] : memref<8x6400xbf16, #tpu.memory_space<vmem>>, vector<8x128xbf16>
    tpu.vector_store %arg6[%c0_32, %c3584], %204 {strides = array<i32>} : memref<8x6400xbf16, #tpu.memory_space<vmem>>, vector<8x128xbf16>,
    %206 = vector.extract_strided_slice %0 {offsets = [0, 29], sizes = [8, 1], strides = [1, 1]} : vector<8x50xi32> to vector<8x1xi32>
    %207 = vector.broadcast %206 : vector<8x1xi32> to vector<8x128xi32>
    %208 = arith.cmpi eq, %2, %207 : vector<8x128xi32>
    %209 = arith.extui %208 : vector<8x128xi1> to vector<8x128xi32>
    %210 = arith.sitofp %209 : vector<8x128xi32> to vector<8x128xf32>
    %211 = arith.truncf %210 : vector<8x128xf32> to vector<8x128xbf16>
    %c0_33 = arith.constant 0 : index
    %c3712 = arith.constant 3712 : index
    %212 = vector.load %arg6[%c0_33, %c3712] : memref<8x6400xbf16, #tpu.memory_space<vmem>>, vector<8x128xbf16>
    tpu.vector_store %arg6[%c0_33, %c3712], %211 {strides = array<i32>} : memref<8x6400xbf16, #tpu.memory_space<vmem>>, vector<8x128xbf16>,
    %213 = vector.extract_strided_slice %0 {offsets = [0, 30], sizes = [8, 1], strides = [1, 1]} : vector<8x50xi32> to vector<8x1xi32>
    %214 = vector.broadcast %213 : vector<8x1xi32> to vector<8x128xi32>
    %215 = arith.cmpi eq, %2, %214 : vector<8x128xi32>
    %216 = arith.extui %215 : vector<8x128xi1> to vector<8x128xi32>
    %217 = arith.sitofp %216 : vector<8x128xi32> to vector<8x128xf32>
    %218 = arith.truncf %217 : vector<8x128xf32> to vector<8x128xbf16>
    %c0_34 = arith.constant 0 : index
    %c3840 = arith.constant 3840 : index
    %219 = vector.load %arg6[%c0_34, %c3840] : memref<8x6400xbf16, #tpu.memory_space<vmem>>, vector<8x128xbf16>
    tpu.vector_store %arg6[%c0_34, %c3840], %218 {strides = array<i32>} : memref<8x6400xbf16, #tpu.memory_space<vmem>>, vector<8x128xbf16>,
    %220 = vector.extract_strided_slice %0 {offsets = [0, 31], sizes = [8, 1], strides = [1, 1]} : vector<8x50xi32> to vector<8x1xi32>
    %221 = vector.broadcast %220 : vector<8x1xi32> to vector<8x128xi32>
    %222 = arith.cmpi eq, %2, %221 : vector<8x128xi32>
    %223 = arith.extui %222 : vector<8x128xi1> to vector<8x128xi32>
    %224 = arith.sitofp %223 : vector<8x128xi32> to vector<8x128xf32>
    %225 = arith.truncf %224 : vector<8x128xf32> to vector<8x128xbf16>
    %c0_35 = arith.constant 0 : index
    %c3968 = arith.constant 3968 : index
    %226 = vector.load %arg6[%c0_35, %c3968] : memref<8x6400xbf16, #tpu.memory_space<vmem>>, vector<8x128xbf16>
    tpu.vector_store %arg6[%c0_35, %c3968], %225 {strides = array<i32>} : memref<8x6400xbf16, #tpu.memory_space<vmem>>, vector<8x128xbf16>,
    %227 = vector.extract_strided_slice %0 {offsets = [0, 32], sizes = [8, 1], strides = [1, 1]} : vector<8x50xi32> to vector<8x1xi32>
    %228 = vector.broadcast %227 : vector<8x1xi32> to vector<8x128xi32>
    %229 = arith.cmpi eq, %2, %228 : vector<8x128xi32>
    %230 = arith.extui %229 : vector<8x128xi1> to vector<8x128xi32>
    %231 = arith.sitofp %230 : vector<8x128xi32> to vector<8x128xf32>
    %232 = arith.truncf %231 : vector<8x128xf32> to vector<8x128xbf16>
    %c0_36 = arith.constant 0 : index
    %c4096 = arith.constant 4096 : index
    %233 = vector.load %arg6[%c0_36, %c4096] : memref<8x6400xbf16, #tpu.memory_space<vmem>>, vector<8x128xbf16>
    tpu.vector_store %arg6[%c0_36, %c4096], %232 {strides = array<i32>} : memref<8x6400xbf16, #tpu.memory_space<vmem>>, vector<8x128xbf16>,
    %234 = vector.extract_strided_slice %0 {offsets = [0, 33], sizes = [8, 1], strides = [1, 1]} : vector<8x50xi32> to vector<8x1xi32>
    %235 = vector.broadcast %234 : vector<8x1xi32> to vector<8x128xi32>
    %236 = arith.cmpi eq, %2, %235 : vector<8x128xi32>
    %237 = arith.extui %236 : vector<8x128xi1> to vector<8x128xi32>
    %238 = arith.sitofp %237 : vector<8x128xi32> to vector<8x128xf32>
    %239 = arith.truncf %238 : vector<8x128xf32> to vector<8x128xbf16>
    %c0_37 = arith.constant 0 : index
    %c4224 = arith.constant 4224 : index
    %240 = vector.load %arg6[%c0_37, %c4224] : memref<8x6400xbf16, #tpu.memory_space<vmem>>, vector<8x128xbf16>
    tpu.vector_store %arg6[%c0_37, %c4224], %239 {strides = array<i32>} : memref<8x6400xbf16, #tpu.memory_space<vmem>>, vector<8x128xbf16>,
    %241 = vector.extract_strided_slice %0 {offsets = [0, 34], sizes = [8, 1], strides = [1, 1]} : vector<8x50xi32> to vector<8x1xi32>
    %242 = vector.broadcast %241 : vector<8x1xi32> to vector<8x128xi32>
    %243 = arith.cmpi eq, %2, %242 : vector<8x128xi32>
    %244 = arith.extui %243 : vector<8x128xi1> to vector<8x128xi32>
    %245 = arith.sitofp %244 : vector<8x128xi32> to vector<8x128xf32>
    %246 = arith.truncf %245 : vector<8x128xf32> to vector<8x128xbf16>
    %c0_38 = arith.constant 0 : index
    %c4352 = arith.constant 4352 : index
    %247 = vector.load %arg6[%c0_38, %c4352] : memref<8x6400xbf16, #tpu.memory_space<vmem>>, vector<8x128xbf16>
    tpu.vector_store %arg6[%c0_38, %c4352], %246 {strides = array<i32>} : memref<8x6400xbf16, #tpu.memory_space<vmem>>, vector<8x128xbf16>,
    %248 = vector.extract_strided_slice %0 {offsets = [0, 35], sizes = [8, 1], strides = [1, 1]} : vector<8x50xi32> to vector<8x1xi32>
    %249 = vector.broadcast %248 : vector<8x1xi32> to vector<8x128xi32>
    %250 = arith.cmpi eq, %2, %249 : vector<8x128xi32>
    %251 = arith.extui %250 : vector<8x128xi1> to vector<8x128xi32>
    %252 = arith.sitofp %251 : vector<8x128xi32> to vector<8x128xf32>
    %253 = arith.truncf %252 : vector<8x128xf32> to vector<8x128xbf16>
    %c0_39 = arith.constant 0 : index
    %c4480 = arith.constant 4480 : index
    %254 = vector.load %arg6[%c0_39, %c4480] : memref<8x6400xbf16, #tpu.memory_space<vmem>>, vector<8x128xbf16>
    tpu.vector_store %arg6[%c0_39, %c4480], %253 {strides = array<i32>} : memref<8x6400xbf16, #tpu.memory_space<vmem>>, vector<8x128xbf16>,
    %255 = vector.extract_strided_slice %0 {offsets = [0, 36], sizes = [8, 1], strides = [1, 1]} : vector<8x50xi32> to vector<8x1xi32>
    %256 = vector.broadcast %255 : vector<8x1xi32> to vector<8x128xi32>
    %257 = arith.cmpi eq, %2, %256 : vector<8x128xi32>
    %258 = arith.extui %257 : vector<8x128xi1> to vector<8x128xi32>
    %259 = arith.sitofp %258 : vector<8x128xi32> to vector<8x128xf32>
    %260 = arith.truncf %259 : vector<8x128xf32> to vector<8x128xbf16>
    %c0_40 = arith.constant 0 : index
    %c4608 = arith.constant 4608 : index
    %261 = vector.load %arg6[%c0_40, %c4608] : memref<8x6400xbf16, #tpu.memory_space<vmem>>, vector<8x128xbf16>
    tpu.vector_store %arg6[%c0_40, %c4608], %260 {strides = array<i32>} : memref<8x6400xbf16, #tpu.memory_space<vmem>>, vector<8x128xbf16>,
    %262 = vector.extract_strided_slice %0 {offsets = [0, 37], sizes = [8, 1], strides = [1, 1]} : vector<8x50xi32> to vector<8x1xi32>
    %263 = vector.broadcast %262 : vector<8x1xi32> to vector<8x128xi32>
    %264 = arith.cmpi eq, %2, %263 : vector<8x128xi32>
    %265 = arith.extui %264 : vector<8x128xi1> to vector<8x128xi32>
    %266 = arith.sitofp %265 : vector<8x128xi32> to vector<8x128xf32>
    %267 = arith.truncf %266 : vector<8x128xf32> to vector<8x128xbf16>
    %c0_41 = arith.constant 0 : index
    %c4736 = arith.constant 4736 : index
    %268 = vector.load %arg6[%c0_41, %c4736] : memref<8x6400xbf16, #tpu.memory_space<vmem>>, vector<8x128xbf16>
    tpu.vector_store %arg6[%c0_41, %c4736], %267 {strides = array<i32>} : memref<8x6400xbf16, #tpu.memory_space<vmem>>, vector<8x128xbf16>,
    %269 = vector.extract_strided_slice %0 {offsets = [0, 38], sizes = [8, 1], strides = [1, 1]} : vector<8x50xi32> to vector<8x1xi32>
    %270 = vector.broadcast %269 : vector<8x1xi32> to vector<8x128xi32>
    %271 = arith.cmpi eq, %2, %270 : vector<8x128xi32>
    %272 = arith.extui %271 : vector<8x128xi1> to vector<8x128xi32>
    %273 = arith.sitofp %272 : vector<8x128xi32> to vector<8x128xf32>
    %274 = arith.truncf %273 : vector<8x128xf32> to vector<8x128xbf16>
    %c0_42 = arith.constant 0 : index
    %c4864 = arith.constant 4864 : index
    %275 = vector.load %arg6[%c0_42, %c4864] : memref<8x6400xbf16, #tpu.memory_space<vmem>>, vector<8x128xbf16>
    tpu.vector_store %arg6[%c0_42, %c4864], %274 {strides = array<i32>} : memref<8x6400xbf16, #tpu.memory_space<vmem>>, vector<8x128xbf16>,
    %276 = vector.extract_strided_slice %0 {offsets = [0, 39], sizes = [8, 1], strides = [1, 1]} : vector<8x50xi32> to vector<8x1xi32>
    %277 = vector.broadcast %276 : vector<8x1xi32> to vector<8x128xi32>
    %278 = arith.cmpi eq, %2, %277 : vector<8x128xi32>
    %279 = arith.extui %278 : vector<8x128xi1> to vector<8x128xi32>
    %280 = arith.sitofp %279 : vector<8x128xi32> to vector<8x128xf32>
    %281 = arith.truncf %280 : vector<8x128xf32> to vector<8x128xbf16>
    %c0_43 = arith.constant 0 : index
    %c4992 = arith.constant 4992 : index
    %282 = vector.load %arg6[%c0_43, %c4992] : memref<8x6400xbf16, #tpu.memory_space<vmem>>, vector<8x128xbf16>
    tpu.vector_store %arg6[%c0_43, %c4992], %281 {strides = array<i32>} : memref<8x6400xbf16, #tpu.memory_space<vmem>>, vector<8x128xbf16>,
    %283 = vector.extract_strided_slice %0 {offsets = [0, 40], sizes = [8, 1], strides = [1, 1]} : vector<8x50xi32> to vector<8x1xi32>
    %284 = vector.broadcast %283 : vector<8x1xi32> to vector<8x128xi32>
    %285 = arith.cmpi eq, %2, %284 : vector<8x128xi32>
    %286 = arith.extui %285 : vector<8x128xi1> to vector<8x128xi32>
    %287 = arith.sitofp %286 : vector<8x128xi32> to vector<8x128xf32>
    %288 = arith.truncf %287 : vector<8x128xf32> to vector<8x128xbf16>
    %c0_44 = arith.constant 0 : index
    %c5120 = arith.constant 5120 : index
    %289 = vector.load %arg6[%c0_44, %c5120] : memref<8x6400xbf16, #tpu.memory_space<vmem>>, vector<8x128xbf16>
    tpu.vector_store %arg6[%c0_44, %c5120], %288 {strides = array<i32>} : memref<8x6400xbf16, #tpu.memory_space<vmem>>, vector<8x128xbf16>,
    %290 = vector.extract_strided_slice %0 {offsets = [0, 41], sizes = [8, 1], strides = [1, 1]} : vector<8x50xi32> to vector<8x1xi32>
    %291 = vector.broadcast %290 : vector<8x1xi32> to vector<8x128xi32>
    %292 = arith.cmpi eq, %2, %291 : vector<8x128xi32>
    %293 = arith.extui %292 : vector<8x128xi1> to vector<8x128xi32>
    %294 = arith.sitofp %293 : vector<8x128xi32> to vector<8x128xf32>
    %295 = arith.truncf %294 : vector<8x128xf32> to vector<8x128xbf16>
    %c0_45 = arith.constant 0 : index
    %c5248 = arith.constant 5248 : index
    %296 = vector.load %arg6[%c0_45, %c5248] : memref<8x6400xbf16, #tpu.memory_space<vmem>>, vector<8x128xbf16>
    tpu.vector_store %arg6[%c0_45, %c5248], %295 {strides = array<i32>} : memref<8x6400xbf16, #tpu.memory_space<vmem>>, vector<8x128xbf16>,
    %297 = vector.extract_strided_slice %0 {offsets = [0, 42], sizes = [8, 1], strides = [1, 1]} : vector<8x50xi32> to vector<8x1xi32>
    %298 = vector.broadcast %297 : vector<8x1xi32> to vector<8x128xi32>
    %299 = arith.cmpi eq, %2, %298 : vector<8x128xi32>
    %300 = arith.extui %299 : vector<8x128xi1> to vector<8x128xi32>
    %301 = arith.sitofp %300 : vector<8x128xi32> to vector<8x128xf32>
    %302 = arith.truncf %301 : vector<8x128xf32> to vector<8x128xbf16>
    %c0_46 = arith.constant 0 : index
    %c5376 = arith.constant 5376 : index
    %303 = vector.load %arg6[%c0_46, %c5376] : memref<8x6400xbf16, #tpu.memory_space<vmem>>, vector<8x128xbf16>
    tpu.vector_store %arg6[%c0_46, %c5376], %302 {strides = array<i32>} : memref<8x6400xbf16, #tpu.memory_space<vmem>>, vector<8x128xbf16>,
    %304 = vector.extract_strided_slice %0 {offsets = [0, 43], sizes = [8, 1], strides = [1, 1]} : vector<8x50xi32> to vector<8x1xi32>
    %305 = vector.broadcast %304 : vector<8x1xi32> to vector<8x128xi32>
    %306 = arith.cmpi eq, %2, %305 : vector<8x128xi32>
    %307 = arith.extui %306 : vector<8x128xi1> to vector<8x128xi32>
    %308 = arith.sitofp %307 : vector<8x128xi32> to vector<8x128xf32>
    %309 = arith.truncf %308 : vector<8x128xf32> to vector<8x128xbf16>
    %c0_47 = arith.constant 0 : index
    %c5504 = arith.constant 5504 : index
    %310 = vector.load %arg6[%c0_47, %c5504] : memref<8x6400xbf16, #tpu.memory_space<vmem>>, vector<8x128xbf16>
    tpu.vector_store %arg6[%c0_47, %c5504], %309 {strides = array<i32>} : memref<8x6400xbf16, #tpu.memory_space<vmem>>, vector<8x128xbf16>,
    %311 = vector.extract_strided_slice %0 {offsets = [0, 44], sizes = [8, 1], strides = [1, 1]} : vector<8x50xi32> to vector<8x1xi32>
    %312 = vector.broadcast %311 : vector<8x1xi32> to vector<8x128xi32>
    %313 = arith.cmpi eq, %2, %312 : vector<8x128xi32>
    %314 = arith.extui %313 : vector<8x128xi1> to vector<8x128xi32>
    %315 = arith.sitofp %314 : vector<8x128xi32> to vector<8x128xf32>
    %316 = arith.truncf %315 : vector<8x128xf32> to vector<8x128xbf16>
    %c0_48 = arith.constant 0 : index
    %c5632 = arith.constant 5632 : index
    %317 = vector.load %arg6[%c0_48, %c5632] : memref<8x6400xbf16, #tpu.memory_space<vmem>>, vector<8x128xbf16>
    tpu.vector_store %arg6[%c0_48, %c5632], %316 {strides = array<i32>} : memref<8x6400xbf16, #tpu.memory_space<vmem>>, vector<8x128xbf16>,
    %318 = vector.extract_strided_slice %0 {offsets = [0, 45], sizes = [8, 1], strides = [1, 1]} : vector<8x50xi32> to vector<8x1xi32>
    %319 = vector.broadcast %318 : vector<8x1xi32> to vector<8x128xi32>
    %320 = arith.cmpi eq, %2, %319 : vector<8x128xi32>
    %321 = arith.extui %320 : vector<8x128xi1> to vector<8x128xi32>
    %322 = arith.sitofp %321 : vector<8x128xi32> to vector<8x128xf32>
    %323 = arith.truncf %322 : vector<8x128xf32> to vector<8x128xbf16>
    %c0_49 = arith.constant 0 : index
    %c5760 = arith.constant 5760 : index
    %324 = vector.load %arg6[%c0_49, %c5760] : memref<8x6400xbf16, #tpu.memory_space<vmem>>, vector<8x128xbf16>
    tpu.vector_store %arg6[%c0_49, %c5760], %323 {strides = array<i32>} : memref<8x6400xbf16, #tpu.memory_space<vmem>>, vector<8x128xbf16>,
    %325 = vector.extract_strided_slice %0 {offsets = [0, 46], sizes = [8, 1], strides = [1, 1]} : vector<8x50xi32> to vector<8x1xi32>
    %326 = vector.broadcast %325 : vector<8x1xi32> to vector<8x128xi32>
    %327 = arith.cmpi eq, %2, %326 : vector<8x128xi32>
    %328 = arith.extui %327 : vector<8x128xi1> to vector<8x128xi32>
    %329 = arith.sitofp %328 : vector<8x128xi32> to vector<8x128xf32>
    %330 = arith.truncf %329 : vector<8x128xf32> to vector<8x128xbf16>
    %c0_50 = arith.constant 0 : index
    %c5888 = arith.constant 5888 : index
    %331 = vector.load %arg6[%c0_50, %c5888] : memref<8x6400xbf16, #tpu.memory_space<vmem>>, vector<8x128xbf16>
    tpu.vector_store %arg6[%c0_50, %c5888], %330 {strides = array<i32>} : memref<8x6400xbf16, #tpu.memory_space<vmem>>, vector<8x128xbf16>,
    %332 = vector.extract_strided_slice %0 {offsets = [0, 47], sizes = [8, 1], strides = [1, 1]} : vector<8x50xi32> to vector<8x1xi32>
    %333 = vector.broadcast %332 : vector<8x1xi32> to vector<8x128xi32>
    %334 = arith.cmpi eq, %2, %333 : vector<8x128xi32>
    %335 = arith.extui %334 : vector<8x128xi1> to vector<8x128xi32>
    %336 = arith.sitofp %335 : vector<8x128xi32> to vector<8x128xf32>
    %337 = arith.truncf %336 : vector<8x128xf32> to vector<8x128xbf16>
    %c0_51 = arith.constant 0 : index
    %c6016 = arith.constant 6016 : index
    %338 = vector.load %arg6[%c0_51, %c6016] : memref<8x6400xbf16, #tpu.memory_space<vmem>>, vector<8x128xbf16>
    tpu.vector_store %arg6[%c0_51, %c6016], %337 {strides = array<i32>} : memref<8x6400xbf16, #tpu.memory_space<vmem>>, vector<8x128xbf16>,
    %339 = vector.extract_strided_slice %0 {offsets = [0, 48], sizes = [8, 1], strides = [1, 1]} : vector<8x50xi32> to vector<8x1xi32>
    %340 = vector.broadcast %339 : vector<8x1xi32> to vector<8x128xi32>
    %341 = arith.cmpi eq, %2, %340 : vector<8x128xi32>
    %342 = arith.extui %341 : vector<8x128xi1> to vector<8x128xi32>
    %343 = arith.sitofp %342 : vector<8x128xi32> to vector<8x128xf32>
    %344 = arith.truncf %343 : vector<8x128xf32> to vector<8x128xbf16>
    %c0_52 = arith.constant 0 : index
    %c6144 = arith.constant 6144 : index
    %345 = vector.load %arg6[%c0_52, %c6144] : memref<8x6400xbf16, #tpu.memory_space<vmem>>, vector<8x128xbf16>
    tpu.vector_store %arg6[%c0_52, %c6144], %344 {strides = array<i32>} : memref<8x6400xbf16, #tpu.memory_space<vmem>>, vector<8x128xbf16>,
    %346 = vector.extract_strided_slice %0 {offsets = [0, 49], sizes = [8, 1], strides = [1, 1]} : vector<8x50xi32> to vector<8x1xi32>
    %347 = vector.broadcast %346 : vector<8x1xi32> to vector<8x128xi32>
    %348 = arith.cmpi eq, %2, %347 : vector<8x128xi32>
    %349 = arith.extui %348 : vector<8x128xi1> to vector<8x128xi32>
    %350 = arith.sitofp %349 : vector<8x128xi32> to vector<8x128xf32>
    %351 = arith.truncf %350 : vector<8x128xf32> to vector<8x128xbf16>
    %c0_53 = arith.constant 0 : index
    %c6272 = arith.constant 6272 : index
    %352 = vector.load %arg6[%c0_53, %c6272] : memref<8x6400xbf16, #tpu.memory_space<vmem>>, vector<8x128xbf16>
    tpu.vector_store %arg6[%c0_53, %c6272], %351 {strides = array<i32>} : memref<8x6400xbf16, #tpu.memory_space<vmem>>, vector<8x128xbf16>,
    %c0_54 = arith.constant 0 : index
    %c0_55 = arith.constant 0 : index
    %353 = vector.load %arg6[%c0_54, %c0_55] : memref<8x6400xbf16, #tpu.memory_space<vmem>>, vector<8x6400xbf16>
    %c0_56 = arith.constant 0 : index
    %c0_57 = arith.constant 0 : index
    %354 = vector.load %arg2[%c0_56, %c0_57] : memref<6400x128xbf16, #tpu.memory_space<vmem>>, vector<6400x128xbf16>
    %cst = arith.constant dense<0.000000e+00> : vector<8x128xf32>
    %355 = tpu.matmul %353, %354, %cst {dimension_numbers = #tpu.dot_dimension_numbers<[1], [0], [0], [1], [0, 0, 1, 1], [], []>} : vector<8x6400xbf16>, vector<6400x128xbf16>, vector<8x128xf32> -> vector<8x128xf32>
    %356 = vector.extract_strided_slice %1 {offsets = [0, 0], sizes = [1, 128], strides = [1, 1]} : vector<3x128xf32> to vector<1x128xf32>
    %357 = vector.broadcast %356 : vector<1x128xf32> to vector<8x128xf32>
    %358 = arith.addf %355, %357 : vector<8x128xf32>
    %cst_58 = arith.constant 0.000000e+00 : f32
    %359 = vector.broadcast %cst_58 : f32 to vector<8x128xf32>
    %360 = arith.maximumf %358, %359 : vector<8x128xf32>
    %c0_59 = arith.constant 0 : index
    %c0_60 = arith.constant 0 : index
    %361 = vector.load %arg3[%c0_59, %c0_60] : memref<256x128xbf16, #tpu.memory_space<vmem>>, vector<128x128xbf16>
    %362 = arith.truncf %360 : vector<8x128xf32> to vector<8x128xbf16>
    %cst_61 = arith.constant dense<0.000000e+00> : vector<8x128xf32>
    %363 = tpu.matmul %362, %361, %cst_61 {dimension_numbers = #tpu.dot_dimension_numbers<[1], [0], [0], [1], [0, 0, 1, 1], [], []>} : vector<8x128xbf16>, vector<128x128xbf16>, vector<8x128xf32> -> vector<8x128xf32>
    %364 = vector.extract_strided_slice %1 {offsets = [1, 0], sizes = [1, 128], strides = [1, 1]} : vector<3x128xf32> to vector<1x128xf32>
    %365 = vector.broadcast %364 : vector<1x128xf32> to vector<8x128xf32>
    %366 = arith.addf %363, %365 : vector<8x128xf32>
    %cst_62 = arith.constant 0.000000e+00 : f32
    %367 = vector.broadcast %cst_62 : f32 to vector<8x128xf32>
    %368 = arith.maximumf %366, %367 : vector<8x128xf32>
    %c128_63 = arith.constant 128 : index
    %c0_64 = arith.constant 0 : index
    %369 = vector.load %arg3[%c128_63, %c0_64] : memref<256x128xbf16, #tpu.memory_space<vmem>>, vector<128x128xbf16>
    %370 = arith.truncf %368 : vector<8x128xf32> to vector<8x128xbf16>
    %cst_65 = arith.constant dense<0.000000e+00> : vector<8x128xf32>
    %371 = tpu.matmul %370, %369, %cst_65 {dimension_numbers = #tpu.dot_dimension_numbers<[1], [0], [0], [1], [0, 0, 1, 1], [], []>} : vector<8x128xbf16>, vector<128x128xbf16>, vector<8x128xf32> -> vector<8x128xf32>
    %372 = vector.extract_strided_slice %1 {offsets = [2, 0], sizes = [1, 128], strides = [1, 1]} : vector<3x128xf32> to vector<1x128xf32>
    %373 = vector.broadcast %372 : vector<1x128xf32> to vector<8x128xf32>
    %374 = arith.addf %371, %373 : vector<8x128xf32>
    %c0_66 = arith.constant 0 : index
    %c0_67 = arith.constant 0 : index
    %375 = vector.load %arg5[%c0_66, %c0_67] : memref<8x128xf32, #tpu.memory_space<vmem>>, vector<8x128xf32>
    tpu.vector_store %arg5[%c0_66, %c0_67], %374 {strides = array<i32>} : memref<8x128xf32, #tpu.memory_space<vmem>>, vector<8x128xf32>,
    return
  }
  func.func @transform_0(%arg0: i32) -> (i32, i32) {
    %c0_i32 = arith.constant 0 : i32
    %c0_i32_0 = arith.constant 0 : i32
    return %arg0, %c0_i32 : i32, i32
  }
  func.func @transform_1(%arg0: i32) -> (i32, i32) {
    %c0_i32 = arith.constant 0 : i32
    %c0_i32_0 = arith.constant 0 : i32
    %c0_i32_1 = arith.constant 0 : i32
    return %c0_i32, %c0_i32_0 : i32, i32
  }
  func.func @transform_2(%arg0: i32) -> (i32, i32) {
    %c0_i32 = arith.constant 0 : i32
    %c0_i32_0 = arith.constant 0 : i32
    %c0_i32_1 = arith.constant 0 : i32
    return %c0_i32, %c0_i32_0 : i32, i32
  }
  func.func @transform_3(%arg0: i32) -> (i32, i32) {
    %c0_i32 = arith.constant 0 : i32
    %c0_i32_0 = arith.constant 0 : i32
    %c0_i32_1 = arith.constant 0 : i32
    return %c0_i32, %c0_i32_0 : i32, i32
  }
  func.func @transform_4(%arg0: i32) -> (i32, i32) {
    %c0_i32 = arith.constant 0 : i32
    %c0_i32_0 = arith.constant 0 : i32
    return %arg0, %c0_i32 : i32, i32
  }
}

</mosaic_0001>

<bundles_post_ra>
// kernel: tpu_custom_call.1
= control target key start
LH: loop header
LB: loop body
LE: loop exit
PB: predicated region body
PF: predicated region fallthrough
CT: control target
= control target key end

     0   :  { %9 = vsyncpa [#allocation4], 0  ;;  %s7410_s0 = inlined_call_operand.hbm [shape: s32[8,50], index: 0, kind: input, shape index: {}]   ;;  %s7411_s1 = inlined_call_operand.hbm [shape: bf16[6400,128], index: 1, kind: input, shape index: {}]   ;;  %s7412_s2 = inlined_call_operand.hbm [shape: bf16[256,128], index: 2, kind: input, shape index: {}]   ;;  %s7413_s3 = inlined_call_operand.hbm [shape: f32[3,128], index: 3, kind: input, shape index: {}]   ;;  %s7414_s4 = inlined_call_operand.hbm [shape: f32[8,128], index: 4, kind: output, shape index: {}]  }
   0x1   :  { %10 = vsyncpa [#allocation7], 0 }
   0x2   :  { %11 = vsyncpa [#allocation10], 0 }
   0x3   :  { %12 = vsyncpa [#allocation5], 0  ;;  %s6937_s15 = smov [#allocation6]   ;;  %s6819_s19 = scalar_lea.hbm %s7411_s1, 51200 }
   0x4   :  { %s28_s16 = sshll.u32 %s6937_s15, 4  ;;  %p6820_p0 = scmp.ne.s32.totalorder %s7411_s1, %s6819_s19  ;;  %s29_s16 = int_to_ptr.vmem [resolvable:$true] %s28_s16 }
   0x5   :  { %p6823_p1 = scmp.lt.u32.totalorder %s6819_s19, %s7411_s1 }
   0x7   :  { %p6825_p2 = pnand %p6823_p1, %p6820_p0 }
   0x9   :  { %6828 = shalt.err (!%p6825_p2)
}
   0xa   :  { %s6829_s24 = scalar_lea.vmem %s29_s16, 51200  ;;  %p6834_p4 = scmp.lt.s32.totalorder %s29_s16, %s29_s16 }
   0xb   :  { %p6830_p3 = scmp.ne.s32.totalorder %s29_s16, %s6829_s24  ;;  %p6835_p5 = scmp.lt.s32.totalorder %s6829_s24, %s6829_s24 }
   0xd   :  { %p6836_p6 = por %p6835_p5, %p6834_p4 }
   0xf   :  { %p6837_p7 = pnand %p6836_p6, %p6830_p3 }
  0x11   :  { %6840 = shalt.err (!%p6837_p7)
}
  0x12   :  { %s6938_s25 = smov 64   ;;  %s6939_s26 = smov 4  }
  0x13   :  { %34 = dma.hbm_to_vmem [thread:$0]  %s7411_s1, 51200, %s29_s16, [#allocation7], %s6938_s25, %s6938_s25, %s6939_s26  }
  0x14   :  { %s6940_s29 = smov [#allocation3]   ;;  %s6941_s5 = smov [#allocation8]  }
  0x15   :  { %s19_s30 = sshll.u32 %s6940_s29, 4  ;;  %s40_s6 = sshll.u32 %s6941_s5, 4  ;;  %s20_s30 = int_to_ptr.vmem [resolvable:$true] %s19_s30  ;;  %s41_s6 = int_to_ptr.vmem [resolvable:$true] %s40_s6 }
  0x16   :  { %s6841_s9 = scalar_lea.hbm %s7410_s0, 128 }
  0x17   :  { %p6842_p8 = scmp.ne.s32.totalorder %s7410_s0, %s6841_s9  ;;  %p6845_p9 = scmp.lt.u32.totalorder %s6841_s9, %s7410_s0 }
  0x19   :  { %p6847_p10 = pnand %p6845_p9, %p6842_p8 }
  0x1b   :  { %6850 = shalt.err (!%p6847_p10)
}
  0x1c   :  { %s6851_s1 = scalar_lea.vmem %s20_s30, 128  ;;  %p6856_p12 = scmp.lt.s32.totalorder %s20_s30, %s20_s30 }
  0x1d   :  { %p6852_p11 = scmp.ne.s32.totalorder %s20_s30, %s6851_s1  ;;  %p6857_p13 = scmp.lt.s32.totalorder %s6851_s1, %s6851_s1 }
  0x1f   :  { %p6858_p0 = por %p6857_p13, %p6856_p12 }
  0x21   :  { %p6859_p1 = pnand %p6858_p0, %p6852_p11 }
  0x23   :  { %6862 = shalt.err (!%p6859_p1)
}
  0x24   :  { %22 = dma.hbm_to_vmem [thread:$0]  %s7410_s0, 128, %s20_s30, [#allocation4]  }
  0x25   :  { %s6863_s18 = scalar_lea.hbm %s7412_s2, 2048 }
  0x26   :  { %p6864_p2 = scmp.ne.s32.totalorder %s7412_s2, %s6863_s18  ;;  %p6867_p3 = scmp.lt.u32.totalorder %s6863_s18, %s7412_s2 }
  0x28   :  { %p6869_p4 = pnand %p6867_p3, %p6864_p2 }
  0x2a   :  { %6872 = shalt.err (!%p6869_p4)
}
  0x2b   :  { %s6873_s23 = scalar_lea.vmem %s41_s6, 2048  ;;  %p6878_p6 = scmp.lt.s32.totalorder %s41_s6, %s41_s6 }
  0x2c   :  { %p6874_p5 = scmp.ne.s32.totalorder %s41_s6, %s6873_s23  ;;  %p6879_p7 = scmp.lt.s32.totalorder %s6873_s23, %s6873_s23 }
  0x2e   :  { %p6880_p8 = por %p6879_p7, %p6878_p6 }
  0x30   :  { %p6881_p9 = pnand %p6880_p8, %p6874_p5 }
  0x32   :  { %6884 = shalt.err (!%p6881_p9)
}
  0x33   :  { %46 = dma.hbm_to_vmem [thread:$0]  %s7412_s2, 2048, %s41_s6, [#allocation7], %s6938_s25, %s6938_s25, %s6939_s26  }
  0x34   :  { %s6942_s27 = smov [#allocation9]   ;;  %s6885_s5 = scalar_lea.hbm %s7413_s3, 64 }
  0x35   :  { %s53_s28 = sshll.u32 %s6942_s27, 4  ;;  %p6886_p10 = scmp.ne.s32.totalorder %s7413_s3, %s6885_s5  ;;  %s54_s28 = int_to_ptr.vmem [resolvable:$true] %s53_s28 }
  0x36   :  { %p6889_p11 = scmp.lt.u32.totalorder %s6885_s5, %s7413_s3 }
  0x38   :  { %p6891_p12 = pnand %p6889_p11, %p6886_p10 }
  0x3a   :  { %6894 = shalt.err (!%p6891_p12)
}
  0x3b   :  { %s6895_s11 = scalar_lea.vmem %s54_s28, 64  ;;  %p6900_p0 = scmp.lt.s32.totalorder %s54_s28, %s54_s28 }
  0x3c   :  { %p6896_p13 = scmp.ne.s32.totalorder %s54_s28, %s6895_s11  ;;  %p6901_p1 = scmp.lt.s32.totalorder %s6895_s11, %s6895_s11 }
  0x3e   :  { %p6902_p2 = por %p6901_p1, %p6900_p0 }
  0x40   :  { %p6903_p3 = pnand %p6902_p2, %p6896_p13 }
  0x42   :  { %6906 = shalt.err (!%p6903_p3)
}
  0x43   :  { %56 = dma.hbm_to_vmem [thread:$0]  %s7413_s3, 64, %s54_s28, [#allocation10]  }
  0x44   :  { %6929 = dma.done.wait [#allocation4], 128  }
  0x45   :  { %6930 = vsyncadd [#allocation4], 4294967168 }
  0x46   :  { %6931 = dma.done.wait [#allocation7], 53248  }
  0x47   :  { %6932 = vsyncadd [#allocation7], 4294914048 }
  0x48   :  { %6933 = dma.done.wait [#allocation10], 64  }
  0x49   :  { %6934 = vsyncadd [#allocation10], 4294967232  ;;  %v6943_v0 = vmov 0   ;;  %v6944_v1 = vmov 2   ;;  %v7075_v2 = vld [vmem:[#allocation3] sm:$0xff]  ;;  %v6350_v3 = vld [vmem:[#allocation6 + $0x40] sm:$0xff]  }
  0x4a   :  { %6299 = vset.pattern.permute.xlu0 %v6943_v0  ;;  %6301 = vset.pattern.permute.xlu1 %v6944_v1  ;;  %v6351_v4 = vld [vmem:[#allocation6] sm:$0xff]   ;;  %v6945_v7 = vmov 1   ;;  %v6946_v8 = vmov 3   ;;  %v6354_v9 = vld [vmem:[#allocation6 + $0x48] sm:$0xff]   ;;  %v6358_v13 = vld [vmem:[#allocation6 + $0x50] sm:$0xff]   ;;  %v6947_v14 = vmov 4  }
  0x4b   :  { %75 = vperm.xlu0 %6299, %v7075_v2   ;;  %91 = vperm.xlu1 %6301, %v7075_v2   ;;  %v6352_v5 = vld [vmem:[#allocation6 + $0xc0] sm:$0xff]   ;;  %v6355_v10 = vld [vmem:[#allocation6 + $0x8] sm:$0xff]   ;;  %v6948_v15 = vmov 5   ;;  %v6359_v16 = vld [vmem:[#allocation6 + $0x10] sm:$0xff]   ;;  %v6949_v21 = vmov 6   ;;  %v6950_v22 = vmov 8  }
  0x4c   :  { %5632 = vmatprep.subr.bf16.mxu0 %v6350_v3  ;;  %v6353_v6 = vld [vmem:[#allocation6 + $0x80] sm:$0xff]   ;;  %5654 = vmatprep.subr.bf16.mxu1 %v6352_v5  ;;  %v6356_v11 = vld [vmem:[#allocation6 + $0xc8] sm:$0xff]   ;;  %v6360_v17 = vld [vmem:[#allocation6 + $0xd0] sm:$0xff]   ;;  %v6951_v28 = vmov 7   ;;  %v6952_v29 = vmov 11   ;;  %v6953_v34 = vmov 9  }
  0x4d   :  { %5633 = vmatpush3.bf16.msra.mxu0 %v6351_v4  ;;  %5655 = vmatpush3.bf16.msra.mxu1 %v6353_v6  ;;  %v6357_v12 = vld [vmem:[#allocation6 + $0x88] sm:$0xff]   ;;  %v6361_v18 = vld [vmem:[#allocation6 + $0x90] sm:$0xff]   ;;  %v6362_v19 = vld [vmem:[#allocation6 + $0x58] sm:$0xff]   ;;  %v6954_v35 = vmov 14   ;;  %v6955_v41 = vmov 10   ;;  %v6956_v42 = vmov 17   ;;  %v72_v4 = vlaneseq }
  0x4e   :  { %5634 = vmatprep.subr.bf16.mxu0 %v6354_v9  ;;  %5656 = vmatprep.subr.bf16.mxu1 %v6356_v11  ;;  %v6363_v20 = vld [vmem:[#allocation6 + $0x18] sm:$0xff]   ;;  %v6366_v25 = vld [vmem:[#allocation6 + $0x60] sm:$0xff]   ;;  %v6370_v30 = vld [vmem:[#allocation6 + $0x68] sm:$0xff]   ;;  %v6957_v47 = vmov 12   ;;  %v6958_v48 = vmov 20   ;;  %v6959_v51 = vmov 13  }
  0x4f   :  { %6300 = vset.pattern.permute.xlu0 %v6945_v7  ;;  %6302 = vset.pattern.permute.xlu1 %v6946_v8  ;;  %v6364_v23 = vld [vmem:[#allocation6 + $0xd8] sm:$0xff]   ;;  %v6367_v26 = vld [vmem:[#allocation6 + $0x20] sm:$0xff]   ;;  %v6371_v32 = vld [vmem:[#allocation6 + $0x28] sm:$0xff]   ;;  %v6960_v52 = vmov 23   ;;  %v6961_v53 = vmov 15   ;;  %v6962_v54 = vmov 16  }
  0x50   :  { %83 = vperm.xlu0 %6300, %v7075_v2   ;;  %99 = vperm.xlu1 %6302, %v7075_v2   ;;  %v6365_v24 = vld [vmem:[#allocation6 + $0x98] sm:$0xff]   ;;  %v6368_v27 = vld [vmem:[#allocation6 + $0xe0] sm:$0xff]   ;;  %v6372_v33 = vld [vmem:[#allocation6 + $0xe8] sm:$0xff]   ;;  %v6963_v55 = vmov 18   ;;  %v6964_v56 = vmov 19   ;;  %v6965_v57 = vmov 21  }
  0x51   :  { %5635 = vmatpush3.bf16.msra.mxu0 %v6355_v10  ;;  %5657 = vmatpush3.bf16.msra.mxu1 %v6357_v12  ;;  %v6369_v31 = vld [vmem:[#allocation6 + $0xa0] sm:$0xff]   ;;  %v6374_v36 = vld [vmem:[#allocation6 + $0x70] sm:$0xff]   ;;  %v6373_v37 = vld [vmem:[#allocation6 + $0xa8] sm:$0xff]   ;;  %v6966_v58 = vmov 22   ;;  %v6967_v59 = vmov 26   ;;  %v6968_v60 = vmov 24  }
  0x52   :  { %5636 = vmatprep.subr.bf16.mxu0 %v6358_v13  ;;  %5658 = vmatprep.subr.bf16.mxu1 %v6360_v17  ;;  %v6375_v38 = vld [vmem:[#allocation6 + $0x30] sm:$0xff]   ;;  %v6378_v40 = vld [vmem:[#allocation6 + $0x78] sm:$0xff]   ;;  %v6384_v46 = vld [vmem:[#allocation6 + $0x140] sm:$0xff]   ;;  %v6969_v61 = vmov 25   ;;  %v6970_v62 = vmov 27   ;;  %v6971_v63 = vmov 28  }
  0x53   :  { %v6376_v39 = vld [vmem:[#allocation6 + $0xf0] sm:$0xff]   ;;  %v6379_v44 = vld [vmem:[#allocation6 + $0x38] sm:$0xff]   ;;  %v6388_v50 = vld [vmem:[#allocation6 + $0x1c0] sm:$0xff]   ;;  %v6972_v0 = vmov 30   ;;  %v6973_v1 = vmov 29   ;;  %v6974_v3 = vmov 31  }
  0x54   :  { %6303 = vset.pattern.permute.xlu1 %v6947_v14  ;;  %6304 = vset.pattern.permute.xlu0 %v6948_v15  ;;  %v6377_v43 = vld [vmem:[#allocation6 + $0xb0] sm:$0xff]   ;;  %v6380_v45 = vld [vmem:[#allocation6 + $0xf8] sm:$0xff]   ;;  %v7110_v5 = vand.u32 127, %v72_v4  ;;  %v6975_v8 = vmov 33   ;;  %v6976_v9 = vmov 32   ;;  %v6977_v10 = vmov 0.0  }
  0x55   :  { %107 = vperm.xlu1 %6303, %v7075_v2   ;;  %115 = vperm.xlu0 %6304, %v7075_v2   ;;  %v6381_v49 = vld [vmem:[#allocation6 + $0xb8] sm:$0xff]   ;;  %s6995_s3 = smov [#allocation11]  }
  0x56   :  { %5637 = vmatpush3.bf16.msra.mxu0 %v6359_v16  ;;  %5659 = vmatpush3.bf16.msra.mxu1 %v6361_v18  ;;  %s5105_s26 = sshll.u32 %s6995_s3, 4  ;;  %s5106_s26 = int_to_ptr.vmem [resolvable:$true] %s5105_s26 }
  0x57   :  { %5638 = vmatprep.subr.bf16.mxu0 %v6362_v19  ;;  %5660 = vmatprep.subr.bf16.mxu1 %v6364_v23  ;;  %v6978_v19 = vmov 34   ;;  %s6907_s6 = scalar_lea.vmem %s5106_s26, 128  ;;  %p6912_p5 = scmp.lt.s32.totalorder %s5106_s26, %s5106_s26 }
  0x58   :  { %p6908_p4 = scmp.ne.s32.totalorder %s5106_s26, %s6907_s6  ;;  %p6913_p6 = scmp.lt.s32.totalorder %s6907_s6, %s6907_s6 }
  0x59   :  { %6305 = vset.pattern.permute.xlu1 %v6949_v21  ;;  %6307 = vset.pattern.permute.xlu0 %v6950_v22 }
  0x5a   :  { %123 = vperm.xlu1 %6305, %v7075_v2   ;;  %139 = vperm.xlu0 %6307, %v7075_v2   ;;  %p6914_p7 = por %p6913_p6, %p6912_p5 }
  0x5b   :  { %5639 = vmatpush3.bf16.msra.mxu0 %v6363_v20  ;;  %5661 = vmatpush3.bf16.msra.mxu1 %v6365_v24  ;;  %v6979_v24 = vmov 35  }
  0x5c   :  { %5640 = vmatprep.subr.bf16.mxu0 %v6366_v25  ;;  %5662 = vmatprep.subr.bf16.mxu1 %v6368_v27  ;;  %p6915_p8 = pnand %p6914_p7, %p6908_p4 }
  0x5e   :  { %6306 = vset.pattern.permute.xlu1 %v6951_v28  ;;  %6310 = vset.pattern.permute.xlu0 %v6952_v29 }
  0x5f   :  { %131 = vperm.xlu1 %6306, %v7075_v2   ;;  %163 = vperm.xlu0 %6310, %v7075_v2  }
  0x60   :  { %5641 = vmatpush3.bf16.msra.mxu0 %v6367_v26  ;;  %5663 = vmatpush3.bf16.msra.mxu1 %v6369_v31  ;;  %v6385_v31 = vld [vmem:[#allocation6 + $0x100] sm:$0xff]  }
  0x61   :  { %5642 = vmatprep.subr.bf16.mxu0 %v6370_v30  ;;  %5664 = vmatprep.subr.bf16.mxu1 %v6372_v33 }
  0x63   :  { %6308 = vset.pattern.permute.xlu1 %v6953_v34  ;;  %6313 = vset.pattern.permute.xlu0 %v6954_v35  ;;  %v6389_v34 = vld [vmem:[#allocation6 + $0x180] sm:$0xff]  }
  0x64   :  { %147 = vperm.xlu1 %6308, %v7075_v2   ;;  %187 = vperm.xlu0 %6313, %v7075_v2  }
  0x65   :  { %5643 = vmatpush3.bf16.msra.mxu0 %v6371_v32  ;;  %5665 = vmatpush3.bf16.msra.mxu1 %v6373_v37 }
  0x66   :  { %5644 = vmatprep.subr.bf16.mxu0 %v6374_v36  ;;  %5666 = vmatprep.subr.bf16.mxu1 %v6376_v39 }
  0x68   :  { %6309 = vset.pattern.permute.xlu1 %v6955_v41  ;;  %6316 = vset.pattern.permute.xlu0 %v6956_v42  ;;  %v6392_v41 = vld [vmem:[#allocation6 + $0x1c8] sm:$0xff]  }
  0x69   :  { %155 = vperm.xlu1 %6309, %v7075_v2   ;;  %211 = vperm.xlu0 %6316, %v7075_v2  }
  0x6a   :  { %5645 = vmatpush3.bf16.msra.mxu0 %v6375_v38  ;;  %5667 = vmatpush3.bf16.msra.mxu1 %v6377_v43 }
  0x6b   :  { %5646 = vmatprep.subr.bf16.mxu0 %v6378_v40  ;;  %5668 = vmatprep.subr.bf16.mxu1 %v6380_v45  ;;  %v6390_v40 = vld [vmem:[#allocation6 + $0x148] sm:$0xff]  }
  0x6c   :  { %v6393_v45 = vld [vmem:[#allocation6 + $0x188] sm:$0xff]  }
  0x6d   :  { %6311 = vset.pattern.permute.xlu1 %v6957_v47  ;;  %6319 = vset.pattern.permute.xlu0 %v6958_v48  ;;  %v6394_v48 = vld [vmem:[#allocation6 + $0x150] sm:$0xff]  }
  0x6e   :  { %171 = vperm.xlu1 %6311, %v7075_v2   ;;  %5647 = vmatpush3.bf16.msra.mxu0 %v6379_v44  ;;  %v6391_v44 = vld [vmem:[#allocation6 + $0x108] sm:$0xff]  }
  0x6f   :  { %5676 = vmatprep.subr.bf16.mxu0 %v6384_v46  ;;  %235 = vperm.xlu0 %6319, %v7075_v2  }
  0x70   :  { %5669 = vmatpush3.bf16.msra.mxu1 %v6381_v49  ;;  %v6396_v49 = vld [vmem:[#allocation6 + $0x1d0] sm:$0xff]  }
  0x71   :  { %5698 = vmatprep.subr.bf16.mxu1 %v6388_v50 }
  0x72   :  { %6312 = vset.pattern.permute.xlu1 %v6959_v51 }
  0x73   :  { %179 = vperm.xlu1 %6312, %v7075_v2   ;;  %6322 = vset.pattern.permute.xlu0 %v6960_v52 }
  0x74   :  { %259 = vperm.xlu0 %6322, %v7075_v2  }
  0x77   :  { %6314 = vset.pattern.permute.xlu1 %v6961_v53 }
  0x78   :  { %195 = vperm.xlu1 %6314, %v7075_v2   ;;  %6325 = vset.pattern.permute.xlu0 %v6967_v59  ;;  %v6397_v59 = vld [vmem:[#allocation6 + $0x190] sm:$0xff]  }
  0x79   :  { %283 = vperm.xlu0 %6325, %v7075_v2  }
  0x7c   :  { %6315 = vset.pattern.permute.xlu1 %v6962_v54 }
  0x7d   :  { %203 = vperm.xlu1 %6315, %v7075_v2   ;;  %6328 = vset.pattern.permute.xlu0 %v6973_v1 }
  0x7e   :  { %307 = vperm.xlu0 %6328, %v7075_v2  }
  0x81   :  { %6317 = vset.pattern.permute.xlu1 %v6963_v55 }
  0x82   :  { %219 = vperm.xlu1 %6317, %v7075_v2   ;;  %6331 = vset.pattern.permute.xlu0 %v6976_v9  ;;  %v6402_v9 = vld [vmem:[#allocation6 + $0x160] sm:$0xff]  }
  0x83   :  { %331 = vperm.xlu0 %6331, %v7075_v2  }
  0x86   :  { %6318 = vset.pattern.permute.xlu1 %v6964_v56  ;;  %v6395_v56 = vld [vmem:[#allocation6 + $0x110] sm:$0xff]  }
  0x87   :  { %227 = vperm.xlu1 %6318, %v7075_v2   ;;  %6334 = vset.pattern.permute.xlu0 %v6979_v24  ;;  %v6408_v24 = vld [vmem:[#allocation6 + $0x1e8] sm:$0xff]  }
  0x88   :  { %355 = vperm.xlu0 %6334, %v7075_v2  }
  0x8b   :  { %6320 = vset.pattern.permute.xlu1 %v6965_v57 }
  0x8c   :  { %243 = vperm.xlu1 %6320, %v7075_v2  }
  0x90   :  { %6321 = vset.pattern.permute.xlu1 %v6966_v58 }
  0x91   :  { %251 = vperm.xlu1 %6321, %v7075_v2  }
  0x95   :  { %6323 = vset.pattern.permute.xlu1 %v6968_v60  ;;  %v6398_v60 = vld [vmem:[#allocation6 + $0x158] sm:$0xff]  }
  0x96   :  { %267 = vperm.xlu1 %6323, %v7075_v2  }
  0x9a   :  { %6324 = vset.pattern.permute.xlu1 %v6969_v61  ;;  %v6400_v61 = vld [vmem:[#allocation6 + $0x1d8] sm:$0xff]  }
  0x9b   :  { %275 = vperm.xlu1 %6324, %v7075_v2  }
  0x9f   :  { %6326 = vset.pattern.permute.xlu1 %v6970_v62 }
  0xa0   :  { %291 = vperm.xlu1 %6326, %v7075_v2  }
  0xa4   :  { %6327 = vset.pattern.permute.xlu1 %v6971_v63 }
  0xa5   :  { %299 = vperm.xlu1 %6327, %v7075_v2  }
  0xa9   :  { %6329 = vset.pattern.permute.xlu1 %v6972_v0  ;;  %v6399_v0 = vld [vmem:[#allocation6 + $0x118] sm:$0xff]  }
  0xaa   :  { %315 = vperm.xlu1 %6329, %v7075_v2  }
  0xae   :  { %6330 = vset.pattern.permute.xlu1 %v6974_v3 }
  0xaf   :  { %323 = vperm.xlu1 %6330, %v7075_v2  }
  0xb3   :  { %6332 = vset.pattern.permute.xlu1 %v6975_v8  ;;  %v7144_v8 = vld [vmem:[#allocation3] sm:$0xff] }
  0xb4   :  { %339 = vperm.xlu1 %6332, %v7075_v2  }
  0xb8   :  { %6333 = vset.pattern.permute.xlu1 %v6978_v19 }
  0xb9   :  { %347 = vperm.xlu1 %6333, %v7075_v2  }
  0xca   :  { %v76_v6 = vpop.permute.xlu0 %75  ;;  %v92_v7 = vpop.permute.xlu1 %91 }
  0xcb   :  { %vm77_vm0 = vcmp.eq.s32.totalorder %v7110_v5, %v76_v6  ;;  %vm93_vm1 = vcmp.eq.s32.totalorder %v7110_v5, %v92_v7  ;;  %v6980_v6 = vmov 36   ;;  %v6401_v7 = vld [vmem:[#allocation6 + $0x198] sm:$0xff]  }
  0xcc   :  { %v5116_v11 = vsel %vm77_vm0, 1.0, %v6977_v10  ;;  %v5118_v12 = vsel %vm93_vm1, 1.0, %v6977_v10  ;;  %6335 = vset.pattern.permute.xlu1 %v6980_v6 }
  0xcd   :  { %v80_v13 = vpack.c.bf16 %v5116_v11, %v5116_v11  ;;  %v96_v14 = vpack.c.bf16 %v5118_v12, %v5118_v12  ;;  %363 = vperm.xlu1 %6335, %v7144_v8  }
  0xcf   :  { %81 = vst [vmem:[#allocation2] sm:$0xf] %v80_v13  ;;  %97 = vst [vmem:[#allocation2 + $0x8] sm:$0xf] %v96_v14  ;;  %v84_v15 = vpop.permute.xlu0 %83  ;;  %v100_v16 = vpop.permute.xlu1 %99  ;;  %v6404_v13 = vld [vmem:[#allocation6 + $0x1e0] sm:$0xff]  }
  0xd0   :  { %vm85_vm2 = vcmp.eq.s32.totalorder %v7110_v5, %v84_v15  ;;  %vm101_vm3 = vcmp.eq.s32.totalorder %v7110_v5, %v100_v16  ;;  %v6403_v14 = vld [vmem:[#allocation6 + $0x120] sm:$0xff]  }
  0xd1   :  { %v5117_v17 = vsel %vm85_vm2, 1.0, %v6977_v10  ;;  %v5119_v18 = vsel %vm101_vm3, 1.0, %v6977_v10 }
  0xd2   :  { %v88_v20 = vpack.c.bf16 %v5117_v17, %v5117_v17  ;;  %v104_v21 = vpack.c.bf16 %v5119_v18, %v5119_v18  ;;  %v6405_v18 = vld [vmem:[#allocation6 + $0x1a0] sm:$0xff]  }
  0xd4   :  { %89 = vst [vmem:[#allocation2 + $0x4] sm:$0xf] %v88_v20  ;;  %105 = vst [vmem:[#allocation2 + $0xc] sm:$0xf] %v104_v21  ;;  %v108_v22 = vpop.permute.xlu1 %107  ;;  %v116_v23 = vpop.permute.xlu0 %115 }
  0xd5   :  { %vm109_vm4 = vcmp.eq.s32.totalorder %v7110_v5, %v108_v22  ;;  %vm117_vm5 = vcmp.eq.s32.totalorder %v7110_v5, %v116_v23  ;;  %v6981_v22 = vmov 37   ;;  %v6406_v23 = vld [vmem:[#allocation6 + $0x168] sm:$0xff]  }
  0xd6   :  { %v5120_v25 = vsel %vm109_vm4, 1.0, %v6977_v10  ;;  %v5121_v26 = vsel %vm117_vm5, 1.0, %v6977_v10  ;;  %6336 = vset.pattern.permute.xlu1 %v6981_v22  ;;  %v6438_v22 = vld [vmem:[#allocation6 + $0x260] sm:$0xff]  }
  0xd7   :  { %v112_v27 = vpack.c.bf16 %v5120_v25, %v5120_v25  ;;  %v120_v28 = vpack.c.bf16 %v5121_v26, %v5121_v26  ;;  %371 = vperm.xlu1 %6336, %v7144_v8   ;;  %v6407_v26 = vld [vmem:[#allocation6 + $0x128] sm:$0xff]  }
  0xd9   :  { %113 = vst [vmem:[#allocation2 + $0x10] sm:$0xf] %v112_v27  ;;  %v124_v29 = vpop.permute.xlu1 %123  ;;  %121 = vst [vmem:[#allocation2 + $0x14] sm:$0xf] %v120_v28  ;;  %v140_v30 = vpop.permute.xlu0 %139  ;;  %v6409_v27 = vld [vmem:[#allocation6 + $0x1a8] sm:$0xff]  }
  0xda   :  { %vm125_vm6 = vcmp.eq.s32.totalorder %v7110_v5, %v124_v29  ;;  %vm141_vm7 = vcmp.eq.s32.totalorder %v7110_v5, %v140_v30  ;;  %v6410_v30 = vld [vmem:[#allocation6 + $0x170] sm:$0xff]  }
  0xdb   :  { %v474_v32 = vld [vmem:[#allocation2] sm:$0xff]  ;;  %v475_v33 = vld [vmem:[#allocation2 + $0x8] sm:$0xff]  ;;  %v5122_v2 = vsel %vm125_vm6, 1.0, %v6977_v10  ;;  %v5124_v35 = vsel %vm141_vm7, 1.0, %v6977_v10 }
  0xdc   :  { %v5166_v36 = vcombine.low %v474_v32, %v474_v32  ;;  %v5167_v37 = vcombine.high %v474_v32, %v474_v32  ;;  %v5168_v38 = vcombine.low %v475_v33, %v475_v33  ;;  %v5169_v39 = vcombine.high %v475_v33, %v475_v33  ;;  %v6412_v32 = vld [vmem:[#allocation6 + $0x1f0] sm:$0xff]  }
  0xdd   :  { %v128_v42 = vpack.c.bf16 %v5122_v2, %v5122_v2  ;;  %v144_v43 = vpack.c.bf16 %v5124_v35, %v5124_v35  ;;  %v6411_v33 = vld [vmem:[#allocation6 + $0x130] sm:$0xff]   ;;  %v6982_v35 = vmov 39  }
  0xde   :  { %3910 = vmatprep.mubr.bf16.mxu0 %v5167_v37  ;;  %3950 = vmatprep.mubr.bf16.mxu1 %v5169_v39  ;;  %v132_v46 = vpop.permute.xlu1 %131  ;;  %v164_v47 = vpop.permute.xlu0 %163  ;;  %v6413_v37 = vld [vmem:[#allocation6 + $0x1b0] sm:$0xff]   ;;  %v6414_v39 = vld [vmem:[#allocation6 + $0x178] sm:$0xff]  }
  0xdf   :  { %3911 = vmatmul.mubr.bf16.vlgmr.msra.gmra.mrb[0].mxu0 %v5166_v36  ;;  %3951 = vmatmul.mubr.bf16.vlgmr.msra.gmra.mrb[0].mxu1 %v5168_v38  ;;  %129 = vst [vmem:[#allocation2 + $0x18] sm:$0xf] %v128_v42  ;;  %vm133_vm8 = vcmp.eq.s32.totalorder %v7110_v5, %v132_v46  ;;  %145 = vst [vmem:[#allocation2 + $0x20] sm:$0xf] %v144_v43  ;;  %vm165_vm9 = vcmp.eq.s32.totalorder %v7110_v5, %v164_v47  ;;  %v6983_v36 = vmov 38   ;;  %v6416_v42 = vld [vmem:[#allocation6 + $0x1f8] sm:$0xff]  }
  0xe0   :  { %5677 = vmatpush3.bf16.msra.mxu0 %v6385_v31  ;;  %5699 = vmatpush3.bf16.msra.mxu1 %v6389_v34  ;;  %v5123_v50 = vsel %vm133_vm8, 1.0, %v6977_v10  ;;  %v7135_v51 = vld [vmem:[#allocation2 + $0x10] sm:$0xff]  ;;  %v5127_v52 = vsel %vm165_vm9, 1.0, %v6977_v10 }
  0xe1   :  { %5678 = vmatprep.subr.bf16.mxu0 %v6390_v40  ;;  %5700 = vmatprep.subr.bf16.mxu1 %v6392_v41  ;;  %v136_v53 = vpack.c.bf16 %v5123_v50, %v5123_v50  ;;  %v5171_v54 = vcombine.high %v7135_v51, %v7135_v51  ;;  %v168_v55 = vpack.c.bf16 %v5127_v52, %v5127_v52  ;;  %v6424_v50 = vld [vmem:[#allocation6 + $0x2c0] sm:$0xff]  }
  0xe2   :  { %6338 = vset.pattern.permute.xlu1 %v6982_v35  ;;  %6337 = vset.pattern.permute.xlu0 %v6983_v36  ;;  %v6445_v35 = vld [vmem:[#allocation6 + $0x2a8] sm:$0xff]   ;;  %v6446_v36 = vld [vmem:[#allocation6 + $0x270] sm:$0xff]  }
  0xe3   :  { %137 = vst [vmem:[#allocation2 + $0x1c] sm:$0xf] %v136_v53  ;;  %3990 = vmatprep.mubr.bf16.mxu0 %v5171_v54  ;;  %v148_v57 = vpop.permute.xlu1 %147  ;;  %v188_v58 = vpop.permute.xlu0 %187  ;;  %169 = vst [vmem:[#allocation2 + $0x2c] sm:$0xf] %v168_v55  ;;  %387 = vperm.xlu1 %6338, %v7144_v8   ;;  %v6423_v53 = vld [vmem:[#allocation6 + $0x200] sm:$0xff]  }
  0xe4   :  { %5679 = vmatpush3.bf16.msra.mxu0 %v6391_v44  ;;  %5701 = vmatpush3.bf16.msra.mxu1 %v6393_v45  ;;  %vm149_vm10 = vcmp.eq.s32.totalorder %v7110_v5, %v148_v57  ;;  %vm189_vm11 = vcmp.eq.s32.totalorder %v7110_v5, %v188_v58  ;;  %v6415_v44 = vld [vmem:[#allocation6 + $0x138] sm:$0xff]   ;;  %v6425_v54 = vld [vmem:[#allocation6 + $0x280] sm:$0xff]   ;;  %v5170_v57 = vcombine.low %v7135_v51, %v7135_v51 }
  0xe5   :  { %5680 = vmatprep.subr.bf16.mxu0 %v6394_v48  ;;  %5702 = vmatprep.subr.bf16.mxu1 %v6396_v49  ;;  %v5125_v62 = vsel %vm149_vm10, 1.0, %v6977_v10  ;;  %v5130_v63 = vsel %vm189_vm11, 1.0, %v6977_v10  ;;  %v6419_v45 = vld [vmem:[#allocation6 + $0x1b8] sm:$0xff]   ;;  %v6420_v48 = vld [vmem:[#allocation6 + $0x240] sm:$0xff]  }
  0xe6   :  { %v152_v1 = vpack.c.bf16 %v5125_v62, %v5125_v62  ;;  %v192_v3 = vpack.c.bf16 %v5130_v63, %v5130_v63  ;;  %379 = vperm.xlu0 %6337, %v7144_v8   ;;  %v6428_v62 = vld [vmem:[#allocation6 + $0x2c8] sm:$0xff]  }
  0xe7   :  { %v6427_v63 = vld [vmem:[#allocation6 + $0x208] sm:$0xff]  }
  0xe8   :  { %5681 = vmatpush3.bf16.msra.mxu0 %v6395_v56  ;;  %5703 = vmatpush3.bf16.msra.mxu1 %v6397_v59  ;;  %153 = vst [vmem:[#allocation2 + $0x24] sm:$0xf] %v152_v1  ;;  %v156_v11 = vpop.permute.xlu1 %155  ;;  %193 = vst [vmem:[#allocation2 + $0x38] sm:$0xf] %v192_v3  ;;  %v212_v12 = vpop.permute.xlu0 %211  ;;  %v6429_v3 = vld [vmem:[#allocation6 + $0x288] sm:$0xff]  }
  0xe9   :  { %5682 = vmatprep.subr.bf16.mxu0 %v6398_v60  ;;  %5704 = vmatprep.subr.bf16.mxu1 %v6400_v61  ;;  %vm157_vm12 = vcmp.eq.s32.totalorder %v7110_v5, %v156_v11  ;;  %vm213_vm13 = vcmp.eq.s32.totalorder %v7110_v5, %v212_v12  ;;  %v6426_v60 = vld [vmem:[#allocation6 + $0x248] sm:$0xff]   ;;  %v6431_v12 = vld [vmem:[#allocation6 + $0x210] sm:$0xff]  }
  0xea   :  { %v7149_v15 = vld [vmem:[#allocation2 + $0x18] sm:$0xff]  ;;  %v5126_v16 = vsel %vm157_vm12, 1.0, %v6977_v10  ;;  %v5133_v17 = vsel %vm213_vm13, 1.0, %v6977_v10 }
  0xeb   :  { %v5173_v19 = vcombine.high %v7149_v15, %v7149_v15  ;;  %v160_v20 = vpack.c.bf16 %v5126_v16, %v5126_v16  ;;  %v216_v21 = vpack.c.bf16 %v5133_v17, %v5133_v17  ;;  %v5172_v58 = vcombine.low %v7149_v15, %v7149_v15  ;;  %v6434_v15 = vld [vmem:[#allocation6 + $0x258] sm:$0xff]  }
  0xec   :  { %5683 = vmatpush3.bf16.msra.mxu0 %v6399_v0  ;;  %5705 = vmatpush3.bf16.msra.mxu1 %v6401_v7  ;;  %v6430_v7 = vld [vmem:[#allocation6 + $0x250] sm:$0xff]   ;;  %v6436_v17 = vld [vmem:[#allocation6 + $0x2d8] sm:$0xff]  }
  0xed   :  { %5684 = vmatprep.subr.bf16.mxu0 %v6402_v9  ;;  %5706 = vmatprep.subr.bf16.mxu1 %v6404_v13  ;;  %161 = vst [vmem:[#allocation2 + $0x28] sm:$0xf] %v160_v20  ;;  %v172_v25 = vpop.permute.xlu1 %171  ;;  %217 = vst [vmem:[#allocation2 + $0x44] sm:$0xf] %v216_v21  ;;  %v6432_v9 = vld [vmem:[#allocation6 + $0x2d0] sm:$0xff]   ;;  %v6984_v20 = vmov 40  }
  0xee   :  { %4030 = vmatprep.mubr.bf16.mxu1 %v5173_v19  ;;  %vm173_vm14 = vcmp.eq.s32.totalorder %v7110_v5, %v172_v25  ;;  %v236_v29 = vpop.permute.xlu0 %235  ;;  %v6433_v13 = vld [vmem:[#allocation6 + $0x290] sm:$0xff]   ;;  %6339 = vset.pattern.permute.xlu1 %v6984_v20  ;;  %v6437_v21 = vld [vmem:[#allocation6 + $0x298] sm:$0xff]  }
  0xef   :  { %v5128_v28 = vsel %vm173_vm14, 1.0, %v6977_v10  ;;  %vm237_vm15 = vcmp.eq.s32.totalorder %v7110_v5, %v236_v29  ;;  %v7168_v55 = vld [vmem:[#allocation2 + $0x20] sm:$0xff]  ;;  %395 = vperm.xlu1 %6339, %v7144_v8   ;;  %v6985_v29 = vmov 42   ;;  %v6472_v20 = vld [vmem:[#allocation6 + $0x3d8] sm:$0xff]  }
  0xf0   :  { %5685 = vmatpush3.bf16.msra.mxu0 %v6403_v14  ;;  %5707 = vmatpush3.bf16.msra.mxu1 %v6405_v18  ;;  %v176_v31 = vpack.c.bf16 %v5128_v28, %v5128_v28  ;;  %v5136_v2 = vsel %vm237_vm15, 1.0, %v6977_v10  ;;  %v5175_v0 = vcombine.high %v7168_v55, %v7168_v55  ;;  %v6435_v18 = vld [vmem:[#allocation6 + $0x218] sm:$0xff]  }
  0xf1   :  { %5686 = vmatprep.subr.bf16.mxu0 %v6406_v23  ;;  %5708 = vmatprep.subr.bf16.mxu1 %v6408_v24  ;;  %v240_v38 = vpack.c.bf16 %v5136_v2, %v5136_v2  ;;  %v6440_v24 = vld [vmem:[#allocation6 + $0x2e0] sm:$0xff]   ;;  %v6986_v2 = vmov 41  }
  0xf2   :  { %177 = vst [vmem:[#allocation2 + $0x30] sm:$0xf] %v176_v31  ;;  %v180_v34 = vpop.permute.xlu1 %179  ;;  %v6444_v31 = vld [vmem:[#allocation6 + $0x2e8] sm:$0xff]   ;;  %6340 = vset.pattern.permute.xlu0 %v6986_v2 }
  0xf3   :  { %vm181_vm0 = vcmp.eq.s32.totalorder %v7110_v5, %v180_v34  ;;  %v260_v41 = vpop.permute.xlu0 %259  ;;  %241 = vst [vmem:[#allocation2 + $0x50] sm:$0xf] %v240_v38  ;;  %6341 = vset.pattern.permute.xlu1 %v6985_v29  ;;  %403 = vperm.xlu0 %6340, %v7144_v8   ;;  %v6448_v38 = vld [vmem:[#allocation6 + $0x2f0] sm:$0xff]   ;;  %v6989_v29 = vmov 44  }
  0xf4   :  { %5687 = vmatpush3.bf16.msra.mxu0 %v6407_v26  ;;  %5709 = vmatpush3.bf16.msra.mxu1 %v6409_v27  ;;  %v5129_v40 = vsel %vm181_vm0, 1.0, %v6977_v10  ;;  %vm261_vm1 = vcmp.eq.s32.totalorder %v7110_v5, %v260_v41  ;;  %v7174_v59 = vld [vmem:[#allocation2 + $0x28] sm:$0xff]  ;;  %v6439_v26 = vld [vmem:[#allocation6 + $0x220] sm:$0xff]   ;;  %v6987_v41 = vmov 43  }
  0xf5   :  { %5688 = vmatprep.subr.bf16.mxu0 %v6410_v30  ;;  %5710 = vmatprep.subr.bf16.mxu1 %v6412_v32  ;;  %v184_v43 = vpack.c.bf16 %v5129_v40, %v5129_v40  ;;  %v5139_v47 = vsel %vm261_vm1, 1.0, %v6977_v10  ;;  %v5177_v51 = vcombine.high %v7174_v59, %v7174_v59  ;;  %v6441_v27 = vld [vmem:[#allocation6 + $0x2a0] sm:$0xff]   ;;  %v6442_v30 = vld [vmem:[#allocation6 + $0x268] sm:$0xff]  }
  0xf6   :  { %v264_v49 = vpack.c.bf16 %v5139_v47, %v5139_v47  ;;  %411 = vperm.xlu1 %6341, %v7144_v8   ;;  %v6452_v47 = vld [vmem:[#allocation6 + $0x2f8] sm:$0xff]  }
  0xf7   :  { %185 = vst [vmem:[#allocation2 + $0x34] sm:$0xf] %v184_v43  ;;  %v196_v46 = vpop.permute.xlu1 %195  ;;  %v6449_v43 = vld [vmem:[#allocation6 + $0x2b0] sm:$0xff]   ;;  %6343 = vset.pattern.permute.xlu0 %v6989_v29  ;;  %v6515_v29 = vld [vmem:[#allocation6 + $0x428] sm:$0xff]  }
  0xf8   :  { %5689 = vmatpush3.bf16.msra.mxu0 %v6411_v33  ;;  %5711 = vmatpush3.bf16.msra.mxu1 %v6413_v37  ;;  %vm197_vm2 = vcmp.eq.s32.totalorder %v7110_v5, %v196_v46  ;;  %265 = vst [vmem:[#allocation2 + $0x5c] sm:$0xf] %v264_v49  ;;  %v6443_v33 = vld [vmem:[#allocation6 + $0x228] sm:$0xff]  }
  0xf9   :  { %5690 = vmatprep.subr.bf16.mxu0 %v6414_v39  ;;  %5712 = vmatprep.subr.bf16.mxu1 %v6416_v42  ;;  %v5131_v52 = vsel %vm197_vm2, 1.0, %v6977_v10  ;;  %v6447_v39 = vld [vmem:[#allocation6 + $0x230] sm:$0xff]   ;;  %v284_v42 = vpop.permute.xlu0 %283 }
  0xfa   :  { %v200_v56 = vpack.c.bf16 %v5131_v52, %v5131_v52  ;;  %6342 = vset.pattern.permute.xlu1 %v6987_v41  ;;  %vm285_vm8 = vcmp.eq.s32.totalorder %v7110_v5, %v284_v42  ;;  %v6455_v52 = vld [vmem:[#allocation6 + $0x2b8] sm:$0xff]   ;;  %427 = vperm.xlu0 %6343, %v7144_v8   ;;  %v6484_v42 = vld [vmem:[#allocation6 + $0x3f0] sm:$0xff]  }
  0xfb   :  { %419 = vperm.xlu1 %6342, %v7144_v8   ;;  %v5142_v46 = vsel %vm285_vm8, 1.0, %v6977_v10 }
  0xfc   :  { %5691 = vmatpush3.bf16.msra.mxu0 %v6415_v44  ;;  %5713 = vmatpush3.bf16.msra.mxu1 %v6419_v45  ;;  %201 = vst [vmem:[#allocation2 + $0x3c] sm:$0xf] %v200_v56  ;;  %v204_v61 = vpop.permute.xlu1 %203  ;;  %v6450_v45 = vld [vmem:[#allocation6 + $0x278] sm:$0xff]   ;;  %v288_v49 = vpack.c.bf16 %v5142_v46, %v5142_v46  ;;  %v6991_v46 = vmov 47  }
  0xfd   :  { %5720 = vmatprep.subr.bf16.mxu0 %v6420_v48  ;;  %5742 = vmatprep.subr.bf16.mxu1 %v6424_v50  ;;  %vm205_vm3 = vcmp.eq.s32.totalorder %v7110_v5, %v204_v61  ;;  %v6451_v50 = vld [vmem:[#allocation6 + $0x238] sm:$0xff]   ;;  %v308_v2 = vpop.permute.xlu0 %307 }
  0xfe   :  { %v5132_v1 = vsel %vm205_vm3, 1.0, %v6977_v10  ;;  %289 = vst [vmem:[#allocation2 + $0x68] sm:$0xf] %v288_v49  ;;  %v7198_v61 = vld [vmem:[#allocation2 + $0x30] sm:$0xff]  ;;  %vm309_vm14 = vcmp.eq.s32.totalorder %v7110_v5, %v308_v2  ;;  %6346 = vset.pattern.permute.xlu0 %v6991_v46  ;;  %v6488_v49 = vld [vmem:[#allocation6 + $0x378] sm:$0xff]  }
  0xff   :  { %3991 = vmatmul.mubr.bf16.vlgmr.msra.gmra.mrb[4].mxu0 %v5170_v57  ;;  %4031 = vmatmul.mubr.bf16.vlgmr.msra.gmra.mrb[4].mxu1 %v5172_v58  ;;  %v208_v6 = vpack.c.bf16 %v5132_v1, %v5132_v1  ;;  %v6460_v57 = vld [vmem:[#allocation6 + $0x3c0] sm:$0xff]   ;;  %v6462_v1 = vld [vmem:[#allocation6 + $0x348] sm:$0xff]  }
 0x100   :  { %5721 = vmatpush3.bf16.msra.mxu0 %v6423_v53  ;;  %5743 = vmatpush3.bf16.msra.mxu1 %v6425_v54  ;;  %v6456_v54 = vld [vmem:[#allocation6 + $0x340] sm:$0xff]  }
 0x101   :  { %5722 = vmatprep.subr.bf16.mxu0 %v6426_v60  ;;  %5744 = vmatprep.subr.bf16.mxu1 %v6428_v62  ;;  %209 = vst [vmem:[#allocation2 + $0x40] sm:$0xf] %v208_v6  ;;  %v220_v11 = vpop.permute.xlu1 %219  ;;  %v6459_v58 = vld [vmem:[#allocation6 + $0x300] sm:$0xff]   ;;  %v6464_v6 = vld [vmem:[#allocation6 + $0x3c8] sm:$0xff]  }
 0x102   :  { %4070 = vmatprep.mubr.bf16.mxu0 %v5175_v0  ;;  %4110 = vmatprep.mubr.bf16.mxu1 %v5177_v51  ;;  %vm221_vm4 = vcmp.eq.s32.totalorder %v7110_v5, %v220_v11  ;;  %v6461_v60 = vld [vmem:[#allocation6 + $0x380] sm:$0xff]   ;;  %v5176_v0 = vcombine.low %v7174_v59, %v7174_v59  ;;  %v6465_v11 = vld [vmem:[#allocation6 + $0x388] sm:$0xff]  }
 0x103   :  { %v5134_v14 = vsel %vm221_vm4, 1.0, %v6977_v10  ;;  %v7204_v51 = vld [vmem:[#allocation2 + $0x38] sm:$0xff]  ;;  %451 = vperm.xlu0 %6346, %v7144_v8   ;;  %v6528_v46 = vld [vmem:[#allocation6 + $0x540] sm:$0xff]  }
 0x104   :  { %5723 = vmatpush3.bf16.msra.mxu0 %v6427_v63  ;;  %5745 = vmatpush3.bf16.msra.mxu1 %v6429_v3  ;;  %v224_v16 = vpack.c.bf16 %v5134_v14, %v5134_v14  ;;  %v5174_v63 = vcombine.low %v7168_v55, %v7168_v55  ;;  %v5179_v55 = vcombine.high %v7198_v61, %v7198_v61  ;;  %v6468_v14 = vld [vmem:[#allocation6 + $0x3d0] sm:$0xff]  }
 0x105   :  { %5724 = vmatprep.subr.bf16.mxu0 %v6430_v7  ;;  %5746 = vmatprep.subr.bf16.mxu1 %v6432_v9  ;;  %v6463_v9 = vld [vmem:[#allocation6 + $0x308] sm:$0xff]   ;;  %v5181_v59 = vcombine.high %v7204_v51, %v7204_v51 }
 0x106   :  { %225 = vst [vmem:[#allocation2 + $0x48] sm:$0xf] %v224_v16  ;;  %v228_v19 = vpop.permute.xlu1 %227  ;;  %v6467_v16 = vld [vmem:[#allocation6 + $0x310] sm:$0xff]  }
 0x107   :  { %vm229_vm5 = vcmp.eq.s32.totalorder %v7110_v5, %v228_v19  ;;  %v6470_v19 = vld [vmem:[#allocation6 + $0x358] sm:$0xff]  }
 0x108   :  { %5725 = vmatpush3.bf16.msra.mxu0 %v6431_v12  ;;  %5747 = vmatpush3.bf16.msra.mxu1 %v6433_v13  ;;  %v5135_v23 = vsel %vm229_vm5, 1.0, %v6977_v10  ;;  %v6466_v13 = vld [vmem:[#allocation6 + $0x350] sm:$0xff]  }
 0x109   :  { %5726 = vmatprep.subr.bf16.mxu0 %v6434_v15  ;;  %5748 = vmatprep.subr.bf16.mxu1 %v6436_v17  ;;  %v232_v25 = vpack.c.bf16 %v5135_v23, %v5135_v23 }
 0x10b   :  { %233 = vst [vmem:[#allocation2 + $0x4c] sm:$0xf] %v232_v25  ;;  %v244_v28 = vpop.permute.xlu1 %243  ;;  %v6476_v25 = vld [vmem:[#allocation6 + $0x3e0] sm:$0xff]  }
 0x10c   :  { %5727 = vmatpush3.bf16.msra.mxu0 %v6435_v18  ;;  %5749 = vmatpush3.bf16.msra.mxu1 %v6437_v21  ;;  %vm245_vm6 = vcmp.eq.s32.totalorder %v7110_v5, %v244_v28  ;;  %v6469_v18 = vld [vmem:[#allocation6 + $0x390] sm:$0xff]   ;;  %v6471_v21 = vld [vmem:[#allocation6 + $0x318] sm:$0xff]   ;;  %v6988_v28 = vmov 45  }
 0x10d   :  { %5728 = vmatprep.subr.bf16.mxu0 %v6438_v22  ;;  %5750 = vmatprep.subr.bf16.mxu1 %v6440_v24  ;;  %v5137_v32 = vsel %vm245_vm6, 1.0, %v6977_v10  ;;  %v6473_v22 = vld [vmem:[#allocation6 + $0x398] sm:$0xff]   ;;  %v6474_v24 = vld [vmem:[#allocation6 + $0x360] sm:$0xff]  }
 0x10e   :  { %v248_v34 = vpack.c.bf16 %v5137_v32, %v5137_v32  ;;  %6344 = vset.pattern.permute.xlu1 %v6988_v28  ;;  %v6478_v32 = vld [vmem:[#allocation6 + $0x368] sm:$0xff]  }
 0x10f   :  { %435 = vperm.xlu1 %6344, %v7144_v8  }
 0x110   :  { %5729 = vmatpush3.bf16.msra.mxu0 %v6439_v26  ;;  %5751 = vmatpush3.bf16.msra.mxu1 %v6441_v27  ;;  %249 = vst [vmem:[#allocation2 + $0x54] sm:$0xf] %v248_v34  ;;  %v252_v37 = vpop.permute.xlu1 %251  ;;  %v6475_v26 = vld [vmem:[#allocation6 + $0x320] sm:$0xff]   ;;  %v6480_v34 = vld [vmem:[#allocation6 + $0x3e8] sm:$0xff]  }
 0x111   :  { %5730 = vmatprep.subr.bf16.mxu0 %v6442_v30  ;;  %5752 = vmatprep.subr.bf16.mxu1 %v6444_v31  ;;  %vm253_vm7 = vcmp.eq.s32.totalorder %v7110_v5, %v252_v37  ;;  %v6477_v30 = vld [vmem:[#allocation6 + $0x3a0] sm:$0xff]   ;;  %v6481_v37 = vld [vmem:[#allocation6 + $0x3a8] sm:$0xff]  }
 0x112   :  { %v5138_v40 = vsel %vm253_vm7, 1.0, %v6977_v10 }
 0x113   :  { %v256_v44 = vpack.c.bf16 %v5138_v40, %v5138_v40  ;;  %v6482_v40 = vld [vmem:[#allocation6 + $0x370] sm:$0xff]  }
 0x114   :  { %5731 = vmatpush3.bf16.msra.mxu0 %v6443_v33  ;;  %5753 = vmatpush3.bf16.msra.mxu1 %v6445_v35 }
 0x115   :  { %5732 = vmatprep.subr.bf16.mxu0 %v6446_v36  ;;  %5754 = vmatprep.subr.bf16.mxu1 %v6448_v38  ;;  %257 = vst [vmem:[#allocation2 + $0x58] sm:$0xf] %v256_v44  ;;  %v268_v48 = vpop.permute.xlu1 %267  ;;  %v6479_v36 = vld [vmem:[#allocation6 + $0x328] sm:$0xff]   ;;  %v6483_v44 = vld [vmem:[#allocation6 + $0x330] sm:$0xff]  }
 0x116   :  { %vm269_vm9 = vcmp.eq.s32.totalorder %v7110_v5, %v268_v48 }
 0x117   :  { %v5140_v53 = vsel %vm269_vm9, 1.0, %v6977_v10 }
 0x118   :  { %5733 = vmatpush3.bf16.msra.mxu0 %v6447_v39  ;;  %5755 = vmatpush3.bf16.msra.mxu1 %v6449_v43  ;;  %v272_v56 = vpack.c.bf16 %v5140_v53, %v5140_v53  ;;  %v5145_v39 = vsel %vm309_vm14, 1.0, %v6977_v10  ;;  %v6489_v53 = vld [vmem:[#allocation6 + $0x338] sm:$0xff]  }
 0x119   :  { %5734 = vmatprep.subr.bf16.mxu0 %v6450_v45  ;;  %5756 = vmatprep.subr.bf16.mxu1 %v6452_v47  ;;  %v312_v41 = vpack.c.bf16 %v5145_v39, %v5145_v39  ;;  %v6990_v45 = vmov 46   ;;  %v6487_v47 = vld [vmem:[#allocation6 + $0x3b0] sm:$0xff]  }
 0x11a   :  { %273 = vst [vmem:[#allocation2 + $0x60] sm:$0xf] %v272_v56  ;;  %v276_v62 = vpop.permute.xlu1 %275  ;;  %6345 = vset.pattern.permute.xlu1 %v6990_v45  ;;  %v6492_v56 = vld [vmem:[#allocation6 + $0x440] sm:$0xff]  }
 0x11b   :  { %vm277_vm10 = vcmp.eq.s32.totalorder %v7110_v5, %v276_v62  ;;  %313 = vst [vmem:[#allocation2 + $0x74] sm:$0xf] %v312_v41  ;;  %443 = vperm.xlu1 %6345, %v7144_v8   ;;  %v7226_v62 = vld [vmem:[#allocation2 + $0x40] sm:$0xff]  ;;  %v5180_v8 = vcombine.low %v7204_v51, %v7204_v51  ;;  %v6501_v51 = vld [vmem:[#allocation6 + $0x488] sm:$0xff]   ;;  %v6524_v41 = vld [vmem:[#allocation6 + $0x4f8] sm:$0xff]  }
 0x11c   :  { %5735 = vmatpush3.bf16.msra.mxu0 %v6451_v50  ;;  %5757 = vmatpush3.bf16.msra.mxu1 %v6455_v52  ;;  %v5141_v3 = vsel %vm277_vm10, 1.0, %v6977_v10  ;;  %v6490_v52 = vld [vmem:[#allocation6 + $0x3f8] sm:$0xff]  }
 0x11d   :  { %5764 = vmatprep.subr.bf16.mxu0 %v6456_v54  ;;  %5786 = vmatprep.subr.bf16.mxu1 %v6460_v57  ;;  %v280_v7 = vpack.c.bf16 %v5141_v3, %v5141_v3  ;;  %v6491_v54 = vld [vmem:[#allocation6 + $0x3b8] sm:$0xff]   ;;  %v6496_v57 = vld [vmem:[#allocation6 + $0x4c0] sm:$0xff]   ;;  %v6500_v3 = vld [vmem:[#allocation6 + $0x4c8] sm:$0xff]  }
 0x11f   :  { %4071 = vmatmul.mubr.bf16.vlgmr.msra.gmra.mrb[8].mxu0 %v5174_v63  ;;  %4111 = vmatmul.mubr.bf16.vlgmr.msra.gmra.mrb[8].mxu1 %v5176_v0  ;;  %281 = vst [vmem:[#allocation2 + $0x64] sm:$0xf] %v280_v7  ;;  %v292_v12 = vpop.permute.xlu1 %291  ;;  %v7230_v63 = vld [vmem:[#allocation2 + $0x48] sm:$0xff]  ;;  %v6498_v0 = vld [vmem:[#allocation6 + $0x448] sm:$0xff]   ;;  %v5183_v7 = vcombine.high %v7226_v62, %v7226_v62 }
 0x120   :  { %5765 = vmatpush3.bf16.msra.mxu0 %v6459_v58  ;;  %5787 = vmatpush3.bf16.msra.mxu1 %v6461_v60  ;;  %vm293_vm11 = vcmp.eq.s32.totalorder %v7110_v5, %v292_v12  ;;  %v6495_v58 = vld [vmem:[#allocation6 + $0x400] sm:$0xff]   ;;  %v6506_v12 = vld [vmem:[#allocation6 + $0x458] sm:$0xff]  }
 0x121   :  { %5766 = vmatprep.subr.bf16.mxu0 %v6462_v1  ;;  %5788 = vmatprep.subr.bf16.mxu1 %v6464_v6  ;;  %v5143_v15 = vsel %vm293_vm11, 1.0, %v6977_v10  ;;  %v6497_v60 = vld [vmem:[#allocation6 + $0x480] sm:$0xff]   ;;  %v5178_v1 = vcombine.low %v7198_v61, %v7198_v61  ;;  %v6499_v6 = vld [vmem:[#allocation6 + $0x408] sm:$0xff]   ;;  %v6503_v61 = vld [vmem:[#allocation6 + $0x410] sm:$0xff]  }
 0x122   :  { %4150 = vmatprep.mubr.bf16.mxu0 %v5179_v55  ;;  %4190 = vmatprep.mubr.bf16.mxu1 %v5181_v59  ;;  %v296_v17 = vpack.c.bf16 %v5143_v15, %v5143_v15  ;;  %v6502_v55 = vld [vmem:[#allocation6 + $0x450] sm:$0xff]   ;;  %v6992_v15 = vmov 48  }
 0x123   :  { %v6504_v59 = vld [vmem:[#allocation6 + $0x4d0] sm:$0xff]   ;;  %6347 = vset.pattern.permute.xlu1 %v6992_v15  ;;  %v6550_v15 = vld [vmem:[#allocation6 + $0x568] sm:$0xff]  }
 0x124   :  { %5767 = vmatpush3.bf16.msra.mxu0 %v6463_v9  ;;  %5789 = vmatpush3.bf16.msra.mxu1 %v6465_v11  ;;  %297 = vst [vmem:[#allocation2 + $0x6c] sm:$0xf] %v296_v17  ;;  %v300_v23 = vpop.permute.xlu1 %299  ;;  %v5185_v9 = vcombine.high %v7230_v63, %v7230_v63  ;;  %v6505_v11 = vld [vmem:[#allocation6 + $0x490] sm:$0xff]   ;;  %v6817_v17 = vld [vmem:[#allocation3] sm:$0xff] }
 0x125   :  { %5768 = vmatprep.subr.bf16.mxu0 %v6466_v13  ;;  %5790 = vmatprep.subr.bf16.mxu1 %v6468_v14  ;;  %vm301_vm12 = vcmp.eq.s32.totalorder %v7110_v5, %v300_v23  ;;  %v6508_v13 = vld [vmem:[#allocation6 + $0x4d8] sm:$0xff]   ;;  %v6514_v23 = vld [vmem:[#allocation6 + $0x468] sm:$0xff]  }
 0x126   :  { %v5144_v27 = vsel %vm301_vm12, 1.0, %v6977_v10  ;;  %v6507_v14 = vld [vmem:[#allocation6 + $0x418] sm:$0xff]   ;;  %459 = vperm.xlu1 %6347, %v6817_v17  }
 0x127   :  { %v304_v31 = vpack.c.bf16 %v5144_v27, %v5144_v27 }
 0x128   :  { %5769 = vmatpush3.bf16.msra.mxu0 %v6467_v16  ;;  %5791 = vmatpush3.bf16.msra.mxu1 %v6469_v18  ;;  %v6509_v16 = vld [vmem:[#allocation6 + $0x498] sm:$0xff]   ;;  %v6510_v18 = vld [vmem:[#allocation6 + $0x460] sm:$0xff]  }
 0x129   :  { %5770 = vmatprep.subr.bf16.mxu0 %v6470_v19  ;;  %5792 = vmatprep.subr.bf16.mxu1 %v6472_v20  ;;  %v316_v33 = vpop.permute.xlu1 %315  ;;  %305 = vst [vmem:[#allocation2 + $0x70] sm:$0xf] %v304_v31  ;;  %v6512_v19 = vld [vmem:[#allocation6 + $0x4e0] sm:$0xff]  }
 0x12a   :  { %vm317_vm13 = vcmp.eq.s32.totalorder %v7110_v5, %v316_v33  ;;  %v6511_v20 = vld [vmem:[#allocation6 + $0x420] sm:$0xff]   ;;  %v6518_v33 = vld [vmem:[#allocation6 + $0x470] sm:$0xff]  }
 0x12b   :  { %v5146_v35 = vsel %vm317_vm13, 1.0, %v6977_v10 }
 0x12c   :  { %5771 = vmatpush3.bf16.msra.mxu0 %v6471_v21  ;;  %5793 = vmatpush3.bf16.msra.mxu1 %v6473_v22  ;;  %v320_v38 = vpack.c.bf16 %v5146_v35, %v5146_v35  ;;  %v6993_v21 = vmov 49   ;;  %v6513_v22 = vld [vmem:[#allocation6 + $0x4a0] sm:$0xff]   ;;  %v6519_v35 = vld [vmem:[#allocation6 + $0x430] sm:$0xff]  }
 0x12d   :  { %5772 = vmatprep.subr.bf16.mxu0 %v6474_v24  ;;  %5794 = vmatprep.subr.bf16.mxu1 %v6476_v25  ;;  %v332_v25 = vpop.permute.xlu0 %331 }
 0x12e   :  { %321 = vst [vmem:[#allocation2 + $0x78] sm:$0xf] %v320_v38  ;;  %v324_v43 = vpop.permute.xlu1 %323  ;;  %6349 = vset.pattern.permute.xlu0 %v6993_v21  ;;  %6348 = vset.pattern.permute.xlu1 %v6993_v21  ;;  %vm333_vm1 = vcmp.eq.s32.totalorder %v7110_v5, %v332_v25  ;;  %v6522_v38 = vld [vmem:[#allocation6 + $0x478] sm:$0xff]  }
 0x12f   :  { %vm325_vm15 = vcmp.eq.s32.totalorder %v7110_v5, %v324_v43  ;;  %467 = vperm.xlu1 %6348, %v6817_v17   ;;  %v5148_v28 = vsel %vm333_vm1, 1.0, %v6977_v10 }
 0x130   :  { %5773 = vmatpush3.bf16.msra.mxu0 %v6475_v26  ;;  %5795 = vmatpush3.bf16.msra.mxu1 %v6477_v30  ;;  %v5147_v48 = vsel %vm325_vm15, 1.0, %v6977_v10  ;;  %v6516_v26 = vld [vmem:[#allocation6 + $0x4e8] sm:$0xff]   ;;  %v336_v31 = vpack.c.bf16 %v5148_v28, %v5148_v28  ;;  %v6558_v28 = vld [vmem:[#allocation6 + $0x578] sm:$0xff]  }
 0x131   :  { %5774 = vmatprep.subr.bf16.mxu0 %v6478_v32  ;;  %5796 = vmatprep.subr.bf16.mxu1 %v6480_v34  ;;  %v328_v50 = vpack.c.bf16 %v5147_v48, %v5147_v48  ;;  %v6517_v32 = vld [vmem:[#allocation6 + $0x4a8] sm:$0xff]   ;;  %v6520_v34 = vld [vmem:[#allocation6 + $0x4f0] sm:$0xff]   ;;  %v6531_v48 = vld [vmem:[#allocation6 + $0x500] sm:$0xff]  }
 0x132   :  { %337 = vst [vmem:[#allocation2 + $0x80] sm:$0xf] %v336_v31 }
 0x133   :  { %329 = vst [vmem:[#allocation2 + $0x7c] sm:$0xf] %v328_v50  ;;  %v340_v24 = vpop.permute.xlu1 %339  ;;  %v7246_v50 = vld [vmem:[#allocation2 + $0x50] sm:$0xff] }
 0x134   :  { %5775 = vmatpush3.bf16.msra.mxu0 %v6479_v36  ;;  %5797 = vmatpush3.bf16.msra.mxu1 %v6481_v37  ;;  %vm341_vm0 = vcmp.eq.s32.totalorder %v7110_v5, %v340_v24  ;;  %v6521_v36 = vld [vmem:[#allocation6 + $0x4b0] sm:$0xff]  }
 0x135   :  { %5776 = vmatprep.subr.bf16.mxu0 %v6482_v40  ;;  %5798 = vmatprep.subr.bf16.mxu1 %v6484_v42  ;;  %v5149_v27 = vsel %vm341_vm0, 1.0, %v6977_v10  ;;  %v356_v40 = vpop.permute.xlu0 %355  ;;  %v6523_v42 = vld [vmem:[#allocation6 + $0x438] sm:$0xff]   ;;  %v6555_v24 = vld [vmem:[#allocation6 + $0x530] sm:$0xff]  }
 0x136   :  { %v344_v30 = vpack.c.bf16 %v5149_v27, %v5149_v27  ;;  %vm357_vm3 = vcmp.eq.s32.totalorder %v7110_v5, %v356_v40  ;;  %v6557_v27 = vld [vmem:[#allocation6 + $0x5b0] sm:$0xff]   ;;  %v5186_v40 = vcombine.low %v7246_v50, %v7246_v50 }
 0x137   :  { %v5151_v43 = vsel %vm357_vm3, 1.0, %v6977_v10 }
 0x138   :  { %5777 = vmatpush3.bf16.msra.mxu0 %v6483_v44  ;;  %5799 = vmatpush3.bf16.msra.mxu1 %v6487_v47  ;;  %345 = vst [vmem:[#allocation2 + $0x84] sm:$0xf] %v344_v30  ;;  %v348_v2 = vpop.permute.xlu1 %347  ;;  %v6527_v44 = vld [vmem:[#allocation6 + $0x4b8] sm:$0xff]   ;;  %v360_v45 = vpack.c.bf16 %v5151_v43, %v5151_v43  ;;  %v6532_v47 = vld [vmem:[#allocation6 + $0x5c0] sm:$0xff]   ;;  %v6570_v43 = vld [vmem:[#allocation6 + $0x648] sm:$0xff]  }
 0x139   :  { %5778 = vmatprep.subr.bf16.mxu0 %v6488_v49  ;;  %5800 = vmatprep.subr.bf16.mxu1 %v6490_v52  ;;  %vm349_vm2 = vcmp.eq.s32.totalorder %v7110_v5, %v348_v2  ;;  %v6533_v49 = vld [vmem:[#allocation6 + $0x580] sm:$0xff]   ;;  %v5182_v52 = vcombine.low %v7226_v62, %v7226_v62  ;;  %v6537_v62 = vld [vmem:[#allocation6 + $0x588] sm:$0xff]   ;;  %v6560_v30 = vld [vmem:[#allocation6 + $0x5f8] sm:$0xff]  }
 0x13a   :  { %v5150_v37 = vsel %vm349_vm2, 1.0, %v6977_v10  ;;  %361 = vst [vmem:[#allocation2 + $0x8c] sm:$0xf] %v360_v45  ;;  %v6563_v2 = vld [vmem:[#allocation6 + $0x5b8] sm:$0xff]   ;;  %v6571_v45 = vld [vmem:[#allocation6 + $0x608] sm:$0xff]   ;;  %vm6994_vm2 = vmmov 0  }
 0x13b   :  { %v352_v39 = vpack.c.bf16 %v5150_v37, %v5150_v37  ;;  %v6567_v37 = vld [vmem:[#allocation6 + $0x600] sm:$0xff]  }
 0x13c   :  { %5779 = vmatpush3.bf16.msra.mxu0 %v6489_v53  ;;  %5801 = vmatpush3.bf16.msra.mxu1 %v6491_v54  ;;  %v5184_v53 = vcombine.low %v7230_v63, %v7230_v63  ;;  %v7252_v54 = vld [vmem:[#allocation2 + $0x58] sm:$0xff]  ;;  %v6538_v63 = vld [vmem:[#allocation6 + $0x550] sm:$0xff]  }
 0x13d   :  { %5808 = vmatprep.subr.bf16.mxu0 %v6492_v56  ;;  %5830 = vmatprep.subr.bf16.mxu1 %v6496_v57  ;;  %353 = vst [vmem:[#allocation2 + $0x88] sm:$0xf] %v352_v39  ;;  %v6534_v56 = vld [vmem:[#allocation6 + $0x548] sm:$0xff]   ;;  %v7266_v39 = vld [vmem:[#allocation2 + $0x60] sm:$0xff] }
 0x13e   :  { %v6536_v57 = vld [vmem:[#allocation6 + $0x5c8] sm:$0xff]  }
 0x13f   :  { %4151 = vmatmul.mubr.bf16.vlgmr.msra.gmra.mrb[12].mxu0 %v5178_v1  ;;  %4191 = vmatmul.mubr.bf16.vlgmr.msra.gmra.mrb[12].mxu1 %v5180_v8  ;;  %v5189_v8 = vcombine.high %v7252_v54, %v7252_v54  ;;  %v6539_v1 = vld [vmem:[#allocation6 + $0x510] sm:$0xff]  }
 0x140   :  { %5809 = vmatpush3.bf16.msra.mxu0 %v6495_v58  ;;  %5831 = vmatpush3.bf16.msra.mxu1 %v6497_v60  ;;  %v6535_v58 = vld [vmem:[#allocation6 + $0x508] sm:$0xff]   ;;  %v5187_v60 = vcombine.high %v7246_v50, %v7246_v50  ;;  %v6576_v50 = vld [vmem:[#allocation6 + $0x6d0] sm:$0xff]  }
 0x141   :  { %5810 = vmatprep.subr.bf16.mxu0 %v6498_v0  ;;  %5832 = vmatprep.subr.bf16.mxu1 %v6500_v3  ;;  %v6540_v0 = vld [vmem:[#allocation6 + $0x5d0] sm:$0xff]  }
 0x142   :  { %4230 = vmatprep.mubr.bf16.mxu0 %v5183_v7  ;;  %4270 = vmatprep.mubr.bf16.mxu1 %v5185_v9  ;;  %v6541_v3 = vld [vmem:[#allocation6 + $0x590] sm:$0xff]   ;;  %v6544_v7 = vld [vmem:[#allocation6 + $0x5d8] sm:$0xff]  }
 0x143   :  { %v6543_v9 = vld [vmem:[#allocation6 + $0x518] sm:$0xff]  }
 0x144   :  { %5811 = vmatpush3.bf16.msra.mxu0 %v6499_v6  ;;  %5833 = vmatpush3.bf16.msra.mxu1 %v6501_v51  ;;  %v6542_v6 = vld [vmem:[#allocation6 + $0x558] sm:$0xff]  }
 0x145   :  { %5812 = vmatprep.subr.bf16.mxu0 %v6502_v55  ;;  %5834 = vmatprep.subr.bf16.mxu1 %v6504_v59  ;;  %v6545_v55 = vld [vmem:[#allocation6 + $0x598] sm:$0xff]   ;;  %v6546_v59 = vld [vmem:[#allocation6 + $0x560] sm:$0xff]  }
 0x148   :  { %5813 = vmatpush3.bf16.msra.mxu0 %v6503_v61  ;;  %5835 = vmatpush3.bf16.msra.mxu1 %v6505_v11  ;;  %v6548_v11 = vld [vmem:[#allocation6 + $0x5e0] sm:$0xff]  }
 0x149   :  { %5814 = vmatprep.subr.bf16.mxu0 %v6506_v12  ;;  %5836 = vmatprep.subr.bf16.mxu1 %v6508_v13  ;;  %v6547_v13 = vld [vmem:[#allocation6 + $0x520] sm:$0xff]  }
 0x14c   :  { %5815 = vmatpush3.bf16.msra.mxu0 %v6507_v14  ;;  %5837 = vmatpush3.bf16.msra.mxu1 %v6509_v16  ;;  %v364_v51 = vpop.permute.xlu1 %363  ;;  %v6549_v14 = vld [vmem:[#allocation6 + $0x5a0] sm:$0xff]   ;;  %v6552_v16 = vld [vmem:[#allocation6 + $0x5e8] sm:$0xff]  }
 0x14d   :  { %5816 = vmatprep.subr.bf16.mxu0 %v6510_v18  ;;  %5838 = vmatprep.subr.bf16.mxu1 %v6512_v19  ;;  %vm365_vm4 = vcmp.eq.s32.totalorder %v7110_v5, %v364_v51  ;;  %v6551_v18 = vld [vmem:[#allocation6 + $0x528] sm:$0xff]  }
 0x14e   :  { %v5152_v61 = vsel %vm365_vm4, 1.0, %v6977_v10  ;;  %v6587_v51 = vld [vmem:[#allocation6 + $0x628] sm:$0xff]  }
 0x14f   :  { %v368_v12 = vpack.c.bf16 %v5152_v61, %v5152_v61 }
 0x150   :  { %5817 = vmatpush3.bf16.msra.mxu0 %v6511_v20  ;;  %5839 = vmatpush3.bf16.msra.mxu1 %v6513_v22  ;;  %v6553_v20 = vld [vmem:[#allocation6 + $0x5a8] sm:$0xff]   ;;  %v6554_v22 = vld [vmem:[#allocation6 + $0x570] sm:$0xff]  }
 0x151   :  { %5818 = vmatprep.subr.bf16.mxu0 %v6514_v23  ;;  %5840 = vmatprep.subr.bf16.mxu1 %v6516_v26  ;;  %369 = vst [vmem:[#allocation2 + $0x90] sm:$0xf] %v368_v12  ;;  %v6556_v23 = vld [vmem:[#allocation6 + $0x5f0] sm:$0xff]  }
 0x154   :  { %5819 = vmatpush3.bf16.msra.mxu0 %v6515_v29  ;;  %5841 = vmatpush3.bf16.msra.mxu1 %v6517_v32 }
 0x155   :  { %5820 = vmatprep.subr.bf16.mxu0 %v6518_v33  ;;  %5842 = vmatprep.subr.bf16.mxu1 %v6520_v34  ;;  %v6559_v33 = vld [vmem:[#allocation6 + $0x538] sm:$0xff]  }
 0x156   :  { %v372_v17 = vpop.permute.xlu1 %371 }
 0x157   :  { %vm373_vm5 = vcmp.eq.s32.totalorder %v7110_v5, %v372_v17 }
 0x158   :  { %5821 = vmatpush3.bf16.msra.mxu0 %v6519_v35  ;;  %5843 = vmatpush3.bf16.msra.mxu1 %v6521_v36  ;;  %v5153_v19 = vsel %vm373_vm5, 1.0, %v6977_v10  ;;  %v6564_v35 = vld [vmem:[#allocation6 + $0x640] sm:$0xff]  }
 0x159   :  { %5822 = vmatprep.subr.bf16.mxu0 %v6522_v38  ;;  %5844 = vmatprep.subr.bf16.mxu1 %v6524_v41  ;;  %v376_v21 = vpack.c.bf16 %v5153_v19, %v5153_v19  ;;  %v6568_v36 = vld [vmem:[#allocation6 + $0x6c0] sm:$0xff]   ;;  %v5188_v41 = vcombine.low %v7252_v54, %v7252_v54  ;;  %v6578_v54 = vld [vmem:[#allocation6 + $0x658] sm:$0xff]  }
 0x15a   :  { %v6569_v38 = vld [vmem:[#allocation6 + $0x680] sm:$0xff]   ;;  %v6596_v19 = vld [vmem:[#allocation6 + $0x678] sm:$0xff]  }
 0x15b   :  { %377 = vst [vmem:[#allocation2 + $0x94] sm:$0xf] %v376_v21  ;;  %v6598_v21 = vld [vmem:[#allocation6 + $0x6f8] sm:$0xff]  }
 0x15c   :  { %5823 = vmatpush3.bf16.msra.mxu0 %v6523_v42  ;;  %5845 = vmatpush3.bf16.msra.mxu1 %v6527_v44  ;;  %v7272_v42 = vld [vmem:[#allocation2 + $0x68] sm:$0xff]  ;;  %v6572_v44 = vld [vmem:[#allocation6 + $0x6c8] sm:$0xff]  }
 0x15d   :  { %5852 = vmatprep.subr.bf16.mxu0 %v6528_v46  ;;  %5874 = vmatprep.subr.bf16.mxu1 %v6532_v47  ;;  %v5191_v46 = vcombine.high %v7266_v39, %v7266_v39  ;;  %v5193_v47 = vcombine.high %v7272_v42, %v7272_v42 }
 0x15f   :  { %4231 = vmatmul.mubr.bf16.vlgmr.msra.gmra.mrb[16].mxu0 %v5182_v52  ;;  %4271 = vmatmul.mubr.bf16.vlgmr.msra.gmra.mrb[16].mxu1 %v5184_v53  ;;  %v6575_v52 = vld [vmem:[#allocation6 + $0x610] sm:$0xff]  }
 0x160   :  { %5853 = vmatpush3.bf16.msra.mxu0 %v6531_v48  ;;  %5875 = vmatpush3.bf16.msra.mxu1 %v6533_v49  ;;  %v6573_v48 = vld [vmem:[#allocation6 + $0x688] sm:$0xff]   ;;  %v6574_v49 = vld [vmem:[#allocation6 + $0x650] sm:$0xff]  }
 0x161   :  { %5854 = vmatprep.subr.bf16.mxu0 %v6534_v56  ;;  %5876 = vmatprep.subr.bf16.mxu1 %v6536_v57  ;;  %v6577_v53 = vld [vmem:[#allocation6 + $0x690] sm:$0xff]   ;;  %v6580_v56 = vld [vmem:[#allocation6 + $0x6d8] sm:$0xff]  }
 0x162   :  { %4310 = vmatprep.mubr.bf16.mxu0 %v5187_v60  ;;  %4350 = vmatprep.mubr.bf16.mxu1 %v5189_v8  ;;  %v388_v25 = vpop.permute.xlu1 %387  ;;  %v6579_v57 = vld [vmem:[#allocation6 + $0x618] sm:$0xff]   ;;  %v6582_v60 = vld [vmem:[#allocation6 + $0x660] sm:$0xff]  }
 0x163   :  { %vm389_vm6 = vcmp.eq.s32.totalorder %v7110_v5, %v388_v25  ;;  %v6600_v25 = vld [vmem:[#allocation6 + $0x740] sm:$0xff]  }
 0x164   :  { %5855 = vmatpush3.bf16.msra.mxu0 %v6535_v58  ;;  %5877 = vmatpush3.bf16.msra.mxu1 %v6537_v62  ;;  %v5155_v29 = vsel %vm389_vm6, 1.0, %v6977_v10  ;;  %v6581_v58 = vld [vmem:[#allocation6 + $0x698] sm:$0xff]   ;;  %v6584_v62 = vld [vmem:[#allocation6 + $0x6e0] sm:$0xff]  }
 0x165   :  { %5856 = vmatprep.subr.bf16.mxu0 %v6538_v63  ;;  %5878 = vmatprep.subr.bf16.mxu1 %v6540_v0  ;;  %v380_v26 = vpop.permute.xlu0 %379  ;;  %v392_v31 = vpack.c.bf16 %v5155_v29, %v5155_v29  ;;  %v6583_v0 = vld [vmem:[#allocation6 + $0x620] sm:$0xff]  }
 0x166   :  { %vm381_vm7 = vcmp.eq.s32.totalorder %v7110_v5, %v380_v26  ;;  %v6604_v26 = vld [vmem:[#allocation6 + $0x7c0] sm:$0xff]  }
 0x167   :  { %v5154_v32 = vsel %vm381_vm7, 1.0, %v6977_v10  ;;  %393 = vst [vmem:[#allocation2 + $0x9c] sm:$0xf] %v392_v31  ;;  %v7286_v29 = vld [vmem:[#allocation2 + $0x70] sm:$0xff]  ;;  %v7290_v31 = vld [vmem:[#allocation2 + $0x78] sm:$0xff] }
 0x168   :  { %5857 = vmatpush3.bf16.msra.mxu0 %v6539_v1  ;;  %5879 = vmatpush3.bf16.msra.mxu1 %v6541_v3  ;;  %v384_v34 = vpack.c.bf16 %v5154_v32, %v5154_v32  ;;  %v6585_v1 = vld [vmem:[#allocation6 + $0x6a0] sm:$0xff]   ;;  %v6606_v32 = vld [vmem:[#allocation6 + $0x748] sm:$0xff]  }
 0x169   :  { %5858 = vmatprep.subr.bf16.mxu0 %v6542_v6  ;;  %5880 = vmatprep.subr.bf16.mxu1 %v6544_v7  ;;  %v6586_v6 = vld [vmem:[#allocation6 + $0x668] sm:$0xff]  }
 0x16a   :  { %385 = vst [vmem:[#allocation2 + $0x98] sm:$0xf] %v384_v34  ;;  %v6588_v7 = vld [vmem:[#allocation6 + $0x6e8] sm:$0xff]  }
 0x16b   :  { %v6608_v34 = vld [vmem:[#allocation6 + $0x7c8] sm:$0xff]  }
 0x16c   :  { %5859 = vmatpush3.bf16.msra.mxu0 %v6543_v9  ;;  %5881 = vmatpush3.bf16.msra.mxu1 %v6545_v55 }
 0x16d   :  { %5860 = vmatprep.subr.bf16.mxu0 %v6546_v59  ;;  %5882 = vmatprep.subr.bf16.mxu1 %v6548_v11  ;;  %v6589_v59 = vld [vmem:[#allocation6 + $0x6a8] sm:$0xff]   ;;  %v6590_v11 = vld [vmem:[#allocation6 + $0x670] sm:$0xff]  }
 0x16e   :  { %v396_v8 = vpop.permute.xlu1 %395 }
 0x16f   :  { %vm397_vm8 = vcmp.eq.s32.totalorder %v7110_v5, %v396_v8 }
 0x170   :  { %5861 = vmatpush3.bf16.msra.mxu0 %v6547_v13  ;;  %5883 = vmatpush3.bf16.msra.mxu1 %v6549_v14  ;;  %v5156_v63 = vsel %vm397_vm8, 1.0, %v6977_v10  ;;  %v6592_v14 = vld [vmem:[#allocation6 + $0x6f0] sm:$0xff]  }
 0x171   :  { %5862 = vmatprep.subr.bf16.mxu0 %v6550_v15  ;;  %5884 = vmatprep.subr.bf16.mxu1 %v6552_v16  ;;  %v400_v3 = vpack.c.bf16 %v5156_v63, %v5156_v63  ;;  %v6591_v16 = vld [vmem:[#allocation6 + $0x630] sm:$0xff]   ;;  %v6625_v63 = vld [vmem:[#allocation6 + $0x7a8] sm:$0xff]  }
 0x172   :  { %v404_v55 = vpop.permute.xlu0 %403 }
 0x173   :  { %401 = vst [vmem:[#allocation2 + $0xa0] sm:$0xf] %v400_v3  ;;  %vm405_vm10 = vcmp.eq.s32.totalorder %v7110_v5, %v404_v55  ;;  %v6628_v3 = vld [vmem:[#allocation6 + $0x7f0] sm:$0xff]  }
 0x174   :  { %5863 = vmatpush3.bf16.msra.mxu0 %v6551_v18  ;;  %5885 = vmatpush3.bf16.msra.mxu1 %v6553_v20  ;;  %v5157_v13 = vsel %vm405_vm10, 1.0, %v6977_v10  ;;  %v6595_v18 = vld [vmem:[#allocation6 + $0x6b0] sm:$0xff]  }
 0x175   :  { %5864 = vmatprep.subr.bf16.mxu0 %v6554_v22  ;;  %5886 = vmatprep.subr.bf16.mxu1 %v6556_v23  ;;  %v412_v9 = vpop.permute.xlu1 %411  ;;  %v408_v15 = vpack.c.bf16 %v5157_v13, %v5157_v13  ;;  %v6597_v23 = vld [vmem:[#allocation6 + $0x638] sm:$0xff]   ;;  %v6629_v55 = vld [vmem:[#allocation6 + $0x7b0] sm:$0xff]  }
 0x176   :  { %vm413_vm9 = vcmp.eq.s32.totalorder %v7110_v5, %v412_v9 }
 0x177   :  { %v5158_v61 = vsel %vm413_vm9, 1.0, %v6977_v10  ;;  %409 = vst [vmem:[#allocation2 + $0xa4] sm:$0xf] %v408_v15  ;;  %v6632_v15 = vld [vmem:[#allocation6 + $0x7f8] sm:$0xff]  }
 0x178   :  { %5865 = vmatpush3.bf16.msra.mxu0 %v6555_v24  ;;  %5887 = vmatpush3.bf16.msra.mxu1 %v6557_v27  ;;  %v416_v12 = vpack.c.bf16 %v5158_v61, %v5158_v61  ;;  %v6599_v24 = vld [vmem:[#allocation6 + $0x6b8] sm:$0xff]   ;;  %v6603_v27 = vld [vmem:[#allocation6 + $0x700] sm:$0xff]  }
 0x179   :  { %5866 = vmatprep.subr.bf16.mxu0 %v6558_v28  ;;  %5888 = vmatprep.subr.bf16.mxu1 %v6560_v30  ;;  %v6605_v28 = vld [vmem:[#allocation6 + $0x780] sm:$0xff]   ;;  %v5192_v30 = vcombine.low %v7272_v42, %v7272_v42  ;;  %v6614_v42 = vld [vmem:[#allocation6 + $0x758] sm:$0xff]  }
 0x17a   :  { %417 = vst [vmem:[#allocation2 + $0xa8] sm:$0xf] %v416_v12  ;;  %v420_v17 = vpop.permute.xlu1 %419 }
 0x17b   :  { %vm421_vm11 = vcmp.eq.s32.totalorder %v7110_v5, %v420_v17 }
 0x17c   :  { %5867 = vmatpush3.bf16.msra.mxu0 %v6559_v33  ;;  %5889 = vmatpush3.bf16.msra.mxu1 %v6563_v2  ;;  %v5159_v20 = vsel %vm421_vm11, 1.0, %v6977_v10  ;;  %v5190_v33 = vcombine.low %v7266_v39, %v7266_v39  ;;  %v6607_v2 = vld [vmem:[#allocation6 + $0x708] sm:$0xff]   ;;  %v6611_v39 = vld [vmem:[#allocation6 + $0x710] sm:$0xff]  }
 0x17d   :  { %5896 = vmatprep.subr.bf16.mxu0 %v6564_v35  ;;  %5918 = vmatprep.subr.bf16.mxu1 %v6568_v36  ;;  %v424_v22 = vpack.c.bf16 %v5159_v20, %v5159_v20  ;;  %v5195_v35 = vcombine.high %v7286_v29, %v7286_v29  ;;  %v5197_v36 = vcombine.high %v7290_v31, %v7290_v31  ;;  %v6631_v20 = vld [vmem:[#allocation6 + $0x738] sm:$0xff]  }
 0x17f   :  { %4311 = vmatmul.mubr.bf16.vlgmr.msra.gmra.mrb[20].mxu0 %v5186_v40  ;;  %4351 = vmatmul.mubr.bf16.vlgmr.msra.gmra.mrb[20].mxu1 %v5188_v41  ;;  %425 = vst [vmem:[#allocation2 + $0xac] sm:$0xf] %v424_v22  ;;  %v6612_v40 = vld [vmem:[#allocation6 + $0x7d0] sm:$0xff]  }
 0x180   :  { %5897 = vmatpush3.bf16.msra.mxu0 %v6567_v37  ;;  %5919 = vmatpush3.bf16.msra.mxu1 %v6569_v38  ;;  %v6609_v37 = vld [vmem:[#allocation6 + $0x788] sm:$0xff]   ;;  %v6610_v38 = vld [vmem:[#allocation6 + $0x750] sm:$0xff]  }
 0x181   :  { %5898 = vmatprep.subr.bf16.mxu0 %v6570_v43  ;;  %5920 = vmatprep.subr.bf16.mxu1 %v6572_v44  ;;  %v6613_v41 = vld [vmem:[#allocation6 + $0x790] sm:$0xff]   ;;  %v6616_v43 = vld [vmem:[#allocation6 + $0x7d8] sm:$0xff]  }
 0x182   :  { %4390 = vmatprep.mubr.bf16.mxu0 %v5191_v46  ;;  %4430 = vmatprep.mubr.bf16.mxu1 %v5193_v47  ;;  %v6615_v44 = vld [vmem:[#allocation6 + $0x718] sm:$0xff]   ;;  %v6618_v46 = vld [vmem:[#allocation6 + $0x760] sm:$0xff]  }
 0x183   :  { %v6620_v47 = vld [vmem:[#allocation6 + $0x7e0] sm:$0xff]  }
 0x184   :  { %5899 = vmatpush3.bf16.msra.mxu0 %v6571_v45  ;;  %5921 = vmatpush3.bf16.msra.mxu1 %v6573_v48  ;;  %v6617_v45 = vld [vmem:[#allocation6 + $0x798] sm:$0xff]   ;;  %v6619_v48 = vld [vmem:[#allocation6 + $0x720] sm:$0xff]  }
 0x185   :  { %5900 = vmatprep.subr.bf16.mxu0 %v6574_v49  ;;  %5922 = vmatprep.subr.bf16.mxu1 %v6576_v50  ;;  %v7299_v49 = vshrl.u32 %v72_v4, 7  ;;  %v6621_v50 = vld [vmem:[#allocation6 + $0x7a0] sm:$0xff]   ;;  %v6623_v4 = vld [vmem:[#allocation6 + $0x728] sm:$0xff]  }
 0x188   :  { %5901 = vmatpush3.bf16.msra.mxu0 %v6575_v52  ;;  %5923 = vmatpush3.bf16.msra.mxu1 %v6577_v53  ;;  %v6622_v52 = vld [vmem:[#allocation6 + $0x768] sm:$0xff]  }
 0x189   :  { %5902 = vmatprep.subr.bf16.mxu0 %v6578_v54  ;;  %5924 = vmatprep.subr.bf16.mxu1 %v6580_v56  ;;  %v428_v54 = vpop.permute.xlu0 %427  ;;  %v71_v56 = vld [vmem:[#allocation9] sm:$0x7] }
 0x18a   :  { %vm429_vm13 = vcmp.eq.s32.totalorder %v7110_v5, %v428_v54 }
 0x18c   :  { %5903 = vmatpush3.bf16.msra.mxu0 %v6579_v57  ;;  %5925 = vmatpush3.bf16.msra.mxu1 %v6581_v58  ;;  %v6624_v57 = vld [vmem:[#allocation6 + $0x7e8] sm:$0xff]   ;;  %v1301_v58 = vsub.s32 0, %v7299_v49 }
 0x18d   :  { %5904 = vmatprep.subr.bf16.mxu0 %v6582_v60  ;;  %5926 = vmatprep.subr.bf16.mxu1 %v6584_v62  ;;  %v5160_v62 = vsel %vm429_vm13, 1.0, %v6977_v10  ;;  %v452_v22 = vpop.permute.xlu0 %451 }
 0x18e   :  { %v436_v53 = vpop.permute.xlu1 %435  ;;  %vm453_vm15 = vcmp.eq.s32.totalorder %v7110_v5, %v452_v22 }
 0x18f   :  { %vm437_vm12 = vcmp.eq.s32.totalorder %v7110_v5, %v436_v53  ;;  %v6654_v53 = vld [vmem:[#allocation6 + $0x860] sm:$0xff]  }
 0x190   :  { %5905 = vmatpush3.bf16.msra.mxu0 %v6583_v0  ;;  %5927 = vmatpush3.bf16.msra.mxu1 %v6585_v1  ;;  %v5161_v60 = vsel %vm437_vm12, 1.0, %v6977_v10  ;;  %v6626_v0 = vld [vmem:[#allocation6 + $0x770] sm:$0xff]   ;;  %v432_v1 = vpack.c.bf16 %v5160_v62, %v5160_v62 }
 0x191   :  { %5906 = vmatprep.subr.bf16.mxu0 %v6586_v6  ;;  %5928 = vmatprep.subr.bf16.mxu1 %v6588_v7  ;;  %v440_v8 = vpack.c.bf16 %v5161_v60, %v5161_v60  ;;  %v1302_v7 = vrot.slane %v71_v56, %v1301_v58  ;;  %v6656_v56 = vld [vmem:[#allocation6 + $0x8e0] sm:$0xff]  }
 0x192   :  { %433 = vst [vmem:[#allocation2 + $0xb0] sm:$0xf] %v432_v1  ;;  %v6655_v58 = vld [vmem:[#allocation6 + $0x820] sm:$0xff]   ;;  %v6661_v1 = vld [vmem:[#allocation6 + $0x8a8] sm:$0xff]  }
 0x193   :  { %441 = vst [vmem:[#allocation2 + $0xb4] sm:$0xf] %v440_v8  ;;  %v6657_v60 = vld [vmem:[#allocation6 + $0x8a0] sm:$0xff]   ;;  %v6660_v8 = vld [vmem:[#allocation6 + $0x8e8] sm:$0xff]  }
 0x194   :  { %5907 = vmatpush3.bf16.msra.mxu0 %v6587_v51  ;;  %5929 = vmatpush3.bf16.msra.mxu1 %v6589_v59  ;;  %v6627_v51 = vld [vmem:[#allocation6 + $0x730] sm:$0xff]  }
 0x195   :  { %5908 = vmatprep.subr.bf16.mxu0 %v6590_v11  ;;  %5930 = vmatprep.subr.bf16.mxu1 %v6592_v14  ;;  %v6630_v14 = vld [vmem:[#allocation6 + $0x778] sm:$0xff]  }
 0x198   :  { %5909 = vmatpush3.bf16.msra.mxu0 %v6591_v16  ;;  %5931 = vmatpush3.bf16.msra.mxu1 %v6595_v18 }
 0x199   :  { %5910 = vmatprep.subr.bf16.mxu0 %v6596_v19  ;;  %5932 = vmatprep.subr.bf16.mxu1 %v6598_v21 }
 0x19a   :  { %v444_v21 = vpop.permute.xlu1 %443 }
 0x19b   :  { %vm445_vm14 = vcmp.eq.s32.totalorder %v7110_v5, %v444_v21  ;;  %v6671_v21 = vld [vmem:[#allocation6 + $0x8b8] sm:$0xff]  }
 0x19c   :  { %5911 = vmatpush3.bf16.msra.mxu0 %v6597_v23  ;;  %5933 = vmatpush3.bf16.msra.mxu1 %v6599_v24  ;;  %v6635_v23 = vld [vmem:[#allocation6 + $0x7b8] sm:$0xff]  }
 0x19d   :  { %5940 = vmatprep.subr.bf16.mxu0 %v6600_v25  ;;  %5962 = vmatprep.subr.bf16.mxu1 %v6604_v26  ;;  %v6636_v25 = vld [vmem:[#allocation6 + $0x840] sm:$0xff]   ;;  %v5162_v26 = vsel %vm445_vm14, 1.0, %v6977_v10 }
 0x19f   :  { %4391 = vmatmul.mubr.bf16.vlgmr.msra.gmra.mrb[24].mxu0 %v5190_v33  ;;  %4431 = vmatmul.mubr.bf16.vlgmr.msra.gmra.mrb[24].mxu1 %v5192_v30  ;;  %v5163_v30 = vsel %vm453_vm15, 1.0, %v6977_v10  ;;  %v6641_v33 = vld [vmem:[#allocation6 + $0x880] sm:$0xff]  }
 0x1a0   :  { %5941 = vmatpush3.bf16.msra.mxu0 %v6603_v27  ;;  %5963 = vmatpush3.bf16.msra.mxu1 %v6605_v28  ;;  %v6640_v27 = vld [vmem:[#allocation6 + $0x8c0] sm:$0xff]   ;;  %v448_v28 = vpack.c.bf16 %v5162_v26, %v5162_v26 }
 0x1a1   :  { %5942 = vmatprep.subr.bf16.mxu0 %v6606_v32  ;;  %5964 = vmatprep.subr.bf16.mxu1 %v6608_v34  ;;  %v6639_v32 = vld [vmem:[#allocation6 + $0x800] sm:$0xff]   ;;  %v7312_v34 = vld [vmem:[#allocation2 + $0x80] sm:$0xff] }
 0x1a2   :  { %4470 = vmatprep.mubr.bf16.mxu0 %v5195_v35  ;;  %4510 = vmatprep.mubr.bf16.mxu1 %v5197_v36  ;;  %v5194_v35 = vcombine.low %v7286_v29, %v7286_v29  ;;  %v5196_v36 = vcombine.low %v7290_v31, %v7290_v31  ;;  %449 = vst [vmem:[#allocation2 + $0xb8] sm:$0xf] %v448_v28  ;;  %v6645_v31 = vld [vmem:[#allocation6 + $0x888] sm:$0xff]   ;;  %v6675_v26 = vld [vmem:[#allocation6 + $0x900] sm:$0xff]  }
 0x1a3   :  { %v7331_v28 = vld [vmem:[#allocation2 + $0x90] sm:$0xff] }
 0x1a4   :  { %5943 = vmatpush3.bf16.msra.mxu0 %v6607_v2  ;;  %5965 = vmatpush3.bf16.msra.mxu1 %v6609_v37  ;;  %v456_v2 = vpack.c.bf16 %v5163_v30, %v5163_v30  ;;  %v7318_v37 = vld [vmem:[#allocation2 + $0x88] sm:$0xff]  ;;  %v5198_v30 = vcombine.low %v7312_v34, %v7312_v34 }
 0x1a5   :  { %5944 = vmatprep.subr.bf16.mxu0 %v6610_v38  ;;  %5966 = vmatprep.subr.bf16.mxu1 %v6612_v40  ;;  %v6642_v38 = vld [vmem:[#allocation6 + $0x848] sm:$0xff]   ;;  %v5201_v29 = vcombine.high %v7318_v37, %v7318_v37 }
 0x1a6   :  { %457 = vst [vmem:[#allocation2 + $0xbc] sm:$0xf] %v456_v2  ;;  %v6644_v40 = vld [vmem:[#allocation6 + $0x8c8] sm:$0xff]  }
 0x1a7   :  { %v6680_v2 = vld [vmem:[#allocation6 + $0x9c8] sm:$0xff]  }
 0x1a8   :  { %5945 = vmatpush3.bf16.msra.mxu0 %v6611_v39  ;;  %5967 = vmatpush3.bf16.msra.mxu1 %v6613_v41  ;;  %v6643_v39 = vld [vmem:[#allocation6 + $0x808] sm:$0xff]   ;;  %v5199_v41 = vcombine.high %v7312_v34, %v7312_v34 }
 0x1a9   :  { %5946 = vmatprep.subr.bf16.mxu0 %v6614_v42  ;;  %5968 = vmatprep.subr.bf16.mxu1 %v6616_v43  ;;  %v6646_v42 = vld [vmem:[#allocation6 + $0x850] sm:$0xff]   ;;  %v6681_v34 = vld [vmem:[#allocation6 + $0x988] sm:$0xff]  }
 0x1aa   :  { %v6648_v43 = vld [vmem:[#allocation6 + $0x8d0] sm:$0xff]  }
 0x1ac   :  { %5947 = vmatpush3.bf16.msra.mxu0 %v6615_v44  ;;  %5969 = vmatpush3.bf16.msra.mxu1 %v6617_v45  ;;  %v6647_v44 = vld [vmem:[#allocation6 + $0x810] sm:$0xff]  }
 0x1ad   :  { %5948 = vmatprep.subr.bf16.mxu0 %v6618_v46  ;;  %5970 = vmatprep.subr.bf16.mxu1 %v6620_v47  ;;  %v6649_v45 = vld [vmem:[#allocation6 + $0x890] sm:$0xff]   ;;  %v6650_v46 = vld [vmem:[#allocation6 + $0x858] sm:$0xff]  }
 0x1ae   :  { %v6652_v47 = vld [vmem:[#allocation6 + $0x8d8] sm:$0xff]  }
 0x1b0   :  { %5949 = vmatpush3.bf16.msra.mxu0 %v6619_v48  ;;  %5971 = vmatpush3.bf16.msra.mxu1 %v6621_v50  ;;  %v6651_v48 = vld [vmem:[#allocation6 + $0x818] sm:$0xff]   ;;  %v460_v50 = vpop.permute.xlu1 %459 }
 0x1b1   :  { %5950 = vmatprep.subr.bf16.mxu0 %v6622_v52  ;;  %5972 = vmatprep.subr.bf16.mxu1 %v6624_v57  ;;  %v6653_v52 = vld [vmem:[#allocation6 + $0x898] sm:$0xff]   ;;  %vm461_vm0 = vcmp.eq.s32.totalorder %v7110_v5, %v460_v50  ;;  %v6696_v50 = vld [vmem:[#allocation6 + $0x9e8] sm:$0xff]  }
 0x1b2   :  { %v5648_v6 = vpop.f32.mrb[0].mxu0  ;;  %v5670_v9 = vpop.f32.mrb[0].mxu1  ;;  %v5164_v54 = vsel %vm461_vm0, 1.0, %v6977_v10 }
 0x1b3   :  { %v5649_v59 = vpop.f32.mrb[1].mxu0  ;;  %v5671_v61 = vpop.f32.mrb[1].mxu1  ;;  %v464_v57 = vpack.c.bf16 %v5164_v54, %v5164_v54  ;;  %v6698_v54 = vld [vmem:[#allocation6 + $0x970] sm:$0xff]  }
 0x1b4   :  { %v5650_v11 = vadd.f32 %v5649_v59, %v5648_v6  ;;  %5951 = vmatpush3.bf16.msra.mxu0 %v6623_v4  ;;  %v5651_v12 = vpop.f32.mrb[2].mxu0  ;;  %v5672_v13 = vadd.f32 %v5671_v61, %v5670_v9  ;;  %5973 = vmatpush3.bf16.msra.mxu1 %v6625_v63  ;;  %v5673_v16 = vpop.f32.mrb[2].mxu1  ;;  %v6658_v4 = vld [vmem:[#allocation6 + $0x868] sm:$0xff]   ;;  %v6662_v6 = vld [vmem:[#allocation6 + $0x870] sm:$0xff]  }
 0x1b5   :  { %v5652_v17 = vpop.f32.mrb[3].mxu0  ;;  %5952 = vmatprep.subr.bf16.mxu0 %v6626_v0  ;;  %5974 = vmatprep.subr.bf16.mxu1 %v6628_v3  ;;  %v5674_v18 = vpop.f32.mrb[3].mxu1  ;;  %465 = vst [vmem:[#allocation2 + $0xc0] sm:$0xf] %v464_v57  ;;  %v6659_v63 = vld [vmem:[#allocation6 + $0x828] sm:$0xff]   ;;  %v6663_v61 = vld [vmem:[#allocation6 + $0x830] sm:$0xff]  }
 0x1b6   :  { %v3913_v19 = vadd.f32 %v5650_v11, %v1302_v7  ;;  %v468_v62 = vpop.permute.xlu1 %467  ;;  %v6664_v7 = vld [vmem:[#allocation6 + $0x8f0] sm:$0xff]  }
 0x1b7   :  { %vm469_vm1 = vcmp.eq.s32.totalorder %v7110_v5, %v468_v62  ;;  %v6665_v11 = vld [vmem:[#allocation6 + $0x8b0] sm:$0xff]  }
 0x1b8   :  { %v7308_v24 = vadd.f32 %v5672_v13, %v3913_v19  ;;  %5953 = vmatpush3.bf16.msra.mxu0 %v6627_v51  ;;  %5975 = vmatpush3.bf16.msra.mxu1 %v6629_v55  ;;  %v5165_v0 = vsel %vm469_vm1, 1.0, %v6977_v10 }
 0x1b9   :  { %5954 = vmatprep.subr.bf16.mxu0 %v6630_v14  ;;  %5976 = vmatprep.subr.bf16.mxu1 %v6632_v15  ;;  %v472_v3 = vpack.c.bf16 %v5165_v0, %v5165_v0  ;;  %v6666_v14 = vld [vmem:[#allocation6 + $0x878] sm:$0xff]   ;;  %v6699_v0 = vld [vmem:[#allocation6 + $0x930] sm:$0xff]  }
 0x1ba   :  { %v6668_v15 = vld [vmem:[#allocation6 + $0x8f8] sm:$0xff]  }
 0x1bb   :  { %473 = vst [vmem:[#allocation2 + $0xc4] sm:$0xf] %v472_v3 }
 0x1bc   :  { %5955 = vmatpush3.bf16.msra.mxu0 %v6631_v20  ;;  %5977 = vmatpush3.bf16.msra.mxu1 %v6635_v23  ;;  %v6667_v20 = vld [vmem:[#allocation6 + $0x838] sm:$0xff]   ;;  %v6672_v23 = vld [vmem:[#allocation6 + $0x940] sm:$0xff]  }
 0x1bd   :  { %5984 = vmatprep.subr.bf16.mxu0 %v6636_v25  ;;  %6006 = vmatprep.subr.bf16.mxu1 %v6640_v27  ;;  %v6676_v25 = vld [vmem:[#allocation6 + $0x9c0] sm:$0xff]  }
 0x1be   :  { %v6677_v27 = vld [vmem:[#allocation6 + $0x980] sm:$0xff]  }
 0x1bf   :  { %4471 = vmatmul.mubr.bf16.vlgmr.msra.gmra.mrb[28].mxu0 %v5194_v35  ;;  %4511 = vmatmul.mubr.bf16.vlgmr.msra.gmra.mrb[28].mxu1 %v5196_v36  ;;  %v6679_v35 = vld [vmem:[#allocation6 + $0x908] sm:$0xff]   ;;  %v5203_v36 = vcombine.high %v7331_v28, %v7331_v28 }
 0x1c0   :  { %5985 = vmatpush3.bf16.msra.mxu0 %v6639_v32  ;;  %6007 = vmatpush3.bf16.msra.mxu1 %v6641_v33  ;;  %v7337_v32 = vld [vmem:[#allocation2 + $0x98] sm:$0xff] }
 0x1c1   :  { %5986 = vmatprep.subr.bf16.mxu0 %v6642_v38  ;;  %6008 = vmatprep.subr.bf16.mxu1 %v6644_v40  ;;  %v6678_v33 = vld [vmem:[#allocation6 + $0x948] sm:$0xff]   ;;  %v5205_v38 = vcombine.high %v7337_v32, %v7337_v32  ;;  %v6684_v40 = vld [vmem:[#allocation6 + $0x9d0] sm:$0xff]  }
 0x1c2   :  { %4550 = vmatprep.mubr.bf16.mxu0 %v5199_v41  ;;  %4590 = vmatprep.mubr.bf16.mxu1 %v5201_v29  ;;  %v6685_v41 = vld [vmem:[#allocation6 + $0x990] sm:$0xff]   ;;  %v6686_v29 = vld [vmem:[#allocation6 + $0x958] sm:$0xff]  }
 0x1c4   :  { %5987 = vmatpush3.bf16.msra.mxu0 %v6643_v39  ;;  %6009 = vmatpush3.bf16.msra.mxu1 %v6645_v31  ;;  %v6683_v39 = vld [vmem:[#allocation6 + $0x910] sm:$0xff]   ;;  %v6688_v31 = vld [vmem:[#allocation6 + $0x9d8] sm:$0xff]  }
 0x1c5   :  { %5988 = vmatprep.subr.bf16.mxu0 %v6646_v42  ;;  %6010 = vmatprep.subr.bf16.mxu1 %v6648_v43  ;;  %v6687_v42 = vld [vmem:[#allocation6 + $0x918] sm:$0xff]  }
 0x1c6   :  { %v6689_v43 = vld [vmem:[#allocation6 + $0x998] sm:$0xff]  }
 0x1c8   :  { %5989 = vmatpush3.bf16.msra.mxu0 %v6647_v44  ;;  %6011 = vmatpush3.bf16.msra.mxu1 %v6649_v45  ;;  %v6690_v44 = vld [vmem:[#allocation6 + $0x960] sm:$0xff]  }
 0x1c9   :  { %5990 = vmatprep.subr.bf16.mxu0 %v6650_v46  ;;  %6012 = vmatprep.subr.bf16.mxu1 %v6652_v47  ;;  %v6692_v45 = vld [vmem:[#allocation6 + $0x9e0] sm:$0xff]  }
 0x1ca   :  { %v6691_v46 = vld [vmem:[#allocation6 + $0x920] sm:$0xff]  }
 0x1cb   :  { %v6693_v47 = vld [vmem:[#allocation6 + $0x9a0] sm:$0xff]  }
 0x1cc   :  { %5991 = vmatpush3.bf16.msra.mxu0 %v6651_v48  ;;  %6013 = vmatpush3.bf16.msra.mxu1 %v6653_v52  ;;  %v6694_v48 = vld [vmem:[#allocation6 + $0x968] sm:$0xff]  }
 0x1cd   :  { %5992 = vmatprep.subr.bf16.mxu0 %v6654_v53  ;;  %6014 = vmatprep.subr.bf16.mxu1 %v6656_v56  ;;  %v6695_v52 = vld [vmem:[#allocation6 + $0x928] sm:$0xff]   ;;  %v6700_v56 = vld [vmem:[#allocation6 + $0x9f0] sm:$0xff]  }
 0x1ce   :  { %v6697_v53 = vld [vmem:[#allocation6 + $0x9a8] sm:$0xff]  }
 0x1d0   :  { %5993 = vmatpush3.bf16.msra.mxu0 %v6655_v58  ;;  %6015 = vmatpush3.bf16.msra.mxu1 %v6657_v60 }
 0x1d1   :  { %5994 = vmatprep.subr.bf16.mxu0 %v6658_v4  ;;  %6016 = vmatprep.subr.bf16.mxu1 %v6660_v8 }
 0x1d2   :  { %v5692_v9 = vpop.f32.mrb[4].mxu0  ;;  %v5714_v51 = vpop.f32.mrb[4].mxu1 }
 0x1d3   :  { %v5693_v55 = vpop.f32.mrb[5].mxu0  ;;  %v5715_v59 = vpop.f32.mrb[5].mxu1 }
 0x1d4   :  { %v5694_v12 = vadd.f32 %v5693_v55, %v5692_v9  ;;  %v5695_v5 = vpop.f32.mrb[6].mxu0  ;;  %5995 = vmatpush3.bf16.msra.mxu0 %v6659_v63  ;;  %v5716_v13 = vadd.f32 %v5715_v59, %v5714_v51  ;;  %6017 = vmatpush3.bf16.msra.mxu1 %v6661_v1  ;;  %v5717_v16 = vpop.f32.mrb[6].mxu1  ;;  %v6703_v1 = vld [vmem:[#allocation6 + $0x9b0] sm:$0xff]   ;;  %v6706_v9 = vld [vmem:[#allocation6 + $0x9f8] sm:$0xff]  }
 0x1d5   :  { %v5696_v17 = vpop.f32.mrb[7].mxu0  ;;  %5996 = vmatprep.subr.bf16.mxu0 %v6662_v6  ;;  %6018 = vmatprep.subr.bf16.mxu1 %v6664_v7  ;;  %v5718_v18 = vpop.f32.mrb[7].mxu1  ;;  %v6704_v7 = vld [vmem:[#allocation6 + $0x978] sm:$0xff]   ;;  %v6712_v5 = vld [vmem:[#allocation6 + $0xac0] sm:$0xff]  }
 0x1d6   :  { %v3993_v19 = vadd.f32 %v5694_v12, %v7308_v24  ;;  %v5200_v24 = vcombine.low %v7318_v37, %v7318_v37  ;;  %v6682_v37 = vld [vmem:[#allocation6 + $0x950] sm:$0xff]   ;;  %v6708_v12 = vld [vmem:[#allocation6 + $0xa40] sm:$0xff]   ;;  %v5202_v18 = vcombine.low %v7331_v28, %v7331_v28 }
 0x1d7   :  { %v6711_v16 = vld [vmem:[#allocation6 + $0xa00] sm:$0xff]   ;;  %v6719_v28 = vld [vmem:[#allocation6 + $0xa10] sm:$0xff]  }
 0x1d8   :  { %v7329_v22 = vadd.f32 %v5716_v13, %v3993_v19  ;;  %5997 = vmatpush3.bf16.msra.mxu0 %v6663_v61  ;;  %6019 = vmatpush3.bf16.msra.mxu1 %v6665_v11  ;;  %v6705_v61 = vld [vmem:[#allocation6 + $0x938] sm:$0xff]   ;;  %v5204_v13 = vcombine.low %v7337_v32, %v7337_v32  ;;  %v6713_v17 = vld [vmem:[#allocation6 + $0xa80] sm:$0xff]   ;;  %v6714_v19 = vld [vmem:[#allocation6 + $0xa48] sm:$0xff]  }
 0x1d9   :  { %5998 = vmatprep.subr.bf16.mxu0 %v6666_v14  ;;  %6020 = vmatprep.subr.bf16.mxu1 %v6668_v15  ;;  %v6707_v11 = vld [vmem:[#allocation6 + $0x9b8] sm:$0xff]   ;;  %v7348_v14 = vld [vmem:[#allocation2 + $0xa0] sm:$0xff] }
 0x1da   :  { %v7350_v15 = vld [vmem:[#allocation2 + $0xa8] sm:$0xff] }
 0x1db   :  { %v6724_v32 = vld [vmem:[#allocation6 + $0xad8] sm:$0xff]  }
 0x1dc   :  { %5999 = vmatpush3.bf16.msra.mxu0 %v6667_v20  ;;  %6021 = vmatpush3.bf16.msra.mxu1 %v6671_v21  ;;  %v6716_v20 = vld [vmem:[#allocation6 + $0xac8] sm:$0xff]   ;;  %v5207_v21 = vcombine.high %v7348_v14, %v7348_v14 }
 0x1dd   :  { %6028 = vmatprep.subr.bf16.mxu0 %v6672_v23  ;;  %6050 = vmatprep.subr.bf16.mxu1 %v6676_v25  ;;  %v6715_v23 = vld [vmem:[#allocation6 + $0xa08] sm:$0xff]  }
 0x1de   :  { %v6717_v25 = vld [vmem:[#allocation6 + $0xa88] sm:$0xff]  }
 0x1df   :  { %4551 = vmatmul.mubr.bf16.vlgmr.msra.gmra.mrb[32].mxu0 %v5198_v30  ;;  %4591 = vmatmul.mubr.bf16.vlgmr.msra.gmra.mrb[32].mxu1 %v5200_v24  ;;  %v6721_v30 = vld [vmem:[#allocation6 + $0xa90] sm:$0xff]   ;;  %v6722_v24 = vld [vmem:[#allocation6 + $0xa58] sm:$0xff]  }
 0x1e0   :  { %6029 = vmatpush3.bf16.msra.mxu0 %v6675_v26  ;;  %6051 = vmatpush3.bf16.msra.mxu1 %v6677_v27  ;;  %v6718_v26 = vld [vmem:[#allocation6 + $0xa50] sm:$0xff]  }
 0x1e1   :  { %6030 = vmatprep.subr.bf16.mxu0 %v6678_v33  ;;  %6052 = vmatprep.subr.bf16.mxu1 %v6680_v2  ;;  %v6720_v27 = vld [vmem:[#allocation6 + $0xad0] sm:$0xff]   ;;  %v6723_v33 = vld [vmem:[#allocation6 + $0xa18] sm:$0xff]  }
 0x1e2   :  { %4630 = vmatprep.mubr.bf16.mxu0 %v5203_v36  ;;  %4670 = vmatprep.mubr.bf16.mxu1 %v5205_v38  ;;  %v6725_v2 = vld [vmem:[#allocation6 + $0xa98] sm:$0xff]   ;;  %v6728_v36 = vld [vmem:[#allocation6 + $0xae0] sm:$0xff]  }
 0x1e3   :  { %v6727_v38 = vld [vmem:[#allocation6 + $0xa20] sm:$0xff]  }
 0x1e4   :  { %6031 = vmatpush3.bf16.msra.mxu0 %v6679_v35  ;;  %6053 = vmatpush3.bf16.msra.mxu1 %v6681_v34  ;;  %v6726_v35 = vld [vmem:[#allocation6 + $0xa60] sm:$0xff]  }
 0x1e5   :  { %6032 = vmatprep.subr.bf16.mxu0 %v6682_v37  ;;  %6054 = vmatprep.subr.bf16.mxu1 %v6684_v40  ;;  %v6729_v34 = vld [vmem:[#allocation6 + $0xaa0] sm:$0xff]   ;;  %v6730_v37 = vld [vmem:[#allocation6 + $0xa68] sm:$0xff]  }
 0x1e6   :  { %v6732_v40 = vld [vmem:[#allocation6 + $0xae8] sm:$0xff]  }
 0x1e8   :  { %6033 = vmatpush3.bf16.msra.mxu0 %v6683_v39  ;;  %6055 = vmatpush3.bf16.msra.mxu1 %v6685_v41  ;;  %v6731_v39 = vld [vmem:[#allocation6 + $0xa28] sm:$0xff]  }
 0x1e9   :  { %6034 = vmatprep.subr.bf16.mxu0 %v6686_v29  ;;  %6056 = vmatprep.subr.bf16.mxu1 %v6688_v31  ;;  %v6733_v41 = vld [vmem:[#allocation6 + $0xaa8] sm:$0xff]   ;;  %v6734_v29 = vld [vmem:[#allocation6 + $0xa70] sm:$0xff]  }
 0x1ea   :  { %v6736_v31 = vld [vmem:[#allocation6 + $0xaf0] sm:$0xff]  }
 0x1ec   :  { %6035 = vmatpush3.bf16.msra.mxu0 %v6687_v42  ;;  %6057 = vmatpush3.bf16.msra.mxu1 %v6689_v43 }
 0x1ed   :  { %6036 = vmatprep.subr.bf16.mxu0 %v6690_v44  ;;  %6058 = vmatprep.subr.bf16.mxu1 %v6692_v45 }
 0x1f0   :  { %6037 = vmatpush3.bf16.msra.mxu0 %v6691_v46  ;;  %6059 = vmatpush3.bf16.msra.mxu1 %v6693_v47 }
 0x1f1   :  { %6038 = vmatprep.subr.bf16.mxu0 %v6694_v48  ;;  %6060 = vmatprep.subr.bf16.mxu1 %v6696_v50  ;;  %v6735_v50 = vld [vmem:[#allocation6 + $0xa30] sm:$0xff]  }
 0x1f2   :  { %v5736_v57 = vpop.f32.mrb[8].mxu0  ;;  %v5758_v58 = vpop.f32.mrb[8].mxu1 }
 0x1f3   :  { %v5737_v60 = vpop.f32.mrb[9].mxu0  ;;  %v5759_v4 = vpop.f32.mrb[9].mxu1 }
 0x1f4   :  { %v5738_v8 = vadd.f32 %v5737_v60, %v5736_v57  ;;  %v5739_v62 = vpop.f32.mrb[10].mxu0  ;;  %6039 = vmatpush3.bf16.msra.mxu0 %v6695_v52  ;;  %v5760_v63 = vadd.f32 %v5759_v4, %v5758_v58  ;;  %6061 = vmatpush3.bf16.msra.mxu1 %v6697_v53  ;;  %v5761_v3 = vpop.f32.mrb[10].mxu1  ;;  %v6737_v52 = vld [vmem:[#allocation6 + $0xab0] sm:$0xff]   ;;  %v6740_v57 = vld [vmem:[#allocation6 + $0xaf8] sm:$0xff]  }
 0x1f5   :  { %v5740_v6 = vpop.f32.mrb[11].mxu0  ;;  %6040 = vmatprep.subr.bf16.mxu0 %v6698_v54  ;;  %6062 = vmatprep.subr.bf16.mxu1 %v6700_v56  ;;  %v5762_v51 = vpop.f32.mrb[11].mxu1  ;;  %v6738_v56 = vld [vmem:[#allocation6 + $0xa78] sm:$0xff]   ;;  %v5208_v3 = vcombine.low %v7350_v15, %v7350_v15 }
 0x1f6   :  { %v4073_v55 = vadd.f32 %v5738_v8, %v7329_v22  ;;  %v5209_v22 = vcombine.high %v7350_v15, %v7350_v15  ;;  %v6739_v8 = vld [vmem:[#allocation6 + $0xa38] sm:$0xff]   ;;  %v7365_v6 = vld [vmem:[#allocation2 + $0xb0] sm:$0xff]  ;;  %v6755_v15 = vld [vmem:[#allocation6 + $0xb10] sm:$0xff]  }
 0x1f7   :  { %v6743_v62 = vld [vmem:[#allocation6 + $0xab8] sm:$0xff]   ;;  %v6749_v51 = vld [vmem:[#allocation6 + $0xb80] sm:$0xff]  }
 0x1f8   :  { %v7344_v59 = vadd.f32 %v5760_v63, %v4073_v55  ;;  %6041 = vmatpush3.bf16.msra.mxu0 %v6699_v0  ;;  %6063 = vmatpush3.bf16.msra.mxu1 %v6703_v1  ;;  %v6744_v63 = vld [vmem:[#allocation6 + $0xb40] sm:$0xff]   ;;  %v5206_v1 = vcombine.low %v7348_v14, %v7348_v14  ;;  %v6750_v55 = vld [vmem:[#allocation6 + $0xb48] sm:$0xff]   ;;  %v6756_v14 = vld [vmem:[#allocation6 + $0xbd0] sm:$0xff]  }
 0x1f9   :  { %6042 = vmatprep.subr.bf16.mxu0 %v6704_v7  ;;  %6064 = vmatprep.subr.bf16.mxu1 %v6706_v9  ;;  %v6748_v0 = vld [vmem:[#allocation6 + $0xbc0] sm:$0xff]   ;;  %v7367_v7 = vld [vmem:[#allocation2 + $0xb8] sm:$0xff] }
 0x1fa   :  { %v6747_v9 = vld [vmem:[#allocation6 + $0xb00] sm:$0xff]  }
 0x1fc   :  { %6043 = vmatpush3.bf16.msra.mxu0 %v6705_v61  ;;  %6065 = vmatpush3.bf16.msra.mxu1 %v6707_v11  ;;  %v5211_v61 = vcombine.high %v7365_v6, %v7365_v6  ;;  %v5213_v11 = vcombine.high %v7367_v7, %v7367_v7 }
 0x1fd   :  { %6072 = vmatprep.subr.bf16.mxu0 %v6708_v12  ;;  %6094 = vmatprep.subr.bf16.mxu1 %v6712_v5  ;;  %v6751_v12 = vld [vmem:[#allocation6 + $0xb08] sm:$0xff]  }
 0x1fe   :  { %v6753_v5 = vld [vmem:[#allocation6 + $0xb88] sm:$0xff]  }
 0x1ff   :  { %4631 = vmatmul.mubr.bf16.vlgmr.msra.gmra.mrb[36].mxu0 %v5202_v18  ;;  %4671 = vmatmul.mubr.bf16.vlgmr.msra.gmra.mrb[36].mxu1 %v5204_v13  ;;  %v6754_v13 = vld [vmem:[#allocation6 + $0xb50] sm:$0xff]   ;;  %v6760_v18 = vld [vmem:[#allocation6 + $0xbd8] sm:$0xff]  }
 0x200   :  { %6073 = vmatpush3.bf16.msra.mxu0 %v6711_v16  ;;  %6095 = vmatpush3.bf16.msra.mxu1 %v6713_v17  ;;  %v6757_v16 = vld [vmem:[#allocation6 + $0xb90] sm:$0xff]   ;;  %v6758_v17 = vld [vmem:[#allocation6 + $0xb58] sm:$0xff]  }
 0x201   :  { %6074 = vmatprep.subr.bf16.mxu0 %v6714_v19  ;;  %6096 = vmatprep.subr.bf16.mxu1 %v6716_v20  ;;  %v6759_v19 = vld [vmem:[#allocation6 + $0xb18] sm:$0xff]  }
 0x202   :  { %4710 = vmatprep.mubr.bf16.mxu0 %v5207_v21  ;;  %4750 = vmatprep.mubr.bf16.mxu1 %v5209_v22  ;;  %v6761_v20 = vld [vmem:[#allocation6 + $0xb98] sm:$0xff]   ;;  %v6762_v21 = vld [vmem:[#allocation6 + $0xb60] sm:$0xff]  }
 0x203   :  { %v6764_v22 = vld [vmem:[#allocation6 + $0xbe0] sm:$0xff]  }
 0x204   :  { %6075 = vmatpush3.bf16.msra.mxu0 %v6715_v23  ;;  %6097 = vmatpush3.bf16.msra.mxu1 %v6717_v25  ;;  %v6763_v23 = vld [vmem:[#allocation6 + $0xb20] sm:$0xff]  }
 0x205   :  { %6076 = vmatprep.subr.bf16.mxu0 %v6718_v26  ;;  %6098 = vmatprep.subr.bf16.mxu1 %v6720_v27  ;;  %v6765_v25 = vld [vmem:[#allocation6 + $0xba0] sm:$0xff]   ;;  %v6766_v26 = vld [vmem:[#allocation6 + $0xb68] sm:$0xff]  }
 0x206   :  { %v6768_v27 = vld [vmem:[#allocation6 + $0xbe8] sm:$0xff]  }
 0x208   :  { %6077 = vmatpush3.bf16.msra.mxu0 %v6719_v28  ;;  %6099 = vmatpush3.bf16.msra.mxu1 %v6721_v30  ;;  %v6767_v28 = vld [vmem:[#allocation6 + $0xb28] sm:$0xff]  }
 0x209   :  { %6078 = vmatprep.subr.bf16.mxu0 %v6722_v24  ;;  %6100 = vmatprep.subr.bf16.mxu1 %v6724_v32  ;;  %v6769_v30 = vld [vmem:[#allocation6 + $0xba8] sm:$0xff]   ;;  %v6770_v24 = vld [vmem:[#allocation6 + $0xb70] sm:$0xff]  }
 0x20a   :  { %v6772_v32 = vld [vmem:[#allocation6 + $0xbf0] sm:$0xff]  }
 0x20c   :  { %6079 = vmatpush3.bf16.msra.mxu0 %v6723_v33  ;;  %6101 = vmatpush3.bf16.msra.mxu1 %v6725_v2 }
 0x20d   :  { %6080 = vmatprep.subr.bf16.mxu0 %v6726_v35  ;;  %6102 = vmatprep.subr.bf16.mxu1 %v6728_v36 }
 0x210   :  { %6081 = vmatpush3.bf16.msra.mxu0 %v6727_v38  ;;  %6103 = vmatpush3.bf16.msra.mxu1 %v6729_v34 }
 0x211   :  { %6082 = vmatprep.subr.bf16.mxu0 %v6730_v37  ;;  %6104 = vmatprep.subr.bf16.mxu1 %v6732_v40  ;;  %v6771_v40 = vld [vmem:[#allocation6 + $0xb30] sm:$0xff]  }
 0x212   :  { %v5780_v42 = vpop.f32.mrb[12].mxu0  ;;  %v5802_v43 = vpop.f32.mrb[12].mxu1 }
 0x213   :  { %v5781_v44 = vpop.f32.mrb[13].mxu0  ;;  %v5803_v45 = vpop.f32.mrb[13].mxu1 }
 0x214   :  { %v5782_v46 = vadd.f32 %v5781_v44, %v5780_v42  ;;  %v5783_v47 = vpop.f32.mrb[14].mxu0  ;;  %6083 = vmatpush3.bf16.msra.mxu0 %v6731_v39  ;;  %v5804_v48 = vadd.f32 %v5803_v45, %v5802_v43  ;;  %6105 = vmatpush3.bf16.msra.mxu1 %v6733_v41  ;;  %v5805_v53 = vpop.f32.mrb[14].mxu1  ;;  %v6773_v39 = vld [vmem:[#allocation6 + $0xbb0] sm:$0xff]   ;;  %v6776_v42 = vld [vmem:[#allocation6 + $0xbf8] sm:$0xff]  }
 0x215   :  { %v5784_v54 = vpop.f32.mrb[15].mxu0  ;;  %6084 = vmatprep.subr.bf16.mxu0 %v6734_v29  ;;  %6106 = vmatprep.subr.bf16.mxu1 %v6736_v31  ;;  %v5806_v58 = vpop.f32.mrb[15].mxu1  ;;  %v6774_v31 = vld [vmem:[#allocation6 + $0xb78] sm:$0xff]   ;;  %v5212_v53 = vcombine.low %v7367_v7, %v7367_v7 }
 0x216   :  { %v4153_v60 = vadd.f32 %v5782_v46, %v7344_v59  ;;  %v6752_v59 = vld [vmem:[#allocation6 + $0xbc8] sm:$0xff]   ;;  %v6775_v46 = vld [vmem:[#allocation6 + $0xb38] sm:$0xff]   ;;  %v6783_v54 = vld [vmem:[#allocation6 + $0xc00] sm:$0xff]  }
 0x217   :  { %v6779_v47 = vld [vmem:[#allocation6 + $0xbb8] sm:$0xff]   ;;  %v6785_v58 = vld [vmem:[#allocation6 + $0xc08] sm:$0xff]  }
 0x218   :  { %v7359_v4 = vadd.f32 %v5804_v48, %v4153_v60  ;;  %6085 = vmatpush3.bf16.msra.mxu0 %v6735_v50  ;;  %6107 = vmatpush3.bf16.msra.mxu1 %v6737_v52  ;;  %v6780_v48 = vld [vmem:[#allocation6 + $0xc40] sm:$0xff]   ;;  %v498_v50 = vld [vmem:[#allocation2 + $0xc0] sm:$0xff]  ;;  %v5210_v52 = vcombine.low %v7365_v6, %v7365_v6 }
 0x219   :  { %6086 = vmatprep.subr.bf16.mxu0 %v6738_v56  ;;  %6108 = vmatprep.subr.bf16.mxu1 %v6740_v57  ;;  %v5215_v56 = vcombine.high %v498_v50, %v498_v50  ;;  %v6784_v57 = vld [vmem:[#allocation6 + $0xc48] sm:$0xff]   ;;  %v6786_v60 = vld [vmem:[#allocation6 + $0xc50] sm:$0xff]  }
 0x21a   :  { %v6794_v6 = vld [vmem:[#allocation6 + $0xc70] sm:$0xff]  }
 0x21c   :  { %6087 = vmatpush3.bf16.msra.mxu0 %v6739_v8  ;;  %6109 = vmatpush3.bf16.msra.mxu1 %v6743_v62  ;;  %v6788_v8 = vld [vmem:[#allocation6 + $0xc58] sm:$0xff]  }
 0x21d   :  { %6116 = vmatprep.subr.bf16.mxu0 %v6744_v63  ;;  %6138 = vmatprep.subr.bf16.mxu1 %v6748_v0  ;;  %v6789_v62 = vld [vmem:[#allocation6 + $0xc18] sm:$0xff]   ;;  %v6790_v63 = vld [vmem:[#allocation6 + $0xc60] sm:$0xff]  }
 0x21e   :  { %v6791_v0 = vld [vmem:[#allocation6 + $0xc20] sm:$0xff]  }
 0x21f   :  { %4711 = vmatmul.mubr.bf16.vlgmr.msra.gmra.mrb[40].mxu0 %v5206_v1  ;;  %4751 = vmatmul.mubr.bf16.vlgmr.msra.gmra.mrb[40].mxu1 %v5208_v3  ;;  %v6792_v1 = vld [vmem:[#allocation6 + $0xc68] sm:$0xff]  }
 0x220   :  { %6117 = vmatpush3.bf16.msra.mxu0 %v6747_v9  ;;  %6139 = vmatpush3.bf16.msra.mxu1 %v6749_v51  ;;  %v6793_v3 = vld [vmem:[#allocation6 + $0xc28] sm:$0xff]  }
 0x221   :  { %6118 = vmatprep.subr.bf16.mxu0 %v6750_v55  ;;  %6140 = vmatprep.subr.bf16.mxu1 %v6752_v59 }
 0x222   :  { %4790 = vmatprep.mubr.bf16.mxu0 %v5211_v61  ;;  %4830 = vmatprep.mubr.bf16.mxu1 %v5213_v11 }
 0x224   :  { %6119 = vmatpush3.bf16.msra.mxu0 %v6751_v12  ;;  %6141 = vmatpush3.bf16.msra.mxu1 %v6753_v5  ;;  %v6795_v12 = vld [vmem:[#allocation6 + $0xc30] sm:$0xff]  }
 0x225   :  { %6120 = vmatprep.subr.bf16.mxu0 %v6754_v13  ;;  %6142 = vmatprep.subr.bf16.mxu1 %v6756_v14  ;;  %v6798_v14 = vld [vmem:[#allocation6 + $0xc78] sm:$0xff]  }
 0x228   :  { %6121 = vmatpush3.bf16.msra.mxu0 %v6755_v15  ;;  %6143 = vmatpush3.bf16.msra.mxu1 %v6757_v16 }
 0x229   :  { %6122 = vmatprep.subr.bf16.mxu0 %v6758_v17  ;;  %6144 = vmatprep.subr.bf16.mxu1 %v6760_v18  ;;  %v6799_v18 = vld [vmem:[#allocation6 + $0xc38] sm:$0xff]  }
 0x22c   :  { %6123 = vmatpush3.bf16.msra.mxu0 %v6759_v19  ;;  %6145 = vmatpush3.bf16.msra.mxu1 %v6761_v20  ;;  %v5214_v19 = vcombine.low %v498_v50, %v498_v50 }
 0x22d   :  { %6124 = vmatprep.subr.bf16.mxu0 %v6762_v21  ;;  %6146 = vmatprep.subr.bf16.mxu1 %v6764_v22 }
 0x230   :  { %6125 = vmatpush3.bf16.msra.mxu0 %v6763_v23  ;;  %6147 = vmatpush3.bf16.msra.mxu1 %v6765_v25 }
 0x231   :  { %6126 = vmatprep.subr.bf16.mxu0 %v6766_v26  ;;  %6148 = vmatprep.subr.bf16.mxu1 %v6768_v27 }
 0x232   :  { %v5824_v33 = vpop.f32.mrb[16].mxu0  ;;  %v5846_v2 = vpop.f32.mrb[16].mxu1 }
 0x233   :  { %v5825_v35 = vpop.f32.mrb[17].mxu0  ;;  %v5847_v36 = vpop.f32.mrb[17].mxu1 }
 0x234   :  { %v5826_v38 = vadd.f32 %v5825_v35, %v5824_v33  ;;  %v5827_v34 = vpop.f32.mrb[18].mxu0  ;;  %6127 = vmatpush3.bf16.msra.mxu0 %v6767_v28  ;;  %v5848_v37 = vadd.f32 %v5847_v36, %v5846_v2  ;;  %6149 = vmatpush3.bf16.msra.mxu1 %v6769_v30  ;;  %v5849_v41 = vpop.f32.mrb[18].mxu1 }
 0x235   :  { %v5828_v29 = vpop.f32.mrb[19].mxu0  ;;  %6128 = vmatprep.subr.bf16.mxu0 %v6770_v24  ;;  %6150 = vmatprep.subr.bf16.mxu1 %v6772_v32  ;;  %v5850_v43 = vpop.f32.mrb[19].mxu1 }
 0x236   :  { %v4233_v44 = vadd.f32 %v5826_v38, %v7359_v4  ;;  %v6787_v4 = vld [vmem:[#allocation6 + $0xc10] sm:$0xff]   ;;  %v6800_v43 = vld [vmem:[#allocation8] sm:$0xff]  }
 0x238   :  { %v4273_v45 = vadd.f32 %v5848_v37, %v4233_v44  ;;  %6129 = vmatpush3.bf16.msra.mxu0 %v6771_v40  ;;  %6151 = vmatpush3.bf16.msra.mxu1 %v6773_v39  ;;  %v6801_v44 = vld [vmem:[#allocation8 + $0x8] sm:$0xff]  }
 0x239   :  { %6130 = vmatprep.subr.bf16.mxu0 %v6774_v31  ;;  %6152 = vmatprep.subr.bf16.mxu1 %v6776_v42 }
 0x23c   :  { %6131 = vmatpush3.bf16.msra.mxu0 %v6775_v46  ;;  %6153 = vmatpush3.bf16.msra.mxu1 %v6779_v47  ;;  %v6803_v46 = vld [vmem:[#allocation8 + $0x18] sm:$0xff]   ;;  %v6804_v47 = vld [vmem:[#allocation8 + $0x20] sm:$0xff]  }
 0x23d   :  { %6160 = vmatprep.subr.bf16.mxu0 %v6780_v48  ;;  %6200 = vmatprep.subr.bf16.mxu1 %v6977_v10  ;;  %v6805_v48 = vld [vmem:[#allocation8 + $0x28] sm:$0xff]  }
 0x23f   :  { %4791 = vmatmul.mubr.bf16.vlgmr.msra.gmra.mrb[44].mxu0 %v5210_v52  ;;  %4831 = vmatmul.mubr.bf16.vlgmr.msra.gmra.mrb[44].mxu1 %v5212_v53 }
 0x240   :  { %6161 = vmatpush3.bf16.msra.mxu0 %v6783_v54  ;;  %4870 = vmatprep.mubr.bf16.mxu0 %v5215_v56  ;;  %v6806_v56 = vld [vmem:[#allocation8 + $0x30] sm:$0xff]  }
 0x241   :  { %6162 = vmatprep.subr.bf16.mxu0 %v6784_v57  ;;  %6201 = vmatpush3.bf16.msra.mxu1 %v6800_v43 }
 0x242   :  { %6202 = vmatprep.subr.bf16.mxu1 %v6977_v10  ;;  %6216 = vmatprep.mubr.msk.bf16.mxu1 %vm6994_vm2, %v6977_v10 }
 0x244   :  { %6163 = vmatpush3.bf16.msra.mxu0 %v6785_v58 }
 0x245   :  { %6164 = vmatprep.subr.bf16.mxu0 %v6786_v60  ;;  %6203 = vmatpush3.bf16.msra.mxu1 %v6801_v44 }
 0x246   :  { %6204 = vmatprep.subr.bf16.mxu1 %v6977_v10 }
 0x248   :  { %6165 = vmatpush3.bf16.msra.mxu0 %v6787_v4 }
 0x249   :  { %6166 = vmatprep.subr.bf16.mxu0 %v6788_v8 }
 0x24c   :  { %6167 = vmatpush3.bf16.msra.mxu0 %v6789_v62 }
 0x24d   :  { %6168 = vmatprep.subr.bf16.mxu0 %v6790_v63 }
 0x250   :  { %6169 = vmatpush3.bf16.msra.mxu0 %v6791_v0  ;;  %v6807_v0 = vld [vmem:[#allocation8 + $0x38] sm:$0xff]  }
 0x251   :  { %6170 = vmatprep.subr.bf16.mxu0 %v6792_v1 }
 0x252   :  { %v5868_v7 = vpop.f32.mrb[20].mxu0  ;;  %v5890_v9 = vpop.f32.mrb[20].mxu1 }
 0x253   :  { %v5869_v51 = vpop.f32.mrb[21].mxu0  ;;  %v5891_v55 = vpop.f32.mrb[21].mxu1 }
 0x254   :  { %v5870_v59 = vadd.f32 %v5869_v51, %v5868_v7  ;;  %v5871_v61 = vpop.f32.mrb[22].mxu0  ;;  %6171 = vmatpush3.bf16.msra.mxu0 %v6793_v3  ;;  %v5892_v11 = vadd.f32 %v5891_v55, %v5890_v9  ;;  %v5893_v5 = vpop.f32.mrb[22].mxu1  ;;  %v6808_v3 = vld [vmem:[#allocation8 + $0x40] sm:$0xff]   ;;  %v6810_v7 = vld [vmem:[#allocation8 + $0x50] sm:$0xff]   ;;  %v6811_v9 = vld [vmem:[#allocation8 + $0x58] sm:$0xff]  }
 0x255   :  { %v5872_v13 = vpop.f32.mrb[23].mxu0  ;;  %6172 = vmatprep.subr.bf16.mxu0 %v6794_v6  ;;  %v5894_v15 = vpop.f32.mrb[23].mxu1  ;;  %v6809_v6 = vld [vmem:[#allocation8 + $0x48] sm:$0xff]   ;;  %v6812_v51 = vld [vmem:[#allocation8 + $0x60] sm:$0xff]  }
 0x256   :  { %v4313_v16 = vadd.f32 %v5870_v59, %v4273_v45  ;;  %v6802_v45 = vld [vmem:[#allocation8 + $0x10] sm:$0xff]   ;;  %v6813_v55 = vld [vmem:[#allocation8 + $0x68] sm:$0xff]  }
 0x257   :  { %6205 = vmatpush3.bf16.msra.mxu1 %v6802_v45 }
 0x258   :  { %v4353_v17 = vadd.f32 %v5892_v11, %v4313_v16  ;;  %6173 = vmatpush3.bf16.msra.mxu0 %v6795_v12  ;;  %6206 = vmatprep.subr.bf16.mxu1 %v6977_v10 }
 0x259   :  { %6174 = vmatprep.subr.bf16.mxu0 %v6798_v14 }
 0x25b   :  { %6207 = vmatpush3.bf16.msra.mxu1 %v6803_v46 }
 0x25c   :  { %6175 = vmatpush3.bf16.msra.mxu0 %v6799_v18  ;;  %6208 = vmatprep.subr.bf16.mxu1 %v6977_v10 }
 0x25d   :  { %6220 = vmatprep.subr.bf16.mxu0 %v6977_v10 }
 0x25f   :  { %4871 = vmatmul.mubr.bf16.vlgmr.msra.gmra.mrb[48].mxu0 %v5214_v19  ;;  %6209 = vmatpush3.bf16.msra.mxu1 %v6804_v47 }
 0x260   :  { %6210 = vmatprep.subr.bf16.mxu1 %v6977_v10  ;;  %6236 = vmatprep.mubr.msk.bf16.mxu0 %vm6994_vm2, %v6977_v10 }
 0x261   :  { %6221 = vmatpush3.bf16.msra.mxu0 %v6808_v3  ;;  %v5008_v3 = vsub.s32 2, %v7299_v49 }
 0x262   :  { %6222 = vmatprep.subr.bf16.mxu0 %v6977_v10 }
 0x263   :  { %6211 = vmatpush3.bf16.msra.mxu1 %v6805_v48 }
 0x264   :  { %6212 = vmatprep.subr.bf16.mxu1 %v6977_v10 }
 0x265   :  { %6223 = vmatpush3.bf16.msra.mxu0 %v6809_v6 }
 0x266   :  { %6224 = vmatprep.subr.bf16.mxu0 %v6977_v10 }
 0x267   :  { %6213 = vmatpush3.bf16.msra.mxu1 %v6806_v56  ;;  %v4898_v56 = vsub.s32 1, %v7299_v49 }
 0x268   :  { %6214 = vmatprep.subr.bf16.mxu1 %v6977_v10 }
 0x269   :  { %6225 = vmatpush3.bf16.msra.mxu0 %v6810_v7 }
 0x26a   :  { %6226 = vmatprep.subr.bf16.mxu0 %v6977_v10 }
 0x26b   :  { %6215 = vmatpush3.bf16.msra.mxu1 %v6807_v0 }
 0x26d   :  { %6227 = vmatpush3.bf16.msra.mxu0 %v6811_v9 }
 0x26e   :  { %6228 = vmatprep.subr.bf16.mxu0 %v6977_v10 }
 0x271   :  { %6229 = vmatpush3.bf16.msra.mxu0 %v6812_v51 }
 0x272   :  { %v5912_v20 = vpop.f32.mrb[24].mxu0  ;;  %v5934_v21 = vpop.f32.mrb[24].mxu1  ;;  %6230 = vmatprep.subr.bf16.mxu0 %v6977_v10 }
 0x273   :  { %v5913_v22 = vpop.f32.mrb[25].mxu0  ;;  %v5935_v23 = vpop.f32.mrb[25].mxu1 }
 0x274   :  { %v5914_v25 = vadd.f32 %v5913_v22, %v5912_v20  ;;  %v5915_v26 = vpop.f32.mrb[26].mxu0  ;;  %v5936_v27 = vadd.f32 %v5935_v23, %v5934_v21  ;;  %v5937_v28 = vpop.f32.mrb[26].mxu1 }
 0x275   :  { %v5916_v30 = vpop.f32.mrb[27].mxu0  ;;  %v5938_v24 = vpop.f32.mrb[27].mxu1  ;;  %6231 = vmatpush3.bf16.msra.mxu0 %v6813_v55 }
 0x276   :  { %v4393_v32 = vadd.f32 %v5914_v25, %v4353_v17  ;;  %6232 = vmatprep.subr.bf16.mxu0 %v6977_v10 }
 0x278   :  { %v4433_v33 = vadd.f32 %v5936_v27, %v4393_v32 }
 0x292   :  { %v5956_v2 = vpop.f32.mrb[28].mxu0  ;;  %v5978_v35 = vpop.f32.mrb[28].mxu1 }
 0x293   :  { %v5957_v36 = vpop.f32.mrb[29].mxu0  ;;  %v5979_v38 = vpop.f32.mrb[29].mxu1 }
 0x294   :  { %v5958_v34 = vadd.f32 %v5957_v36, %v5956_v2  ;;  %v5959_v37 = vpop.f32.mrb[30].mxu0  ;;  %v5980_v40 = vadd.f32 %v5979_v38, %v5978_v35  ;;  %v5981_v39 = vpop.f32.mrb[30].mxu1 }
 0x295   :  { %v5960_v41 = vpop.f32.mrb[31].mxu0  ;;  %v5982_v29 = vpop.f32.mrb[31].mxu1 }
 0x296   :  { %v4473_v31 = vadd.f32 %v5958_v34, %v4433_v33 }
 0x298   :  { %v4513_v42 = vadd.f32 %v5980_v40, %v4473_v31 }
 0x2b2   :  { %v6000_v50 = vpop.f32.mrb[32].mxu0  ;;  %v6022_v52 = vpop.f32.mrb[32].mxu1 }
 0x2b3   :  { %v6001_v53 = vpop.f32.mrb[33].mxu0  ;;  %v6023_v54 = vpop.f32.mrb[33].mxu1 }
 0x2b4   :  { %v6002_v57 = vadd.f32 %v6001_v53, %v6000_v50  ;;  %v6003_v58 = vpop.f32.mrb[34].mxu0  ;;  %v6024_v60 = vadd.f32 %v6023_v54, %v6022_v52  ;;  %v6025_v4 = vpop.f32.mrb[34].mxu1  ;;  %v6814_v53 = vld [vmem:[#allocation8 + $0x70] sm:$0xff]   ;;  %v6815_v54 = vld [vmem:[#allocation8 + $0x78] sm:$0xff]  }
 0x2b5   :  { %v6004_v8 = vpop.f32.mrb[35].mxu0  ;;  %v6026_v62 = vpop.f32.mrb[35].mxu1  ;;  %6233 = vmatpush3.bf16.msra.mxu0 %v6814_v53 }
 0x2b6   :  { %v4553_v63 = vadd.f32 %v6002_v57, %v4513_v42  ;;  %6234 = vmatprep.subr.bf16.mxu0 %v6977_v10  ;;  %v6818_v57 = vld [vmem:[#allocation9] sm:$0x7] }
 0x2b7   :  { %v4899_v58 = vrot.slane %v6818_v57, %v4898_v56  ;;  %v5009_v6 = vrot.slane %v6818_v57, %v5008_v3 }
 0x2b8   :  { %v4593_v1 = vadd.f32 %v6024_v60, %v4553_v63 }
 0x2b9   :  { %6235 = vmatpush3.bf16.msra.mxu0 %v6815_v54 }
 0x2d2   :  { %v6044_v59 = vpop.f32.mrb[36].mxu0  ;;  %v6066_v61 = vpop.f32.mrb[36].mxu1 }
 0x2d3   :  { %v6045_v11 = vpop.f32.mrb[37].mxu0  ;;  %v6067_v12 = vpop.f32.mrb[37].mxu1 }
 0x2d4   :  { %v6046_v5 = vadd.f32 %v6045_v11, %v6044_v59  ;;  %v6047_v13 = vpop.f32.mrb[38].mxu0  ;;  %v6068_v14 = vadd.f32 %v6067_v12, %v6066_v61  ;;  %v6069_v15 = vpop.f32.mrb[38].mxu1 }
 0x2d5   :  { %v6048_v16 = vpop.f32.mrb[39].mxu0  ;;  %v6070_v17 = vpop.f32.mrb[39].mxu1 }
 0x2d6   :  { %v4633_v18 = vadd.f32 %v6046_v5, %v4593_v1 }
 0x2d8   :  { %v4673_v19 = vadd.f32 %v6068_v14, %v4633_v18 }
 0x2f2   :  { %v6088_v20 = vpop.f32.mrb[40].mxu0  ;;  %v6110_v21 = vpop.f32.mrb[40].mxu1 }
 0x2f3   :  { %v6089_v22 = vpop.f32.mrb[41].mxu0  ;;  %v6111_v23 = vpop.f32.mrb[41].mxu1 }
 0x2f4   :  { %v6090_v25 = vadd.f32 %v6089_v22, %v6088_v20  ;;  %v6091_v26 = vpop.f32.mrb[42].mxu0  ;;  %v6112_v27 = vadd.f32 %v6111_v23, %v6110_v21  ;;  %v6113_v28 = vpop.f32.mrb[42].mxu1 }
 0x2f5   :  { %v6092_v30 = vpop.f32.mrb[43].mxu0  ;;  %v6114_v24 = vpop.f32.mrb[43].mxu1 }
 0x2f6   :  { %v4713_v32 = vadd.f32 %v6090_v25, %v4673_v19 }
 0x2f8   :  { %v4753_v33 = vadd.f32 %v6112_v27, %v4713_v32 }
 0x312   :  { %v6132_v2 = vpop.f32.mrb[44].mxu0  ;;  %v6154_v35 = vpop.f32.mrb[44].mxu1 }
 0x313   :  { %v6133_v36 = vpop.f32.mrb[45].mxu0  ;;  %v6155_v38 = vpop.f32.mrb[45].mxu1 }
 0x314   :  { %v6134_v34 = vadd.f32 %v6133_v36, %v6132_v2  ;;  %v6135_v37 = vpop.f32.mrb[46].mxu0  ;;  %v6156_v40 = vadd.f32 %v6155_v38, %v6154_v35  ;;  %v6157_v39 = vpop.f32.mrb[46].mxu1 }
 0x315   :  { %v6136_v41 = vpop.f32.mrb[47].mxu0  ;;  %v6158_v29 = vpop.f32.mrb[47].mxu1 }
 0x316   :  { %v4793_v31 = vadd.f32 %v6134_v34, %v4753_v33 }
 0x318   :  { %v4833_v42 = vadd.f32 %v6156_v40, %v4793_v31 }
 0x332   :  { %v6176_v43 = vpop.f32.mrb[48].mxu0 }
 0x333   :  { %v6177_v44 = vpop.f32.mrb[49].mxu0 }
 0x334   :  { %v6178_v45 = vadd.f32 %v6177_v44, %v6176_v43  ;;  %v6179_v46 = vpop.f32.mrb[50].mxu0 }
 0x335   :  { %v6180_v47 = vpop.f32.mrb[51].mxu0 }
 0x336   :  { %v4873_v48 = vadd.f32 %v6178_v45, %v4833_v42 }
 0x338   :  { %v4878_v50 = vmax.f32 %v4873_v48, 0.0 }
 0x33a   :  { %v4895_v52 = vpack.c.bf16 %v4878_v50, %v4878_v50 }
 0x33c   :  { %6217 = vmatmul.mubr.bf16.vlgmr.msra.gmra.mrb[48].mxu1 %v4895_v52 }
 0x40f   :  { %v4982_v60 = vpop.f32.mrb[48].mxu1 }
 0x410   :  { %v4983_v4 = vadd.f32 %v4982_v60, %v4899_v58  ;;  %v6218_v8 = vpop.f32.mrb[49].mxu1 }
 0x411   :  { %v4985_v62 = vpop.f32.mrb[50].mxu1 }
 0x412   :  { %v4988_v63 = vmax.f32 %v4983_v4, 0.0  ;;  %v6219_v0 = vpop.f32.mrb[51].mxu1 }
 0x414   :  { %v5005_v1 = vpack.c.bf16 %v4988_v63, %v4988_v63 }
 0x416   :  { %6237 = vmatmul.mubr.bf16.vlgmr.msra.gmra.mrb[52].mxu0 %v5005_v1 }
 0x4e9   :  { %v5092_v10 = vpop.f32.mrb[52].mxu0 }
 0x4ea   :  { %v5093_v7 = vadd.f32 %v5092_v10, %v5009_v6  ;;  %v6238_v9 = vpop.f32.mrb[53].mxu0 }
 0x4eb   :  { %v5095_v51 = vpop.f32.mrb[54].mxu0 }
 0x4ec   :  { %5098 = vst [vmem:[#allocation11] sm:$0xff] %v5093_v7  ;;  %v6239_v55 = vpop.f32.mrb[55].mxu0 }
 0x4ed   :  { %6918 = shalt.err (!%p6915_p8)
}
 0x4ee   :  { %s6919_s1 = scalar_lea.hbm %s7414_s4, 128 }
 0x4ef   :  { %p6920_p9 = scmp.ne.s32.totalorder %s7414_s4, %s6919_s1  ;;  %p6923_p10 = scmp.lt.u32.totalorder %s6919_s1, %s7414_s4 }
 0x4f1   :  { %p6925_p11 = pnand %p6923_p10, %p6920_p9 }
 0x4f3   :  { %6928 = shalt.err (!%p6925_p11)
}
 0x4f4   :  { %5108 = dma.vmem_to_hbm [thread:$0]  %s5106_s26, 128, %s7414_s4, [#allocation5]  }
 0x4f5   :  { %6935 = dma.done.wait [#allocation5], 128  }
 0x4f6   :  { %6936 = vsyncadd [#allocation5], 4294967168 }
 0x4f7   :  { %5112 = vsyncpa [#allocation4], 1 }
 0x4f8   :  { %5113 = vsyncpa [#allocation7], 1 }
 0x4f9   :  { %5114 = vsyncpa [#allocation10], 1 }
 0x4fa   :  { %5115 = vsyncpa [#allocation5], 1 }

// kernel: tpu_custom_call.1
= control target key start
LH: loop header
LB: loop body
LE: loop exit
PB: predicated region body
PF: predicated region fallthrough
CT: control target
= control target key end

     0   :  { %9 = vsyncpa [#allocation4], 0  ;;  %s7410_s0 = inlined_call_operand.hbm [shape: s32[8,50], index: 0, kind: input, shape index: {}]   ;;  %s7411_s1 = inlined_call_operand.hbm [shape: bf16[6400,128], index: 1, kind: input, shape index: {}]   ;;  %s7412_s2 = inlined_call_operand.hbm [shape: bf16[256,128], index: 2, kind: input, shape index: {}]   ;;  %s7413_s3 = inlined_call_operand.hbm [shape: f32[3,128], index: 3, kind: input, shape index: {}]   ;;  %s7414_s4 = inlined_call_operand.hbm [shape: f32[8,128], index: 4, kind: output, shape index: {}]  }
   0x1   :  { %10 = vsyncpa [#allocation7], 0 }
   0x2   :  { %11 = vsyncpa [#allocation10], 0 }
   0x3   :  { %12 = vsyncpa [#allocation5], 0  ;;  %s6937_s15 = smov [#allocation6]   ;;  %s6819_s19 = scalar_lea.hbm %s7411_s1, 51200 }
   0x4   :  { %s28_s16 = sshll.u32 %s6937_s15, 4  ;;  %p6820_p0 = scmp.ne.s32.totalorder %s7411_s1, %s6819_s19  ;;  %s29_s16 = int_to_ptr.vmem [resolvable:$true] %s28_s16 }
   0x5   :  { %p6823_p1 = scmp.lt.u32.totalorder %s6819_s19, %s7411_s1 }
   0x7   :  { %p6825_p2 = pnand %p6823_p1, %p6820_p0 }
   0x9   :  { %6828 = shalt.err (!%p6825_p2)
}
   0xa   :  { %s6829_s24 = scalar_lea.vmem %s29_s16, 51200  ;;  %p6834_p4 = scmp.lt.s32.totalorder %s29_s16, %s29_s16 }
   0xb   :  { %p6830_p3 = scmp.ne.s32.totalorder %s29_s16, %s6829_s24  ;;  %p6835_p5 = scmp.lt.s32.totalorder %s6829_s24, %s6829_s24 }
   0xd   :  { %p6836_p6 = por %p6835_p5, %p6834_p4 }
   0xf   :  { %p6837_p7 = pnand %p6836_p6, %p6830_p3 }
  0x11   :  { %6840 = shalt.err (!%p6837_p7)
}
  0x12   :  { %s6938_s25 = smov 64   ;;  %s6939_s26 = smov 4  }
  0x13   :  { %34 = dma.hbm_to_vmem [thread:$0]  %s7411_s1, 51200, %s29_s16, [#allocation7], %s6938_s25, %s6938_s25, %s6939_s26  }
  0x14   :  { %s6940_s29 = smov [#allocation3]   ;;  %s6941_s5 = smov [#allocation8]  }
  0x15   :  { %s19_s30 = sshll.u32 %s6940_s29, 4  ;;  %s40_s6 = sshll.u32 %s6941_s5, 4  ;;  %s20_s30 = int_to_ptr.vmem [resolvable:$true] %s19_s30  ;;  %s41_s6 = int_to_ptr.vmem [resolvable:$true] %s40_s6 }
  0x16   :  { %s6841_s9 = scalar_lea.hbm %s7410_s0, 128 }
  0x17   :  { %p6842_p8 = scmp.ne.s32.totalorder %s7410_s0, %s6841_s9  ;;  %p6845_p9 = scmp.lt.u32.totalorder %s6841_s9, %s7410_s0 }
  0x19   :  { %p6847_p10 = pnand %p6845_p9, %p6842_p8 }
  0x1b   :  { %6850 = shalt.err (!%p6847_p10)
}
  0x1c   :  { %s6851_s1 = scalar_lea.vmem %s20_s30, 128  ;;  %p6856_p12 = scmp.lt.s32.totalorder %s20_s30, %s20_s30 }
  0x1d   :  { %p6852_p11 = scmp.ne.s32.totalorder %s20_s30, %s6851_s1  ;;  %p6857_p13 = scmp.lt.s32.totalorder %s6851_s1, %s6851_s1 }
  0x1f   :  { %p6858_p0 = por %p6857_p13, %p6856_p12 }
  0x21   :  { %p6859_p1 = pnand %p6858_p0, %p6852_p11 }
  0x23   :  { %6862 = shalt.err (!%p6859_p1)
}
  0x24   :  { %22 = dma.hbm_to_vmem [thread:$0]  %s7410_s0, 128, %s20_s30, [#allocation4]  }
  0x25   :  { %s6863_s18 = scalar_lea.hbm %s7412_s2, 2048 }
  0x26   :  { %p6864_p2 = scmp.ne.s32.totalorder %s7412_s2, %s6863_s18  ;;  %p6867_p3 = scmp.lt.u32.totalorder %s6863_s18, %s7412_s2 }
  0x28   :  { %p6869_p4 = pnand %p6867_p3, %p6864_p2 }
  0x2a   :  { %6872 = shalt.err (!%p6869_p4)
}
  0x2b   :  { %s6873_s23 = scalar_lea.vmem %s41_s6, 2048  ;;  %p6878_p6 = scmp.lt.s32.totalorder %s41_s6, %s41_s6 }
  0x2c   :  { %p6874_p5 = scmp.ne.s32.totalorder %s41_s6, %s6873_s23  ;;  %p6879_p7 = scmp.lt.s32.totalorder %s6873_s23, %s6873_s23 }
  0x2e   :  { %p6880_p8 = por %p6879_p7, %p6878_p6 }
  0x30   :  { %p6881_p9 = pnand %p6880_p8, %p6874_p5 }
  0x32   :  { %6884 = shalt.err (!%p6881_p9)
}
  0x33   :  { %46 = dma.hbm_to_vmem [thread:$0]  %s7412_s2, 2048, %s41_s6, [#allocation7], %s6938_s25, %s6938_s25, %s6939_s26  }
  0x34   :  { %s6942_s27 = smov [#allocation9]   ;;  %s6885_s5 = scalar_lea.hbm %s7413_s3, 64 }
  0x35   :  { %s53_s28 = sshll.u32 %s6942_s27, 4  ;;  %p6886_p10 = scmp.ne.s32.totalorder %s7413_s3, %s6885_s5  ;;  %s54_s28 = int_to_ptr.vmem [resolvable:$true] %s53_s28 }
  0x36   :  { %p6889_p11 = scmp.lt.u32.totalorder %s6885_s5, %s7413_s3 }
  0x38   :  { %p6891_p12 = pnand %p6889_p11, %p6886_p10 }
  0x3a   :  { %6894 = shalt.err (!%p6891_p12)
}
  0x3b   :  { %s6895_s11 = scalar_lea.vmem %s54_s28, 64  ;;  %p6900_p0 = scmp.lt.s32.totalorder %s54_s28, %s54_s28 }
  0x3c   :  { %p6896_p13 = scmp.ne.s32.totalorder %s54_s28, %s6895_s11  ;;  %p6901_p1 = scmp.lt.s32.totalorder %s6895_s11, %s6895_s11 }
  0x3e   :  { %p6902_p2 = por %p6901_p1, %p6900_p0 }
  0x40   :  { %p6903_p3 = pnand %p6902_p2, %p6896_p13 }
  0x42   :  { %6906 = shalt.err (!%p6903_p3)
}
  0x43   :  { %56 = dma.hbm_to_vmem [thread:$0]  %s7413_s3, 64, %s54_s28, [#allocation10]  }
  0x44   :  { %6929 = dma.done.wait [#allocation4], 128  }
  0x45   :  { %6930 = vsyncadd [#allocation4], 4294967168 }
  0x46   :  { %6931 = dma.done.wait [#allocation7], 53248  }
  0x47   :  { %6932 = vsyncadd [#allocation7], 4294914048 }
  0x48   :  { %6933 = dma.done.wait [#allocation10], 64  }
  0x49   :  { %6934 = vsyncadd [#allocation10], 4294967232  ;;  %v6943_v0 = vmov 0   ;;  %v6944_v1 = vmov 2   ;;  %v7075_v2 = vld [vmem:[#allocation3] sm:$0xff]  ;;  %v6350_v3 = vld [vmem:[#allocation6 + $0x40] sm:$0xff]  }
  0x4a   :  { %6299 = vset.pattern.permute.xlu0 %v6943_v0  ;;  %6301 = vset.pattern.permute.xlu1 %v6944_v1  ;;  %v6351_v4 = vld [vmem:[#allocation6] sm:$0xff]   ;;  %v6945_v7 = vmov 1   ;;  %v6946_v8 = vmov 3   ;;  %v6354_v9 = vld [vmem:[#allocation6 + $0x48] sm:$0xff]   ;;  %v6358_v13 = vld [vmem:[#allocation6 + $0x50] sm:$0xff]   ;;  %v6947_v14 = vmov 4  }
  0x4b   :  { %75 = vperm.xlu0 %6299, %v7075_v2   ;;  %91 = vperm.xlu1 %6301, %v7075_v2   ;;  %v6352_v5 = vld [vmem:[#allocation6 + $0xc0] sm:$0xff]   ;;  %v6355_v10 = vld [vmem:[#allocation6 + $0x8] sm:$0xff]   ;;  %v6948_v15 = vmov 5   ;;  %v6359_v16 = vld [vmem:[#allocation6 + $0x10] sm:$0xff]   ;;  %v6949_v21 = vmov 6   ;;  %v6950_v22 = vmov 8  }
  0x4c   :  { %5632 = vmatprep.subr.bf16.mxu0 %v6350_v3  ;;  %v6353_v6 = vld [vmem:[#allocation6 + $0x80] sm:$0xff]   ;;  %5654 = vmatprep.subr.bf16.mxu1 %v6352_v5  ;;  %v6356_v11 = vld [vmem:[#allocation6 + $0xc8] sm:$0xff]   ;;  %v6360_v17 = vld [vmem:[#allocation6 + $0xd0] sm:$0xff]   ;;  %v6951_v28 = vmov 7   ;;  %v6952_v29 = vmov 11   ;;  %v6953_v34 = vmov 9  }
  0x4d   :  { %5633 = vmatpush3.bf16.msra.mxu0 %v6351_v4  ;;  %5655 = vmatpush3.bf16.msra.mxu1 %v6353_v6  ;;  %v6357_v12 = vld [vmem:[#allocation6 + $0x88] sm:$0xff]   ;;  %v6361_v18 = vld [vmem:[#allocation6 + $0x90] sm:$0xff]   ;;  %v6362_v19 = vld [vmem:[#allocation6 + $0x58] sm:$0xff]   ;;  %v6954_v35 = vmov 14   ;;  %v6955_v41 = vmov 10   ;;  %v6956_v42 = vmov 17   ;;  %v72_v4 = vlaneseq }
  0x4e   :  { %5634 = vmatprep.subr.bf16.mxu0 %v6354_v9  ;;  %5656 = vmatprep.subr.bf16.mxu1 %v6356_v11  ;;  %v6363_v20 = vld [vmem:[#allocation6 + $0x18] sm:$0xff]   ;;  %v6366_v25 = vld [vmem:[#allocation6 + $0x60] sm:$0xff]   ;;  %v6370_v30 = vld [vmem:[#allocation6 + $0x68] sm:$0xff]   ;;  %v6957_v47 = vmov 12   ;;  %v6958_v48 = vmov 20   ;;  %v6959_v51 = vmov 13  }
  0x4f   :  { %6300 = vset.pattern.permute.xlu0 %v6945_v7  ;;  %6302 = vset.pattern.permute.xlu1 %v6946_v8  ;;  %v6364_v23 = vld [vmem:[#allocation6 + $0xd8] sm:$0xff]   ;;  %v6367_v26 = vld [vmem:[#allocation6 + $0x20] sm:$0xff]   ;;  %v6371_v32 = vld [vmem:[#allocation6 + $0x28] sm:$0xff]   ;;  %v6960_v52 = vmov 23   ;;  %v6961_v53 = vmov 15   ;;  %v6962_v54 = vmov 16  }
  0x50   :  { %83 = vperm.xlu0 %6300, %v7075_v2   ;;  %99 = vperm.xlu1 %6302, %v7075_v2   ;;  %v6365_v24 = vld [vmem:[#allocation6 + $0x98] sm:$0xff]   ;;  %v6368_v27 = vld [vmem:[#allocation6 + $0xe0] sm:$0xff]   ;;  %v6372_v33 = vld [vmem:[#allocation6 + $0xe8] sm:$0xff]   ;;  %v6963_v55 = vmov 18   ;;  %v6964_v56 = vmov 19   ;;  %v6965_v57 = vmov 21  }
  0x51   :  { %5635 = vmatpush3.bf16.msra.mxu0 %v6355_v10  ;;  %5657 = vmatpush3.bf16.msra.mxu1 %v6357_v12  ;;  %v6369_v31 = vld [vmem:[#allocation6 + $0xa0] sm:$0xff]   ;;  %v6374_v36 = vld [vmem:[#allocation6 + $0x70] sm:$0xff]   ;;  %v6373_v37 = vld [vmem:[#allocation6 + $0xa8] sm:$0xff]   ;;  %v6966_v58 = vmov 22   ;;  %v6967_v59 = vmov 26   ;;  %v6968_v60 = vmov 24  }
  0x52   :  { %5636 = vmatprep.subr.bf16.mxu0 %v6358_v13  ;;  %5658 = vmatprep.subr.bf16.mxu1 %v6360_v17  ;;  %v6375_v38 = vld [vmem:[#allocation6 + $0x30] sm:$0xff]   ;;  %v6378_v40 = vld [vmem:[#allocation6 + $0x78] sm:$0xff]   ;;  %v6384_v46 = vld [vmem:[#allocation6 + $0x140] sm:$0xff]   ;;  %v6969_v61 = vmov 25   ;;  %v6970_v62 = vmov 27   ;;  %v6971_v63 = vmov 28  }
  0x53   :  { %v6376_v39 = vld [vmem:[#allocation6 + $0xf0] sm:$0xff]   ;;  %v6379_v44 = vld [vmem:[#allocation6 + $0x38] sm:$0xff]   ;;  %v6388_v50 = vld [vmem:[#allocation6 + $0x1c0] sm:$0xff]   ;;  %v6972_v0 = vmov 30   ;;  %v6973_v1 = vmov 29   ;;  %v6974_v3 = vmov 31  }
  0x54   :  { %6303 = vset.pattern.permute.xlu1 %v6947_v14  ;;  %6304 = vset.pattern.permute.xlu0 %v6948_v15  ;;  %v6377_v43 = vld [vmem:[#allocation6 + $0xb0] sm:$0xff]   ;;  %v6380_v45 = vld [vmem:[#allocation6 + $0xf8] sm:$0xff]   ;;  %v7110_v5 = vand.u32 127, %v72_v4  ;;  %v6975_v8 = vmov 33   ;;  %v6976_v9 = vmov 32   ;;  %v6977_v10 = vmov 0.0  }
  0x55   :  { %107 = vperm.xlu1 %6303, %v7075_v2   ;;  %115 = vperm.xlu0 %6304, %v7075_v2   ;;  %v6381_v49 = vld [vmem:[#allocation6 + $0xb8] sm:$0xff]   ;;  %s6995_s3 = smov [#allocation11]  }
  0x56   :  { %5637 = vmatpush3.bf16.msra.mxu0 %v6359_v16  ;;  %5659 = vmatpush3.bf16.msra.mxu1 %v6361_v18  ;;  %s5105_s26 = sshll.u32 %s6995_s3, 4  ;;  %s5106_s26 = int_to_ptr.vmem [resolvable:$true] %s5105_s26 }
  0x57   :  { %5638 = vmatprep.subr.bf16.mxu0 %v6362_v19  ;;  %5660 = vmatprep.subr.bf16.mxu1 %v6364_v23  ;;  %v6978_v19 = vmov 34   ;;  %s6907_s6 = scalar_lea.vmem %s5106_s26, 128  ;;  %p6912_p5 = scmp.lt.s32.totalorder %s5106_s26, %s5106_s26 }
  0x58   :  { %p6908_p4 = scmp.ne.s32.totalorder %s5106_s26, %s6907_s6  ;;  %p6913_p6 = scmp.lt.s32.totalorder %s6907_s6, %s6907_s6 }
  0x59   :  { %6305 = vset.pattern.permute.xlu1 %v6949_v21  ;;  %6307 = vset.pattern.permute.xlu0 %v6950_v22 }
  0x5a   :  { %123 = vperm.xlu1 %6305, %v7075_v2   ;;  %139 = vperm.xlu0 %6307, %v7075_v2   ;;  %p6914_p7 = por %p6913_p6, %p6912_p5 }
  0x5b   :  { %5639 = vmatpush3.bf16.msra.mxu0 %v6363_v20  ;;  %5661 = vmatpush3.bf16.msra.mxu1 %v6365_v24  ;;  %v6979_v24 = vmov 35  }
  0x5c   :  { %5640 = vmatprep.subr.bf16.mxu0 %v6366_v25  ;;  %5662 = vmatprep.subr.bf16.mxu1 %v6368_v27  ;;  %p6915_p8 = pnand %p6914_p7, %p6908_p4 }
  0x5e   :  { %6306 = vset.pattern.permute.xlu1 %v6951_v28  ;;  %6310 = vset.pattern.permute.xlu0 %v6952_v29 }
  0x5f   :  { %131 = vperm.xlu1 %6306, %v7075_v2   ;;  %163 = vperm.xlu0 %6310, %v7075_v2  }
  0x60   :  { %5641 = vmatpush3.bf16.msra.mxu0 %v6367_v26  ;;  %5663 = vmatpush3.bf16.msra.mxu1 %v6369_v31  ;;  %v6385_v31 = vld [vmem:[#allocation6 + $0x100] sm:$0xff]  }
  0x61   :  { %5642 = vmatprep.subr.bf16.mxu0 %v6370_v30  ;;  %5664 = vmatprep.subr.bf16.mxu1 %v6372_v33 }
  0x63   :  { %6308 = vset.pattern.permute.xlu1 %v6953_v34  ;;  %6313 = vset.pattern.permute.xlu0 %v6954_v35  ;;  %v6389_v34 = vld [vmem:[#allocation6 + $0x180] sm:$0xff]  }
  0x64   :  { %147 = vperm.xlu1 %6308, %v7075_v2   ;;  %187 = vperm.xlu0 %6313, %v7075_v2  }
  0x65   :  { %5643 = vmatpush3.bf16.msra.mxu0 %v6371_v32  ;;  %5665 = vmatpush3.bf16.msra.mxu1 %v6373_v37 }
  0x66   :  { %5644 = vmatprep.subr.bf16.mxu0 %v6374_v36  ;;  %5666 = vmatprep.subr.bf16.mxu1 %v6376_v39 }
  0x68   :  { %6309 = vset.pattern.permute.xlu1 %v6955_v41  ;;  %6316 = vset.pattern.permute.xlu0 %v6956_v42  ;;  %v6392_v41 = vld [vmem:[#allocation6 + $0x1c8] sm:$0xff]  }
  0x69   :  { %155 = vperm.xlu1 %6309, %v7075_v2   ;;  %211 = vperm.xlu0 %6316, %v7075_v2  }
  0x6a   :  { %5645 = vmatpush3.bf16.msra.mxu0 %v6375_v38  ;;  %5667 = vmatpush3.bf16.msra.mxu1 %v6377_v43 }
  0x6b   :  { %5646 = vmatprep.subr.bf16.mxu0 %v6378_v40  ;;  %5668 = vmatprep.subr.bf16.mxu1 %v6380_v45  ;;  %v6390_v40 = vld [vmem:[#allocation6 + $0x148] sm:$0xff]  }
  0x6c   :  { %v6393_v45 = vld [vmem:[#allocation6 + $0x188] sm:$0xff]  }
  0x6d   :  { %6311 = vset.pattern.permute.xlu1 %v6957_v47  ;;  %6319 = vset.pattern.permute.xlu0 %v6958_v48  ;;  %v6394_v48 = vld [vmem:[#allocation6 + $0x150] sm:$0xff]  }
  0x6e   :  { %171 = vperm.xlu1 %6311, %v7075_v2   ;;  %5647 = vmatpush3.bf16.msra.mxu0 %v6379_v44  ;;  %v6391_v44 = vld [vmem:[#allocation6 + $0x108] sm:$0xff]  }
  0x6f   :  { %5676 = vmatprep.subr.bf16.mxu0 %v6384_v46  ;;  %235 = vperm.xlu0 %6319, %v7075_v2  }
  0x70   :  { %5669 = vmatpush3.bf16.msra.mxu1 %v6381_v49  ;;  %v6396_v49 = vld [vmem:[#allocation6 + $0x1d0] sm:$0xff]  }
  0x71   :  { %5698 = vmatprep.subr.bf16.mxu1 %v6388_v50 }
  0x72   :  { %6312 = vset.pattern.permute.xlu1 %v6959_v51 }
  0x73   :  { %179 = vperm.xlu1 %6312, %v7075_v2   ;;  %6322 = vset.pattern.permute.xlu0 %v6960_v52 }
  0x74   :  { %259 = vperm.xlu0 %6322, %v7075_v2  }
  0x77   :  { %6314 = vset.pattern.permute.xlu1 %v6961_v53 }
  0x78   :  { %195 = vperm.xlu1 %6314, %v7075_v2   ;;  %6325 = vset.pattern.permute.xlu0 %v6967_v59  ;;  %v6397_v59 = vld [vmem:[#allocation6 + $0x190] sm:$0xff]  }
  0x79   :  { %283 = vperm.xlu0 %6325, %v7075_v2  }
  0x7c   :  { %6315 = vset.pattern.permute.xlu1 %v6962_v54 }
  0x7d   :  { %203 = vperm.xlu1 %6315, %v7075_v2   ;;  %6328 = vset.pattern.permute.xlu0 %v6973_v1 }
  0x7e   :  { %307 = vperm.xlu0 %6328, %v7075_v2  }
  0x81   :  { %6317 = vset.pattern.permute.xlu1 %v6963_v55 }
  0x82   :  { %219 = vperm.xlu1 %6317, %v7075_v2   ;;  %6331 = vset.pattern.permute.xlu0 %v6976_v9  ;;  %v6402_v9 = vld [vmem:[#allocation6 + $0x160] sm:$0xff]  }
  0x83   :  { %331 = vperm.xlu0 %6331, %v7075_v2  }
  0x86   :  { %6318 = vset.pattern.permute.xlu1 %v6964_v56  ;;  %v6395_v56 = vld [vmem:[#allocation6 + $0x110] sm:$0xff]  }
  0x87   :  { %227 = vperm.xlu1 %6318, %v7075_v2   ;;  %6334 = vset.pattern.permute.xlu0 %v6979_v24  ;;  %v6408_v24 = vld [vmem:[#allocation6 + $0x1e8] sm:$0xff]  }
  0x88   :  { %355 = vperm.xlu0 %6334, %v7075_v2  }
  0x8b   :  { %6320 = vset.pattern.permute.xlu1 %v6965_v57 }
  0x8c   :  { %243 = vperm.xlu1 %6320, %v7075_v2  }
  0x90   :  { %6321 = vset.pattern.permute.xlu1 %v6966_v58 }
  0x91   :  { %251 = vperm.xlu1 %6321, %v7075_v2  }
  0x95   :  { %6323 = vset.pattern.permute.xlu1 %v6968_v60  ;;  %v6398_v60 = vld [vmem:[#allocation6 + $0x158] sm:$0xff]  }
  0x96   :  { %267 = vperm.xlu1 %6323, %v7075_v2  }
  0x9a   :  { %6324 = vset.pattern.permute.xlu1 %v6969_v61  ;;  %v6400_v61 = vld [vmem:[#allocation6 + $0x1d8] sm:$0xff]  }
  0x9b   :  { %275 = vperm.xlu1 %6324, %v7075_v2  }
  0x9f   :  { %6326 = vset.pattern.permute.xlu1 %v6970_v62 }
  0xa0   :  { %291 = vperm.xlu1 %6326, %v7075_v2  }
  0xa4   :  { %6327 = vset.pattern.permute.xlu1 %v6971_v63 }
  0xa5   :  { %299 = vperm.xlu1 %6327, %v7075_v2  }
  0xa9   :  { %6329 = vset.pattern.permute.xlu1 %v6972_v0  ;;  %v6399_v0 = vld [vmem:[#allocation6 + $0x118] sm:$0xff]  }
  0xaa   :  { %315 = vperm.xlu1 %6329, %v7075_v2  }
  0xae   :  { %6330 = vset.pattern.permute.xlu1 %v6974_v3 }
  0xaf   :  { %323 = vperm.xlu1 %6330, %v7075_v2  }
  0xb3   :  { %6332 = vset.pattern.permute.xlu1 %v6975_v8  ;;  %v7144_v8 = vld [vmem:[#allocation3] sm:$0xff] }
  0xb4   :  { %339 = vperm.xlu1 %6332, %v7075_v2  }
  0xb8   :  { %6333 = vset.pattern.permute.xlu1 %v6978_v19 }
  0xb9   :  { %347 = vperm.xlu1 %6333, %v7075_v2  }
  0xca   :  { %v76_v6 = vpop.permute.xlu0 %75  ;;  %v92_v7 = vpop.permute.xlu1 %91 }
  0xcb   :  { %vm77_vm0 = vcmp.eq.s32.totalorder %v7110_v5, %v76_v6  ;;  %vm93_vm1 = vcmp.eq.s32.totalorder %v7110_v5, %v92_v7  ;;  %v6980_v6 = vmov 36   ;;  %v6401_v7 = vld [vmem:[#allocation6 + $0x198] sm:$0xff]  }
  0xcc   :  { %v5116_v11 = vsel %vm77_vm0, 1.0, %v6977_v10  ;;  %v5118_v12 = vsel %vm93_vm1, 1.0, %v6977_v10  ;;  %6335 = vset.pattern.permute.xlu1 %v6980_v6 }
  0xcd   :  { %v80_v13 = vpack.c.bf16 %v5116_v11, %v5116_v11  ;;  %v96_v14 = vpack.c.bf16 %v5118_v12, %v5118_v12  ;;  %363 = vperm.xlu1 %6335, %v7144_v8  }
  0xcf   :  { %81 = vst [vmem:[#allocation2] sm:$0xf] %v80_v13  ;;  %97 = vst [vmem:[#allocation2 + $0x8] sm:$0xf] %v96_v14  ;;  %v84_v15 = vpop.permute.xlu0 %83  ;;  %v100_v16 = vpop.permute.xlu1 %99  ;;  %v6404_v13 = vld [vmem:[#allocation6 + $0x1e0] sm:$0xff]  }
  0xd0   :  { %vm85_vm2 = vcmp.eq.s32.totalorder %v7110_v5, %v84_v15  ;;  %vm101_vm3 = vcmp.eq.s32.totalorder %v7110_v5, %v100_v16  ;;  %v6403_v14 = vld [vmem:[#allocation6 + $0x120] sm:$0xff]  }
  0xd1   :  { %v5117_v17 = vsel %vm85_vm2, 1.0, %v6977_v10  ;;  %v5119_v18 = vsel %vm101_vm3, 1.0, %v6977_v10 }
  0xd2   :  { %v88_v20 = vpack.c.bf16 %v5117_v17, %v5117_v17  ;;  %v104_v21 = vpack.c.bf16 %v5119_v18, %v5119_v18  ;;  %v6405_v18 = vld [vmem:[#allocation6 + $0x1a0] sm:$0xff]  }
  0xd4   :  { %89 = vst [vmem:[#allocation2 + $0x4] sm:$0xf] %v88_v20  ;;  %105 = vst [vmem:[#allocation2 + $0xc] sm:$0xf] %v104_v21  ;;  %v108_v22 = vpop.permute.xlu1 %107  ;;  %v116_v23 = vpop.permute.xlu0 %115 }
  0xd5   :  { %vm109_vm4 = vcmp.eq.s32.totalorder %v7110_v5, %v108_v22  ;;  %vm117_vm5 = vcmp.eq.s32.totalorder %v7110_v5, %v116_v23  ;;  %v6981_v22 = vmov 37   ;;  %v6406_v23 = vld [vmem:[#allocation6 + $0x168] sm:$0xff]  }
  0xd6   :  { %v5120_v25 = vsel %vm109_vm4, 1.0, %v6977_v10  ;;  %v5121_v26 = vsel %vm117_vm5, 1.0, %v6977_v10  ;;  %6336 = vset.pattern.permute.xlu1 %v6981_v22  ;;  %v6438_v22 = vld [vmem:[#allocation6 + $0x260] sm:$0xff]  }
  0xd7   :  { %v112_v27 = vpack.c.bf16 %v5120_v25, %v5120_v25  ;;  %v120_v28 = vpack.c.bf16 %v5121_v26, %v5121_v26  ;;  %371 = vperm.xlu1 %6336, %v7144_v8   ;;  %v6407_v26 = vld [vmem:[#allocation6 + $0x128] sm:$0xff]  }
  0xd9   :  { %113 = vst [vmem:[#allocation2 + $0x10] sm:$0xf] %v112_v27  ;;  %v124_v29 = vpop.permute.xlu1 %123  ;;  %121 = vst [vmem:[#allocation2 + $0x14] sm:$0xf] %v120_v28  ;;  %v140_v30 = vpop.permute.xlu0 %139  ;;  %v6409_v27 = vld [vmem:[#allocation6 + $0x1a8] sm:$0xff]  }
  0xda   :  { %vm125_vm6 = vcmp.eq.s32.totalorder %v7110_v5, %v124_v29  ;;  %vm141_vm7 = vcmp.eq.s32.totalorder %v7110_v5, %v140_v30  ;;  %v6410_v30 = vld [vmem:[#allocation6 + $0x170] sm:$0xff]  }
  0xdb   :  { %v474_v32 = vld [vmem:[#allocation2] sm:$0xff]  ;;  %v475_v33 = vld [vmem:[#allocation2 + $0x8] sm:$0xff]  ;;  %v5122_v2 = vsel %vm125_vm6, 1.0, %v6977_v10  ;;  %v5124_v35 = vsel %vm141_vm7, 1.0, %v6977_v10 }
  0xdc   :  { %v5166_v36 = vcombine.low %v474_v32, %v474_v32  ;;  %v5167_v37 = vcombine.high %v474_v32, %v474_v32  ;;  %v5168_v38 = vcombine.low %v475_v33, %v475_v33  ;;  %v5169_v39 = vcombine.high %v475_v33, %v475_v33  ;;  %v6412_v32 = vld [vmem:[#allocation6 + $0x1f0] sm:$0xff]  }
  0xdd   :  { %v128_v42 = vpack.c.bf16 %v5122_v2, %v5122_v2  ;;  %v144_v43 = vpack.c.bf16 %v5124_v35, %v5124_v35  ;;  %v6411_v33 = vld [vmem:[#allocation6 + $0x130] sm:$0xff]   ;;  %v6982_v35 = vmov 39  }
  0xde   :  { %3910 = vmatprep.mubr.bf16.mxu0 %v5167_v37  ;;  %3950 = vmatprep.mubr.bf16.mxu1 %v5169_v39  ;;  %v132_v46 = vpop.permute.xlu1 %131  ;;  %v164_v47 = vpop.permute.xlu0 %163  ;;  %v6413_v37 = vld [vmem:[#allocation6 + $0x1b0] sm:$0xff]   ;;  %v6414_v39 = vld [vmem:[#allocation6 + $0x178] sm:$0xff]  }
  0xdf   :  { %3911 = vmatmul.mubr.bf16.vlgmr.msra.gmra.mrb[0].mxu0 %v5166_v36  ;;  %3951 = vmatmul.mubr.bf16.vlgmr.msra.gmra.mrb[0].mxu1 %v5168_v38  ;;  %129 = vst [vmem:[#allocation2 + $0x18] sm:$0xf] %v128_v42  ;;  %vm133_vm8 = vcmp.eq.s32.totalorder %v7110_v5, %v132_v46  ;;  %145 = vst [vmem:[#allocation2 + $0x20] sm:$0xf] %v144_v43  ;;  %vm165_vm9 = vcmp.eq.s32.totalorder %v7110_v5, %v164_v47  ;;  %v6983_v36 = vmov 38   ;;  %v6416_v42 = vld [vmem:[#allocation6 + $0x1f8] sm:$0xff]  }
  0xe0   :  { %5677 = vmatpush3.bf16.msra.mxu0 %v6385_v31  ;;  %5699 = vmatpush3.bf16.msra.mxu1 %v6389_v34  ;;  %v5123_v50 = vsel %vm133_vm8, 1.0, %v6977_v10  ;;  %v7135_v51 = vld [vmem:[#allocation2 + $0x10] sm:$0xff]  ;;  %v5127_v52 = vsel %vm165_vm9, 1.0, %v6977_v10 }
  0xe1   :  { %5678 = vmatprep.subr.bf16.mxu0 %v6390_v40  ;;  %5700 = vmatprep.subr.bf16.mxu1 %v6392_v41  ;;  %v136_v53 = vpack.c.bf16 %v5123_v50, %v5123_v50  ;;  %v5171_v54 = vcombine.high %v7135_v51, %v7135_v51  ;;  %v168_v55 = vpack.c.bf16 %v5127_v52, %v5127_v52  ;;  %v6424_v50 = vld [vmem:[#allocation6 + $0x2c0] sm:$0xff]  }
  0xe2   :  { %6338 = vset.pattern.permute.xlu1 %v6982_v35  ;;  %6337 = vset.pattern.permute.xlu0 %v6983_v36  ;;  %v6445_v35 = vld [vmem:[#allocation6 + $0x2a8] sm:$0xff]   ;;  %v6446_v36 = vld [vmem:[#allocation6 + $0x270] sm:$0xff]  }
  0xe3   :  { %137 = vst [vmem:[#allocation2 + $0x1c] sm:$0xf] %v136_v53  ;;  %3990 = vmatprep.mubr.bf16.mxu0 %v5171_v54  ;;  %v148_v57 = vpop.permute.xlu1 %147  ;;  %v188_v58 = vpop.permute.xlu0 %187  ;;  %169 = vst [vmem:[#allocation2 + $0x2c] sm:$0xf] %v168_v55  ;;  %387 = vperm.xlu1 %6338, %v7144_v8   ;;  %v6423_v53 = vld [vmem:[#allocation6 + $0x200] sm:$0xff]  }
  0xe4   :  { %5679 = vmatpush3.bf16.msra.mxu0 %v6391_v44  ;;  %5701 = vmatpush3.bf16.msra.mxu1 %v6393_v45  ;;  %vm149_vm10 = vcmp.eq.s32.totalorder %v7110_v5, %v148_v57  ;;  %vm189_vm11 = vcmp.eq.s32.totalorder %v7110_v5, %v188_v58  ;;  %v6415_v44 = vld [vmem:[#allocation6 + $0x138] sm:$0xff]   ;;  %v6425_v54 = vld [vmem:[#allocation6 + $0x280] sm:$0xff]   ;;  %v5170_v57 = vcombine.low %v7135_v51, %v7135_v51 }
  0xe5   :  { %5680 = vmatprep.subr.bf16.mxu0 %v6394_v48  ;;  %5702 = vmatprep.subr.bf16.mxu1 %v6396_v49  ;;  %v5125_v62 = vsel %vm149_vm10, 1.0, %v6977_v10  ;;  %v5130_v63 = vsel %vm189_vm11, 1.0, %v6977_v10  ;;  %v6419_v45 = vld [vmem:[#allocation6 + $0x1b8] sm:$0xff]   ;;  %v6420_v48 = vld [vmem:[#allocation6 + $0x240] sm:$0xff]  }
  0xe6   :  { %v152_v1 = vpack.c.bf16 %v5125_v62, %v5125_v62  ;;  %v192_v3 = vpack.c.bf16 %v5130_v63, %v5130_v63  ;;  %379 = vperm.xlu0 %6337, %v7144_v8   ;;  %v6428_v62 = vld [vmem:[#allocation6 + $0x2c8] sm:$0xff]  }
  0xe7   :  { %v6427_v63 = vld [vmem:[#allocation6 + $0x208] sm:$0xff]  }
  0xe8   :  { %5681 = vmatpush3.bf16.msra.mxu0 %v6395_v56  ;;  %5703 = vmatpush3.bf16.msra.mxu1 %v6397_v59  ;;  %153 = vst [vmem:[#allocation2 + $0x24] sm:$0xf] %v152_v1  ;;  %v156_v11 = vpop.permute.xlu1 %155  ;;  %193 = vst [vmem:[#allocation2 + $0x38] sm:$0xf] %v192_v3  ;;  %v212_v12 = vpop.permute.xlu0 %211  ;;  %v6429_v3 = vld [vmem:[#allocation6 + $0x288] sm:$0xff]  }
  0xe9   :  { %5682 = vmatprep.subr.bf16.mxu0 %v6398_v60  ;;  %5704 = vmatprep.subr.bf16.mxu1 %v6400_v61  ;;  %vm157_vm12 = vcmp.eq.s32.totalorder %v7110_v5, %v156_v11  ;;  %vm213_vm13 = vcmp.eq.s32.totalorder %v7110_v5, %v212_v12  ;;  %v6426_v60 = vld [vmem:[#allocation6 + $0x248] sm:$0xff]   ;;  %v6431_v12 = vld [vmem:[#allocation6 + $0x210] sm:$0xff]  }
  0xea   :  { %v7149_v15 = vld [vmem:[#allocation2 + $0x18] sm:$0xff]  ;;  %v5126_v16 = vsel %vm157_vm12, 1.0, %v6977_v10  ;;  %v5133_v17 = vsel %vm213_vm13, 1.0, %v6977_v10 }
  0xeb   :  { %v5173_v19 = vcombine.high %v7149_v15, %v7149_v15  ;;  %v160_v20 = vpack.c.bf16 %v5126_v16, %v5126_v16  ;;  %v216_v21 = vpack.c.bf16 %v5133_v17, %v5133_v17  ;;  %v5172_v58 = vcombine.low %v7149_v15, %v7149_v15  ;;  %v6434_v15 = vld [vmem:[#allocation6 + $0x258] sm:$0xff]  }
  0xec   :  { %5683 = vmatpush3.bf16.msra.mxu0 %v6399_v0  ;;  %5705 = vmatpush3.bf16.msra.mxu1 %v6401_v7  ;;  %v6430_v7 = vld [vmem:[#allocation6 + $0x250] sm:$0xff]   ;;  %v6436_v17 = vld [vmem:[#allocation6 + $0x2d8] sm:$0xff]  }
  0xed   :  { %5684 = vmatprep.subr.bf16.mxu0 %v6402_v9  ;;  %5706 = vmatprep.subr.bf16.mxu1 %v6404_v13  ;;  %161 = vst [vmem:[#allocation2 + $0x28] sm:$0xf] %v160_v20  ;;  %v172_v25 = vpop.permute.xlu1 %171  ;;  %217 = vst [vmem:[#allocation2 + $0x44] sm:$0xf] %v216_v21  ;;  %v6432_v9 = vld [vmem:[#allocation6 + $0x2d0] sm:$0xff]   ;;  %v6984_v20 = vmov 40  }
  0xee   :  { %4030 = vmatprep.mubr.bf16.mxu1 %v5173_v19  ;;  %vm173_vm14 = vcmp.eq.s32.totalorder %v7110_v5, %v172_v25  ;;  %v236_v29 = vpop.permute.xlu0 %235  ;;  %v6433_v13 = vld [vmem:[#allocation6 + $0x290] sm:$0xff]   ;;  %6339 = vset.pattern.permute.xlu1 %v6984_v20  ;;  %v6437_v21 = vld [vmem:[#allocation6 + $0x298] sm:$0xff]  }
  0xef   :  { %v5128_v28 = vsel %vm173_vm14, 1.0, %v6977_v10  ;;  %vm237_vm15 = vcmp.eq.s32.totalorder %v7110_v5, %v236_v29  ;;  %v7168_v55 = vld [vmem:[#allocation2 + $0x20] sm:$0xff]  ;;  %395 = vperm.xlu1 %6339, %v7144_v8   ;;  %v6985_v29 = vmov 42   ;;  %v6472_v20 = vld [vmem:[#allocation6 + $0x3d8] sm:$0xff]  }
  0xf0   :  { %5685 = vmatpush3.bf16.msra.mxu0 %v6403_v14  ;;  %5707 = vmatpush3.bf16.msra.mxu1 %v6405_v18  ;;  %v176_v31 = vpack.c.bf16 %v5128_v28, %v5128_v28  ;;  %v5136_v2 = vsel %vm237_vm15, 1.0, %v6977_v10  ;;  %v5175_v0 = vcombine.high %v7168_v55, %v7168_v55  ;;  %v6435_v18 = vld [vmem:[#allocation6 + $0x218] sm:$0xff]  }
  0xf1   :  { %5686 = vmatprep.subr.bf16.mxu0 %v6406_v23  ;;  %5708 = vmatprep.subr.bf16.mxu1 %v6408_v24  ;;  %v240_v38 = vpack.c.bf16 %v5136_v2, %v5136_v2  ;;  %v6440_v24 = vld [vmem:[#allocation6 + $0x2e0] sm:$0xff]   ;;  %v6986_v2 = vmov 41  }
  0xf2   :  { %177 = vst [vmem:[#allocation2 + $0x30] sm:$0xf] %v176_v31  ;;  %v180_v34 = vpop.permute.xlu1 %179  ;;  %v6444_v31 = vld [vmem:[#allocation6 + $0x2e8] sm:$0xff]   ;;  %6340 = vset.pattern.permute.xlu0 %v6986_v2 }
  0xf3   :  { %vm181_vm0 = vcmp.eq.s32.totalorder %v7110_v5, %v180_v34  ;;  %v260_v41 = vpop.permute.xlu0 %259  ;;  %241 = vst [vmem:[#allocation2 + $0x50] sm:$0xf] %v240_v38  ;;  %6341 = vset.pattern.permute.xlu1 %v6985_v29  ;;  %403 = vperm.xlu0 %6340, %v7144_v8   ;;  %v6448_v38 = vld [vmem:[#allocation6 + $0x2f0] sm:$0xff]   ;;  %v6989_v29 = vmov 44  }
  0xf4   :  { %5687 = vmatpush3.bf16.msra.mxu0 %v6407_v26  ;;  %5709 = vmatpush3.bf16.msra.mxu1 %v6409_v27  ;;  %v5129_v40 = vsel %vm181_vm0, 1.0, %v6977_v10  ;;  %vm261_vm1 = vcmp.eq.s32.totalorder %v7110_v5, %v260_v41  ;;  %v7174_v59 = vld [vmem:[#allocation2 + $0x28] sm:$0xff]  ;;  %v6439_v26 = vld [vmem:[#allocation6 + $0x220] sm:$0xff]   ;;  %v6987_v41 = vmov 43  }
  0xf5   :  { %5688 = vmatprep.subr.bf16.mxu0 %v6410_v30  ;;  %5710 = vmatprep.subr.bf16.mxu1 %v6412_v32  ;;  %v184_v43 = vpack.c.bf16 %v5129_v40, %v5129_v40  ;;  %v5139_v47 = vsel %vm261_vm1, 1.0, %v6977_v10  ;;  %v5177_v51 = vcombine.high %v7174_v59, %v7174_v59  ;;  %v6441_v27 = vld [vmem:[#allocation6 + $0x2a0] sm:$0xff]   ;;  %v6442_v30 = vld [vmem:[#allocation6 + $0x268] sm:$0xff]  }
  0xf6   :  { %v264_v49 = vpack.c.bf16 %v5139_v47, %v5139_v47  ;;  %411 = vperm.xlu1 %6341, %v7144_v8   ;;  %v6452_v47 = vld [vmem:[#allocation6 + $0x2f8] sm:$0xff]  }
  0xf7   :  { %185 = vst [vmem:[#allocation2 + $0x34] sm:$0xf] %v184_v43  ;;  %v196_v46 = vpop.permute.xlu1 %195  ;;  %v6449_v43 = vld [vmem:[#allocation6 + $0x2b0] sm:$0xff]   ;;  %6343 = vset.pattern.permute.xlu0 %v6989_v29  ;;  %v6515_v29 = vld [vmem:[#allocation6 + $0x428] sm:$0xff]  }
  0xf8   :  { %5689 = vmatpush3.bf16.msra.mxu0 %v6411_v33  ;;  %5711 = vmatpush3.bf16.msra.mxu1 %v6413_v37  ;;  %vm197_vm2 = vcmp.eq.s32.totalorder %v7110_v5, %v196_v46  ;;  %265 = vst [vmem:[#allocation2 + $0x5c] sm:$0xf] %v264_v49  ;;  %v6443_v33 = vld [vmem:[#allocation6 + $0x228] sm:$0xff]  }
  0xf9   :  { %5690 = vmatprep.subr.bf16.mxu0 %v6414_v39  ;;  %5712 = vmatprep.subr.bf16.mxu1 %v6416_v42  ;;  %v5131_v52 = vsel %vm197_vm2, 1.0, %v6977_v10  ;;  %v6447_v39 = vld [vmem:[#allocation6 + $0x230] sm:$0xff]   ;;  %v284_v42 = vpop.permute.xlu0 %283 }
  0xfa   :  { %v200_v56 = vpack.c.bf16 %v5131_v52, %v5131_v52  ;;  %6342 = vset.pattern.permute.xlu1 %v6987_v41  ;;  %vm285_vm8 = vcmp.eq.s32.totalorder %v7110_v5, %v284_v42  ;;  %v6455_v52 = vld [vmem:[#allocation6 + $0x2b8] sm:$0xff]   ;;  %427 = vperm.xlu0 %6343, %v7144_v8   ;;  %v6484_v42 = vld [vmem:[#allocation6 + $0x3f0] sm:$0xff]  }
  0xfb   :  { %419 = vperm.xlu1 %6342, %v7144_v8   ;;  %v5142_v46 = vsel %vm285_vm8, 1.0, %v6977_v10 }
  0xfc   :  { %5691 = vmatpush3.bf16.msra.mxu0 %v6415_v44  ;;  %5713 = vmatpush3.bf16.msra.mxu1 %v6419_v45  ;;  %201 = vst [vmem:[#allocation2 + $0x3c] sm:$0xf] %v200_v56  ;;  %v204_v61 = vpop.permute.xlu1 %203  ;;  %v6450_v45 = vld [vmem:[#allocation6 + $0x278] sm:$0xff]   ;;  %v288_v49 = vpack.c.bf16 %v5142_v46, %v5142_v46  ;;  %v6991_v46 = vmov 47  }
  0xfd   :  { %5720 = vmatprep.subr.bf16.mxu0 %v6420_v48  ;;  %5742 = vmatprep.subr.bf16.mxu1 %v6424_v50  ;;  %vm205_vm3 = vcmp.eq.s32.totalorder %v7110_v5, %v204_v61  ;;  %v6451_v50 = vld [vmem:[#allocation6 + $0x238] sm:$0xff]   ;;  %v308_v2 = vpop.permute.xlu0 %307 }
  0xfe   :  { %v5132_v1 = vsel %vm205_vm3, 1.0, %v6977_v10  ;;  %289 = vst [vmem:[#allocation2 + $0x68] sm:$0xf] %v288_v49  ;;  %v7198_v61 = vld [vmem:[#allocation2 + $0x30] sm:$0xff]  ;;  %vm309_vm14 = vcmp.eq.s32.totalorder %v7110_v5, %v308_v2  ;;  %6346 = vset.pattern.permute.xlu0 %v6991_v46  ;;  %v6488_v49 = vld [vmem:[#allocation6 + $0x378] sm:$0xff]  }
  0xff   :  { %3991 = vmatmul.mubr.bf16.vlgmr.msra.gmra.mrb[4].mxu0 %v5170_v57  ;;  %4031 = vmatmul.mubr.bf16.vlgmr.msra.gmra.mrb[4].mxu1 %v5172_v58  ;;  %v208_v6 = vpack.c.bf16 %v5132_v1, %v5132_v1  ;;  %v6460_v57 = vld [vmem:[#allocation6 + $0x3c0] sm:$0xff]   ;;  %v6462_v1 = vld [vmem:[#allocation6 + $0x348] sm:$0xff]  }
 0x100   :  { %5721 = vmatpush3.bf16.msra.mxu0 %v6423_v53  ;;  %5743 = vmatpush3.bf16.msra.mxu1 %v6425_v54  ;;  %v6456_v54 = vld [vmem:[#allocation6 + $0x340] sm:$0xff]  }
 0x101   :  { %5722 = vmatprep.subr.bf16.mxu0 %v6426_v60  ;;  %5744 = vmatprep.subr.bf16.mxu1 %v6428_v62  ;;  %209 = vst [vmem:[#allocation2 + $0x40] sm:$0xf] %v208_v6  ;;  %v220_v11 = vpop.permute.xlu1 %219  ;;  %v6459_v58 = vld [vmem:[#allocation6 + $0x300] sm:$0xff]   ;;  %v6464_v6 = vld [vmem:[#allocation6 + $0x3c8] sm:$0xff]  }
 0x102   :  { %4070 = vmatprep.mubr.bf16.mxu0 %v5175_v0  ;;  %4110 = vmatprep.mubr.bf16.mxu1 %v5177_v51  ;;  %vm221_vm4 = vcmp.eq.s32.totalorder %v7110_v5, %v220_v11  ;;  %v6461_v60 = vld [vmem:[#allocation6 + $0x380] sm:$0xff]   ;;  %v5176_v0 = vcombine.low %v7174_v59, %v7174_v59  ;;  %v6465_v11 = vld [vmem:[#allocation6 + $0x388] sm:$0xff]  }
 0x103   :  { %v5134_v14 = vsel %vm221_vm4, 1.0, %v6977_v10  ;;  %v7204_v51 = vld [vmem:[#allocation2 + $0x38] sm:$0xff]  ;;  %451 = vperm.xlu0 %6346, %v7144_v8   ;;  %v6528_v46 = vld [vmem:[#allocation6 + $0x540] sm:$0xff]  }
 0x104   :  { %5723 = vmatpush3.bf16.msra.mxu0 %v6427_v63  ;;  %5745 = vmatpush3.bf16.msra.mxu1 %v6429_v3  ;;  %v224_v16 = vpack.c.bf16 %v5134_v14, %v5134_v14  ;;  %v5174_v63 = vcombine.low %v7168_v55, %v7168_v55  ;;  %v5179_v55 = vcombine.high %v7198_v61, %v7198_v61  ;;  %v6468_v14 = vld [vmem:[#allocation6 + $0x3d0] sm:$0xff]  }
 0x105   :  { %5724 = vmatprep.subr.bf16.mxu0 %v6430_v7  ;;  %5746 = vmatprep.subr.bf16.mxu1 %v6432_v9  ;;  %v6463_v9 = vld [vmem:[#allocation6 + $0x308] sm:$0xff]   ;;  %v5181_v59 = vcombine.high %v7204_v51, %v7204_v51 }
 0x106   :  { %225 = vst [vmem:[#allocation2 + $0x48] sm:$0xf] %v224_v16  ;;  %v228_v19 = vpop.permute.xlu1 %227  ;;  %v6467_v16 = vld [vmem:[#allocation6 + $0x310] sm:$0xff]  }
 0x107   :  { %vm229_vm5 = vcmp.eq.s32.totalorder %v7110_v5, %v228_v19  ;;  %v6470_v19 = vld [vmem:[#allocation6 + $0x358] sm:$0xff]  }
 0x108   :  { %5725 = vmatpush3.bf16.msra.mxu0 %v6431_v12  ;;  %5747 = vmatpush3.bf16.msra.mxu1 %v6433_v13  ;;  %v5135_v23 = vsel %vm229_vm5, 1.0, %v6977_v10  ;;  %v6466_v13 = vld [vmem:[#allocation6 + $0x350] sm:$0xff]  }
 0x109   :  { %5726 = vmatprep.subr.bf16.mxu0 %v6434_v15  ;;  %5748 = vmatprep.subr.bf16.mxu1 %v6436_v17  ;;  %v232_v25 = vpack.c.bf16 %v5135_v23, %v5135_v23 }
 0x10b   :  { %233 = vst [vmem:[#allocation2 + $0x4c] sm:$0xf] %v232_v25  ;;  %v244_v28 = vpop.permute.xlu1 %243  ;;  %v6476_v25 = vld [vmem:[#allocation6 + $0x3e0] sm:$0xff]  }
 0x10c   :  { %5727 = vmatpush3.bf16.msra.mxu0 %v6435_v18  ;;  %5749 = vmatpush3.bf16.msra.mxu1 %v6437_v21  ;;  %vm245_vm6 = vcmp.eq.s32.totalorder %v7110_v5, %v244_v28  ;;  %v6469_v18 = vld [vmem:[#allocation6 + $0x390] sm:$0xff]   ;;  %v6471_v21 = vld [vmem:[#allocation6 + $0x318] sm:$0xff]   ;;  %v6988_v28 = vmov 45  }
 0x10d   :  { %5728 = vmatprep.subr.bf16.mxu0 %v6438_v22  ;;  %5750 = vmatprep.subr.bf16.mxu1 %v6440_v24  ;;  %v5137_v32 = vsel %vm245_vm6, 1.0, %v6977_v10  ;;  %v6473_v22 = vld [vmem:[#allocation6 + $0x398] sm:$0xff]   ;;  %v6474_v24 = vld [vmem:[#allocation6 + $0x360] sm:$0xff]  }
 0x10e   :  { %v248_v34 = vpack.c.bf16 %v5137_v32, %v5137_v32  ;;  %6344 = vset.pattern.permute.xlu1 %v6988_v28  ;;  %v6478_v32 = vld [vmem:[#allocation6 + $0x368] sm:$0xff]  }
 0x10f   :  { %435 = vperm.xlu1 %6344, %v7144_v8  }
 0x110   :  { %5729 = vmatpush3.bf16.msra.mxu0 %v6439_v26  ;;  %5751 = vmatpush3.bf16.msra.mxu1 %v6441_v27  ;;  %249 = vst [vmem:[#allocation2 + $0x54] sm:$0xf] %v248_v34  ;;  %v252_v37 = vpop.permute.xlu1 %251  ;;  %v6475_v26 = vld [vmem:[#allocation6 + $0x320] sm:$0xff]   ;;  %v6480_v34 = vld [vmem:[#allocation6 + $0x3e8] sm:$0xff]  }
 0x111   :  { %5730 = vmatprep.subr.bf16.mxu0 %v6442_v30  ;;  %5752 = vmatprep.subr.bf16.mxu1 %v6444_v31  ;;  %vm253_vm7 = vcmp.eq.s32.totalorder %v7110_v5, %v252_v37  ;;  %v6477_v30 = vld [vmem:[#allocation6 + $0x3a0] sm:$0xff]   ;;  %v6481_v37 = vld [vmem:[#allocation6 + $0x3a8] sm:$0xff]  }
 0x112   :  { %v5138_v40 = vsel %vm253_vm7, 1.0, %v6977_v10 }
 0x113   :  { %v256_v44 = vpack.c.bf16 %v5138_v40, %v5138_v40  ;;  %v6482_v40 = vld [vmem:[#allocation6 + $0x370] sm:$0xff]  }
 0x114   :  { %5731 = vmatpush3.bf16.msra.mxu0 %v6443_v33  ;;  %5753 = vmatpush3.bf16.msra.mxu1 %v6445_v35 }
 0x115   :  { %5732 = vmatprep.subr.bf16.mxu0 %v6446_v36  ;;  %5754 = vmatprep.subr.bf16.mxu1 %v6448_v38  ;;  %257 = vst [vmem:[#allocation2 + $0x58] sm:$0xf] %v256_v44  ;;  %v268_v48 = vpop.permute.xlu1 %267  ;;  %v6479_v36 = vld [vmem:[#allocation6 + $0x328] sm:$0xff]   ;;  %v6483_v44 = vld [vmem:[#allocation6 + $0x330] sm:$0xff]  }
 0x116   :  { %vm269_vm9 = vcmp.eq.s32.totalorder %v7110_v5, %v268_v48 }
 0x117   :  { %v5140_v53 = vsel %vm269_vm9, 1.0, %v6977_v10 }
 0x118   :  { %5733 = vmatpush3.bf16.msra.mxu0 %v6447_v39  ;;  %5755 = vmatpush3.bf16.msra.mxu1 %v6449_v43  ;;  %v272_v56 = vpack.c.bf16 %v5140_v53, %v5140_v53  ;;  %v5145_v39 = vsel %vm309_vm14, 1.0, %v6977_v10  ;;  %v6489_v53 = vld [vmem:[#allocation6 + $0x338] sm:$0xff]  }
 0x119   :  { %5734 = vmatprep.subr.bf16.mxu0 %v6450_v45  ;;  %5756 = vmatprep.subr.bf16.mxu1 %v6452_v47  ;;  %v312_v41 = vpack.c.bf16 %v5145_v39, %v5145_v39  ;;  %v6990_v45 = vmov 46   ;;  %v6487_v47 = vld [vmem:[#allocation6 + $0x3b0] sm:$0xff]  }
 0x11a   :  { %273 = vst [vmem:[#allocation2 + $0x60] sm:$0xf] %v272_v56  ;;  %v276_v62 = vpop.permute.xlu1 %275  ;;  %6345 = vset.pattern.permute.xlu1 %v6990_v45  ;;  %v6492_v56 = vld [vmem:[#allocation6 + $0x440] sm:$0xff]  }
 0x11b   :  { %vm277_vm10 = vcmp.eq.s32.totalorder %v7110_v5, %v276_v62  ;;  %313 = vst [vmem:[#allocation2 + $0x74] sm:$0xf] %v312_v41  ;;  %443 = vperm.xlu1 %6345, %v7144_v8   ;;  %v7226_v62 = vld [vmem:[#allocation2 + $0x40] sm:$0xff]  ;;  %v5180_v8 = vcombine.low %v7204_v51, %v7204_v51  ;;  %v6501_v51 = vld [vmem:[#allocation6 + $0x488] sm:$0xff]   ;;  %v6524_v41 = vld [vmem:[#allocation6 + $0x4f8] sm:$0xff]  }
 0x11c   :  { %5735 = vmatpush3.bf16.msra.mxu0 %v6451_v50  ;;  %5757 = vmatpush3.bf16.msra.mxu1 %v6455_v52  ;;  %v5141_v3 = vsel %vm277_vm10, 1.0, %v6977_v10  ;;  %v6490_v52 = vld [vmem:[#allocation6 + $0x3f8] sm:$0xff]  }
 0x11d   :  { %5764 = vmatprep.subr.bf16.mxu0 %v6456_v54  ;;  %5786 = vmatprep.subr.bf16.mxu1 %v6460_v57  ;;  %v280_v7 = vpack.c.bf16 %v5141_v3, %v5141_v3  ;;  %v6491_v54 = vld [vmem:[#allocation6 + $0x3b8] sm:$0xff]   ;;  %v6496_v57 = vld [vmem:[#allocation6 + $0x4c0] sm:$0xff]   ;;  %v6500_v3 = vld [vmem:[#allocation6 + $0x4c8] sm:$0xff]  }
 0x11f   :  { %4071 = vmatmul.mubr.bf16.vlgmr.msra.gmra.mrb[8].mxu0 %v5174_v63  ;;  %4111 = vmatmul.mubr.bf16.vlgmr.msra.gmra.mrb[8].mxu1 %v5176_v0  ;;  %281 = vst [vmem:[#allocation2 + $0x64] sm:$0xf] %v280_v7  ;;  %v292_v12 = vpop.permute.xlu1 %291  ;;  %v7230_v63 = vld [vmem:[#allocation2 + $0x48] sm:$0xff]  ;;  %v6498_v0 = vld [vmem:[#allocation6 + $0x448] sm:$0xff]   ;;  %v5183_v7 = vcombine.high %v7226_v62, %v7226_v62 }
 0x120   :  { %5765 = vmatpush3.bf16.msra.mxu0 %v6459_v58  ;;  %5787 = vmatpush3.bf16.msra.mxu1 %v6461_v60  ;;  %vm293_vm11 = vcmp.eq.s32.totalorder %v7110_v5, %v292_v12  ;;  %v6495_v58 = vld [vmem:[#allocation6 + $0x400] sm:$0xff]   ;;  %v6506_v12 = vld [vmem:[#allocation6 + $0x458] sm:$0xff]  }
 0x121   :  { %5766 = vmatprep.subr.bf16.mxu0 %v6462_v1  ;;  %5788 = vmatprep.subr.bf16.mxu1 %v6464_v6  ;;  %v5143_v15 = vsel %vm293_vm11, 1.0, %v6977_v10  ;;  %v6497_v60 = vld [vmem:[#allocation6 + $0x480] sm:$0xff]   ;;  %v5178_v1 = vcombine.low %v7198_v61, %v7198_v61  ;;  %v6499_v6 = vld [vmem:[#allocation6 + $0x408] sm:$0xff]   ;;  %v6503_v61 = vld [vmem:[#allocation6 + $0x410] sm:$0xff]  }
 0x122   :  { %4150 = vmatprep.mubr.bf16.mxu0 %v5179_v55  ;;  %4190 = vmatprep.mubr.bf16.mxu1 %v5181_v59  ;;  %v296_v17 = vpack.c.bf16 %v5143_v15, %v5143_v15  ;;  %v6502_v55 = vld [vmem:[#allocation6 + $0x450] sm:$0xff]   ;;  %v6992_v15 = vmov 48  }
 0x123   :  { %v6504_v59 = vld [vmem:[#allocation6 + $0x4d0] sm:$0xff]   ;;  %6347 = vset.pattern.permute.xlu1 %v6992_v15  ;;  %v6550_v15 = vld [vmem:[#allocation6 + $0x568] sm:$0xff]  }
 0x124   :  { %5767 = vmatpush3.bf16.msra.mxu0 %v6463_v9  ;;  %5789 = vmatpush3.bf16.msra.mxu1 %v6465_v11  ;;  %297 = vst [vmem:[#allocation2 + $0x6c] sm:$0xf] %v296_v17  ;;  %v300_v23 = vpop.permute.xlu1 %299  ;;  %v5185_v9 = vcombine.high %v7230_v63, %v7230_v63  ;;  %v6505_v11 = vld [vmem:[#allocation6 + $0x490] sm:$0xff]   ;;  %v6817_v17 = vld [vmem:[#allocation3] sm:$0xff] }
 0x125   :  { %5768 = vmatprep.subr.bf16.mxu0 %v6466_v13  ;;  %5790 = vmatprep.subr.bf16.mxu1 %v6468_v14  ;;  %vm301_vm12 = vcmp.eq.s32.totalorder %v7110_v5, %v300_v23  ;;  %v6508_v13 = vld [vmem:[#allocation6 + $0x4d8] sm:$0xff]   ;;  %v6514_v23 = vld [vmem:[#allocation6 + $0x468] sm:$0xff]  }
 0x126   :  { %v5144_v27 = vsel %vm301_vm12, 1.0, %v6977_v10  ;;  %v6507_v14 = vld [vmem:[#allocation6 + $0x418] sm:$0xff]   ;;  %459 = vperm.xlu1 %6347, %v6817_v17  }
 0x127   :  { %v304_v31 = vpack.c.bf16 %v5144_v27, %v5144_v27 }
 0x128   :  { %5769 = vmatpush3.bf16.msra.mxu0 %v6467_v16  ;;  %5791 = vmatpush3.bf16.msra.mxu1 %v6469_v18  ;;  %v6509_v16 = vld [vmem:[#allocation6 + $0x498] sm:$0xff]   ;;  %v6510_v18 = vld [vmem:[#allocation6 + $0x460] sm:$0xff]  }
 0x129   :  { %5770 = vmatprep.subr.bf16.mxu0 %v6470_v19  ;;  %5792 = vmatprep.subr.bf16.mxu1 %v6472_v20  ;;  %v316_v33 = vpop.permute.xlu1 %315  ;;  %305 = vst [vmem:[#allocation2 + $0x70] sm:$0xf] %v304_v31  ;;  %v6512_v19 = vld [vmem:[#allocation6 + $0x4e0] sm:$0xff]  }
 0x12a   :  { %vm317_vm13 = vcmp.eq.s32.totalorder %v7110_v5, %v316_v33  ;;  %v6511_v20 = vld [vmem:[#allocation6 + $0x420] sm:$0xff]   ;;  %v6518_v33 = vld [vmem:[#allocation6 + $0x470] sm:$0xff]  }
 0x12b   :  { %v5146_v35 = vsel %vm317_vm13, 1.0, %v6977_v10 }
 0x12c   :  { %5771 = vmatpush3.bf16.msra.mxu0 %v6471_v21  ;;  %5793 = vmatpush3.bf16.msra.mxu1 %v6473_v22  ;;  %v320_v38 = vpack.c.bf16 %v5146_v35, %v5146_v35  ;;  %v6993_v21 = vmov 49   ;;  %v6513_v22 = vld [vmem:[#allocation6 + $0x4a0] sm:$0xff]   ;;  %v6519_v35 = vld [vmem:[#allocation6 + $0x430] sm:$0xff]  }
 0x12d   :  { %5772 = vmatprep.subr.bf16.mxu0 %v6474_v24  ;;  %5794 = vmatprep.subr.bf16.mxu1 %v6476_v25  ;;  %v332_v25 = vpop.permute.xlu0 %331 }
 0x12e   :  { %321 = vst [vmem:[#allocation2 + $0x78] sm:$0xf] %v320_v38  ;;  %v324_v43 = vpop.permute.xlu1 %323  ;;  %6349 = vset.pattern.permute.xlu0 %v6993_v21  ;;  %6348 = vset.pattern.permute.xlu1 %v6993_v21  ;;  %vm333_vm1 = vcmp.eq.s32.totalorder %v7110_v5, %v332_v25  ;;  %v6522_v38 = vld [vmem:[#allocation6 + $0x478] sm:$0xff]  }
 0x12f   :  { %vm325_vm15 = vcmp.eq.s32.totalorder %v7110_v5, %v324_v43  ;;  %467 = vperm.xlu1 %6348, %v6817_v17   ;;  %v5148_v28 = vsel %vm333_vm1, 1.0, %v6977_v10 }
 0x130   :  { %5773 = vmatpush3.bf16.msra.mxu0 %v6475_v26  ;;  %5795 = vmatpush3.bf16.msra.mxu1 %v6477_v30  ;;  %v5147_v48 = vsel %vm325_vm15, 1.0, %v6977_v10  ;;  %v6516_v26 = vld [vmem:[#allocation6 + $0x4e8] sm:$0xff]   ;;  %v336_v31 = vpack.c.bf16 %v5148_v28, %v5148_v28  ;;  %v6558_v28 = vld [vmem:[#allocation6 + $0x578] sm:$0xff]  }
 0x131   :  { %5774 = vmatprep.subr.bf16.mxu0 %v6478_v32  ;;  %5796 = vmatprep.subr.bf16.mxu1 %v6480_v34  ;;  %v328_v50 = vpack.c.bf16 %v5147_v48, %v5147_v48  ;;  %v6517_v32 = vld [vmem:[#allocation6 + $0x4a8] sm:$0xff]   ;;  %v6520_v34 = vld [vmem:[#allocation6 + $0x4f0] sm:$0xff]   ;;  %v6531_v48 = vld [vmem:[#allocation6 + $0x500] sm:$0xff]  }
 0x132   :  { %337 = vst [vmem:[#allocation2 + $0x80] sm:$0xf] %v336_v31 }
 0x133   :  { %329 = vst [vmem:[#allocation2 + $0x7c] sm:$0xf] %v328_v50  ;;  %v340_v24 = vpop.permute.xlu1 %339  ;;  %v7246_v50 = vld [vmem:[#allocation2 + $0x50] sm:$0xff] }
 0x134   :  { %5775 = vmatpush3.bf16.msra.mxu0 %v6479_v36  ;;  %5797 = vmatpush3.bf16.msra.mxu1 %v6481_v37  ;;  %vm341_vm0 = vcmp.eq.s32.totalorder %v7110_v5, %v340_v24  ;;  %v6521_v36 = vld [vmem:[#allocation6 + $0x4b0] sm:$0xff]  }
 0x135   :  { %5776 = vmatprep.subr.bf16.mxu0 %v6482_v40  ;;  %5798 = vmatprep.subr.bf16.mxu1 %v6484_v42  ;;  %v5149_v27 = vsel %vm341_vm0, 1.0, %v6977_v10  ;;  %v356_v40 = vpop.permute.xlu0 %355  ;;  %v6523_v42 = vld [vmem:[#allocation6 + $0x438] sm:$0xff]   ;;  %v6555_v24 = vld [vmem:[#allocation6 + $0x530] sm:$0xff]  }
 0x136   :  { %v344_v30 = vpack.c.bf16 %v5149_v27, %v5149_v27  ;;  %vm357_vm3 = vcmp.eq.s32.totalorder %v7110_v5, %v356_v40  ;;  %v6557_v27 = vld [vmem:[#allocation6 + $0x5b0] sm:$0xff]   ;;  %v5186_v40 = vcombine.low %v7246_v50, %v7246_v50 }
 0x137   :  { %v5151_v43 = vsel %vm357_vm3, 1.0, %v6977_v10 }
 0x138   :  { %5777 = vmatpush3.bf16.msra.mxu0 %v6483_v44  ;;  %5799 = vmatpush3.bf16.msra.mxu1 %v6487_v47  ;;  %345 = vst [vmem:[#allocation2 + $0x84] sm:$0xf] %v344_v30  ;;  %v348_v2 = vpop.permute.xlu1 %347  ;;  %v6527_v44 = vld [vmem:[#allocation6 + $0x4b8] sm:$0xff]   ;;  %v360_v45 = vpack.c.bf16 %v5151_v43, %v5151_v43  ;;  %v6532_v47 = vld [vmem:[#allocation6 + $0x5c0] sm:$0xff]   ;;  %v6570_v43 = vld [vmem:[#allocation6 + $0x648] sm:$0xff]  }
 0x139   :  { %5778 = vmatprep.subr.bf16.mxu0 %v6488_v49  ;;  %5800 = vmatprep.subr.bf16.mxu1 %v6490_v52  ;;  %vm349_vm2 = vcmp.eq.s32.totalorder %v7110_v5, %v348_v2  ;;  %v6533_v49 = vld [vmem:[#allocation6 + $0x580] sm:$0xff]   ;;  %v5182_v52 = vcombine.low %v7226_v62, %v7226_v62  ;;  %v6537_v62 = vld [vmem:[#allocation6 + $0x588] sm:$0xff]   ;;  %v6560_v30 = vld [vmem:[#allocation6 + $0x5f8] sm:$0xff]  }
 0x13a   :  { %v5150_v37 = vsel %vm349_vm2, 1.0, %v6977_v10  ;;  %361 = vst [vmem:[#allocation2 + $0x8c] sm:$0xf] %v360_v45  ;;  %v6563_v2 = vld [vmem:[#allocation6 + $0x5b8] sm:$0xff]   ;;  %v6571_v45 = vld [vmem:[#allocation6 + $0x608] sm:$0xff]   ;;  %vm6994_vm2 = vmmov 0  }
 0x13b   :  { %v352_v39 = vpack.c.bf16 %v5150_v37, %v5150_v37  ;;  %v6567_v37 = vld [vmem:[#allocation6 + $0x600] sm:$0xff]  }
 0x13c   :  { %5779 = vmatpush3.bf16.msra.mxu0 %v6489_v53  ;;  %5801 = vmatpush3.bf16.msra.mxu1 %v6491_v54  ;;  %v5184_v53 = vcombine.low %v7230_v63, %v7230_v63  ;;  %v7252_v54 = vld [vmem:[#allocation2 + $0x58] sm:$0xff]  ;;  %v6538_v63 = vld [vmem:[#allocation6 + $0x550] sm:$0xff]  }
 0x13d   :  { %5808 = vmatprep.subr.bf16.mxu0 %v6492_v56  ;;  %5830 = vmatprep.subr.bf16.mxu1 %v6496_v57  ;;  %353 = vst [vmem:[#allocation2 + $0x88] sm:$0xf] %v352_v39  ;;  %v6534_v56 = vld [vmem:[#allocation6 + $0x548] sm:$0xff]   ;;  %v7266_v39 = vld [vmem:[#allocation2 + $0x60] sm:$0xff] }
 0x13e   :  { %v6536_v57 = vld [vmem:[#allocation6 + $0x5c8] sm:$0xff]  }
 0x13f   :  { %4151 = vmatmul.mubr.bf16.vlgmr.msra.gmra.mrb[12].mxu0 %v5178_v1  ;;  %4191 = vmatmul.mubr.bf16.vlgmr.msra.gmra.mrb[12].mxu1 %v5180_v8  ;;  %v5189_v8 = vcombine.high %v7252_v54, %v7252_v54  ;;  %v6539_v1 = vld [vmem:[#allocation6 + $0x510] sm:$0xff]  }
 0x140   :  { %5809 = vmatpush3.bf16.msra.mxu0 %v6495_v58  ;;  %5831 = vmatpush3.bf16.msra.mxu1 %v6497_v60  ;;  %v6535_v58 = vld [vmem:[#allocation6 + $0x508] sm:$0xff]   ;;  %v5187_v60 = vcombine.high %v7246_v50, %v7246_v50  ;;  %v6576_v50 = vld [vmem:[#allocation6 + $0x6d0] sm:$0xff]  }
 0x141   :  { %5810 = vmatprep.subr.bf16.mxu0 %v6498_v0  ;;  %5832 = vmatprep.subr.bf16.mxu1 %v6500_v3  ;;  %v6540_v0 = vld [vmem:[#allocation6 + $0x5d0] sm:$0xff]  }
 0x142   :  { %4230 = vmatprep.mubr.bf16.mxu0 %v5183_v7  ;;  %4270 = vmatprep.mubr.bf16.mxu1 %v5185_v9  ;;  %v6541_v3 = vld [vmem:[#allocation6 + $0x590] sm:$0xff]   ;;  %v6544_v7 = vld [vmem:[#allocation6 + $0x5d8] sm:$0xff]  }
 0x143   :  { %v6543_v9 = vld [vmem:[#allocation6 + $0x518] sm:$0xff]  }
 0x144   :  { %5811 = vmatpush3.bf16.msra.mxu0 %v6499_v6  ;;  %5833 = vmatpush3.bf16.msra.mxu1 %v6501_v51  ;;  %v6542_v6 = vld [vmem:[#allocation6 + $0x558] sm:$0xff]  }
 0x145   :  { %5812 = vmatprep.subr.bf16.mxu0 %v6502_v55  ;;  %5834 = vmatprep.subr.bf16.mxu1 %v6504_v59  ;;  %v6545_v55 = vld [vmem:[#allocation6 + $0x598] sm:$0xff]   ;;  %v6546_v59 = vld [vmem:[#allocation6 + $0x560] sm:$0xff]  }
 0x148   :  { %5813 = vmatpush3.bf16.msra.mxu0 %v6503_v61  ;;  %5835 = vmatpush3.bf16.msra.mxu1 %v6505_v11  ;;  %v6548_v11 = vld [vmem:[#allocation6 + $0x5e0] sm:$0xff]  }
 0x149   :  { %5814 = vmatprep.subr.bf16.mxu0 %v6506_v12  ;;  %5836 = vmatprep.subr.bf16.mxu1 %v6508_v13  ;;  %v6547_v13 = vld [vmem:[#allocation6 + $0x520] sm:$0xff]  }
 0x14c   :  { %5815 = vmatpush3.bf16.msra.mxu0 %v6507_v14  ;;  %5837 = vmatpush3.bf16.msra.mxu1 %v6509_v16  ;;  %v364_v51 = vpop.permute.xlu1 %363  ;;  %v6549_v14 = vld [vmem:[#allocation6 + $0x5a0] sm:$0xff]   ;;  %v6552_v16 = vld [vmem:[#allocation6 + $0x5e8] sm:$0xff]  }
 0x14d   :  { %5816 = vmatprep.subr.bf16.mxu0 %v6510_v18  ;;  %5838 = vmatprep.subr.bf16.mxu1 %v6512_v19  ;;  %vm365_vm4 = vcmp.eq.s32.totalorder %v7110_v5, %v364_v51  ;;  %v6551_v18 = vld [vmem:[#allocation6 + $0x528] sm:$0xff]  }
 0x14e   :  { %v5152_v61 = vsel %vm365_vm4, 1.0, %v6977_v10  ;;  %v6587_v51 = vld [vmem:[#allocation6 + $0x628] sm:$0xff]  }
 0x14f   :  { %v368_v12 = vpack.c.bf16 %v5152_v61, %v5152_v61 }
 0x150   :  { %5817 = vmatpush3.bf16.msra.mxu0 %v6511_v20  ;;  %5839 = vmatpush3.bf16.msra.mxu1 %v6513_v22  ;;  %v6553_v20 = vld [vmem:[#allocation6 + $0x5a8] sm:$0xff]   ;;  %v6554_v22 = vld [vmem:[#allocation6 + $0x570] sm:$0xff]  }
 0x151   :  { %5818 = vmatprep.subr.bf16.mxu0 %v6514_v23  ;;  %5840 = vmatprep.subr.bf16.mxu1 %v6516_v26  ;;  %369 = vst [vmem:[#allocation2 + $0x90] sm:$0xf] %v368_v12  ;;  %v6556_v23 = vld [vmem:[#allocation6 + $0x5f0] sm:$0xff]  }
 0x154   :  { %5819 = vmatpush3.bf16.msra.mxu0 %v6515_v29  ;;  %5841 = vmatpush3.bf16.msra.mxu1 %v6517_v32 }
 0x155   :  { %5820 = vmatprep.subr.bf16.mxu0 %v6518_v33  ;;  %5842 = vmatprep.subr.bf16.mxu1 %v6520_v34  ;;  %v6559_v33 = vld [vmem:[#allocation6 + $0x538] sm:$0xff]  }
 0x156   :  { %v372_v17 = vpop.permute.xlu1 %371 }
 0x157   :  { %vm373_vm5 = vcmp.eq.s32.totalorder %v7110_v5, %v372_v17 }
 0x158   :  { %5821 = vmatpush3.bf16.msra.mxu0 %v6519_v35  ;;  %5843 = vmatpush3.bf16.msra.mxu1 %v6521_v36  ;;  %v5153_v19 = vsel %vm373_vm5, 1.0, %v6977_v10  ;;  %v6564_v35 = vld [vmem:[#allocation6 + $0x640] sm:$0xff]  }
 0x159   :  { %5822 = vmatprep.subr.bf16.mxu0 %v6522_v38  ;;  %5844 = vmatprep.subr.bf16.mxu1 %v6524_v41  ;;  %v376_v21 = vpack.c.bf16 %v5153_v19, %v5153_v19  ;;  %v6568_v36 = vld [vmem:[#allocation6 + $0x6c0] sm:$0xff]   ;;  %v5188_v41 = vcombine.low %v7252_v54, %v7252_v54  ;;  %v6578_v54 = vld [vmem:[#allocation6 + $0x658] sm:$0xff]  }
 0x15a   :  { %v6569_v38 = vld [vmem:[#allocation6 + $0x680] sm:$0xff]   ;;  %v6596_v19 = vld [vmem:[#allocation6 + $0x678] sm:$0xff]  }
 0x15b   :  { %377 = vst [vmem:[#allocation2 + $0x94] sm:$0xf] %v376_v21  ;;  %v6598_v21 = vld [vmem:[#allocation6 + $0x6f8] sm:$0xff]  }
 0x15c   :  { %5823 = vmatpush3.bf16.msra.mxu0 %v6523_v42  ;;  %5845 = vmatpush3.bf16.msra.mxu1 %v6527_v44  ;;  %v7272_v42 = vld [vmem:[#allocation2 + $0x68] sm:$0xff]  ;;  %v6572_v44 = vld [vmem:[#allocation6 + $0x6c8] sm:$0xff]  }
 0x15d   :  { %5852 = vmatprep.subr.bf16.mxu0 %v6528_v46  ;;  %5874 = vmatprep.subr.bf16.mxu1 %v6532_v47  ;;  %v5191_v46 = vcombine.high %v7266_v39, %v7266_v39  ;;  %v5193_v47 = vcombine.high %v7272_v42, %v7272_v42 }
 0x15f   :  { %4231 = vmatmul.mubr.bf16.vlgmr.msra.gmra.mrb[16].mxu0 %v5182_v52  ;;  %4271 = vmatmul.mubr.bf16.vlgmr.msra.gmra.mrb[16].mxu1 %v5184_v53  ;;  %v6575_v52 = vld [vmem:[#allocation6 + $0x610] sm:$0xff]  }
 0x160   :  { %5853 = vmatpush3.bf16.msra.mxu0 %v6531_v48  ;;  %5875 = vmatpush3.bf16.msra.mxu1 %v6533_v49  ;;  %v6573_v48 = vld [vmem:[#allocation6 + $0x688] sm:$0xff]   ;;  %v6574_v49 = vld [vmem:[#allocation6 + $0x650] sm:$0xff]  }
 0x161   :  { %5854 = vmatprep.subr.bf16.mxu0 %v6534_v56  ;;  %5876 = vmatprep.subr.bf16.mxu1 %v6536_v57  ;;  %v6577_v53 = vld [vmem:[#allocation6 + $0x690] sm:$0xff]   ;;  %v6580_v56 = vld [vmem:[#allocation6 + $0x6d8] sm:$0xff]  }
 0x162   :  { %4310 = vmatprep.mubr.bf16.mxu0 %v5187_v60  ;;  %4350 = vmatprep.mubr.bf16.mxu1 %v5189_v8  ;;  %v388_v25 = vpop.permute.xlu1 %387  ;;  %v6579_v57 = vld [vmem:[#allocation6 + $0x618] sm:$0xff]   ;;  %v6582_v60 = vld [vmem:[#allocation6 + $0x660] sm:$0xff]  }
 0x163   :  { %vm389_vm6 = vcmp.eq.s32.totalorder %v7110_v5, %v388_v25  ;;  %v6600_v25 = vld [vmem:[#allocation6 + $0x740] sm:$0xff]  }
 0x164   :  { %5855 = vmatpush3.bf16.msra.mxu0 %v6535_v58  ;;  %5877 = vmatpush3.bf16.msra.mxu1 %v6537_v62  ;;  %v5155_v29 = vsel %vm389_vm6, 1.0, %v6977_v10  ;;  %v6581_v58 = vld [vmem:[#allocation6 + $0x698] sm:$0xff]   ;;  %v6584_v62 = vld [vmem:[#allocation6 + $0x6e0] sm:$0xff]  }
 0x165   :  { %5856 = vmatprep.subr.bf16.mxu0 %v6538_v63  ;;  %5878 = vmatprep.subr.bf16.mxu1 %v6540_v0  ;;  %v380_v26 = vpop.permute.xlu0 %379  ;;  %v392_v31 = vpack.c.bf16 %v5155_v29, %v5155_v29  ;;  %v6583_v0 = vld [vmem:[#allocation6 + $0x620] sm:$0xff]  }
 0x166   :  { %vm381_vm7 = vcmp.eq.s32.totalorder %v7110_v5, %v380_v26  ;;  %v6604_v26 = vld [vmem:[#allocation6 + $0x7c0] sm:$0xff]  }
 0x167   :  { %v5154_v32 = vsel %vm381_vm7, 1.0, %v6977_v10  ;;  %393 = vst [vmem:[#allocation2 + $0x9c] sm:$0xf] %v392_v31  ;;  %v7286_v29 = vld [vmem:[#allocation2 + $0x70] sm:$0xff]  ;;  %v7290_v31 = vld [vmem:[#allocation2 + $0x78] sm:$0xff] }
 0x168   :  { %5857 = vmatpush3.bf16.msra.mxu0 %v6539_v1  ;;  %5879 = vmatpush3.bf16.msra.mxu1 %v6541_v3  ;;  %v384_v34 = vpack.c.bf16 %v5154_v32, %v5154_v32  ;;  %v6585_v1 = vld [vmem:[#allocation6 + $0x6a0] sm:$0xff]   ;;  %v6606_v32 = vld [vmem:[#allocation6 + $0x748] sm:$0xff]  }
 0x169   :  { %5858 = vmatprep.subr.bf16.mxu0 %v6542_v6  ;;  %5880 = vmatprep.subr.bf16.mxu1 %v6544_v7  ;;  %v6586_v6 = vld [vmem:[#allocation6 + $0x668] sm:$0xff]  }
 0x16a   :  { %385 = vst [vmem:[#allocation2 + $0x98] sm:$0xf] %v384_v34  ;;  %v6588_v7 = vld [vmem:[#allocation6 + $0x6e8] sm:$0xff]  }
 0x16b   :  { %v6608_v34 = vld [vmem:[#allocation6 + $0x7c8] sm:$0xff]  }
 0x16c   :  { %5859 = vmatpush3.bf16.msra.mxu0 %v6543_v9  ;;  %5881 = vmatpush3.bf16.msra.mxu1 %v6545_v55 }
 0x16d   :  { %5860 = vmatprep.subr.bf16.mxu0 %v6546_v59  ;;  %5882 = vmatprep.subr.bf16.mxu1 %v6548_v11  ;;  %v6589_v59 = vld [vmem:[#allocation6 + $0x6a8] sm:$0xff]   ;;  %v6590_v11 = vld [vmem:[#allocation6 + $0x670] sm:$0xff]  }
 0x16e   :  { %v396_v8 = vpop.permute.xlu1 %395 }
 0x16f   :  { %vm397_vm8 = vcmp.eq.s32.totalorder %v7110_v5, %v396_v8 }
 0x170   :  { %5861 = vmatpush3.bf16.msra.mxu0 %v6547_v13  ;;  %5883 = vmatpush3.bf16.msra.mxu1 %v6549_v14  ;;  %v5156_v63 = vsel %vm397_vm8, 1.0, %v6977_v10  ;;  %v6592_v14 = vld [vmem:[#allocation6 + $0x6f0] sm:$0xff]  }
 0x171   :  { %5862 = vmatprep.subr.bf16.mxu0 %v6550_v15  ;;  %5884 = vmatprep.subr.bf16.mxu1 %v6552_v16  ;;  %v400_v3 = vpack.c.bf16 %v5156_v63, %v5156_v63  ;;  %v6591_v16 = vld [vmem:[#allocation6 + $0x630] sm:$0xff]   ;;  %v6625_v63 = vld [vmem:[#allocation6 + $0x7a8] sm:$0xff]  }
 0x172   :  { %v404_v55 = vpop.permute.xlu0 %403 }
 0x173   :  { %401 = vst [vmem:[#allocation2 + $0xa0] sm:$0xf] %v400_v3  ;;  %vm405_vm10 = vcmp.eq.s32.totalorder %v7110_v5, %v404_v55  ;;  %v6628_v3 = vld [vmem:[#allocation6 + $0x7f0] sm:$0xff]  }
 0x174   :  { %5863 = vmatpush3.bf16.msra.mxu0 %v6551_v18  ;;  %5885 = vmatpush3.bf16.msra.mxu1 %v6553_v20  ;;  %v5157_v13 = vsel %vm405_vm10, 1.0, %v6977_v10  ;;  %v6595_v18 = vld [vmem:[#allocation6 + $0x6b0] sm:$0xff]  }
 0x175   :  { %5864 = vmatprep.subr.bf16.mxu0 %v6554_v22  ;;  %5886 = vmatprep.subr.bf16.mxu1 %v6556_v23  ;;  %v412_v9 = vpop.permute.xlu1 %411  ;;  %v408_v15 = vpack.c.bf16 %v5157_v13, %v5157_v13  ;;  %v6597_v23 = vld [vmem:[#allocation6 + $0x638] sm:$0xff]   ;;  %v6629_v55 = vld [vmem:[#allocation6 + $0x7b0] sm:$0xff]  }
 0x176   :  { %vm413_vm9 = vcmp.eq.s32.totalorder %v7110_v5, %v412_v9 }
 0x177   :  { %v5158_v61 = vsel %vm413_vm9, 1.0, %v6977_v10  ;;  %409 = vst [vmem:[#allocation2 + $0xa4] sm:$0xf] %v408_v15  ;;  %v6632_v15 = vld [vmem:[#allocation6 + $0x7f8] sm:$0xff]  }
 0x178   :  { %5865 = vmatpush3.bf16.msra.mxu0 %v6555_v24  ;;  %5887 = vmatpush3.bf16.msra.mxu1 %v6557_v27  ;;  %v416_v12 = vpack.c.bf16 %v5158_v61, %v5158_v61  ;;  %v6599_v24 = vld [vmem:[#allocation6 + $0x6b8] sm:$0xff]   ;;  %v6603_v27 = vld [vmem:[#allocation6 + $0x700] sm:$0xff]  }
 0x179   :  { %5866 = vmatprep.subr.bf16.mxu0 %v6558_v28  ;;  %5888 = vmatprep.subr.bf16.mxu1 %v6560_v30  ;;  %v6605_v28 = vld [vmem:[#allocation6 + $0x780] sm:$0xff]   ;;  %v5192_v30 = vcombine.low %v7272_v42, %v7272_v42  ;;  %v6614_v42 = vld [vmem:[#allocation6 + $0x758] sm:$0xff]  }
 0x17a   :  { %417 = vst [vmem:[#allocation2 + $0xa8] sm:$0xf] %v416_v12  ;;  %v420_v17 = vpop.permute.xlu1 %419 }
 0x17b   :  { %vm421_vm11 = vcmp.eq.s32.totalorder %v7110_v5, %v420_v17 }
 0x17c   :  { %5867 = vmatpush3.bf16.msra.mxu0 %v6559_v33  ;;  %5889 = vmatpush3.bf16.msra.mxu1 %v6563_v2  ;;  %v5159_v20 = vsel %vm421_vm11, 1.0, %v6977_v10  ;;  %v5190_v33 = vcombine.low %v7266_v39, %v7266_v39  ;;  %v6607_v2 = vld [vmem:[#allocation6 + $0x708] sm:$0xff]   ;;  %v6611_v39 = vld [vmem:[#allocation6 + $0x710] sm:$0xff]  }
 0x17d   :  { %5896 = vmatprep.subr.bf16.mxu0 %v6564_v35  ;;  %5918 = vmatprep.subr.bf16.mxu1 %v6568_v36  ;;  %v424_v22 = vpack.c.bf16 %v5159_v20, %v5159_v20  ;;  %v5195_v35 = vcombine.high %v7286_v29, %v7286_v29  ;;  %v5197_v36 = vcombine.high %v7290_v31, %v7290_v31  ;;  %v6631_v20 = vld [vmem:[#allocation6 + $0x738] sm:$0xff]  }
 0x17f   :  { %4311 = vmatmul.mubr.bf16.vlgmr.msra.gmra.mrb[20].mxu0 %v5186_v40  ;;  %4351 = vmatmul.mubr.bf16.vlgmr.msra.gmra.mrb[20].mxu1 %v5188_v41  ;;  %425 = vst [vmem:[#allocation2 + $0xac] sm:$0xf] %v424_v22  ;;  %v6612_v40 = vld [vmem:[#allocation6 + $0x7d0] sm:$0xff]  }
 0x180   :  { %5897 = vmatpush3.bf16.msra.mxu0 %v6567_v37  ;;  %5919 = vmatpush3.bf16.msra.mxu1 %v6569_v38  ;;  %v6609_v37 = vld [vmem:[#allocation6 + $0x788] sm:$0xff]   ;;  %v6610_v38 = vld [vmem:[#allocation6 + $0x750] sm:$0xff]  }
 0x181   :  { %5898 = vmatprep.subr.bf16.mxu0 %v6570_v43  ;;  %5920 = vmatprep.subr.bf16.mxu1 %v6572_v44  ;;  %v6613_v41 = vld [vmem:[#allocation6 + $0x790] sm:$0xff]   ;;  %v6616_v43 = vld [vmem:[#allocation6 + $0x7d8] sm:$0xff]  }
 0x182   :  { %4390 = vmatprep.mubr.bf16.mxu0 %v5191_v46  ;;  %4430 = vmatprep.mubr.bf16.mxu1 %v5193_v47  ;;  %v6615_v44 = vld [vmem:[#allocation6 + $0x718] sm:$0xff]   ;;  %v6618_v46 = vld [vmem:[#allocation6 + $0x760] sm:$0xff]  }
 0x183   :  { %v6620_v47 = vld [vmem:[#allocation6 + $0x7e0] sm:$0xff]  }
 0x184   :  { %5899 = vmatpush3.bf16.msra.mxu0 %v6571_v45  ;;  %5921 = vmatpush3.bf16.msra.mxu1 %v6573_v48  ;;  %v6617_v45 = vld [vmem:[#allocation6 + $0x798] sm:$0xff]   ;;  %v6619_v48 = vld [vmem:[#allocation6 + $0x720] sm:$0xff]  }
 0x185   :  { %5900 = vmatprep.subr.bf16.mxu0 %v6574_v49  ;;  %5922 = vmatprep.subr.bf16.mxu1 %v6576_v50  ;;  %v7299_v49 = vshrl.u32 %v72_v4, 7  ;;  %v6621_v50 = vld [vmem:[#allocation6 + $0x7a0] sm:$0xff]   ;;  %v6623_v4 = vld [vmem:[#allocation6 + $0x728] sm:$0xff]  }
 0x188   :  { %5901 = vmatpush3.bf16.msra.mxu0 %v6575_v52  ;;  %5923 = vmatpush3.bf16.msra.mxu1 %v6577_v53  ;;  %v6622_v52 = vld [vmem:[#allocation6 + $0x768] sm:$0xff]  }
 0x189   :  { %5902 = vmatprep.subr.bf16.mxu0 %v6578_v54  ;;  %5924 = vmatprep.subr.bf16.mxu1 %v6580_v56  ;;  %v428_v54 = vpop.permute.xlu0 %427  ;;  %v71_v56 = vld [vmem:[#allocation9] sm:$0x7] }
 0x18a   :  { %vm429_vm13 = vcmp.eq.s32.totalorder %v7110_v5, %v428_v54 }
 0x18c   :  { %5903 = vmatpush3.bf16.msra.mxu0 %v6579_v57  ;;  %5925 = vmatpush3.bf16.msra.mxu1 %v6581_v58  ;;  %v6624_v57 = vld [vmem:[#allocation6 + $0x7e8] sm:$0xff]   ;;  %v1301_v58 = vsub.s32 0, %v7299_v49 }
 0x18d   :  { %5904 = vmatprep.subr.bf16.mxu0 %v6582_v60  ;;  %5926 = vmatprep.subr.bf16.mxu1 %v6584_v62  ;;  %v5160_v62 = vsel %vm429_vm13, 1.0, %v6977_v10  ;;  %v452_v22 = vpop.permute.xlu0 %451 }
 0x18e   :  { %v436_v53 = vpop.permute.xlu1 %435  ;;  %vm453_vm15 = vcmp.eq.s32.totalorder %v7110_v5, %v452_v22 }
 0x18f   :  { %vm437_vm12 = vcmp.eq.s32.totalorder %v7110_v5, %v436_v53  ;;  %v6654_v53 = vld [vmem:[#allocation6 + $0x860] sm:$0xff]  }
 0x190   :  { %5905 = vmatpush3.bf16.msra.mxu0 %v6583_v0  ;;  %5927 = vmatpush3.bf16.msra.mxu1 %v6585_v1  ;;  %v5161_v60 = vsel %vm437_vm12, 1.0, %v6977_v10  ;;  %v6626_v0 = vld [vmem:[#allocation6 + $0x770] sm:$0xff]   ;;  %v432_v1 = vpack.c.bf16 %v5160_v62, %v5160_v62 }
 0x191   :  { %5906 = vmatprep.subr.bf16.mxu0 %v6586_v6  ;;  %5928 = vmatprep.subr.bf16.mxu1 %v6588_v7  ;;  %v440_v8 = vpack.c.bf16 %v5161_v60, %v5161_v60  ;;  %v1302_v7 = vrot.slane %v71_v56, %v1301_v58  ;;  %v6656_v56 = vld [vmem:[#allocation6 + $0x8e0] sm:$0xff]  }
 0x192   :  { %433 = vst [vmem:[#allocation2 + $0xb0] sm:$0xf] %v432_v1  ;;  %v6655_v58 = vld [vmem:[#allocation6 + $0x820] sm:$0xff]   ;;  %v6661_v1 = vld [vmem:[#allocation6 + $0x8a8] sm:$0xff]  }
 0x193   :  { %441 = vst [vmem:[#allocation2 + $0xb4] sm:$0xf] %v440_v8  ;;  %v6657_v60 = vld [vmem:[#allocation6 + $0x8a0] sm:$0xff]   ;;  %v6660_v8 = vld [vmem:[#allocation6 + $0x8e8] sm:$0xff]  }
 0x194   :  { %5907 = vmatpush3.bf16.msra.mxu0 %v6587_v51  ;;  %5929 = vmatpush3.bf16.msra.mxu1 %v6589_v59  ;;  %v6627_v51 = vld [vmem:[#allocation6 + $0x730] sm:$0xff]  }
 0x195   :  { %5908 = vmatprep.subr.bf16.mxu0 %v6590_v11  ;;  %5930 = vmatprep.subr.bf16.mxu1 %v6592_v14  ;;  %v6630_v14 = vld [vmem:[#allocation6 + $0x778] sm:$0xff]  }
 0x198   :  { %5909 = vmatpush3.bf16.msra.mxu0 %v6591_v16  ;;  %5931 = vmatpush3.bf16.msra.mxu1 %v6595_v18 }
 0x199   :  { %5910 = vmatprep.subr.bf16.mxu0 %v6596_v19  ;;  %5932 = vmatprep.subr.bf16.mxu1 %v6598_v21 }
 0x19a   :  { %v444_v21 = vpop.permute.xlu1 %443 }
 0x19b   :  { %vm445_vm14 = vcmp.eq.s32.totalorder %v7110_v5, %v444_v21  ;;  %v6671_v21 = vld [vmem:[#allocation6 + $0x8b8] sm:$0xff]  }
 0x19c   :  { %5911 = vmatpush3.bf16.msra.mxu0 %v6597_v23  ;;  %5933 = vmatpush3.bf16.msra.mxu1 %v6599_v24  ;;  %v6635_v23 = vld [vmem:[#allocation6 + $0x7b8] sm:$0xff]  }
 0x19d   :  { %5940 = vmatprep.subr.bf16.mxu0 %v6600_v25  ;;  %5962 = vmatprep.subr.bf16.mxu1 %v6604_v26  ;;  %v6636_v25 = vld [vmem:[#allocation6 + $0x840] sm:$0xff]   ;;  %v5162_v26 = vsel %vm445_vm14, 1.0, %v6977_v10 }
 0x19f   :  { %4391 = vmatmul.mubr.bf16.vlgmr.msra.gmra.mrb[24].mxu0 %v5190_v33  ;;  %4431 = vmatmul.mubr.bf16.vlgmr.msra.gmra.mrb[24].mxu1 %v5192_v30  ;;  %v5163_v30 = vsel %vm453_vm15, 1.0, %v6977_v10  ;;  %v6641_v33 = vld [vmem:[#allocation6 + $0x880] sm:$0xff]  }
 0x1a0   :  { %5941 = vmatpush3.bf16.msra.mxu0 %v6603_v27  ;;  %5963 = vmatpush3.bf16.msra.mxu1 %v6605_v28  ;;  %v6640_v27 = vld [vmem:[#allocation6 + $0x8c0] sm:$0xff]   ;;  %v448_v28 = vpack.c.bf16 %v5162_v26, %v5162_v26 }
 0x1a1   :  { %5942 = vmatprep.subr.bf16.mxu0 %v6606_v32  ;;  %5964 = vmatprep.subr.bf16.mxu1 %v6608_v34  ;;  %v6639_v32 = vld [vmem:[#allocation6 + $0x800] sm:$0xff]   ;;  %v7312_v34 = vld [vmem:[#allocation2 + $0x80] sm:$0xff] }
 0x1a2   :  { %4470 = vmatprep.mubr.bf16.mxu0 %v5195_v35  ;;  %4510 = vmatprep.mubr.bf16.mxu1 %v5197_v36  ;;  %v5194_v35 = vcombine.low %v7286_v29, %v7286_v29  ;;  %v5196_v36 = vcombine.low %v7290_v31, %v7290_v31  ;;  %449 = vst [vmem:[#allocation2 + $0xb8] sm:$0xf] %v448_v28  ;;  %v6645_v31 = vld [vmem:[#allocation6 + $0x888] sm:$0xff]   ;;  %v6675_v26 = vld [vmem:[#allocation6 + $0x900] sm:$0xff]  }
 0x1a3   :  { %v7331_v28 = vld [vmem:[#allocation2 + $0x90] sm:$0xff] }
 0x1a4   :  { %5943 = vmatpush3.bf16.msra.mxu0 %v6607_v2  ;;  %5965 = vmatpush3.bf16.msra.mxu1 %v6609_v37  ;;  %v456_v2 = vpack.c.bf16 %v5163_v30, %v5163_v30  ;;  %v7318_v37 = vld [vmem:[#allocation2 + $0x88] sm:$0xff]  ;;  %v5198_v30 = vcombine.low %v7312_v34, %v7312_v34 }
 0x1a5   :  { %5944 = vmatprep.subr.bf16.mxu0 %v6610_v38  ;;  %5966 = vmatprep.subr.bf16.mxu1 %v6612_v40  ;;  %v6642_v38 = vld [vmem:[#allocation6 + $0x848] sm:$0xff]   ;;  %v5201_v29 = vcombine.high %v7318_v37, %v7318_v37 }
 0x1a6   :  { %457 = vst [vmem:[#allocation2 + $0xbc] sm:$0xf] %v456_v2  ;;  %v6644_v40 = vld [vmem:[#allocation6 + $0x8c8] sm:$0xff]  }
 0x1a7   :  { %v6680_v2 = vld [vmem:[#allocation6 + $0x9c8] sm:$0xff]  }
 0x1a8   :  { %5945 = vmatpush3.bf16.msra.mxu0 %v6611_v39  ;;  %5967 = vmatpush3.bf16.msra.mxu1 %v6613_v41  ;;  %v6643_v39 = vld [vmem:[#allocation6 + $0x808] sm:$0xff]   ;;  %v5199_v41 = vcombine.high %v7312_v34, %v7312_v34 }
 0x1a9   :  { %5946 = vmatprep.subr.bf16.mxu0 %v6614_v42  ;;  %5968 = vmatprep.subr.bf16.mxu1 %v6616_v43  ;;  %v6646_v42 = vld [vmem:[#allocation6 + $0x850] sm:$0xff]   ;;  %v6681_v34 = vld [vmem:[#allocation6 + $0x988] sm:$0xff]  }
 0x1aa   :  { %v6648_v43 = vld [vmem:[#allocation6 + $0x8d0] sm:$0xff]  }
 0x1ac   :  { %5947 = vmatpush3.bf16.msra.mxu0 %v6615_v44  ;;  %5969 = vmatpush3.bf16.msra.mxu1 %v6617_v45  ;;  %v6647_v44 = vld [vmem:[#allocation6 + $0x810] sm:$0xff]  }
 0x1ad   :  { %5948 = vmatprep.subr.bf16.mxu0 %v6618_v46  ;;  %5970 = vmatprep.subr.bf16.mxu1 %v6620_v47  ;;  %v6649_v45 = vld [vmem:[#allocation6 + $0x890] sm:$0xff]   ;;  %v6650_v46 = vld [vmem:[#allocation6 + $0x858] sm:$0xff]  }
 0x1ae   :  { %v6652_v47 = vld [vmem:[#allocation6 + $0x8d8] sm:$0xff]  }
 0x1b0   :  { %5949 = vmatpush3.bf16.msra.mxu0 %v6619_v48  ;;  %5971 = vmatpush3.bf16.msra.mxu1 %v6621_v50  ;;  %v6651_v48 = vld [vmem:[#allocation6 + $0x818] sm:$0xff]   ;;  %v460_v50 = vpop.permute.xlu1 %459 }
 0x1b1   :  { %5950 = vmatprep.subr.bf16.mxu0 %v6622_v52  ;;  %5972 = vmatprep.subr.bf16.mxu1 %v6624_v57  ;;  %v6653_v52 = vld [vmem:[#allocation6 + $0x898] sm:$0xff]   ;;  %vm461_vm0 = vcmp.eq.s32.totalorder %v7110_v5, %v460_v50  ;;  %v6696_v50 = vld [vmem:[#allocation6 + $0x9e8] sm:$0xff]  }
 0x1b2   :  { %v5648_v6 = vpop.f32.mrb[0].mxu0  ;;  %v5670_v9 = vpop.f32.mrb[0].mxu1  ;;  %v5164_v54 = vsel %vm461_vm0, 1.0, %v6977_v10 }
 0x1b3   :  { %v5649_v59 = vpop.f32.mrb[1].mxu0  ;;  %v5671_v61 = vpop.f32.mrb[1].mxu1  ;;  %v464_v57 = vpack.c.bf16 %v5164_v54, %v5164_v54  ;;  %v6698_v54 = vld [vmem:[#allocation6 + $0x970] sm:$0xff]  }
 0x1b4   :  { %v5650_v11 = vadd.f32 %v5649_v59, %v5648_v6  ;;  %5951 = vmatpush3.bf16.msra.mxu0 %v6623_v4  ;;  %v5651_v12 = vpop.f32.mrb[2].mxu0  ;;  %v5672_v13 = vadd.f32 %v5671_v61, %v5670_v9  ;;  %5973 = vmatpush3.bf16.msra.mxu1 %v6625_v63  ;;  %v5673_v16 = vpop.f32.mrb[2].mxu1  ;;  %v6658_v4 = vld [vmem:[#allocation6 + $0x868] sm:$0xff]   ;;  %v6662_v6 = vld [vmem:[#allocation6 + $0x870] sm:$0xff]  }
 0x1b5   :  { %v5652_v17 = vpop.f32.mrb[3].mxu0  ;;  %5952 = vmatprep.subr.bf16.mxu0 %v6626_v0  ;;  %5974 = vmatprep.subr.bf16.mxu1 %v6628_v3  ;;  %v5674_v18 = vpop.f32.mrb[3].mxu1  ;;  %465 = vst [vmem:[#allocation2 + $0xc0] sm:$0xf] %v464_v57  ;;  %v6659_v63 = vld [vmem:[#allocation6 + $0x828] sm:$0xff]   ;;  %v6663_v61 = vld [vmem:[#allocation6 + $0x830] sm:$0xff]  }
 0x1b6   :  { %v3913_v19 = vadd.f32 %v5650_v11, %v1302_v7  ;;  %v468_v62 = vpop.permute.xlu1 %467  ;;  %v6664_v7 = vld [vmem:[#allocation6 + $0x8f0] sm:$0xff]  }
 0x1b7   :  { %vm469_vm1 = vcmp.eq.s32.totalorder %v7110_v5, %v468_v62  ;;  %v6665_v11 = vld [vmem:[#allocation6 + $0x8b0] sm:$0xff]  }
 0x1b8   :  { %v7308_v24 = vadd.f32 %v5672_v13, %v3913_v19  ;;  %5953 = vmatpush3.bf16.msra.mxu0 %v6627_v51  ;;  %5975 = vmatpush3.bf16.msra.mxu1 %v6629_v55  ;;  %v5165_v0 = vsel %vm469_vm1, 1.0, %v6977_v10 }
 0x1b9   :  { %5954 = vmatprep.subr.bf16.mxu0 %v6630_v14  ;;  %5976 = vmatprep.subr.bf16.mxu1 %v6632_v15  ;;  %v472_v3 = vpack.c.bf16 %v5165_v0, %v5165_v0  ;;  %v6666_v14 = vld [vmem:[#allocation6 + $0x878] sm:$0xff]   ;;  %v6699_v0 = vld [vmem:[#allocation6 + $0x930] sm:$0xff]  }
 0x1ba   :  { %v6668_v15 = vld [vmem:[#allocation6 + $0x8f8] sm:$0xff]  }
 0x1bb   :  { %473 = vst [vmem:[#allocation2 + $0xc4] sm:$0xf] %v472_v3 }
 0x1bc   :  { %5955 = vmatpush3.bf16.msra.mxu0 %v6631_v20  ;;  %5977 = vmatpush3.bf16.msra.mxu1 %v6635_v23  ;;  %v6667_v20 = vld [vmem:[#allocation6 + $0x838] sm:$0xff]   ;;  %v6672_v23 = vld [vmem:[#allocation6 + $0x940] sm:$0xff]  }
 0x1bd   :  { %5984 = vmatprep.subr.bf16.mxu0 %v6636_v25  ;;  %6006 = vmatprep.subr.bf16.mxu1 %v6640_v27  ;;  %v6676_v25 = vld [vmem:[#allocation6 + $0x9c0] sm:$0xff]  }
 0x1be   :  { %v6677_v27 = vld [vmem:[#allocation6 + $0x980] sm:$0xff]  }
 0x1bf   :  { %4471 = vmatmul.mubr.bf16.vlgmr.msra.gmra.mrb[28].mxu0 %v5194_v35  ;;  %4511 = vmatmul.mubr.bf16.vlgmr.msra.gmra.mrb[28].mxu1 %v5196_v36  ;;  %v6679_v35 = vld [vmem:[#allocation6 + $0x908] sm:$0xff]   ;;  %v5203_v36 = vcombine.high %v7331_v28, %v7331_v28 }
 0x1c0   :  { %5985 = vmatpush3.bf16.msra.mxu0 %v6639_v32  ;;  %6007 = vmatpush3.bf16.msra.mxu1 %v6641_v33  ;;  %v7337_v32 = vld [vmem:[#allocation2 + $0x98] sm:$0xff] }
 0x1c1   :  { %5986 = vmatprep.subr.bf16.mxu0 %v6642_v38  ;;  %6008 = vmatprep.subr.bf16.mxu1 %v6644_v40  ;;  %v6678_v33 = vld [vmem:[#allocation6 + $0x948] sm:$0xff]   ;;  %v5205_v38 = vcombine.high %v7337_v32, %v7337_v32  ;;  %v6684_v40 = vld [vmem:[#allocation6 + $0x9d0] sm:$0xff]  }
 0x1c2   :  { %4550 = vmatprep.mubr.bf16.mxu0 %v5199_v41  ;;  %4590 = vmatprep.mubr.bf16.mxu1 %v5201_v29  ;;  %v6685_v41 = vld [vmem:[#allocation6 + $0x990] sm:$0xff]   ;;  %v6686_v29 = vld [vmem:[#allocation6 + $0x958] sm:$0xff]  }
 0x1c4   :  { %5987 = vmatpush3.bf16.msra.mxu0 %v6643_v39  ;;  %6009 = vmatpush3.bf16.msra.mxu1 %v6645_v31  ;;  %v6683_v39 = vld [vmem:[#allocation6 + $0x910] sm:$0xff]   ;;  %v6688_v31 = vld [vmem:[#allocation6 + $0x9d8] sm:$0xff]  }
 0x1c5   :  { %5988 = vmatprep.subr.bf16.mxu0 %v6646_v42  ;;  %6010 = vmatprep.subr.bf16.mxu1 %v6648_v43  ;;  %v6687_v42 = vld [vmem:[#allocation6 + $0x918] sm:$0xff]  }
 0x1c6   :  { %v6689_v43 = vld [vmem:[#allocation6 + $0x998] sm:$0xff]  }
 0x1c8   :  { %5989 = vmatpush3.bf16.msra.mxu0 %v6647_v44  ;;  %6011 = vmatpush3.bf16.msra.mxu1 %v6649_v45  ;;  %v6690_v44 = vld [vmem:[#allocation6 + $0x960] sm:$0xff]  }
 0x1c9   :  { %5990 = vmatprep.subr.bf16.mxu0 %v6650_v46  ;;  %6012 = vmatprep.subr.bf16.mxu1 %v6652_v47  ;;  %v6692_v45 = vld [vmem:[#allocation6 + $0x9e0] sm:$0xff]  }
 0x1ca   :  { %v6691_v46 = vld [vmem:[#allocation6 + $0x920] sm:$0xff]  }
 0x1cb   :  { %v6693_v47 = vld [vmem:[#allocation6 + $0x9a0] sm:$0xff]  }
 0x1cc   :  { %5991 = vmatpush3.bf16.msra.mxu0 %v6651_v48  ;;  %6013 = vmatpush3.bf16.msra.mxu1 %v6653_v52  ;;  %v6694_v48 = vld [vmem:[#allocation6 + $0x968] sm:$0xff]  }
 0x1cd   :  { %5992 = vmatprep.subr.bf16.mxu0 %v6654_v53  ;;  %6014 = vmatprep.subr.bf16.mxu1 %v6656_v56  ;;  %v6695_v52 = vld [vmem:[#allocation6 + $0x928] sm:$0xff]   ;;  %v6700_v56 = vld [vmem:[#allocation6 + $0x9f0] sm:$0xff]  }
 0x1ce   :  { %v6697_v53 = vld [vmem:[#allocation6 + $0x9a8] sm:$0xff]  }
 0x1d0   :  { %5993 = vmatpush3.bf16.msra.mxu0 %v6655_v58  ;;  %6015 = vmatpush3.bf16.msra.mxu1 %v6657_v60 }
 0x1d1   :  { %5994 = vmatprep.subr.bf16.mxu0 %v6658_v4  ;;  %6016 = vmatprep.subr.bf16.mxu1 %v6660_v8 }
 0x1d2   :  { %v5692_v9 = vpop.f32.mrb[4].mxu0  ;;  %v5714_v51 = vpop.f32.mrb[4].mxu1 }
 0x1d3   :  { %v5693_v55 = vpop.f32.mrb[5].mxu0  ;;  %v5715_v59 = vpop.f32.mrb[5].mxu1 }
 0x1d4   :  { %v5694_v12 = vadd.f32 %v5693_v55, %v5692_v9  ;;  %v5695_v5 = vpop.f32.mrb[6].mxu0  ;;  %5995 = vmatpush3.bf16.msra.mxu0 %v6659_v63  ;;  %v5716_v13 = vadd.f32 %v5715_v59, %v5714_v51  ;;  %6017 = vmatpush3.bf16.msra.mxu1 %v6661_v1  ;;  %v5717_v16 = vpop.f32.mrb[6].mxu1  ;;  %v6703_v1 = vld [vmem:[#allocation6 + $0x9b0] sm:$0xff]   ;;  %v6706_v9 = vld [vmem:[#allocation6 + $0x9f8] sm:$0xff]  }
 0x1d5   :  { %v5696_v17 = vpop.f32.mrb[7].mxu0  ;;  %5996 = vmatprep.subr.bf16.mxu0 %v6662_v6  ;;  %6018 = vmatprep.subr.bf16.mxu1 %v6664_v7  ;;  %v5718_v18 = vpop.f32.mrb[7].mxu1  ;;  %v6704_v7 = vld [vmem:[#allocation6 + $0x978] sm:$0xff]   ;;  %v6712_v5 = vld [vmem:[#allocation6 + $0xac0] sm:$0xff]  }
 0x1d6   :  { %v3993_v19 = vadd.f32 %v5694_v12, %v7308_v24  ;;  %v5200_v24 = vcombine.low %v7318_v37, %v7318_v37  ;;  %v6682_v37 = vld [vmem:[#allocation6 + $0x950] sm:$0xff]   ;;  %v6708_v12 = vld [vmem:[#allocation6 + $0xa40] sm:$0xff]   ;;  %v5202_v18 = vcombine.low %v7331_v28, %v7331_v28 }
 0x1d7   :  { %v6711_v16 = vld [vmem:[#allocation6 + $0xa00] sm:$0xff]   ;;  %v6719_v28 = vld [vmem:[#allocation6 + $0xa10] sm:$0xff]  }
 0x1d8   :  { %v7329_v22 = vadd.f32 %v5716_v13, %v3993_v19  ;;  %5997 = vmatpush3.bf16.msra.mxu0 %v6663_v61  ;;  %6019 = vmatpush3.bf16.msra.mxu1 %v6665_v11  ;;  %v6705_v61 = vld [vmem:[#allocation6 + $0x938] sm:$0xff]   ;;  %v5204_v13 = vcombine.low %v7337_v32, %v7337_v32  ;;  %v6713_v17 = vld [vmem:[#allocation6 + $0xa80] sm:$0xff]   ;;  %v6714_v19 = vld [vmem:[#allocation6 + $0xa48] sm:$0xff]  }
 0x1d9   :  { %5998 = vmatprep.subr.bf16.mxu0 %v6666_v14  ;;  %6020 = vmatprep.subr.bf16.mxu1 %v6668_v15  ;;  %v6707_v11 = vld [vmem:[#allocation6 + $0x9b8] sm:$0xff]   ;;  %v7348_v14 = vld [vmem:[#allocation2 + $0xa0] sm:$0xff] }
 0x1da   :  { %v7350_v15 = vld [vmem:[#allocation2 + $0xa8] sm:$0xff] }
 0x1db   :  { %v6724_v32 = vld [vmem:[#allocation6 + $0xad8] sm:$0xff]  }
 0x1dc   :  { %5999 = vmatpush3.bf16.msra.mxu0 %v6667_v20  ;;  %6021 = vmatpush3.bf16.msra.mxu1 %v6671_v21  ;;  %v6716_v20 = vld [vmem:[#allocation6 + $0xac8] sm:$0xff]   ;;  %v5207_v21 = vcombine.high %v7348_v14, %v7348_v14 }
 0x1dd   :  { %6028 = vmatprep.subr.bf16.mxu0 %v6672_v23  ;;  %6050 = vmatprep.subr.bf16.mxu1 %v6676_v25  ;;  %v6715_v23 = vld [vmem:[#allocation6 + $0xa08] sm:$0xff]  }
 0x1de   :  { %v6717_v25 = vld [vmem:[#allocation6 + $0xa88] sm:$0xff]  }
 0x1df   :  { %4551 = vmatmul.mubr.bf16.vlgmr.msra.gmra.mrb[32].mxu0 %v5198_v30  ;;  %4591 = vmatmul.mubr.bf16.vlgmr.msra.gmra.mrb[32].mxu1 %v5200_v24  ;;  %v6721_v30 = vld [vmem:[#allocation6 + $0xa90] sm:$0xff]   ;;  %v6722_v24 = vld [vmem:[#allocation6 + $0xa58] sm:$0xff]  }
 0x1e0   :  { %6029 = vmatpush3.bf16.msra.mxu0 %v6675_v26  ;;  %6051 = vmatpush3.bf16.msra.mxu1 %v6677_v27  ;;  %v6718_v26 = vld [vmem:[#allocation6 + $0xa50] sm:$0xff]  }
 0x1e1   :  { %6030 = vmatprep.subr.bf16.mxu0 %v6678_v33  ;;  %6052 = vmatprep.subr.bf16.mxu1 %v6680_v2  ;;  %v6720_v27 = vld [vmem:[#allocation6 + $0xad0] sm:$0xff]   ;;  %v6723_v33 = vld [vmem:[#allocation6 + $0xa18] sm:$0xff]  }
 0x1e2   :  { %4630 = vmatprep.mubr.bf16.mxu0 %v5203_v36  ;;  %4670 = vmatprep.mubr.bf16.mxu1 %v5205_v38  ;;  %v6725_v2 = vld [vmem:[#allocation6 + $0xa98] sm:$0xff]   ;;  %v6728_v36 = vld [vmem:[#allocation6 + $0xae0] sm:$0xff]  }
 0x1e3   :  { %v6727_v38 = vld [vmem:[#allocation6 + $0xa20] sm:$0xff]  }
 0x1e4   :  { %6031 = vmatpush3.bf16.msra.mxu0 %v6679_v35  ;;  %6053 = vmatpush3.bf16.msra.mxu1 %v6681_v34  ;;  %v6726_v35 = vld [vmem:[#allocation6 + $0xa60] sm:$0xff]  }
 0x1e5   :  { %6032 = vmatprep.subr.bf16.mxu0 %v6682_v37  ;;  %6054 = vmatprep.subr.bf16.mxu1 %v6684_v40  ;;  %v6729_v34 = vld [vmem:[#allocation6 + $0xaa0] sm:$0xff]   ;;  %v6730_v37 = vld [vmem:[#allocation6 + $0xa68] sm:$0xff]  }
 0x1e6   :  { %v6732_v40 = vld [vmem:[#allocation6 + $0xae8] sm:$0xff]  }
 0x1e8   :  { %6033 = vmatpush3.bf16.msra.mxu0 %v6683_v39  ;;  %6055 = vmatpush3.bf16.msra.mxu1 %v6685_v41  ;;  %v6731_v39 = vld [vmem:[#allocation6 + $0xa28] sm:$0xff]  }
 0x1e9   :  { %6034 = vmatprep.subr.bf16.mxu0 %v6686_v29  ;;  %6056 = vmatprep.subr.bf16.mxu1 %v6688_v31  ;;  %v6733_v41 = vld [vmem:[#allocation6 + $0xaa8] sm:$0xff]   ;;  %v6734_v29 = vld [vmem:[#allocation6 + $0xa70] sm:$0xff]  }
 0x1ea   :  { %v6736_v31 = vld [vmem:[#allocation6 + $0xaf0] sm:$0xff]  }
 0x1ec   :  { %6035 = vmatpush3.bf16.msra.mxu0 %v6687_v42  ;;  %6057 = vmatpush3.bf16.msra.mxu1 %v6689_v43 }
 0x1ed   :  { %6036 = vmatprep.subr.bf16.mxu0 %v6690_v44  ;;  %6058 = vmatprep.subr.bf16.mxu1 %v6692_v45 }
 0x1f0   :  { %6037 = vmatpush3.bf16.msra.mxu0 %v6691_v46  ;;  %6059 = vmatpush3.bf16.msra.mxu1 %v6693_v47 }
 0x1f1   :  { %6038 = vmatprep.subr.bf16.mxu0 %v6694_v48  ;;  %6060 = vmatprep.subr.bf16.mxu1 %v6696_v50  ;;  %v6735_v50 = vld [vmem:[#allocation6 + $0xa30] sm:$0xff]  }
 0x1f2   :  { %v5736_v57 = vpop.f32.mrb[8].mxu0  ;;  %v5758_v58 = vpop.f32.mrb[8].mxu1 }
 0x1f3   :  { %v5737_v60 = vpop.f32.mrb[9].mxu0  ;;  %v5759_v4 = vpop.f32.mrb[9].mxu1 }
 0x1f4   :  { %v5738_v8 = vadd.f32 %v5737_v60, %v5736_v57  ;;  %v5739_v62 = vpop.f32.mrb[10].mxu0  ;;  %6039 = vmatpush3.bf16.msra.mxu0 %v6695_v52  ;;  %v5760_v63 = vadd.f32 %v5759_v4, %v5758_v58  ;;  %6061 = vmatpush3.bf16.msra.mxu1 %v6697_v53  ;;  %v5761_v3 = vpop.f32.mrb[10].mxu1  ;;  %v6737_v52 = vld [vmem:[#allocation6 + $0xab0] sm:$0xff]   ;;  %v6740_v57 = vld [vmem:[#allocation6 + $0xaf8] sm:$0xff]  }
 0x1f5   :  { %v5740_v6 = vpop.f32.mrb[11].mxu0  ;;  %6040 = vmatprep.subr.bf16.mxu0 %v6698_v54  ;;  %6062 = vmatprep.subr.bf16.mxu1 %v6700_v56  ;;  %v5762_v51 = vpop.f32.mrb[11].mxu1  ;;  %v6738_v56 = vld [vmem:[#allocation6 + $0xa78] sm:$0xff]   ;;  %v5208_v3 = vcombine.low %v7350_v15, %v7350_v15 }
 0x1f6   :  { %v4073_v55 = vadd.f32 %v5738_v8, %v7329_v22  ;;  %v5209_v22 = vcombine.high %v7350_v15, %v7350_v15  ;;  %v6739_v8 = vld [vmem:[#allocation6 + $0xa38] sm:$0xff]   ;;  %v7365_v6 = vld [vmem:[#allocation2 + $0xb0] sm:$0xff]  ;;  %v6755_v15 = vld [vmem:[#allocation6 + $0xb10] sm:$0xff]  }
 0x1f7   :  { %v6743_v62 = vld [vmem:[#allocation6 + $0xab8] sm:$0xff]   ;;  %v6749_v51 = vld [vmem:[#allocation6 + $0xb80] sm:$0xff]  }
 0x1f8   :  { %v7344_v59 = vadd.f32 %v5760_v63, %v4073_v55  ;;  %6041 = vmatpush3.bf16.msra.mxu0 %v6699_v0  ;;  %6063 = vmatpush3.bf16.msra.mxu1 %v6703_v1  ;;  %v6744_v63 = vld [vmem:[#allocation6 + $0xb40] sm:$0xff]   ;;  %v5206_v1 = vcombine.low %v7348_v14, %v7348_v14  ;;  %v6750_v55 = vld [vmem:[#allocation6 + $0xb48] sm:$0xff]   ;;  %v6756_v14 = vld [vmem:[#allocation6 + $0xbd0] sm:$0xff]  }
 0x1f9   :  { %6042 = vmatprep.subr.bf16.mxu0 %v6704_v7  ;;  %6064 = vmatprep.subr.bf16.mxu1 %v6706_v9  ;;  %v6748_v0 = vld [vmem:[#allocation6 + $0xbc0] sm:$0xff]   ;;  %v7367_v7 = vld [vmem:[#allocation2 + $0xb8] sm:$0xff] }
 0x1fa   :  { %v6747_v9 = vld [vmem:[#allocation6 + $0xb00] sm:$0xff]  }
 0x1fc   :  { %6043 = vmatpush3.bf16.msra.mxu0 %v6705_v61  ;;  %6065 = vmatpush3.bf16.msra.mxu1 %v6707_v11  ;;  %v5211_v61 = vcombine.high %v7365_v6, %v7365_v6  ;;  %v5213_v11 = vcombine.high %v7367_v7, %v7367_v7 }
 0x1fd   :  { %6072 = vmatprep.subr.bf16.mxu0 %v6708_v12  ;;  %6094 = vmatprep.subr.bf16.mxu1 %v6712_v5  ;;  %v6751_v12 = vld [vmem:[#allocation6 + $0xb08] sm:$0xff]  }
 0x1fe   :  { %v6753_v5 = vld [vmem:[#allocation6 + $0xb88] sm:$0xff]  }
 0x1ff   :  { %4631 = vmatmul.mubr.bf16.vlgmr.msra.gmra.mrb[36].mxu0 %v5202_v18  ;;  %4671 = vmatmul.mubr.bf16.vlgmr.msra.gmra.mrb[36].mxu1 %v5204_v13  ;;  %v6754_v13 = vld [vmem:[#allocation6 + $0xb50] sm:$0xff]   ;;  %v6760_v18 = vld [vmem:[#allocation6 + $0xbd8] sm:$0xff]  }
 0x200   :  { %6073 = vmatpush3.bf16.msra.mxu0 %v6711_v16  ;;  %6095 = vmatpush3.bf16.msra.mxu1 %v6713_v17  ;;  %v6757_v16 = vld [vmem:[#allocation6 + $0xb90] sm:$0xff]   ;;  %v6758_v17 = vld [vmem:[#allocation6 + $0xb58] sm:$0xff]  }
 0x201   :  { %6074 = vmatprep.subr.bf16.mxu0 %v6714_v19  ;;  %6096 = vmatprep.subr.bf16.mxu1 %v6716_v20  ;;  %v6759_v19 = vld [vmem:[#allocation6 + $0xb18] sm:$0xff]  }
 0x202   :  { %4710 = vmatprep.mubr.bf16.mxu0 %v5207_v21  ;;  %4750 = vmatprep.mubr.bf16.mxu1 %v5209_v22  ;;  %v6761_v20 = vld [vmem:[#allocation6 + $0xb98] sm:$0xff]   ;;  %v6762_v21 = vld [vmem:[#allocation6 + $0xb60] sm:$0xff]  }
 0x203   :  { %v6764_v22 = vld [vmem:[#allocation6 + $0xbe0] sm:$0xff]  }
 0x204   :  { %6075 = vmatpush3.bf16.msra.mxu0 %v6715_v23  ;;  %6097 = vmatpush3.bf16.msra.mxu1 %v6717_v25  ;;  %v6763_v23 = vld [vmem:[#allocation6 + $0xb20] sm:$0xff]  }
 0x205   :  { %6076 = vmatprep.subr.bf16.mxu0 %v6718_v26  ;;  %6098 = vmatprep.subr.bf16.mxu1 %v6720_v27  ;;  %v6765_v25 = vld [vmem:[#allocation6 + $0xba0] sm:$0xff]   ;;  %v6766_v26 = vld [vmem:[#allocation6 + $0xb68] sm:$0xff]  }
 0x206   :  { %v6768_v27 = vld [vmem:[#allocation6 + $0xbe8] sm:$0xff]  }
 0x208   :  { %6077 = vmatpush3.bf16.msra.mxu0 %v6719_v28  ;;  %6099 = vmatpush3.bf16.msra.mxu1 %v6721_v30  ;;  %v6767_v28 = vld [vmem:[#allocation6 + $0xb28] sm:$0xff]  }
 0x209   :  { %6078 = vmatprep.subr.bf16.mxu0 %v6722_v24  ;;  %6100 = vmatprep.subr.bf16.mxu1 %v6724_v32  ;;  %v6769_v30 = vld [vmem:[#allocation6 + $0xba8] sm:$0xff]   ;;  %v6770_v24 = vld [vmem:[#allocation6 + $0xb70] sm:$0xff]  }
 0x20a   :  { %v6772_v32 = vld [vmem:[#allocation6 + $0xbf0] sm:$0xff]  }
 0x20c   :  { %6079 = vmatpush3.bf16.msra.mxu0 %v6723_v33  ;;  %6101 = vmatpush3.bf16.msra.mxu1 %v6725_v2 }
 0x20d   :  { %6080 = vmatprep.subr.bf16.mxu0 %v6726_v35  ;;  %6102 = vmatprep.subr.bf16.mxu1 %v6728_v36 }
 0x210   :  { %6081 = vmatpush3.bf16.msra.mxu0 %v6727_v38  ;;  %6103 = vmatpush3.bf16.msra.mxu1 %v6729_v34 }
 0x211   :  { %6082 = vmatprep.subr.bf16.mxu0 %v6730_v37  ;;  %6104 = vmatprep.subr.bf16.mxu1 %v6732_v40  ;;  %v6771_v40 = vld [vmem:[#allocation6 + $0xb30] sm:$0xff]  }
 0x212   :  { %v5780_v42 = vpop.f32.mrb[12].mxu0  ;;  %v5802_v43 = vpop.f32.mrb[12].mxu1 }
 0x213   :  { %v5781_v44 = vpop.f32.mrb[13].mxu0  ;;  %v5803_v45 = vpop.f32.mrb[13].mxu1 }
 0x214   :  { %v5782_v46 = vadd.f32 %v5781_v44, %v5780_v42  ;;  %v5783_v47 = vpop.f32.mrb[14].mxu0  ;;  %6083 = vmatpush3.bf16.msra.mxu0 %v6731_v39  ;;  %v5804_v48 = vadd.f32 %v5803_v45, %v5802_v43  ;;  %6105 = vmatpush3.bf16.msra.mxu1 %v6733_v41  ;;  %v5805_v53 = vpop.f32.mrb[14].mxu1  ;;  %v6773_v39 = vld [vmem:[#allocation6 + $0xbb0] sm:$0xff]   ;;  %v6776_v42 = vld [vmem:[#allocation6 + $0xbf8] sm:$0xff]  }
 0x215   :  { %v5784_v54 = vpop.f32.mrb[15].mxu0  ;;  %6084 = vmatprep.subr.bf16.mxu0 %v6734_v29  ;;  %6106 = vmatprep.subr.bf16.mxu1 %v6736_v31  ;;  %v5806_v58 = vpop.f32.mrb[15].mxu1  ;;  %v6774_v31 = vld [vmem:[#allocation6 + $0xb78] sm:$0xff]   ;;  %v5212_v53 = vcombine.low %v7367_v7, %v7367_v7 }
 0x216   :  { %v4153_v60 = vadd.f32 %v5782_v46, %v7344_v59  ;;  %v6752_v59 = vld [vmem:[#allocation6 + $0xbc8] sm:$0xff]   ;;  %v6775_v46 = vld [vmem:[#allocation6 + $0xb38] sm:$0xff]   ;;  %v6783_v54 = vld [vmem:[#allocation6 + $0xc00] sm:$0xff]  }
 0x217   :  { %v6779_v47 = vld [vmem:[#allocation6 + $0xbb8] sm:$0xff]   ;;  %v6785_v58 = vld [vmem:[#allocation6 + $0xc08] sm:$0xff]  }
 0x218   :  { %v7359_v4 = vadd.f32 %v5804_v48, %v4153_v60  ;;  %6085 = vmatpush3.bf16.msra.mxu0 %v6735_v50  ;;  %6107 = vmatpush3.bf16.msra.mxu1 %v6737_v52  ;;  %v6780_v48 = vld [vmem:[#allocation6 + $0xc40] sm:$0xff]   ;;  %v498_v50 = vld [vmem:[#allocation2 + $0xc0] sm:$0xff]  ;;  %v5210_v52 = vcombine.low %v7365_v6, %v7365_v6 }
 0x219   :  { %6086 = vmatprep.subr.bf16.mxu0 %v6738_v56  ;;  %6108 = vmatprep.subr.bf16.mxu1 %v6740_v57  ;;  %v5215_v56 = vcombine.high %v498_v50, %v498_v50  ;;  %v6784_v57 = vld [vmem:[#allocation6 + $0xc48] sm:$0xff]   ;;  %v6786_v60 = vld [vmem:[#allocation6 + $0xc50] sm:$0xff]  }
 0x21a   :  { %v6794_v6 = vld [vmem:[#allocation6 + $0xc70] sm:$0xff]  }
 0x21c   :  { %6087 = vmatpush3.bf16.msra.mxu0 %v6739_v8  ;;  %6109 = vmatpush3.bf16.msra.mxu1 %v6743_v62  ;;  %v6788_v8 = vld [vmem:[#allocation6 + $0xc58] sm:$0xff]  }
 0x21d   :  { %6116 = vmatprep.subr.bf16.mxu0 %v6744_v63  ;;  %6138 = vmatprep.subr.bf16.mxu1 %v6748_v0  ;;  %v6789_v62 = vld [vmem:[#allocation6 + $0xc18] sm:$0xff]   ;;  %v6790_v63 = vld [vmem:[#allocation6 + $0xc60] sm:$0xff]  }
 0x21e   :  { %v6791_v0 = vld [vmem:[#allocation6 + $0xc20] sm:$0xff]  }
 0x21f   :  { %4711 = vmatmul.mubr.bf16.vlgmr.msra.gmra.mrb[40].mxu0 %v5206_v1  ;;  %4751 = vmatmul.mubr.bf16.vlgmr.msra.gmra.mrb[40].mxu1 %v5208_v3  ;;  %v6792_v1 = vld [vmem:[#allocation6 + $0xc68] sm:$0xff]  }
 0x220   :  { %6117 = vmatpush3.bf16.msra.mxu0 %v6747_v9  ;;  %6139 = vmatpush3.bf16.msra.mxu1 %v6749_v51  ;;  %v6793_v3 = vld [vmem:[#allocation6 + $0xc28] sm:$0xff]  }
 0x221   :  { %6118 = vmatprep.subr.bf16.mxu0 %v6750_v55  ;;  %6140 = vmatprep.subr.bf16.mxu1 %v6752_v59 }
 0x222   :  { %4790 = vmatprep.mubr.bf16.mxu0 %v5211_v61  ;;  %4830 = vmatprep.mubr.bf16.mxu1 %v5213_v11 }
 0x224   :  { %6119 = vmatpush3.bf16.msra.mxu0 %v6751_v12  ;;  %6141 = vmatpush3.bf16.msra.mxu1 %v6753_v5  ;;  %v6795_v12 = vld [vmem:[#allocation6 + $0xc30] sm:$0xff]  }
 0x225   :  { %6120 = vmatprep.subr.bf16.mxu0 %v6754_v13  ;;  %6142 = vmatprep.subr.bf16.mxu1 %v6756_v14  ;;  %v6798_v14 = vld [vmem:[#allocation6 + $0xc78] sm:$0xff]  }
 0x228   :  { %6121 = vmatpush3.bf16.msra.mxu0 %v6755_v15  ;;  %6143 = vmatpush3.bf16.msra.mxu1 %v6757_v16 }
 0x229   :  { %6122 = vmatprep.subr.bf16.mxu0 %v6758_v17  ;;  %6144 = vmatprep.subr.bf16.mxu1 %v6760_v18  ;;  %v6799_v18 = vld [vmem:[#allocation6 + $0xc38] sm:$0xff]  }
 0x22c   :  { %6123 = vmatpush3.bf16.msra.mxu0 %v6759_v19  ;;  %6145 = vmatpush3.bf16.msra.mxu1 %v6761_v20  ;;  %v5214_v19 = vcombine.low %v498_v50, %v498_v50 }
 0x22d   :  { %6124 = vmatprep.subr.bf16.mxu0 %v6762_v21  ;;  %6146 = vmatprep.subr.bf16.mxu1 %v6764_v22 }
 0x230   :  { %6125 = vmatpush3.bf16.msra.mxu0 %v6763_v23  ;;  %6147 = vmatpush3.bf16.msra.mxu1 %v6765_v25 }
 0x231   :  { %6126 = vmatprep.subr.bf16.mxu0 %v6766_v26  ;;  %6148 = vmatprep.subr.bf16.mxu1 %v6768_v27 }
 0x232   :  { %v5824_v33 = vpop.f32.mrb[16].mxu0  ;;  %v5846_v2 = vpop.f32.mrb[16].mxu1 }
 0x233   :  { %v5825_v35 = vpop.f32.mrb[17].mxu0  ;;  %v5847_v36 = vpop.f32.mrb[17].mxu1 }
 0x234   :  { %v5826_v38 = vadd.f32 %v5825_v35, %v5824_v33  ;;  %v5827_v34 = vpop.f32.mrb[18].mxu0  ;;  %6127 = vmatpush3.bf16.msra.mxu0 %v6767_v28  ;;  %v5848_v37 = vadd.f32 %v5847_v36, %v5846_v2  ;;  %6149 = vmatpush3.bf16.msra.mxu1 %v6769_v30  ;;  %v5849_v41 = vpop.f32.mrb[18].mxu1 }
 0x235   :  { %v5828_v29 = vpop.f32.mrb[19].mxu0  ;;  %6128 = vmatprep.subr.bf16.mxu0 %v6770_v24  ;;  %6150 = vmatprep.subr.bf16.mxu1 %v6772_v32  ;;  %v5850_v43 = vpop.f32.mrb[19].mxu1 }
 0x236   :  { %v4233_v44 = vadd.f32 %v5826_v38, %v7359_v4  ;;  %v6787_v4 = vld [vmem:[#allocation6 + $0xc10] sm:$0xff]   ;;  %v6800_v43 = vld [vmem:[#allocation8] sm:$0xff]  }
 0x238   :  { %v4273_v45 = vadd.f32 %v5848_v37, %v4233_v44  ;;  %6129 = vmatpush3.bf16.msra.mxu0 %v6771_v40  ;;  %6151 = vmatpush3.bf16.msra.mxu1 %v6773_v39  ;;  %v6801_v44 = vld [vmem:[#allocation8 + $0x8] sm:$0xff]  }
 0x239   :  { %6130 = vmatprep.subr.bf16.mxu0 %v6774_v31  ;;  %6152 = vmatprep.subr.bf16.mxu1 %v6776_v42 }
 0x23c   :  { %6131 = vmatpush3.bf16.msra.mxu0 %v6775_v46  ;;  %6153 = vmatpush3.bf16.msra.mxu1 %v6779_v47  ;;  %v6803_v46 = vld [vmem:[#allocation8 + $0x18] sm:$0xff]   ;;  %v6804_v47 = vld [vmem:[#allocation8 + $0x20] sm:$0xff]  }
 0x23d   :  { %6160 = vmatprep.subr.bf16.mxu0 %v6780_v48  ;;  %6200 = vmatprep.subr.bf16.mxu1 %v6977_v10  ;;  %v6805_v48 = vld [vmem:[#allocation8 + $0x28] sm:$0xff]  }
 0x23f   :  { %4791 = vmatmul.mubr.bf16.vlgmr.msra.gmra.mrb[44].mxu0 %v5210_v52  ;;  %4831 = vmatmul.mubr.bf16.vlgmr.msra.gmra.mrb[44].mxu1 %v5212_v53 }
 0x240   :  { %6161 = vmatpush3.bf16.msra.mxu0 %v6783_v54  ;;  %4870 = vmatprep.mubr.bf16.mxu0 %v5215_v56  ;;  %v6806_v56 = vld [vmem:[#allocation8 + $0x30] sm:$0xff]  }
 0x241   :  { %6162 = vmatprep.subr.bf16.mxu0 %v6784_v57  ;;  %6201 = vmatpush3.bf16.msra.mxu1 %v6800_v43 }
 0x242   :  { %6202 = vmatprep.subr.bf16.mxu1 %v6977_v10  ;;  %6216 = vmatprep.mubr.msk.bf16.mxu1 %vm6994_vm2, %v6977_v10 }
 0x244   :  { %6163 = vmatpush3.bf16.msra.mxu0 %v6785_v58 }
 0x245   :  { %6164 = vmatprep.subr.bf16.mxu0 %v6786_v60  ;;  %6203 = vmatpush3.bf16.msra.mxu1 %v6801_v44 }
 0x246   :  { %6204 = vmatprep.subr.bf16.mxu1 %v6977_v10 }
 0x248   :  { %6165 = vmatpush3.bf16.msra.mxu0 %v6787_v4 }
 0x249   :  { %6166 = vmatprep.subr.bf16.mxu0 %v6788_v8 }
 0x24c   :  { %6167 = vmatpush3.bf16.msra.mxu0 %v6789_v62 }
 0x24d   :  { %6168 = vmatprep.subr.bf16.mxu0 %v6790_v63 }
 0x250   :  { %6169 = vmatpush3.bf16.msra.mxu0 %v6791_v0  ;;  %v6807_v0 = vld [vmem:[#allocation8 + $0x38] sm:$0xff]  }
 0x251   :  { %6170 = vmatprep.subr.bf16.mxu0 %v6792_v1 }
 0x252   :  { %v5868_v7 = vpop.f32.mrb[20].mxu0  ;;  %v5890_v9 = vpop.f32.mrb[20].mxu1 }
 0x253   :  { %v5869_v51 = vpop.f32.mrb[21].mxu0  ;;  %v5891_v55 = vpop.f32.mrb[21].mxu1 }
 0x254   :  { %v5870_v59 = vadd.f32 %v5869_v51, %v5868_v7  ;;  %v5871_v61 = vpop.f32.mrb[22].mxu0  ;;  %6171 = vmatpush3.bf16.msra.mxu0 %v6793_v3  ;;  %v5892_v11 = vadd.f32 %v5891_v55, %v5890_v9  ;;  %v5893_v5 = vpop.f32.mrb[22].mxu1  ;;  %v6808_v3 = vld [vmem:[#allocation8 + $0x40] sm:$0xff]   ;;  %v6810_v7 = vld [vmem:[#allocation8 + $0x50] sm:$0xff]   ;;  %v6811_v9 = vld [vmem:[#allocation8 + $0x58] sm:$0xff]  }
 0x255   :  { %v5872_v13 = vpop.f32.mrb[23].mxu0  ;;  %6172 = vmatprep.subr.bf16.mxu0 %v6794_v6  ;;  %v5894_v15 = vpop.f32.mrb[23].mxu1  ;;  %v6809_v6 = vld [vmem:[#allocation8 + $0x48] sm:$0xff]   ;;  %v6812_v51 = vld [vmem:[#allocation8 + $0x60] sm:$0xff]  }
 0x256   :  { %v4313_v16 = vadd.f32 %v5870_v59, %v4273_v45  ;;  %v6802_v45 = vld [vmem:[#allocation8 + $0x10] sm:$0xff]   ;;  %v6813_v55 = vld [vmem:[#allocation8 + $0x68] sm:$0xff]  }
 0x257   :  { %6205 = vmatpush3.bf16.msra.mxu1 %v6802_v45 }
 0x258   :  { %v4353_v17 = vadd.f32 %v5892_v11, %v4313_v16  ;;  %6173 = vmatpush3.bf16.msra.mxu0 %v6795_v12  ;;  %6206 = vmatprep.subr.bf16.mxu1 %v6977_v10 }
 0x259   :  { %6174 = vmatprep.subr.bf16.mxu0 %v6798_v14 }
 0x25b   :  { %6207 = vmatpush3.bf16.msra.mxu1 %v6803_v46 }
 0x25c   :  { %6175 = vmatpush3.bf16.msra.mxu0 %v6799_v18  ;;  %6208 = vmatprep.subr.bf16.mxu1 %v6977_v10 }
 0x25d   :  { %6220 = vmatprep.subr.bf16.mxu0 %v6977_v10 }
 0x25f   :  { %4871 = vmatmul.mubr.bf16.vlgmr.msra.gmra.mrb[48].mxu0 %v5214_v19  ;;  %6209 = vmatpush3.bf16.msra.mxu1 %v6804_v47 }
 0x260   :  { %6210 = vmatprep.subr.bf16.mxu1 %v6977_v10  ;;  %6236 = vmatprep.mubr.msk.bf16.mxu0 %vm6994_vm2, %v6977_v10 }
 0x261   :  { %6221 = vmatpush3.bf16.msra.mxu0 %v6808_v3  ;;  %v5008_v3 = vsub.s32 2, %v7299_v49 }
 0x262   :  { %6222 = vmatprep.subr.bf16.mxu0 %v6977_v10 }
 0x263   :  { %6211 = vmatpush3.bf16.msra.mxu1 %v6805_v48 }
 0x264   :  { %6212 = vmatprep.subr.bf16.mxu1 %v6977_v10 }
 0x265   :  { %6223 = vmatpush3.bf16.msra.mxu0 %v6809_v6 }
 0x266   :  { %6224 = vmatprep.subr.bf16.mxu0 %v6977_v10 }
 0x267   :  { %6213 = vmatpush3.bf16.msra.mxu1 %v6806_v56  ;;  %v4898_v56 = vsub.s32 1, %v7299_v49 }
 0x268   :  { %6214 = vmatprep.subr.bf16.mxu1 %v6977_v10 }
 0x269   :  { %6225 = vmatpush3.bf16.msra.mxu0 %v6810_v7 }
 0x26a   :  { %6226 = vmatprep.subr.bf16.mxu0 %v6977_v10 }
 0x26b   :  { %6215 = vmatpush3.bf16.msra.mxu1 %v6807_v0 }
 0x26d   :  { %6227 = vmatpush3.bf16.msra.mxu0 %v6811_v9 }
 0x26e   :  { %6228 = vmatprep.subr.bf16.mxu0 %v6977_v10 }
 0x271   :  { %6229 = vmatpush3.bf16.msra.mxu0 %v6812_v51 }
 0x272   :  { %v5912_v20 = vpop.f32.mrb[24].mxu0  ;;  %v5934_v21 = vpop.f32.mrb[24].mxu1  ;;  %6230 = vmatprep.subr.bf16.mxu0 %v6977_v10 }
 0x273   :  { %v5913_v22 = vpop.f32.mrb[25].mxu0  ;;  %v5935_v23 = vpop.f32.mrb[25].mxu1 }
 0x274   :  { %v5914_v25 = vadd.f32 %v5913_v22, %v5912_v20  ;;  %v5915_v26 = vpop.f32.mrb[26].mxu0  ;;  %v5936_v27 = vadd.f32 %v5935_v23, %v5934_v21  ;;  %v5937_v28 = vpop.f32.mrb[26].mxu1 }
 0x275   :  { %v5916_v30 = vpop.f32.mrb[27].mxu0  ;;  %v5938_v24 = vpop.f32.mrb[27].mxu1  ;;  %6231 = vmatpush3.bf16.msra.mxu0 %v6813_v55 }
 0x276   :  { %v4393_v32 = vadd.f32 %v5914_v25, %v4353_v17  ;;  %6232 = vmatprep.subr.bf16.mxu0 %v6977_v10 }
 0x278   :  { %v4433_v33 = vadd.f32 %v5936_v27, %v4393_v32 }
 0x292   :  { %v5956_v2 = vpop.f32.mrb[28].mxu0  ;;  %v5978_v35 = vpop.f32.mrb[28].mxu1 }
 0x293   :  { %v5957_v36 = vpop.f32.mrb[29].mxu0  ;;  %v5979_v38 = vpop.f32.mrb[29].mxu1 }
 0x294   :  { %v5958_v34 = vadd.f32 %v5957_v36, %v5956_v2  ;;  %v5959_v37 = vpop.f32.mrb[30].mxu0  ;;  %v5980_v40 = vadd.f32 %v5979_v38, %v5978_v35  ;;  %v5981_v39 = vpop.f32.mrb[30].mxu1 }
 0x295   :  { %v5960_v41 = vpop.f32.mrb[31].mxu0  ;;  %v5982_v29 = vpop.f32.mrb[31].mxu1 }
 0x296   :  { %v4473_v31 = vadd.f32 %v5958_v34, %v4433_v33 }
 0x298   :  { %v4513_v42 = vadd.f32 %v5980_v40, %v4473_v31 }
 0x2b2   :  { %v6000_v50 = vpop.f32.mrb[32].mxu0  ;;  %v6022_v52 = vpop.f32.mrb[32].mxu1 }
 0x2b3   :  { %v6001_v53 = vpop.f32.mrb[33].mxu0  ;;  %v6023_v54 = vpop.f32.mrb[33].mxu1 }
 0x2b4   :  { %v6002_v57 = vadd.f32 %v6001_v53, %v6000_v50  ;;  %v6003_v58 = vpop.f32.mrb[34].mxu0  ;;  %v6024_v60 = vadd.f32 %v6023_v54, %v6022_v52  ;;  %v6025_v4 = vpop.f32.mrb[34].mxu1  ;;  %v6814_v53 = vld [vmem:[#allocation8 + $0x70] sm:$0xff]   ;;  %v6815_v54 = vld [vmem:[#allocation8 + $0x78] sm:$0xff]  }
 0x2b5   :  { %v6004_v8 = vpop.f32.mrb[35].mxu0  ;;  %v6026_v62 = vpop.f32.mrb[35].mxu1  ;;  %6233 = vmatpush3.bf16.msra.mxu0 %v6814_v53 }
 0x2b6   :  { %v4553_v63 = vadd.f32 %v6002_v57, %v4513_v42  ;;  %6234 = vmatprep.subr.bf16.mxu0 %v6977_v10  ;;  %v6818_v57 = vld [vmem:[#allocation9] sm:$0x7] }
 0x2b7   :  { %v4899_v58 = vrot.slane %v6818_v57, %v4898_v56  ;;  %v5009_v6 = vrot.slane %v6818_v57, %v5008_v3 }
 0x2b8   :  { %v4593_v1 = vadd.f32 %v6024_v60, %v4553_v63 }
 0x2b9   :  { %6235 = vmatpush3.bf16.msra.mxu0 %v6815_v54 }
 0x2d2   :  { %v6044_v59 = vpop.f32.mrb[36].mxu0  ;;  %v6066_v61 = vpop.f32.mrb[36].mxu1 }
 0x2d3   :  { %v6045_v11 = vpop.f32.mrb[37].mxu0  ;;  %v6067_v12 = vpop.f32.mrb[37].mxu1 }
 0x2d4   :  { %v6046_v5 = vadd.f32 %v6045_v11, %v6044_v59  ;;  %v6047_v13 = vpop.f32.mrb[38].mxu0  ;;  %v6068_v14 = vadd.f32 %v6067_v12, %v6066_v61  ;;  %v6069_v15 = vpop.f32.mrb[38].mxu1 }
 0x2d5   :  { %v6048_v16 = vpop.f32.mrb[39].mxu0  ;;  %v6070_v17 = vpop.f32.mrb[39].mxu1 }
 0x2d6   :  { %v4633_v18 = vadd.f32 %v6046_v5, %v4593_v1 }
 0x2d8   :  { %v4673_v19 = vadd.f32 %v6068_v14, %v4633_v18 }
 0x2f2   :  { %v6088_v20 = vpop.f32.mrb[40].mxu0  ;;  %v6110_v21 = vpop.f32.mrb[40].mxu1 }
 0x2f3   :  { %v6089_v22 = vpop.f32.mrb[41].mxu0  ;;  %v6111_v23 = vpop.f32.mrb[41].mxu1 }
 0x2f4   :  { %v6090_v25 = vadd.f32 %v6089_v22, %v6088_v20  ;;  %v6091_v26 = vpop.f32.mrb[42].mxu0  ;;  %v6112_v27 = vadd.f32 %v6111_v23, %v6110_v21  ;;  %v6113_v28 = vpop.f32.mrb[42].mxu1 }
 0x2f5   :  { %v6092_v30 = vpop.f32.mrb[43].mxu0  ;;  %v6114_v24 = vpop.f32.mrb[43].mxu1 }
 0x2f6   :  { %v4713_v32 = vadd.f32 %v6090_v25, %v4673_v19 }
 0x2f8   :  { %v4753_v33 = vadd.f32 %v6112_v27, %v4713_v32 }
 0x312   :  { %v6132_v2 = vpop.f32.mrb[44].mxu0  ;;  %v6154_v35 = vpop.f32.mrb[44].mxu1 }
 0x313   :  { %v6133_v36 = vpop.f32.mrb[45].mxu0  ;;  %v6155_v38 = vpop.f32.mrb[45].mxu1 }
 0x314   :  { %v6134_v34 = vadd.f32 %v6133_v36, %v6132_v2  ;;  %v6135_v37 = vpop.f32.mrb[46].mxu0  ;;  %v6156_v40 = vadd.f32 %v6155_v38, %v6154_v35  ;;  %v6157_v39 = vpop.f32.mrb[46].mxu1 }
 0x315   :  { %v6136_v41 = vpop.f32.mrb[47].mxu0  ;;  %v6158_v29 = vpop.f32.mrb[47].mxu1 }
 0x316   :  { %v4793_v31 = vadd.f32 %v6134_v34, %v4753_v33 }
 0x318   :  { %v4833_v42 = vadd.f32 %v6156_v40, %v4793_v31 }
 0x332   :  { %v6176_v43 = vpop.f32.mrb[48].mxu0 }
 0x333   :  { %v6177_v44 = vpop.f32.mrb[49].mxu0 }
 0x334   :  { %v6178_v45 = vadd.f32 %v6177_v44, %v6176_v43  ;;  %v6179_v46 = vpop.f32.mrb[50].mxu0 }
 0x335   :  { %v6180_v47 = vpop.f32.mrb[51].mxu0 }
 0x336   :  { %v4873_v48 = vadd.f32 %v6178_v45, %v4833_v42 }
 0x338   :  { %v4878_v50 = vmax.f32 %v4873_v48, 0.0 }
 0x33a   :  { %v4895_v52 = vpack.c.bf16 %v4878_v50, %v4878_v50 }
 0x33c   :  { %6217 = vmatmul.mubr.bf16.vlgmr.msra.gmra.mrb[48].mxu1 %v4895_v52 }
 0x40f   :  { %v4982_v60 = vpop.f32.mrb[48].mxu1 }
 0x410   :  { %v4983_v4 = vadd.f32 %v4982_v60, %v4899_v58  ;;  %v6218_v8 = vpop.f32.mrb[49].mxu1 }
 0x411   :  { %v4985_v62 = vpop.f32.mrb[50].mxu1 }
 0x412   :  { %v4988_v63 = vmax.f32 %v4983_v4, 0.0  ;;  %v6219_v0 = vpop.f32.mrb[51].mxu1 }
 0x414   :  { %v5005_v1 = vpack.c.bf16 %v4988_v63, %v4988_v63 }
 0x416   :  { %6237 = vmatmul.mubr.bf16.vlgmr.msra.gmra.mrb[52].mxu0 %v5005_v1 }
 0x4e9   :  { %v5092_v10 = vpop.f32.mrb[52].mxu0 }
 0x4ea   :  { %v5093_v7 = vadd.f32 %v5092_v10, %v5009_v6  ;;  %v6238_v9 = vpop.f32.mrb[53].mxu0 }
 0x4eb   :  { %v5095_v51 = vpop.f32.mrb[54].mxu0 }
 0x4ec   :  { %5098 = vst [vmem:[#allocation11] sm:$0xff] %v5093_v7  ;;  %v6239_v55 = vpop.f32.mrb[55].mxu0 }
 0x4ed   :  { %6918 = shalt.err (!%p6915_p8)
}
 0x4ee   :  { %s6919_s1 = scalar_lea.hbm %s7414_s4, 128 }
 0x4ef   :  { %p6920_p9 = scmp.ne.s32.totalorder %s7414_s4, %s6919_s1  ;;  %p6923_p10 = scmp.lt.u32.totalorder %s6919_s1, %s7414_s4 }
 0x4f1   :  { %p6925_p11 = pnand %p6923_p10, %p6920_p9 }
 0x4f3   :  { %6928 = shalt.err (!%p6925_p11)
}
 0x4f4   :  { %5108 = dma.vmem_to_hbm [thread:$0]  %s5106_s26, 128, %s7414_s4, [#allocation5]  }
 0x4f5   :  { %6935 = dma.done.wait [#allocation5], 128  }
 0x4f6   :  { %6936 = vsyncadd [#allocation5], 4294967168 }
 0x4f7   :  { %5112 = vsyncpa [#allocation4], 1 }
 0x4f8   :  { %5113 = vsyncpa [#allocation7], 1 }
 0x4f9   :  { %5114 = vsyncpa [#allocation10], 1 }
 0x4fa   :  { %5115 = vsyncpa [#allocation5], 1 }

</bundles_post_ra>
